<compile_context>
chip_gen: v7x
topology: tpu7x:2x2x1
jax: 0.10.0
libtpu: 0.0.40
codegen_flags: <defaults>
</compile_context>

<pallas_src>
import jax
import jax.numpy as jnp
from jax import lax
from jax.experimental import pallas as pl
from jax.experimental.pallas import tpu as pltpu

_LANE = 128      # vreg lane width
_SUBLANE = 8     # f32 vreg sublane count

# Above this many padded table rows (users + items) the resident one-hot path
# wastes too much MXU work / VMEM; switch to the HBM row-gather path.
# Per-chip guidance: lower (~1-2K) on v5e (weak f32 MXU), and v7x's 64 MiB VMEM
# caps the resident path earliest.  4K is a conservative default for all chips.
_MAX_RESIDENT_ROWS = 4096


def _round_up(x, m):
    return (x + m - 1) // m * m


def _cdiv(a, b):
    return (a + b - 1) // b


def _vmem_limit_bytes(resident_bytes, per_step_bytes):
    """Explicit scoped-VMEM request: actual footprint + headroom, clamped."""
    est = int((resident_bytes + per_step_bytes) * 1.5) + (8 << 20)
    return max(32 << 20, min(est, 100 << 20))


# ---------------------------------------------------------------------------
# Path A: resident tables + one-hot MXU gather (small tables)
# ---------------------------------------------------------------------------

def _mf_bpr_resident_kernel(uid_ref, iid_ref, u_tab_t_ref, i_tab_t_ref, out_ref):
    """One grid step: scores for an (8, TB) tile of (uid, iid) pairs.

    uid_ref / iid_ref : VMEM (8, TB)  int32  lane-dense index tile
    u_tab_t_ref       : VMEM (Dp, Nu) transposed, zero-padded user table
    i_tab_t_ref       : VMEM (Dp, Ni) transposed, zero-padded item table
    out_ref           : VMEM (8, TB)  float32 scores
    """
    nu = u_tab_t_ref.shape[1]
    ni = i_tab_t_ref.shape[1]
    rows, tb = out_ref.shape

    # Hoisted iotas (broadcast_in_dim is not CSE'd by JAX; build once).
    u_iota = lax.broadcasted_iota(jnp.int32, (nu, tb), 0)
    i_iota = lax.broadcasted_iota(jnp.int32, (ni, tb), 0)

    # Static unroll over the 8 sublane rows: each row is a lane-dense (1, TB)
    # slab of indices -> one-hot -> MXU gather -> sublane reduce.
    for r in range(rows):
        uid = uid_ref[pl.ds(r, 1), :]                       # (1, TB)
        iid = iid_ref[pl.ds(r, 1), :]
        u_oh = (u_iota == uid).astype(u_tab_t_ref.dtype)    # (Nu, TB)
        i_oh = (i_iota == iid).astype(i_tab_t_ref.dtype)    # (Ni, TB)
        # Gather rows lane-major along the batch on the MXU:
        #   (Dp, Nu) @ (Nu, TB) -> (Dp, TB)
        u_rows_t = jnp.dot(u_tab_t_ref[...], u_oh,
                           preferred_element_type=jnp.float32)
        i_rows_t = jnp.dot(i_tab_t_ref[...], i_oh,
                           preferred_element_type=jnp.float32)
        # score[t] = sum_d u[d, t] * i[d, t]  ->  lane-dense (1, TB) store.
        out_ref[pl.ds(r, 1), :] = jnp.sum(u_rows_t * i_rows_t,
                                          axis=0, keepdims=True)


def prepare_resident_tables(user_table, item_table, *, table_dtype=jnp.float32):
    """One-time prep for the resident path (hoist out of the per-call path!).

    Pads the embedding dim to 128 lanes and row counts to a multiple of 128
    (zero padding is exact) and transposes so the in-kernel gather matmul is a
    natural (M, K) @ (K, N).  table_dtype=jnp.bfloat16 halves resident VMEM
    and hits the MXU's native bf16 rate (selection stays exact; the embedding
    values are bf16-rounded).
    """
    n_users, d = user_table.shape
    n_items, d2 = item_table.shape
    assert d == d2
    dp = _round_up(d, _LANE)
    nu = _round_up(n_users, _LANE)
    ni = _round_up(n_items, _LANE)
    u_tab_t = jnp.pad(user_table.astype(table_dtype),
                      ((0, nu - n_users), (0, dp - d))).T   # (Dp, Nu)
    i_tab_t = jnp.pad(item_table.astype(table_dtype),
                      ((0, ni - n_items), (0, dp - d))).T   # (Dp, Ni)
    return u_tab_t, i_tab_t


def mf_bpr_forward_resident(uid, iid, u_tab_t, i_tab_t, *, tb=512):
    """Small-table path.  tb = lane width of one tile (8*tb pairs per step)."""
    dp, nu = u_tab_t.shape
    dp2, ni = i_tab_t.shape
    assert dp == dp2
    assert tb % _LANE == 0
    b = uid.shape[0]

    # Adapt the tile down for tiny batches so we don't pad 8*tb >> b.
    tb_eff = max(_LANE, min(tb, _round_up(_cdiv(b, _SUBLANE), _LANE)))
    per_step = _SUBLANE * tb_eff
    g = _cdiv(b, per_step)
    bp = g * per_step
    cols = g * tb_eff

    # No clamp needed on this path: an out-of-range index matches no one-hot
    # row and simply scores 0 (there is no indexed memory access here).
    uid2d = jnp.pad(uid.astype(jnp.int32), (0, bp - b)).reshape(_SUBLANE, cols)
    iid2d = jnp.pad(iid.astype(jnp.int32), (0, bp - b)).reshape(_SUBLANE, cols)

    itemsize = jnp.dtype(u_tab_t.dtype).itemsize
    resident_bytes = (u_tab_t.size + i_tab_t.size) * itemsize
    per_step_bytes = (
        3 * 2 * _SUBLANE * tb_eff * 4          # double-buffered idx/out blocks
        + (nu + ni) * tb_eff * itemsize        # one-hot intermediates
        + 4 * dp * tb_eff * 4                  # gathered rows + products
    )
    vmem_limit = _vmem_limit_bytes(resident_bytes, per_step_bytes)

    def build(whole_vmem_tables):
        idx_spec = pl.BlockSpec((_SUBLANE, tb_eff), lambda i: (0, i))
        if whole_vmem_tables:
            # Whole tables placed in VMEM once: no per-step pipelining, no
            # double-buffering of a block that never changes.
            tab_specs = [pl.BlockSpec(memory_space=pltpu.MemorySpace.VMEM),
                         pl.BlockSpec(memory_space=pltpu.MemorySpace.VMEM)]
        else:
            # Compatibility fallback: blocked with a constant index map
            # (functionally identical; may double-buffer the tables).
            tab_specs = [pl.BlockSpec((dp, nu), lambda i: (0, 0)),
                         pl.BlockSpec((dp, ni), lambda i: (0, 0))]
        return pl.pallas_call(
            _mf_bpr_resident_kernel,
            out_shape=jax.ShapeDtypeStruct((_SUBLANE, cols), jnp.float32),
            grid_spec=pltpu.PrefetchScalarGridSpec(
                num_scalar_prefetch=0,
                grid=(g,),
                in_specs=[idx_spec, idx_spec] + tab_specs,
                out_specs=pl.BlockSpec((_SUBLANE, tb_eff), lambda i: (0, i)),
            ),
            compiler_params=pltpu.CompilerParams(
                dimension_semantics=("parallel",),
                vmem_limit_bytes=vmem_limit,
            ),
        )

    try:
        out = build(True)(uid2d, iid2d, u_tab_t, i_tab_t)
    except Exception:  # compatibility fallback for the untiled-VMEM table spec
        out = build(False)(uid2d, iid2d, u_tab_t, i_tab_t)

    return out.reshape(-1)[:b]


# ---------------------------------------------------------------------------
# Path B: HBM-resident tables + per-row DMA gather (large tables)
# ---------------------------------------------------------------------------

def _mf_bpr_gather_kernel(uid_sref, iid_sref, u_hbm, i_hbm, out_ref,
                          u_buf, i_buf, sem):
    """One grid step: DMA-gather TR user rows + TR item rows, then reduce.

    uid_sref / iid_sref : SMEM (Bp,) int32  scalar-prefetched index arrays
    u_hbm / i_hbm       : HBM  (Nu, Dp) / (Ni, Dp) float32 tables (pl.ANY)
    out_ref             : VMEM (TR, 1)  float32 scores for this tile
    u_buf / i_buf       : VMEM (TR, Dp) float32 gathered rows
    sem                 : DMA semaphores, shape (2,)
    """
    tr = u_buf.shape[0]
    base = pl.program_id(0) * tr

    # Issue all 2*TR row copies; they run concurrently on the DMA engines.
    @pl.loop(0, tr)
    def _(t):
        u_row = uid_sref[base + t]
        i_row = iid_sref[base + t]
        pltpu.make_async_copy(u_hbm.at[pl.ds(u_row, 1), :],
                              u_buf.at[pl.ds(t, 1), :], sem.at[0]).start()
        pltpu.make_async_copy(i_hbm.at[pl.ds(i_row, 1), :],
                              i_buf.at[pl.ds(t, 1), :], sem.at[1]).start()

    # Drain: one matching single-row wait per issued copy.
    @pl.loop(0, tr)
    def _(t):
        pltpu.make_async_copy(u_hbm.at[pl.ds(0, 1), :],
                              u_buf.at[pl.ds(0, 1), :], sem.at[0]).wait()
        pltpu.make_async_copy(i_hbm.at[pl.ds(0, 1), :],
                              i_buf.at[pl.ds(0, 1), :], sem.at[1]).wait()

    # score[t] = sum_d u[t, d] * i[t, d]   (DMA-bound; the reduce is filler)
    out_ref[...] = jnp.sum(u_buf[...] * i_buf[...], axis=1, keepdims=True)


def prepare_gather_tables(user_table, item_table):
    """One-time prep for the HBM row-gather path: pad the embedding dim to a
    full 128-lane vreg (rows stay un-padded; only valid rows are ever DMA'd)."""
    n_users, d = user_table.shape
    n_items, d2 = item_table.shape
    assert d == d2
    dp = _round_up(d, _LANE)
    u_tab = jnp.pad(user_table.astype(jnp.float32), ((0, 0), (0, dp - d)))
    i_tab = jnp.pad(item_table.astype(jnp.float32), ((0, 0), (0, dp - d)))
    return u_tab, i_tab   # (Nu, Dp), (Ni, Dp)


def mf_bpr_forward_gather(uid, iid, u_tab, i_tab, *, tr=256):
    """Large-table path: tables stay in HBM, rows are DMA-gathered per tile."""
    n_users, dp = u_tab.shape
    n_items, dp2 = i_tab.shape
    assert dp == dp2
    assert tr % _LANE == 0
    b = uid.shape[0]

    tr_eff = max(_LANE, min(tr, _round_up(b, _LANE)))
    g = _cdiv(b, tr_eff)
    bp = g * tr_eff

    # Clamp: DMA reads are real memory accesses (unlike the one-hot path), so
    # indices must be in range.  Padded tail entries gather row 0 harmlessly.
    uid_p = jnp.pad(jnp.clip(uid.astype(jnp.int32), 0, n_users - 1), (0, bp - b))
    iid_p = jnp.pad(jnp.clip(iid.astype(jnp.int32), 0, n_items - 1), (0, bp - b))

    per_step_bytes = 2 * tr_eff * dp * 4 + 2 * 2 * tr_eff * 4

    out = pl.pallas_call(
        _mf_bpr_gather_kernel,
        out_shape=jax.ShapeDtypeStruct((bp, 1), jnp.float32),
        grid_spec=pltpu.PrefetchScalarGridSpec(
            num_scalar_prefetch=2,                 # uid, iid -> SMEM
            grid=(g,),
            in_specs=[
                pl.BlockSpec(memory_space=pl.ANY),   # user table stays in HBM
                pl.BlockSpec(memory_space=pl.ANY),   # item table stays in HBM
            ],
            out_specs=pl.BlockSpec((tr_eff, 1), lambda i, uid_r, iid_r: (i, 0)),
            scratch_shapes=[
                pltpu.VMEM((tr_eff, dp), jnp.float32),
                pltpu.VMEM((tr_eff, dp), jnp.float32),
                pltpu.SemaphoreType.DMA((2,)),
            ],
        ),
        compiler_params=pltpu.CompilerParams(
            dimension_semantics=("parallel",),
            vmem_limit_bytes=_vmem_limit_bytes(0, per_step_bytes),
        ),
    )(uid_p, iid_p, u_tab, i_tab)

    return out.reshape(-1)[:b]


# ---------------------------------------------------------------------------
# Dispatcher (convenience; in a real model, do the prepare_* once and cache it)
# ---------------------------------------------------------------------------

def mf_bpr_forward(uid, iid, user_table, item_table, *, use_gather=None,
                   tb=512, tr=256, table_dtype=jnp.float32):
    n_users, _ = user_table.shape
    n_items, _ = item_table.shape
    if use_gather is None:
        padded_rows = _round_up(n_users, _LANE) + _round_up(n_items, _LANE)
        use_gather = padded_rows > _MAX_RESIDENT_ROWS
    if use_gather:
        u_tab, i_tab = prepare_gather_tables(user_table, item_table)
        return mf_bpr_forward_gather(uid, iid, u_tab, i_tab, tr=tr)
    u_tab_t, i_tab_t = prepare_resident_tables(user_table, item_table,
                                               table_dtype=table_dtype)
    return mf_bpr_forward_resident(uid, iid, u_tab_t, i_tab_t, tb=tb)


if __name__ == "__main__":
    # --- spec-sized test: resident one-hot path -----------------------------
    n_users, n_items, embed_dim, batch = 32, 48, 64, 8
    key = jax.random.PRNGKey(0)
    k_u, k_i, k_uid, k_iid = jax.random.split(key, 4)

    # nn.Embedding default init: N(0, 1)
    user_table = jax.random.normal(k_u, (n_users, embed_dim), dtype=jnp.float32)
    item_table = jax.random.normal(k_i, (n_items, embed_dim), dtype=jnp.float32)
    uid = jax.random.randint(k_uid, (batch,), 0, n_users, dtype=jnp.int32)
    iid = jax.random.randint(k_iid, (batch,), 0, n_items, dtype=jnp.int32)

    u_res, i_res = prepare_resident_tables(user_table, item_table)  # hoisted
    scores = jax.block_until_ready(
        mf_bpr_forward_resident(uid, iid, u_res, i_res))
    ref = jnp.sum(user_table[uid] * item_table[iid], axis=1)
    assert scores.shape == (batch,)
    assert jnp.allclose(scores, ref, rtol=1e-5, atol=1e-5)

    # --- exercise the HBM DMA row-gather (large-table) path -----------------
    k_u2, k_i2, k_uid2, k_iid2 = jax.random.split(jax.random.PRNGKey(1), 4)
    n_users2, n_items2, batch2 = 300, 200, 37
    user_table2 = jax.random.normal(k_u2, (n_users2, embed_dim), jnp.float32)
    item_table2 = jax.random.normal(k_i2, (n_items2, embed_dim), jnp.float32)
    uid2 = jax.random.randint(k_uid2, (batch2,), 0, n_users2, dtype=jnp.int32)
    iid2 = jax.random.randint(k_iid2, (batch2,), 0, n_items2, dtype=jnp.int32)

    u_g, i_g = prepare_gather_tables(user_table2, item_table2)  # hoisted
    scores2 = jax.block_until_ready(
        mf_bpr_forward_gather(uid2, iid2, u_g, i_g))
    ref2 = jnp.sum(user_table2[uid2] * item_table2[iid2], axis=1)
    assert scores2.shape == (batch2,)
    assert jnp.allclose(scores2, ref2, rtol=1e-5, atol=1e-4)

    print("KERNEL_OK")
</pallas_src>

<mosaic_0001>
module attributes {stable_mosaic.version = 11 : i64} {
  func.func @_mf_bpr_resident_kernel(%arg0: i32, %arg1: memref<8x128xi32, #tpu.memory_space<vmem>>, %arg2: memref<8x128xi32, #tpu.memory_space<vmem>>, %arg3: memref<128x128xf32, #tpu.memory_space<vmem>>, %arg4: memref<128x128xf32, #tpu.memory_space<vmem>>, %arg5: memref<8x128xf32, #tpu.memory_space<vmem>>) attributes {dimension_semantics = [#tpu.dimension_semantics<parallel>], iteration_bounds = array<i64: 1>, scalar_prefetch = 0 : i64, scratch_operands = 0 : i64, tpu.core_type = #tpu.core_type<tc>, window_params = [{transform_indices = @transform_0, window_bounds = array<i64: 8, 128>}, {transform_indices = @transform_1, window_bounds = array<i64: 8, 128>}, {pipeline_mode = #tpu.pipeline_mode<synchronous>, transform_indices = @transform_2, window_bounds = array<i64: 128, 128>}, {pipeline_mode = #tpu.pipeline_mode<synchronous>, transform_indices = @transform_3, window_bounds = array<i64: 128, 128>}, {transform_indices = @transform_4, window_bounds = array<i64: 8, 128>}]} {
    %0 = tpu.iota {dimensions = array<i32: 0>} : vector<128x128xi32>
    %1 = tpu.iota {dimensions = array<i32: 0>} : vector<128x128xi32>
    %c0 = arith.constant 0 : index
    %c0_0 = arith.constant 0 : index
    %2 = vector.load %arg1[%c0, %c0_0] : memref<8x128xi32, #tpu.memory_space<vmem>>, vector<1x128xi32>
    %c0_1 = arith.constant 0 : index
    %c0_2 = arith.constant 0 : index
    %3 = vector.load %arg2[%c0_1, %c0_2] : memref<8x128xi32, #tpu.memory_space<vmem>>, vector<1x128xi32>
    %4 = vector.broadcast %2 : vector<1x128xi32> to vector<128x128xi32>
    %5 = arith.cmpi eq, %0, %4 : vector<128x128xi32>
    %6 = arith.extui %5 : vector<128x128xi1> to vector<128x128xi32>
    %7 = arith.sitofp %6 : vector<128x128xi32> to vector<128x128xf32>
    %8 = vector.broadcast %3 : vector<1x128xi32> to vector<128x128xi32>
    %9 = arith.cmpi eq, %1, %8 : vector<128x128xi32>
    %10 = arith.extui %9 : vector<128x128xi1> to vector<128x128xi32>
    %11 = arith.sitofp %10 : vector<128x128xi32> to vector<128x128xf32>
    %c0_3 = arith.constant 0 : index
    %c0_4 = arith.constant 0 : index
    %12 = vector.load %arg3[%c0_3, %c0_4] : memref<128x128xf32, #tpu.memory_space<vmem>>, vector<128x128xf32>
    %cst = arith.constant dense<0.000000e+00> : vector<128x128xf32>
    %13 = tpu.matmul %12, %7, %cst {dimension_numbers = #tpu.dot_dimension_numbers<[1], [0], [0], [1], [0, 0, 1, 1], [], []>} : vector<128x128xf32>, vector<128x128xf32>, vector<128x128xf32> -> vector<128x128xf32>
    %c0_5 = arith.constant 0 : index
    %c0_6 = arith.constant 0 : index
    %14 = vector.load %arg4[%c0_5, %c0_6] : memref<128x128xf32, #tpu.memory_space<vmem>>, vector<128x128xf32>
    %cst_7 = arith.constant dense<0.000000e+00> : vector<128x128xf32>
    %15 = tpu.matmul %14, %11, %cst_7 {dimension_numbers = #tpu.dot_dimension_numbers<[1], [0], [0], [1], [0, 0, 1, 1], [], []>} : vector<128x128xf32>, vector<128x128xf32>, vector<128x128xf32> -> vector<128x128xf32>
    %16 = arith.mulf %13, %15 : vector<128x128xf32>
    %cst_8 = arith.constant dense<0.000000e+00> : vector<128xf32>
    %17 = vector.multi_reduction <add>, %16, %cst_8 [0] : vector<128x128xf32> to vector<128xf32>
    %18 = vector.shape_cast %17 : vector<128xf32> to vector<1x128xf32>
    %c0_9 = arith.constant 0 : index
    %c0_10 = arith.constant 0 : index
    %19 = vector.load %arg5[%c0_9, %c0_10] : memref<8x128xf32, #tpu.memory_space<vmem>>, vector<1x128xf32>
    tpu.vector_store %arg5[%c0_9, %c0_10], %18 {strides = array<i32>} : memref<8x128xf32, #tpu.memory_space<vmem>>, vector<1x128xf32>,
    %c1 = arith.constant 1 : index
    %c0_11 = arith.constant 0 : index
    %20 = vector.load %arg1[%c1, %c0_11] : memref<8x128xi32, #tpu.memory_space<vmem>>, vector<1x128xi32>
    %c1_12 = arith.constant 1 : index
    %c0_13 = arith.constant 0 : index
    %21 = vector.load %arg2[%c1_12, %c0_13] : memref<8x128xi32, #tpu.memory_space<vmem>>, vector<1x128xi32>
    %22 = vector.broadcast %20 : vector<1x128xi32> to vector<128x128xi32>
    %23 = arith.cmpi eq, %0, %22 : vector<128x128xi32>
    %24 = arith.extui %23 : vector<128x128xi1> to vector<128x128xi32>
    %25 = arith.sitofp %24 : vector<128x128xi32> to vector<128x128xf32>
    %26 = vector.broadcast %21 : vector<1x128xi32> to vector<128x128xi32>
    %27 = arith.cmpi eq, %1, %26 : vector<128x128xi32>
    %28 = arith.extui %27 : vector<128x128xi1> to vector<128x128xi32>
    %29 = arith.sitofp %28 : vector<128x128xi32> to vector<128x128xf32>
    %c0_14 = arith.constant 0 : index
    %c0_15 = arith.constant 0 : index
    %30 = vector.load %arg3[%c0_14, %c0_15] : memref<128x128xf32, #tpu.memory_space<vmem>>, vector<128x128xf32>
    %cst_16 = arith.constant dense<0.000000e+00> : vector<128x128xf32>
    %31 = tpu.matmul %30, %25, %cst_16 {dimension_numbers = #tpu.dot_dimension_numbers<[1], [0], [0], [1], [0, 0, 1, 1], [], []>} : vector<128x128xf32>, vector<128x128xf32>, vector<128x128xf32> -> vector<128x128xf32>
    %c0_17 = arith.constant 0 : index
    %c0_18 = arith.constant 0 : index
    %32 = vector.load %arg4[%c0_17, %c0_18] : memref<128x128xf32, #tpu.memory_space<vmem>>, vector<128x128xf32>
    %cst_19 = arith.constant dense<0.000000e+00> : vector<128x128xf32>
    %33 = tpu.matmul %32, %29, %cst_19 {dimension_numbers = #tpu.dot_dimension_numbers<[1], [0], [0], [1], [0, 0, 1, 1], [], []>} : vector<128x128xf32>, vector<128x128xf32>, vector<128x128xf32> -> vector<128x128xf32>
    %34 = arith.mulf %31, %33 : vector<128x128xf32>
    %cst_20 = arith.constant dense<0.000000e+00> : vector<128xf32>
    %35 = vector.multi_reduction <add>, %34, %cst_20 [0] : vector<128x128xf32> to vector<128xf32>
    %36 = vector.shape_cast %35 : vector<128xf32> to vector<1x128xf32>
    %c1_21 = arith.constant 1 : index
    %c0_22 = arith.constant 0 : index
    %37 = vector.load %arg5[%c1_21, %c0_22] : memref<8x128xf32, #tpu.memory_space<vmem>>, vector<1x128xf32>
    tpu.vector_store %arg5[%c1_21, %c0_22], %36 {strides = array<i32>} : memref<8x128xf32, #tpu.memory_space<vmem>>, vector<1x128xf32>,
    %c2 = arith.constant 2 : index
    %c0_23 = arith.constant 0 : index
    %38 = vector.load %arg1[%c2, %c0_23] : memref<8x128xi32, #tpu.memory_space<vmem>>, vector<1x128xi32>
    %c2_24 = arith.constant 2 : index
    %c0_25 = arith.constant 0 : index
    %39 = vector.load %arg2[%c2_24, %c0_25] : memref<8x128xi32, #tpu.memory_space<vmem>>, vector<1x128xi32>
    %40 = vector.broadcast %38 : vector<1x128xi32> to vector<128x128xi32>
    %41 = arith.cmpi eq, %0, %40 : vector<128x128xi32>
    %42 = arith.extui %41 : vector<128x128xi1> to vector<128x128xi32>
    %43 = arith.sitofp %42 : vector<128x128xi32> to vector<128x128xf32>
    %44 = vector.broadcast %39 : vector<1x128xi32> to vector<128x128xi32>
    %45 = arith.cmpi eq, %1, %44 : vector<128x128xi32>
    %46 = arith.extui %45 : vector<128x128xi1> to vector<128x128xi32>
    %47 = arith.sitofp %46 : vector<128x128xi32> to vector<128x128xf32>
    %c0_26 = arith.constant 0 : index
    %c0_27 = arith.constant 0 : index
    %48 = vector.load %arg3[%c0_26, %c0_27] : memref<128x128xf32, #tpu.memory_space<vmem>>, vector<128x128xf32>
    %cst_28 = arith.constant dense<0.000000e+00> : vector<128x128xf32>
    %49 = tpu.matmul %48, %43, %cst_28 {dimension_numbers = #tpu.dot_dimension_numbers<[1], [0], [0], [1], [0, 0, 1, 1], [], []>} : vector<128x128xf32>, vector<128x128xf32>, vector<128x128xf32> -> vector<128x128xf32>
    %c0_29 = arith.constant 0 : index
    %c0_30 = arith.constant 0 : index
    %50 = vector.load %arg4[%c0_29, %c0_30] : memref<128x128xf32, #tpu.memory_space<vmem>>, vector<128x128xf32>
    %cst_31 = arith.constant dense<0.000000e+00> : vector<128x128xf32>
    %51 = tpu.matmul %50, %47, %cst_31 {dimension_numbers = #tpu.dot_dimension_numbers<[1], [0], [0], [1], [0, 0, 1, 1], [], []>} : vector<128x128xf32>, vector<128x128xf32>, vector<128x128xf32> -> vector<128x128xf32>
    %52 = arith.mulf %49, %51 : vector<128x128xf32>
    %cst_32 = arith.constant dense<0.000000e+00> : vector<128xf32>
    %53 = vector.multi_reduction <add>, %52, %cst_32 [0] : vector<128x128xf32> to vector<128xf32>
    %54 = vector.shape_cast %53 : vector<128xf32> to vector<1x128xf32>
    %c2_33 = arith.constant 2 : index
    %c0_34 = arith.constant 0 : index
    %55 = vector.load %arg5[%c2_33, %c0_34] : memref<8x128xf32, #tpu.memory_space<vmem>>, vector<1x128xf32>
    tpu.vector_store %arg5[%c2_33, %c0_34], %54 {strides = array<i32>} : memref<8x128xf32, #tpu.memory_space<vmem>>, vector<1x128xf32>,
    %c3 = arith.constant 3 : index
    %c0_35 = arith.constant 0 : index
    %56 = vector.load %arg1[%c3, %c0_35] : memref<8x128xi32, #tpu.memory_space<vmem>>, vector<1x128xi32>
    %c3_36 = arith.constant 3 : index
    %c0_37 = arith.constant 0 : index
    %57 = vector.load %arg2[%c3_36, %c0_37] : memref<8x128xi32, #tpu.memory_space<vmem>>, vector<1x128xi32>
    %58 = vector.broadcast %56 : vector<1x128xi32> to vector<128x128xi32>
    %59 = arith.cmpi eq, %0, %58 : vector<128x128xi32>
    %60 = arith.extui %59 : vector<128x128xi1> to vector<128x128xi32>
    %61 = arith.sitofp %60 : vector<128x128xi32> to vector<128x128xf32>
    %62 = vector.broadcast %57 : vector<1x128xi32> to vector<128x128xi32>
    %63 = arith.cmpi eq, %1, %62 : vector<128x128xi32>
    %64 = arith.extui %63 : vector<128x128xi1> to vector<128x128xi32>
    %65 = arith.sitofp %64 : vector<128x128xi32> to vector<128x128xf32>
    %c0_38 = arith.constant 0 : index
    %c0_39 = arith.constant 0 : index
    %66 = vector.load %arg3[%c0_38, %c0_39] : memref<128x128xf32, #tpu.memory_space<vmem>>, vector<128x128xf32>
    %cst_40 = arith.constant dense<0.000000e+00> : vector<128x128xf32>
    %67 = tpu.matmul %66, %61, %cst_40 {dimension_numbers = #tpu.dot_dimension_numbers<[1], [0], [0], [1], [0, 0, 1, 1], [], []>} : vector<128x128xf32>, vector<128x128xf32>, vector<128x128xf32> -> vector<128x128xf32>
    %c0_41 = arith.constant 0 : index
    %c0_42 = arith.constant 0 : index
    %68 = vector.load %arg4[%c0_41, %c0_42] : memref<128x128xf32, #tpu.memory_space<vmem>>, vector<128x128xf32>
    %cst_43 = arith.constant dense<0.000000e+00> : vector<128x128xf32>
    %69 = tpu.matmul %68, %65, %cst_43 {dimension_numbers = #tpu.dot_dimension_numbers<[1], [0], [0], [1], [0, 0, 1, 1], [], []>} : vector<128x128xf32>, vector<128x128xf32>, vector<128x128xf32> -> vector<128x128xf32>
    %70 = arith.mulf %67, %69 : vector<128x128xf32>
    %cst_44 = arith.constant dense<0.000000e+00> : vector<128xf32>
    %71 = vector.multi_reduction <add>, %70, %cst_44 [0] : vector<128x128xf32> to vector<128xf32>
    %72 = vector.shape_cast %71 : vector<128xf32> to vector<1x128xf32>
    %c3_45 = arith.constant 3 : index
    %c0_46 = arith.constant 0 : index
    %73 = vector.load %arg5[%c3_45, %c0_46] : memref<8x128xf32, #tpu.memory_space<vmem>>, vector<1x128xf32>
    tpu.vector_store %arg5[%c3_45, %c0_46], %72 {strides = array<i32>} : memref<8x128xf32, #tpu.memory_space<vmem>>, vector<1x128xf32>,
    %c4 = arith.constant 4 : index
    %c0_47 = arith.constant 0 : index
    %74 = vector.load %arg1[%c4, %c0_47] : memref<8x128xi32, #tpu.memory_space<vmem>>, vector<1x128xi32>
    %c4_48 = arith.constant 4 : index
    %c0_49 = arith.constant 0 : index
    %75 = vector.load %arg2[%c4_48, %c0_49] : memref<8x128xi32, #tpu.memory_space<vmem>>, vector<1x128xi32>
    %76 = vector.broadcast %74 : vector<1x128xi32> to vector<128x128xi32>
    %77 = arith.cmpi eq, %0, %76 : vector<128x128xi32>
    %78 = arith.extui %77 : vector<128x128xi1> to vector<128x128xi32>
    %79 = arith.sitofp %78 : vector<128x128xi32> to vector<128x128xf32>
    %80 = vector.broadcast %75 : vector<1x128xi32> to vector<128x128xi32>
    %81 = arith.cmpi eq, %1, %80 : vector<128x128xi32>
    %82 = arith.extui %81 : vector<128x128xi1> to vector<128x128xi32>
    %83 = arith.sitofp %82 : vector<128x128xi32> to vector<128x128xf32>
    %c0_50 = arith.constant 0 : index
    %c0_51 = arith.constant 0 : index
    %84 = vector.load %arg3[%c0_50, %c0_51] : memref<128x128xf32, #tpu.memory_space<vmem>>, vector<128x128xf32>
    %cst_52 = arith.constant dense<0.000000e+00> : vector<128x128xf32>
    %85 = tpu.matmul %84, %79, %cst_52 {dimension_numbers = #tpu.dot_dimension_numbers<[1], [0], [0], [1], [0, 0, 1, 1], [], []>} : vector<128x128xf32>, vector<128x128xf32>, vector<128x128xf32> -> vector<128x128xf32>
    %c0_53 = arith.constant 0 : index
    %c0_54 = arith.constant 0 : index
    %86 = vector.load %arg4[%c0_53, %c0_54] : memref<128x128xf32, #tpu.memory_space<vmem>>, vector<128x128xf32>
    %cst_55 = arith.constant dense<0.000000e+00> : vector<128x128xf32>
    %87 = tpu.matmul %86, %83, %cst_55 {dimension_numbers = #tpu.dot_dimension_numbers<[1], [0], [0], [1], [0, 0, 1, 1], [], []>} : vector<128x128xf32>, vector<128x128xf32>, vector<128x128xf32> -> vector<128x128xf32>
    %88 = arith.mulf %85, %87 : vector<128x128xf32>
    %cst_56 = arith.constant dense<0.000000e+00> : vector<128xf32>
    %89 = vector.multi_reduction <add>, %88, %cst_56 [0] : vector<128x128xf32> to vector<128xf32>
    %90 = vector.shape_cast %89 : vector<128xf32> to vector<1x128xf32>
    %c4_57 = arith.constant 4 : index
    %c0_58 = arith.constant 0 : index
    %91 = vector.load %arg5[%c4_57, %c0_58] : memref<8x128xf32, #tpu.memory_space<vmem>>, vector<1x128xf32>
    tpu.vector_store %arg5[%c4_57, %c0_58], %90 {strides = array<i32>} : memref<8x128xf32, #tpu.memory_space<vmem>>, vector<1x128xf32>,
    %c5 = arith.constant 5 : index
    %c0_59 = arith.constant 0 : index
    %92 = vector.load %arg1[%c5, %c0_59] : memref<8x128xi32, #tpu.memory_space<vmem>>, vector<1x128xi32>
    %c5_60 = arith.constant 5 : index
    %c0_61 = arith.constant 0 : index
    %93 = vector.load %arg2[%c5_60, %c0_61] : memref<8x128xi32, #tpu.memory_space<vmem>>, vector<1x128xi32>
    %94 = vector.broadcast %92 : vector<1x128xi32> to vector<128x128xi32>
    %95 = arith.cmpi eq, %0, %94 : vector<128x128xi32>
    %96 = arith.extui %95 : vector<128x128xi1> to vector<128x128xi32>
    %97 = arith.sitofp %96 : vector<128x128xi32> to vector<128x128xf32>
    %98 = vector.broadcast %93 : vector<1x128xi32> to vector<128x128xi32>
    %99 = arith.cmpi eq, %1, %98 : vector<128x128xi32>
    %100 = arith.extui %99 : vector<128x128xi1> to vector<128x128xi32>
    %101 = arith.sitofp %100 : vector<128x128xi32> to vector<128x128xf32>
    %c0_62 = arith.constant 0 : index
    %c0_63 = arith.constant 0 : index
    %102 = vector.load %arg3[%c0_62, %c0_63] : memref<128x128xf32, #tpu.memory_space<vmem>>, vector<128x128xf32>
    %cst_64 = arith.constant dense<0.000000e+00> : vector<128x128xf32>
    %103 = tpu.matmul %102, %97, %cst_64 {dimension_numbers = #tpu.dot_dimension_numbers<[1], [0], [0], [1], [0, 0, 1, 1], [], []>} : vector<128x128xf32>, vector<128x128xf32>, vector<128x128xf32> -> vector<128x128xf32>
    %c0_65 = arith.constant 0 : index
    %c0_66 = arith.constant 0 : index
    %104 = vector.load %arg4[%c0_65, %c0_66] : memref<128x128xf32, #tpu.memory_space<vmem>>, vector<128x128xf32>
    %cst_67 = arith.constant dense<0.000000e+00> : vector<128x128xf32>
    %105 = tpu.matmul %104, %101, %cst_67 {dimension_numbers = #tpu.dot_dimension_numbers<[1], [0], [0], [1], [0, 0, 1, 1], [], []>} : vector<128x128xf32>, vector<128x128xf32>, vector<128x128xf32> -> vector<128x128xf32>
    %106 = arith.mulf %103, %105 : vector<128x128xf32>
    %cst_68 = arith.constant dense<0.000000e+00> : vector<128xf32>
    %107 = vector.multi_reduction <add>, %106, %cst_68 [0] : vector<128x128xf32> to vector<128xf32>
    %108 = vector.shape_cast %107 : vector<128xf32> to vector<1x128xf32>
    %c5_69 = arith.constant 5 : index
    %c0_70 = arith.constant 0 : index
    %109 = vector.load %arg5[%c5_69, %c0_70] : memref<8x128xf32, #tpu.memory_space<vmem>>, vector<1x128xf32>
    tpu.vector_store %arg5[%c5_69, %c0_70], %108 {strides = array<i32>} : memref<8x128xf32, #tpu.memory_space<vmem>>, vector<1x128xf32>,
    %c6 = arith.constant 6 : index
    %c0_71 = arith.constant 0 : index
    %110 = vector.load %arg1[%c6, %c0_71] : memref<8x128xi32, #tpu.memory_space<vmem>>, vector<1x128xi32>
    %c6_72 = arith.constant 6 : index
    %c0_73 = arith.constant 0 : index
    %111 = vector.load %arg2[%c6_72, %c0_73] : memref<8x128xi32, #tpu.memory_space<vmem>>, vector<1x128xi32>
    %112 = vector.broadcast %110 : vector<1x128xi32> to vector<128x128xi32>
    %113 = arith.cmpi eq, %0, %112 : vector<128x128xi32>
    %114 = arith.extui %113 : vector<128x128xi1> to vector<128x128xi32>
    %115 = arith.sitofp %114 : vector<128x128xi32> to vector<128x128xf32>
    %116 = vector.broadcast %111 : vector<1x128xi32> to vector<128x128xi32>
    %117 = arith.cmpi eq, %1, %116 : vector<128x128xi32>
    %118 = arith.extui %117 : vector<128x128xi1> to vector<128x128xi32>
    %119 = arith.sitofp %118 : vector<128x128xi32> to vector<128x128xf32>
    %c0_74 = arith.constant 0 : index
    %c0_75 = arith.constant 0 : index
    %120 = vector.load %arg3[%c0_74, %c0_75] : memref<128x128xf32, #tpu.memory_space<vmem>>, vector<128x128xf32>
    %cst_76 = arith.constant dense<0.000000e+00> : vector<128x128xf32>
    %121 = tpu.matmul %120, %115, %cst_76 {dimension_numbers = #tpu.dot_dimension_numbers<[1], [0], [0], [1], [0, 0, 1, 1], [], []>} : vector<128x128xf32>, vector<128x128xf32>, vector<128x128xf32> -> vector<128x128xf32>
    %c0_77 = arith.constant 0 : index
    %c0_78 = arith.constant 0 : index
    %122 = vector.load %arg4[%c0_77, %c0_78] : memref<128x128xf32, #tpu.memory_space<vmem>>, vector<128x128xf32>
    %cst_79 = arith.constant dense<0.000000e+00> : vector<128x128xf32>
    %123 = tpu.matmul %122, %119, %cst_79 {dimension_numbers = #tpu.dot_dimension_numbers<[1], [0], [0], [1], [0, 0, 1, 1], [], []>} : vector<128x128xf32>, vector<128x128xf32>, vector<128x128xf32> -> vector<128x128xf32>
    %124 = arith.mulf %121, %123 : vector<128x128xf32>
    %cst_80 = arith.constant dense<0.000000e+00> : vector<128xf32>
    %125 = vector.multi_reduction <add>, %124, %cst_80 [0] : vector<128x128xf32> to vector<128xf32>
    %126 = vector.shape_cast %125 : vector<128xf32> to vector<1x128xf32>
    %c6_81 = arith.constant 6 : index
    %c0_82 = arith.constant 0 : index
    %127 = vector.load %arg5[%c6_81, %c0_82] : memref<8x128xf32, #tpu.memory_space<vmem>>, vector<1x128xf32>
    tpu.vector_store %arg5[%c6_81, %c0_82], %126 {strides = array<i32>} : memref<8x128xf32, #tpu.memory_space<vmem>>, vector<1x128xf32>,
    %c7 = arith.constant 7 : index
    %c0_83 = arith.constant 0 : index
    %128 = vector.load %arg1[%c7, %c0_83] : memref<8x128xi32, #tpu.memory_space<vmem>>, vector<1x128xi32>
    %c7_84 = arith.constant 7 : index
    %c0_85 = arith.constant 0 : index
    %129 = vector.load %arg2[%c7_84, %c0_85] : memref<8x128xi32, #tpu.memory_space<vmem>>, vector<1x128xi32>
    %130 = vector.broadcast %128 : vector<1x128xi32> to vector<128x128xi32>
    %131 = arith.cmpi eq, %0, %130 : vector<128x128xi32>
    %132 = arith.extui %131 : vector<128x128xi1> to vector<128x128xi32>
    %133 = arith.sitofp %132 : vector<128x128xi32> to vector<128x128xf32>
    %134 = vector.broadcast %129 : vector<1x128xi32> to vector<128x128xi32>
    %135 = arith.cmpi eq, %1, %134 : vector<128x128xi32>
    %136 = arith.extui %135 : vector<128x128xi1> to vector<128x128xi32>
    %137 = arith.sitofp %136 : vector<128x128xi32> to vector<128x128xf32>
    %c0_86 = arith.constant 0 : index
    %c0_87 = arith.constant 0 : index
    %138 = vector.load %arg3[%c0_86, %c0_87] : memref<128x128xf32, #tpu.memory_space<vmem>>, vector<128x128xf32>
    %cst_88 = arith.constant dense<0.000000e+00> : vector<128x128xf32>
    %139 = tpu.matmul %138, %133, %cst_88 {dimension_numbers = #tpu.dot_dimension_numbers<[1], [0], [0], [1], [0, 0, 1, 1], [], []>} : vector<128x128xf32>, vector<128x128xf32>, vector<128x128xf32> -> vector<128x128xf32>
    %c0_89 = arith.constant 0 : index
    %c0_90 = arith.constant 0 : index
    %140 = vector.load %arg4[%c0_89, %c0_90] : memref<128x128xf32, #tpu.memory_space<vmem>>, vector<128x128xf32>
    %cst_91 = arith.constant dense<0.000000e+00> : vector<128x128xf32>
    %141 = tpu.matmul %140, %137, %cst_91 {dimension_numbers = #tpu.dot_dimension_numbers<[1], [0], [0], [1], [0, 0, 1, 1], [], []>} : vector<128x128xf32>, vector<128x128xf32>, vector<128x128xf32> -> vector<128x128xf32>
    %142 = arith.mulf %139, %141 : vector<128x128xf32>
    %cst_92 = arith.constant dense<0.000000e+00> : vector<128xf32>
    %143 = vector.multi_reduction <add>, %142, %cst_92 [0] : vector<128x128xf32> to vector<128xf32>
    %144 = vector.shape_cast %143 : vector<128xf32> to vector<1x128xf32>
    %c7_93 = arith.constant 7 : index
    %c0_94 = arith.constant 0 : index
    %145 = vector.load %arg5[%c7_93, %c0_94] : memref<8x128xf32, #tpu.memory_space<vmem>>, vector<1x128xf32>
    tpu.vector_store %arg5[%c7_93, %c0_94], %144 {strides = array<i32>} : memref<8x128xf32, #tpu.memory_space<vmem>>, vector<1x128xf32>,
    return
  }
  func.func @transform_0(%arg0: i32) -> (i32, i32) {
    %c0_i32 = arith.constant 0 : i32
    %c0_i32_0 = arith.constant 0 : i32
    return %c0_i32, %arg0 : i32, i32
  }
  func.func @transform_1(%arg0: i32) -> (i32, i32) {
    %c0_i32 = arith.constant 0 : i32
    %c0_i32_0 = arith.constant 0 : i32
    return %c0_i32, %arg0 : i32, i32
  }
  func.func @transform_2(%arg0: i32) -> (i32, i32) {
    %c0_i32 = arith.constant 0 : i32
    %c0_i32_0 = arith.constant 0 : i32
    %c0_i32_1 = arith.constant 0 : i32
    return %c0_i32, %c0_i32_0 : i32, i32
  }
  func.func @transform_3(%arg0: i32) -> (i32, i32) {
    %c0_i32 = arith.constant 0 : i32
    %c0_i32_0 = arith.constant 0 : i32
    %c0_i32_1 = arith.constant 0 : i32
    return %c0_i32, %c0_i32_0 : i32, i32
  }
  func.func @transform_4(%arg0: i32) -> (i32, i32) {
    %c0_i32 = arith.constant 0 : i32
    %c0_i32_0 = arith.constant 0 : i32
    return %c0_i32, %arg0 : i32, i32
  }
}

module attributes {stable_mosaic.version = 11 : i64} {
  func.func @_mf_bpr_resident_kernel(%arg0: i32, %arg1: memref<8x128xi32, #tpu.memory_space<vmem>>, %arg2: memref<8x128xi32, #tpu.memory_space<vmem>>, %arg3: memref<128x128xf32, #tpu.memory_space<vmem>>, %arg4: memref<128x128xf32, #tpu.memory_space<vmem>>, %arg5: memref<8x128xf32, #tpu.memory_space<vmem>>) attributes {dimension_semantics = [#tpu.dimension_semantics<parallel>], iteration_bounds = array<i64: 1>, scalar_prefetch = 0 : i64, scratch_operands = 0 : i64, tpu.core_type = #tpu.core_type<tc>, window_params = [{transform_indices = @transform_0, window_bounds = array<i64: 8, 128>}, {transform_indices = @transform_1, window_bounds = array<i64: 8, 128>}, {pipeline_mode = #tpu.pipeline_mode<synchronous>, transform_indices = @transform_2, window_bounds = array<i64: 128, 128>}, {pipeline_mode = #tpu.pipeline_mode<synchronous>, transform_indices = @transform_3, window_bounds = array<i64: 128, 128>}, {transform_indices = @transform_4, window_bounds = array<i64: 8, 128>}]} {
    %0 = tpu.iota {dimensions = array<i32: 0>} : vector<128x128xi32>
    %1 = tpu.iota {dimensions = array<i32: 0>} : vector<128x128xi32>
    %c0 = arith.constant 0 : index
    %c0_0 = arith.constant 0 : index
    %2 = vector.load %arg1[%c0, %c0_0] : memref<8x128xi32, #tpu.memory_space<vmem>>, vector<1x128xi32>
    %c0_1 = arith.constant 0 : index
    %c0_2 = arith.constant 0 : index
    %3 = vector.load %arg2[%c0_1, %c0_2] : memref<8x128xi32, #tpu.memory_space<vmem>>, vector<1x128xi32>
    %4 = vector.broadcast %2 : vector<1x128xi32> to vector<128x128xi32>
    %5 = arith.cmpi eq, %0, %4 : vector<128x128xi32>
    %6 = arith.extui %5 : vector<128x128xi1> to vector<128x128xi32>
    %7 = arith.sitofp %6 : vector<128x128xi32> to vector<128x128xf32>
    %8 = vector.broadcast %3 : vector<1x128xi32> to vector<128x128xi32>
    %9 = arith.cmpi eq, %1, %8 : vector<128x128xi32>
    %10 = arith.extui %9 : vector<128x128xi1> to vector<128x128xi32>
    %11 = arith.sitofp %10 : vector<128x128xi32> to vector<128x128xf32>
    %c0_3 = arith.constant 0 : index
    %c0_4 = arith.constant 0 : index
    %12 = vector.load %arg3[%c0_3, %c0_4] : memref<128x128xf32, #tpu.memory_space<vmem>>, vector<128x128xf32>
    %cst = arith.constant dense<0.000000e+00> : vector<128x128xf32>
    %13 = tpu.matmul %12, %7, %cst {dimension_numbers = #tpu.dot_dimension_numbers<[1], [0], [0], [1], [0, 0, 1, 1], [], []>} : vector<128x128xf32>, vector<128x128xf32>, vector<128x128xf32> -> vector<128x128xf32>
    %c0_5 = arith.constant 0 : index
    %c0_6 = arith.constant 0 : index
    %14 = vector.load %arg4[%c0_5, %c0_6] : memref<128x128xf32, #tpu.memory_space<vmem>>, vector<128x128xf32>
    %cst_7 = arith.constant dense<0.000000e+00> : vector<128x128xf32>
    %15 = tpu.matmul %14, %11, %cst_7 {dimension_numbers = #tpu.dot_dimension_numbers<[1], [0], [0], [1], [0, 0, 1, 1], [], []>} : vector<128x128xf32>, vector<128x128xf32>, vector<128x128xf32> -> vector<128x128xf32>
    %16 = arith.mulf %13, %15 : vector<128x128xf32>
    %cst_8 = arith.constant dense<0.000000e+00> : vector<128xf32>
    %17 = vector.multi_reduction <add>, %16, %cst_8 [0] : vector<128x128xf32> to vector<128xf32>
    %18 = vector.shape_cast %17 : vector<128xf32> to vector<1x128xf32>
    %c0_9 = arith.constant 0 : index
    %c0_10 = arith.constant 0 : index
    %19 = vector.load %arg5[%c0_9, %c0_10] : memref<8x128xf32, #tpu.memory_space<vmem>>, vector<1x128xf32>
    tpu.vector_store %arg5[%c0_9, %c0_10], %18 {strides = array<i32>} : memref<8x128xf32, #tpu.memory_space<vmem>>, vector<1x128xf32>,
    %c1 = arith.constant 1 : index
    %c0_11 = arith.constant 0 : index
    %20 = vector.load %arg1[%c1, %c0_11] : memref<8x128xi32, #tpu.memory_space<vmem>>, vector<1x128xi32>
    %c1_12 = arith.constant 1 : index
    %c0_13 = arith.constant 0 : index
    %21 = vector.load %arg2[%c1_12, %c0_13] : memref<8x128xi32, #tpu.memory_space<vmem>>, vector<1x128xi32>
    %22 = vector.broadcast %20 : vector<1x128xi32> to vector<128x128xi32>
    %23 = arith.cmpi eq, %0, %22 : vector<128x128xi32>
    %24 = arith.extui %23 : vector<128x128xi1> to vector<128x128xi32>
    %25 = arith.sitofp %24 : vector<128x128xi32> to vector<128x128xf32>
    %26 = vector.broadcast %21 : vector<1x128xi32> to vector<128x128xi32>
    %27 = arith.cmpi eq, %1, %26 : vector<128x128xi32>
    %28 = arith.extui %27 : vector<128x128xi1> to vector<128x128xi32>
    %29 = arith.sitofp %28 : vector<128x128xi32> to vector<128x128xf32>
    %c0_14 = arith.constant 0 : index
    %c0_15 = arith.constant 0 : index
    %30 = vector.load %arg3[%c0_14, %c0_15] : memref<128x128xf32, #tpu.memory_space<vmem>>, vector<128x128xf32>
    %cst_16 = arith.constant dense<0.000000e+00> : vector<128x128xf32>
    %31 = tpu.matmul %30, %25, %cst_16 {dimension_numbers = #tpu.dot_dimension_numbers<[1], [0], [0], [1], [0, 0, 1, 1], [], []>} : vector<128x128xf32>, vector<128x128xf32>, vector<128x128xf32> -> vector<128x128xf32>
    %c0_17 = arith.constant 0 : index
    %c0_18 = arith.constant 0 : index
    %32 = vector.load %arg4[%c0_17, %c0_18] : memref<128x128xf32, #tpu.memory_space<vmem>>, vector<128x128xf32>
    %cst_19 = arith.constant dense<0.000000e+00> : vector<128x128xf32>
    %33 = tpu.matmul %32, %29, %cst_19 {dimension_numbers = #tpu.dot_dimension_numbers<[1], [0], [0], [1], [0, 0, 1, 1], [], []>} : vector<128x128xf32>, vector<128x128xf32>, vector<128x128xf32> -> vector<128x128xf32>
    %34 = arith.mulf %31, %33 : vector<128x128xf32>
    %cst_20 = arith.constant dense<0.000000e+00> : vector<128xf32>
    %35 = vector.multi_reduction <add>, %34, %cst_20 [0] : vector<128x128xf32> to vector<128xf32>
    %36 = vector.shape_cast %35 : vector<128xf32> to vector<1x128xf32>
    %c1_21 = arith.constant 1 : index
    %c0_22 = arith.constant 0 : index
    %37 = vector.load %arg5[%c1_21, %c0_22] : memref<8x128xf32, #tpu.memory_space<vmem>>, vector<1x128xf32>
    tpu.vector_store %arg5[%c1_21, %c0_22], %36 {strides = array<i32>} : memref<8x128xf32, #tpu.memory_space<vmem>>, vector<1x128xf32>,
    %c2 = arith.constant 2 : index
    %c0_23 = arith.constant 0 : index
    %38 = vector.load %arg1[%c2, %c0_23] : memref<8x128xi32, #tpu.memory_space<vmem>>, vector<1x128xi32>
    %c2_24 = arith.constant 2 : index
    %c0_25 = arith.constant 0 : index
    %39 = vector.load %arg2[%c2_24, %c0_25] : memref<8x128xi32, #tpu.memory_space<vmem>>, vector<1x128xi32>
    %40 = vector.broadcast %38 : vector<1x128xi32> to vector<128x128xi32>
    %41 = arith.cmpi eq, %0, %40 : vector<128x128xi32>
    %42 = arith.extui %41 : vector<128x128xi1> to vector<128x128xi32>
    %43 = arith.sitofp %42 : vector<128x128xi32> to vector<128x128xf32>
    %44 = vector.broadcast %39 : vector<1x128xi32> to vector<128x128xi32>
    %45 = arith.cmpi eq, %1, %44 : vector<128x128xi32>
    %46 = arith.extui %45 : vector<128x128xi1> to vector<128x128xi32>
    %47 = arith.sitofp %46 : vector<128x128xi32> to vector<128x128xf32>
    %c0_26 = arith.constant 0 : index
    %c0_27 = arith.constant 0 : index
    %48 = vector.load %arg3[%c0_26, %c0_27] : memref<128x128xf32, #tpu.memory_space<vmem>>, vector<128x128xf32>
    %cst_28 = arith.constant dense<0.000000e+00> : vector<128x128xf32>
    %49 = tpu.matmul %48, %43, %cst_28 {dimension_numbers = #tpu.dot_dimension_numbers<[1], [0], [0], [1], [0, 0, 1, 1], [], []>} : vector<128x128xf32>, vector<128x128xf32>, vector<128x128xf32> -> vector<128x128xf32>
    %c0_29 = arith.constant 0 : index
    %c0_30 = arith.constant 0 : index
    %50 = vector.load %arg4[%c0_29, %c0_30] : memref<128x128xf32, #tpu.memory_space<vmem>>, vector<128x128xf32>
    %cst_31 = arith.constant dense<0.000000e+00> : vector<128x128xf32>
    %51 = tpu.matmul %50, %47, %cst_31 {dimension_numbers = #tpu.dot_dimension_numbers<[1], [0], [0], [1], [0, 0, 1, 1], [], []>} : vector<128x128xf32>, vector<128x128xf32>, vector<128x128xf32> -> vector<128x128xf32>
    %52 = arith.mulf %49, %51 : vector<128x128xf32>
    %cst_32 = arith.constant dense<0.000000e+00> : vector<128xf32>
    %53 = vector.multi_reduction <add>, %52, %cst_32 [0] : vector<128x128xf32> to vector<128xf32>
    %54 = vector.shape_cast %53 : vector<128xf32> to vector<1x128xf32>
    %c2_33 = arith.constant 2 : index
    %c0_34 = arith.constant 0 : index
    %55 = vector.load %arg5[%c2_33, %c0_34] : memref<8x128xf32, #tpu.memory_space<vmem>>, vector<1x128xf32>
    tpu.vector_store %arg5[%c2_33, %c0_34], %54 {strides = array<i32>} : memref<8x128xf32, #tpu.memory_space<vmem>>, vector<1x128xf32>,
    %c3 = arith.constant 3 : index
    %c0_35 = arith.constant 0 : index
    %56 = vector.load %arg1[%c3, %c0_35] : memref<8x128xi32, #tpu.memory_space<vmem>>, vector<1x128xi32>
    %c3_36 = arith.constant 3 : index
    %c0_37 = arith.constant 0 : index
    %57 = vector.load %arg2[%c3_36, %c0_37] : memref<8x128xi32, #tpu.memory_space<vmem>>, vector<1x128xi32>
    %58 = vector.broadcast %56 : vector<1x128xi32> to vector<128x128xi32>
    %59 = arith.cmpi eq, %0, %58 : vector<128x128xi32>
    %60 = arith.extui %59 : vector<128x128xi1> to vector<128x128xi32>
    %61 = arith.sitofp %60 : vector<128x128xi32> to vector<128x128xf32>
    %62 = vector.broadcast %57 : vector<1x128xi32> to vector<128x128xi32>
    %63 = arith.cmpi eq, %1, %62 : vector<128x128xi32>
    %64 = arith.extui %63 : vector<128x128xi1> to vector<128x128xi32>
    %65 = arith.sitofp %64 : vector<128x128xi32> to vector<128x128xf32>
    %c0_38 = arith.constant 0 : index
    %c0_39 = arith.constant 0 : index
    %66 = vector.load %arg3[%c0_38, %c0_39] : memref<128x128xf32, #tpu.memory_space<vmem>>, vector<128x128xf32>
    %cst_40 = arith.constant dense<0.000000e+00> : vector<128x128xf32>
    %67 = tpu.matmul %66, %61, %cst_40 {dimension_numbers = #tpu.dot_dimension_numbers<[1], [0], [0], [1], [0, 0, 1, 1], [], []>} : vector<128x128xf32>, vector<128x128xf32>, vector<128x128xf32> -> vector<128x128xf32>
    %c0_41 = arith.constant 0 : index
    %c0_42 = arith.constant 0 : index
    %68 = vector.load %arg4[%c0_41, %c0_42] : memref<128x128xf32, #tpu.memory_space<vmem>>, vector<128x128xf32>
    %cst_43 = arith.constant dense<0.000000e+00> : vector<128x128xf32>
    %69 = tpu.matmul %68, %65, %cst_43 {dimension_numbers = #tpu.dot_dimension_numbers<[1], [0], [0], [1], [0, 0, 1, 1], [], []>} : vector<128x128xf32>, vector<128x128xf32>, vector<128x128xf32> -> vector<128x128xf32>
    %70 = arith.mulf %67, %69 : vector<128x128xf32>
    %cst_44 = arith.constant dense<0.000000e+00> : vector<128xf32>
    %71 = vector.multi_reduction <add>, %70, %cst_44 [0] : vector<128x128xf32> to vector<128xf32>
    %72 = vector.shape_cast %71 : vector<128xf32> to vector<1x128xf32>
    %c3_45 = arith.constant 3 : index
    %c0_46 = arith.constant 0 : index
    %73 = vector.load %arg5[%c3_45, %c0_46] : memref<8x128xf32, #tpu.memory_space<vmem>>, vector<1x128xf32>
    tpu.vector_store %arg5[%c3_45, %c0_46], %72 {strides = array<i32>} : memref<8x128xf32, #tpu.memory_space<vmem>>, vector<1x128xf32>,
    %c4 = arith.constant 4 : index
    %c0_47 = arith.constant 0 : index
    %74 = vector.load %arg1[%c4, %c0_47] : memref<8x128xi32, #tpu.memory_space<vmem>>, vector<1x128xi32>
    %c4_48 = arith.constant 4 : index
    %c0_49 = arith.constant 0 : index
    %75 = vector.load %arg2[%c4_48, %c0_49] : memref<8x128xi32, #tpu.memory_space<vmem>>, vector<1x128xi32>
    %76 = vector.broadcast %74 : vector<1x128xi32> to vector<128x128xi32>
    %77 = arith.cmpi eq, %0, %76 : vector<128x128xi32>
    %78 = arith.extui %77 : vector<128x128xi1> to vector<128x128xi32>
    %79 = arith.sitofp %78 : vector<128x128xi32> to vector<128x128xf32>
    %80 = vector.broadcast %75 : vector<1x128xi32> to vector<128x128xi32>
    %81 = arith.cmpi eq, %1, %80 : vector<128x128xi32>
    %82 = arith.extui %81 : vector<128x128xi1> to vector<128x128xi32>
    %83 = arith.sitofp %82 : vector<128x128xi32> to vector<128x128xf32>
    %c0_50 = arith.constant 0 : index
    %c0_51 = arith.constant 0 : index
    %84 = vector.load %arg3[%c0_50, %c0_51] : memref<128x128xf32, #tpu.memory_space<vmem>>, vector<128x128xf32>
    %cst_52 = arith.constant dense<0.000000e+00> : vector<128x128xf32>
    %85 = tpu.matmul %84, %79, %cst_52 {dimension_numbers = #tpu.dot_dimension_numbers<[1], [0], [0], [1], [0, 0, 1, 1], [], []>} : vector<128x128xf32>, vector<128x128xf32>, vector<128x128xf32> -> vector<128x128xf32>
    %c0_53 = arith.constant 0 : index
    %c0_54 = arith.constant 0 : index
    %86 = vector.load %arg4[%c0_53, %c0_54] : memref<128x128xf32, #tpu.memory_space<vmem>>, vector<128x128xf32>
    %cst_55 = arith.constant dense<0.000000e+00> : vector<128x128xf32>
    %87 = tpu.matmul %86, %83, %cst_55 {dimension_numbers = #tpu.dot_dimension_numbers<[1], [0], [0], [1], [0, 0, 1, 1], [], []>} : vector<128x128xf32>, vector<128x128xf32>, vector<128x128xf32> -> vector<128x128xf32>
    %88 = arith.mulf %85, %87 : vector<128x128xf32>
    %cst_56 = arith.constant dense<0.000000e+00> : vector<128xf32>
    %89 = vector.multi_reduction <add>, %88, %cst_56 [0] : vector<128x128xf32> to vector<128xf32>
    %90 = vector.shape_cast %89 : vector<128xf32> to vector<1x128xf32>
    %c4_57 = arith.constant 4 : index
    %c0_58 = arith.constant 0 : index
    %91 = vector.load %arg5[%c4_57, %c0_58] : memref<8x128xf32, #tpu.memory_space<vmem>>, vector<1x128xf32>
    tpu.vector_store %arg5[%c4_57, %c0_58], %90 {strides = array<i32>} : memref<8x128xf32, #tpu.memory_space<vmem>>, vector<1x128xf32>,
    %c5 = arith.constant 5 : index
    %c0_59 = arith.constant 0 : index
    %92 = vector.load %arg1[%c5, %c0_59] : memref<8x128xi32, #tpu.memory_space<vmem>>, vector<1x128xi32>
    %c5_60 = arith.constant 5 : index
    %c0_61 = arith.constant 0 : index
    %93 = vector.load %arg2[%c5_60, %c0_61] : memref<8x128xi32, #tpu.memory_space<vmem>>, vector<1x128xi32>
    %94 = vector.broadcast %92 : vector<1x128xi32> to vector<128x128xi32>
    %95 = arith.cmpi eq, %0, %94 : vector<128x128xi32>
    %96 = arith.extui %95 : vector<128x128xi1> to vector<128x128xi32>
    %97 = arith.sitofp %96 : vector<128x128xi32> to vector<128x128xf32>
    %98 = vector.broadcast %93 : vector<1x128xi32> to vector<128x128xi32>
    %99 = arith.cmpi eq, %1, %98 : vector<128x128xi32>
    %100 = arith.extui %99 : vector<128x128xi1> to vector<128x128xi32>
    %101 = arith.sitofp %100 : vector<128x128xi32> to vector<128x128xf32>
    %c0_62 = arith.constant 0 : index
    %c0_63 = arith.constant 0 : index
    %102 = vector.load %arg3[%c0_62, %c0_63] : memref<128x128xf32, #tpu.memory_space<vmem>>, vector<128x128xf32>
    %cst_64 = arith.constant dense<0.000000e+00> : vector<128x128xf32>
    %103 = tpu.matmul %102, %97, %cst_64 {dimension_numbers = #tpu.dot_dimension_numbers<[1], [0], [0], [1], [0, 0, 1, 1], [], []>} : vector<128x128xf32>, vector<128x128xf32>, vector<128x128xf32> -> vector<128x128xf32>
    %c0_65 = arith.constant 0 : index
    %c0_66 = arith.constant 0 : index
    %104 = vector.load %arg4[%c0_65, %c0_66] : memref<128x128xf32, #tpu.memory_space<vmem>>, vector<128x128xf32>
    %cst_67 = arith.constant dense<0.000000e+00> : vector<128x128xf32>
    %105 = tpu.matmul %104, %101, %cst_67 {dimension_numbers = #tpu.dot_dimension_numbers<[1], [0], [0], [1], [0, 0, 1, 1], [], []>} : vector<128x128xf32>, vector<128x128xf32>, vector<128x128xf32> -> vector<128x128xf32>
    %106 = arith.mulf %103, %105 : vector<128x128xf32>
    %cst_68 = arith.constant dense<0.000000e+00> : vector<128xf32>
    %107 = vector.multi_reduction <add>, %106, %cst_68 [0] : vector<128x128xf32> to vector<128xf32>
    %108 = vector.shape_cast %107 : vector<128xf32> to vector<1x128xf32>
    %c5_69 = arith.constant 5 : index
    %c0_70 = arith.constant 0 : index
    %109 = vector.load %arg5[%c5_69, %c0_70] : memref<8x128xf32, #tpu.memory_space<vmem>>, vector<1x128xf32>
    tpu.vector_store %arg5[%c5_69, %c0_70], %108 {strides = array<i32>} : memref<8x128xf32, #tpu.memory_space<vmem>>, vector<1x128xf32>,
    %c6 = arith.constant 6 : index
    %c0_71 = arith.constant 0 : index
    %110 = vector.load %arg1[%c6, %c0_71] : memref<8x128xi32, #tpu.memory_space<vmem>>, vector<1x128xi32>
    %c6_72 = arith.constant 6 : index
    %c0_73 = arith.constant 0 : index
    %111 = vector.load %arg2[%c6_72, %c0_73] : memref<8x128xi32, #tpu.memory_space<vmem>>, vector<1x128xi32>
    %112 = vector.broadcast %110 : vector<1x128xi32> to vector<128x128xi32>
    %113 = arith.cmpi eq, %0, %112 : vector<128x128xi32>
    %114 = arith.extui %113 : vector<128x128xi1> to vector<128x128xi32>
    %115 = arith.sitofp %114 : vector<128x128xi32> to vector<128x128xf32>
    %116 = vector.broadcast %111 : vector<1x128xi32> to vector<128x128xi32>
    %117 = arith.cmpi eq, %1, %116 : vector<128x128xi32>
    %118 = arith.extui %117 : vector<128x128xi1> to vector<128x128xi32>
    %119 = arith.sitofp %118 : vector<128x128xi32> to vector<128x128xf32>
    %c0_74 = arith.constant 0 : index
    %c0_75 = arith.constant 0 : index
    %120 = vector.load %arg3[%c0_74, %c0_75] : memref<128x128xf32, #tpu.memory_space<vmem>>, vector<128x128xf32>
    %cst_76 = arith.constant dense<0.000000e+00> : vector<128x128xf32>
    %121 = tpu.matmul %120, %115, %cst_76 {dimension_numbers = #tpu.dot_dimension_numbers<[1], [0], [0], [1], [0, 0, 1, 1], [], []>} : vector<128x128xf32>, vector<128x128xf32>, vector<128x128xf32> -> vector<128x128xf32>
    %c0_77 = arith.constant 0 : index
    %c0_78 = arith.constant 0 : index
    %122 = vector.load %arg4[%c0_77, %c0_78] : memref<128x128xf32, #tpu.memory_space<vmem>>, vector<128x128xf32>
    %cst_79 = arith.constant dense<0.000000e+00> : vector<128x128xf32>
    %123 = tpu.matmul %122, %119, %cst_79 {dimension_numbers = #tpu.dot_dimension_numbers<[1], [0], [0], [1], [0, 0, 1, 1], [], []>} : vector<128x128xf32>, vector<128x128xf32>, vector<128x128xf32> -> vector<128x128xf32>
    %124 = arith.mulf %121, %123 : vector<128x128xf32>
    %cst_80 = arith.constant dense<0.000000e+00> : vector<128xf32>
    %125 = vector.multi_reduction <add>, %124, %cst_80 [0] : vector<128x128xf32> to vector<128xf32>
    %126 = vector.shape_cast %125 : vector<128xf32> to vector<1x128xf32>
    %c6_81 = arith.constant 6 : index
    %c0_82 = arith.constant 0 : index
    %127 = vector.load %arg5[%c6_81, %c0_82] : memref<8x128xf32, #tpu.memory_space<vmem>>, vector<1x128xf32>
    tpu.vector_store %arg5[%c6_81, %c0_82], %126 {strides = array<i32>} : memref<8x128xf32, #tpu.memory_space<vmem>>, vector<1x128xf32>,
    %c7 = arith.constant 7 : index
    %c0_83 = arith.constant 0 : index
    %128 = vector.load %arg1[%c7, %c0_83] : memref<8x128xi32, #tpu.memory_space<vmem>>, vector<1x128xi32>
    %c7_84 = arith.constant 7 : index
    %c0_85 = arith.constant 0 : index
    %129 = vector.load %arg2[%c7_84, %c0_85] : memref<8x128xi32, #tpu.memory_space<vmem>>, vector<1x128xi32>
    %130 = vector.broadcast %128 : vector<1x128xi32> to vector<128x128xi32>
    %131 = arith.cmpi eq, %0, %130 : vector<128x128xi32>
    %132 = arith.extui %131 : vector<128x128xi1> to vector<128x128xi32>
    %133 = arith.sitofp %132 : vector<128x128xi32> to vector<128x128xf32>
    %134 = vector.broadcast %129 : vector<1x128xi32> to vector<128x128xi32>
    %135 = arith.cmpi eq, %1, %134 : vector<128x128xi32>
    %136 = arith.extui %135 : vector<128x128xi1> to vector<128x128xi32>
    %137 = arith.sitofp %136 : vector<128x128xi32> to vector<128x128xf32>
    %c0_86 = arith.constant 0 : index
    %c0_87 = arith.constant 0 : index
    %138 = vector.load %arg3[%c0_86, %c0_87] : memref<128x128xf32, #tpu.memory_space<vmem>>, vector<128x128xf32>
    %cst_88 = arith.constant dense<0.000000e+00> : vector<128x128xf32>
    %139 = tpu.matmul %138, %133, %cst_88 {dimension_numbers = #tpu.dot_dimension_numbers<[1], [0], [0], [1], [0, 0, 1, 1], [], []>} : vector<128x128xf32>, vector<128x128xf32>, vector<128x128xf32> -> vector<128x128xf32>
    %c0_89 = arith.constant 0 : index
    %c0_90 = arith.constant 0 : index
    %140 = vector.load %arg4[%c0_89, %c0_90] : memref<128x128xf32, #tpu.memory_space<vmem>>, vector<128x128xf32>
    %cst_91 = arith.constant dense<0.000000e+00> : vector<128x128xf32>
    %141 = tpu.matmul %140, %137, %cst_91 {dimension_numbers = #tpu.dot_dimension_numbers<[1], [0], [0], [1], [0, 0, 1, 1], [], []>} : vector<128x128xf32>, vector<128x128xf32>, vector<128x128xf32> -> vector<128x128xf32>
    %142 = arith.mulf %139, %141 : vector<128x128xf32>
    %cst_92 = arith.constant dense<0.000000e+00> : vector<128xf32>
    %143 = vector.multi_reduction <add>, %142, %cst_92 [0] : vector<128x128xf32> to vector<128xf32>
    %144 = vector.shape_cast %143 : vector<128xf32> to vector<1x128xf32>
    %c7_93 = arith.constant 7 : index
    %c0_94 = arith.constant 0 : index
    %145 = vector.load %arg5[%c7_93, %c0_94] : memref<8x128xf32, #tpu.memory_space<vmem>>, vector<1x128xf32>
    tpu.vector_store %arg5[%c7_93, %c0_94], %144 {strides = array<i32>} : memref<8x128xf32, #tpu.memory_space<vmem>>, vector<1x128xf32>,
    return
  }
  func.func @transform_0(%arg0: i32) -> (i32, i32) {
    %c0_i32 = arith.constant 0 : i32
    %c0_i32_0 = arith.constant 0 : i32
    return %c0_i32, %arg0 : i32, i32
  }
  func.func @transform_1(%arg0: i32) -> (i32, i32) {
    %c0_i32 = arith.constant 0 : i32
    %c0_i32_0 = arith.constant 0 : i32
    return %c0_i32, %arg0 : i32, i32
  }
  func.func @transform_2(%arg0: i32) -> (i32, i32) {
    %c0_i32 = arith.constant 0 : i32
    %c0_i32_0 = arith.constant 0 : i32
    %c0_i32_1 = arith.constant 0 : i32
    return %c0_i32, %c0_i32_0 : i32, i32
  }
  func.func @transform_3(%arg0: i32) -> (i32, i32) {
    %c0_i32 = arith.constant 0 : i32
    %c0_i32_0 = arith.constant 0 : i32
    %c0_i32_1 = arith.constant 0 : i32
    return %c0_i32, %c0_i32_0 : i32, i32
  }
  func.func @transform_4(%arg0: i32) -> (i32, i32) {
    %c0_i32 = arith.constant 0 : i32
    %c0_i32_0 = arith.constant 0 : i32
    return %c0_i32, %arg0 : i32, i32
  }
}

</mosaic_0001>

<bundles_post_ra>
// kernel: tpu_custom_call.1
= control target key start
LH: loop header
LB: loop body
LE: loop exit
PB: predicated region body
PF: predicated region fallthrough
CT: control target
= control target key end

     0   :  { %9 = vsyncpa [#allocation3], 0  ;;  %s8723_s0 = inlined_call_operand.hbm [shape: s32[8,128], index: 0, kind: input, shape index: {}]   ;;  %s8724_s1 = inlined_call_operand.hbm [shape: s32[8,128], index: 1, kind: input, shape index: {}]   ;;  %s8725_s2 = inlined_call_operand.hbm [shape: f32[128,128], index: 2, kind: input, shape index: {}]   ;;  %s8726_s3 = inlined_call_operand.hbm [shape: f32[128,128], index: 3, kind: input, shape index: {}]   ;;  %s8727_s4 = inlined_call_operand.hbm [shape: f32[8,128], index: 4, kind: output, shape index: {}]  }
   0x1   :  { %10 = vsyncpa [#allocation6], 0 }
   0x2   :  { %11 = vsyncpa [#allocation9], 0 }
   0x3   :  { %12 = vsyncpa [#allocation4], 0  ;;  %s6405_s15 = smov [#allocation5]   ;;  %s6406_s17 = smov [#allocation2]  }
   0x4   :  { %s29_s16 = sshll.u32 %s6405_s15, 4  ;;  %s19_s18 = sshll.u32 %s6406_s17, 4  ;;  %s30_s16 = int_to_ptr.vmem [resolvable:$true] %s29_s16  ;;  %s20_s18 = int_to_ptr.vmem [resolvable:$true] %s19_s18 }
   0x5   :  { %s6287_s21 = scalar_lea.hbm %s8724_s1, 128 }
   0x6   :  { %p6288_p0 = scmp.ne.s32.totalorder %s8724_s1, %s6287_s21  ;;  %p6291_p1 = scmp.lt.u32.totalorder %s6287_s21, %s8724_s1 }
   0x8   :  { %p6293_p2 = pnand %p6291_p1, %p6288_p0 }
   0xa   :  { %6296 = shalt.err (!%p6293_p2)
}
   0xb   :  { %s6297_s26 = scalar_lea.vmem %s30_s16, 128  ;;  %p6302_p4 = scmp.lt.s32.totalorder %s30_s16, %s30_s16 }
   0xc   :  { %p6298_p3 = scmp.ne.s32.totalorder %s30_s16, %s6297_s26  ;;  %p6303_p5 = scmp.lt.s32.totalorder %s6297_s26, %s6297_s26 }
   0xe   :  { %p6304_p6 = por %p6303_p5, %p6302_p4 }
  0x10   :  { %p6305_p7 = pnand %p6304_p6, %p6298_p3 }
  0x12   :  { %6308 = shalt.err (!%p6305_p7)
}
  0x13   :  { %32 = dma.hbm_to_vmem [thread:$0]  %s8724_s1, 128, %s30_s16, [#allocation6]  }
  0x14   :  { %s6309_s5 = scalar_lea.hbm %s8723_s0, 128 }
  0x15   :  { %p6310_p8 = scmp.ne.s32.totalorder %s8723_s0, %s6309_s5  ;;  %p6313_p9 = scmp.lt.u32.totalorder %s6309_s5, %s8723_s0 }
  0x17   :  { %p6315_p10 = pnand %p6313_p9, %p6310_p8 }
  0x19   :  { %6318 = shalt.err (!%p6315_p10)
}
  0x1a   :  { %s6319_s10 = scalar_lea.vmem %s20_s18, 128  ;;  %p6324_p12 = scmp.lt.s32.totalorder %s20_s18, %s20_s18 }
  0x1b   :  { %p6320_p11 = scmp.ne.s32.totalorder %s20_s18, %s6319_s10  ;;  %p6325_p13 = scmp.lt.s32.totalorder %s6319_s10, %s6319_s10 }
  0x1d   :  { %p6326_p0 = por %p6325_p13, %p6324_p12 }
  0x1f   :  { %p6327_p1 = pnand %p6326_p0, %p6320_p11 }
  0x21   :  { %6330 = shalt.err (!%p6327_p1)
}
  0x22   :  { %22 = dma.hbm_to_vmem [thread:$0]  %s8723_s0, 128, %s20_s18, [#allocation3]  }
  0x23   :  { %s6407_s12 = smov [#allocation7]   ;;  %s6331_s16 = scalar_lea.hbm %s8725_s2, 2048 }
  0x24   :  { %s38_s13 = sshll.u32 %s6407_s12, 4  ;;  %p6332_p2 = scmp.ne.s32.totalorder %s8725_s2, %s6331_s16  ;;  %s39_s13 = int_to_ptr.vmem [resolvable:$true] %s38_s13 }
  0x25   :  { %p6335_p3 = scmp.lt.u32.totalorder %s6331_s16, %s8725_s2 }
  0x27   :  { %p6337_p4 = pnand %p6335_p3, %p6332_p2 }
  0x29   :  { %6340 = shalt.err (!%p6337_p4)
}
  0x2a   :  { %s6341_s22 = scalar_lea.vmem %s39_s13, 2048  ;;  %p6346_p6 = scmp.lt.s32.totalorder %s39_s13, %s39_s13 }
  0x2b   :  { %p6342_p5 = scmp.ne.s32.totalorder %s39_s13, %s6341_s22  ;;  %p6347_p7 = scmp.lt.s32.totalorder %s6341_s22, %s6341_s22 }
  0x2d   :  { %p6348_p8 = por %p6347_p7, %p6346_p6 }
  0x2f   :  { %p6349_p9 = pnand %p6348_p8, %p6342_p5 }
  0x31   :  { %6352 = shalt.err (!%p6349_p9)
}
  0x32   :  { %s6408_s0 = smov 128   ;;  %s6409_s18 = smov 8  }
  0x33   :  { %44 = dma.hbm_to_vmem [thread:$0]  %s8725_s2, 2048, %s39_s13, [#allocation6], %s6408_s0, %s6408_s0, %s6409_s18  }
  0x34   :  { %s6410_s25 = smov [#allocation8]   ;;  %s6353_s29 = scalar_lea.hbm %s8726_s3, 2048 }
  0x35   :  { %s50_s26 = sshll.u32 %s6410_s25, 4  ;;  %p6354_p10 = scmp.ne.s32.totalorder %s8726_s3, %s6353_s29  ;;  %s51_s26 = int_to_ptr.vmem [resolvable:$true] %s50_s26 }
  0x36   :  { %p6357_p11 = scmp.lt.u32.totalorder %s6353_s29, %s8726_s3 }
  0x38   :  { %p6359_p12 = pnand %p6357_p11, %p6354_p10 }
  0x3a   :  { %6362 = shalt.err (!%p6359_p12)
}
  0x3b   :  { %s6363_s8 = scalar_lea.vmem %s51_s26, 2048  ;;  %p6368_p0 = scmp.lt.s32.totalorder %s51_s26, %s51_s26 }
  0x3c   :  { %p6364_p13 = scmp.ne.s32.totalorder %s51_s26, %s6363_s8  ;;  %p6369_p1 = scmp.lt.s32.totalorder %s6363_s8, %s6363_s8 }
  0x3e   :  { %p6370_p2 = por %p6369_p1, %p6368_p0 }
  0x40   :  { %p6371_p3 = pnand %p6370_p2, %p6364_p13 }
  0x42   :  { %6374 = shalt.err (!%p6371_p3)
}
  0x43   :  { %56 = dma.hbm_to_vmem [thread:$0]  %s8726_s3, 2048, %s51_s26, [#allocation9], %s6408_s0, %s6408_s0, %s6409_s18  }
  0x44   :  { %6397 = dma.done.wait [#allocation3], 128  }
  0x45   :  { %6398 = vsyncadd [#allocation3], 4294967168 }
  0x46   :  { %6399 = dma.done.wait [#allocation6], 2176  }
  0x47   :  { %6400 = vsyncadd [#allocation6], 4294965120 }
  0x48   :  { %6401 = dma.done.wait [#allocation9], 2048  }
  0x49   :  { %6402 = vsyncadd [#allocation9], 4294965248  ;;  %v69_v0 = vlaneseq  ;;  %v6503_v7 = vld [vmem:[#allocation2] ss:$0 sm:$0xff]  ;;  %v6505_v8 = vld [vmem:[#allocation5] ss:$0 sm:$0xff] }
  0x4a   :  { %v6515_v9 = vld [vmem:[#allocation7] sm:$0xff]  ;;  %v6411_v10 = vmov 1.0|1.0   ;;  %v6706_v32 = vld [vmem:[#allocation2 + $0x1] ss:$0 sm:$0xff]  ;;  %v6744_v36 = vld [vmem:[#allocation7 + $0x8] sm:$0xff] }
  0x4b   :  { %v6486_v1 = vshrl.u32 %v69_v0, 7  ;;  %4903 = vmatprep.mubr.f32.mxu0 %v6515_v9  ;;  %v6543_v13 = vld [vmem:[#allocation8] sm:$0xff]  ;;  %v6714_v33 = vld [vmem:[#allocation5 + $0x1] ss:$0 sm:$0xff]  ;;  %v6751_v37 = vld [vmem:[#allocation8 + $0x8] sm:$0xff]  ;;  %s6412_s3 = smov [#allocation10]  }
  0x4c   :  { %4959 = vmatprep.mubr.f32.mxu1 %v6543_v13  ;;  %v6763_v38 = vld [vmem:[#allocation7 + $0x10] sm:$0xff]  ;;  %v6776_v41 = vld [vmem:[#allocation7 + $0x18] sm:$0xff]  ;;  %v6800_v44 = vld [vmem:[#allocation7 + $0x20] sm:$0xff]  ;;  %s3820_s10 = sshll.u32 %s6412_s3, 4  ;;  %s3821_s10 = int_to_ptr.vmem [resolvable:$true] %s3820_s10 }
  0x4d   :  { %v6489_v2 = vadd.s32 8, %v6486_v1  ;;  %v6492_v3 = vadd.s32 16, %v6486_v1  ;;  %v6495_v4 = vadd.s32 24, %v6486_v1  ;;  %v6498_v5 = vadd.s32 32, %v6486_v1  ;;  %v6766_v39 = vld [vmem:[#allocation8 + $0x10] sm:$0xff]  ;;  %v6790_v43 = vld [vmem:[#allocation8 + $0x18] sm:$0xff]  ;;  %p6380_p5 = scmp.lt.s32.totalorder %s3821_s10, %s3821_s10 }
  0x4e   :  { %v6501_v6 = vadd.s32 40, %v6486_v1  ;;  %vm92_vm0 = vcmp.eq.s32.totalorder %v6486_v1, %v6503_v7  ;;  %vm144_vm2 = vcmp.eq.s32.totalorder %v6486_v1, %v6505_v8  ;;  %v6532_v11 = vadd.s32 48, %v6486_v1  ;;  %v6806_v45 = vld [vmem:[#allocation8 + $0x20] sm:$0xff]  ;;  %v6816_v47 = vld [vmem:[#allocation7 + $0x28] sm:$0xff]  ;;  %v6840_v50 = vld [vmem:[#allocation7 + $0x30] sm:$0xff]  ;;  %s6375_s1 = scalar_lea.vmem %s3821_s10, 128 }
  0x4f   :  { %vm93_vm1 = vcmp.eq.s32.totalorder %v6489_v2, %v6503_v7  ;;  %vm145_vm3 = vcmp.eq.s32.totalorder %v6489_v2, %v6505_v8  ;;  %vm94_vm5 = vcmp.eq.s32.totalorder %v6492_v3, %v6503_v7  ;;  %vm95_vm6 = vcmp.eq.s32.totalorder %v6495_v4, %v6503_v7  ;;  %v6830_v49 = vld [vmem:[#allocation8 + $0x28] sm:$0xff]  ;;  %v6846_v51 = vld [vmem:[#allocation8 + $0x30] sm:$0xff]  ;;  %v6856_v53 = vld [vmem:[#allocation7 + $0x38] sm:$0xff]  ;;  %p6376_p4 = scmp.ne.s32.totalorder %s3821_s10, %s6375_s1  ;;  %p6381_p6 = scmp.lt.s32.totalorder %s6375_s1, %s6375_s1 }
  0x50   :  { %vm5767_vm4 = vmpackc.low %vm93_vm1, %vm92_vm0  ;;  %vm146_vm7 = vcmp.eq.s32.totalorder %v6492_v3, %v6505_v8  ;;  %vm147_vm8 = vcmp.eq.s32.totalorder %v6495_v4, %v6505_v8  ;;  %vm96_vm10 = vcmp.eq.s32.totalorder %v6498_v5, %v6503_v7  ;;  %vm97_vm11 = vcmp.eq.s32.totalorder %v6501_v6, %v6503_v7  ;;  %v6870_v55 = vld [vmem:[#allocation8 + $0x38] sm:$0xff]  ;;  %v6880_v56 = vld [vmem:[#allocation7 + $0x40] sm:$0xff] }
  0x51   :  { %5768 = vmatprep.subr.msk.bf16.mxu0 %vm5767_vm4, %v6411_v10  ;;  %vm5799_vm9 = vmpackc.low %vm145_vm3, %vm144_vm2  ;;  %v6535_v12 = vadd.s32 56, %v6486_v1  ;;  %vm148_vm13 = vcmp.eq.s32.totalorder %v6498_v5, %v6505_v8  ;;  %vm149_vm14 = vcmp.eq.s32.totalorder %v6501_v6, %v6505_v8  ;;  %vm98_vm2 = vcmp.eq.s32.totalorder %v6532_v11, %v6503_v7  ;;  %v6886_v57 = vld [vmem:[#allocation8 + $0x40] sm:$0xff]  ;;  %v6896_v59 = vld [vmem:[#allocation7 + $0x48] sm:$0xff]  ;;  %p6382_p7 = por %p6381_p6, %p6380_p5 }
  0x52   :  { %5800 = vmatprep.subr.msk.bf16.mxu1 %vm5799_vm9, %v6411_v10  ;;  %5770 = vmatpush3.bf16.msk.msra.mxu0 %vm5767_vm4, %v6411_v10  ;;  %vm5771_vm12 = vmpackc.low %vm95_vm6, %vm94_vm5  ;;  %v6567_v16 = vadd.s32 64, %v6486_v1  ;;  %v6570_v17 = vadd.s32 72, %v6486_v1  ;;  %vm150_vm4 = vcmp.eq.s32.totalorder %v6532_v11, %v6505_v8  ;;  %v6598_v20 = vadd.s32 80, %v6486_v1  ;;  %v6910_v61 = vld [vmem:[#allocation8 + $0x48] sm:$0xff]  ;;  %v6920_v62 = vld [vmem:[#allocation7 + $0x50] sm:$0xff] }
  0x53   :  { %5802 = vmatpush3.bf16.msk.msra.mxu1 %vm5799_vm9, %v6411_v10  ;;  %5772 = vmatprep.subr.msk.bf16.mxu0 %vm5771_vm12, %v6411_v10  ;;  %vm5803_vm15 = vmpackc.low %vm147_vm8, %vm146_vm7  ;;  %vm99_vm3 = vcmp.eq.s32.totalorder %v6535_v12, %v6503_v7  ;;  %vm151_vm5 = vcmp.eq.s32.totalorder %v6535_v12, %v6505_v8  ;;  %v6601_v21 = vadd.s32 88, %v6486_v1  ;;  %v6632_v24 = vadd.s32 96, %v6486_v1  ;;  %v6926_v63 = vld [vmem:[#allocation8 + $0x50] sm:$0xff]  ;;  %v6950_v14 = vld [vmem:[#allocation8 + $0x58] sm:$0xff]  ;;  %p6383_p8 = pnand %p6382_p7, %p6376_p4 }
  0x54   :  { %5804 = vmatprep.subr.msk.bf16.mxu1 %vm5803_vm15, %v6411_v10  ;;  %vm6554_vm0 = vmpackc.low %vm97_vm11, %vm96_vm10  ;;  %vm100_vm8 = vcmp.eq.s32.totalorder %v6567_v16, %v6503_v7  ;;  %vm101_vm9 = vcmp.eq.s32.totalorder %v6570_v17, %v6503_v7  ;;  %vm152_vm10 = vcmp.eq.s32.totalorder %v6567_v16, %v6505_v8  ;;  %vm153_vm11 = vcmp.eq.s32.totalorder %v6570_v17, %v6505_v8  ;;  %v6960_v15 = vld [vmem:[#allocation7 + $0x60] sm:$0xff]  ;;  %v6976_v22 = vld [vmem:[#allocation7 + $0x68] sm:$0xff] }
  0x55   :  { %vm6558_vm1 = vmpackc.low %vm149_vm14, %vm148_vm13  ;;  %vm102_vm14 = vcmp.eq.s32.totalorder %v6598_v20, %v6503_v7  ;;  %v6635_v25 = vadd.s32 104, %v6486_v1  ;;  %v6666_v28 = vadd.s32 112, %v6486_v1  ;;  %v6669_v29 = vadd.s32 120, %v6486_v1  ;;  %v6966_v18 = vld [vmem:[#allocation8 + $0x60] sm:$0xff]  ;;  %v6990_v26 = vld [vmem:[#allocation8 + $0x68] sm:$0xff] }
  0x56   :  { %5774 = vmatpush3.bf16.msk.msra.mxu0 %vm5771_vm12, %v6411_v10  ;;  %vm6585_vm6 = vmpackc.low %vm99_vm3, %vm98_vm2  ;;  %v6996_v27 = vld [vmem:[#allocation2 + $0x2] ss:$0 sm:$0xff]  ;;  %v7004_v31 = vld [vmem:[#allocation5 + $0x2] ss:$0 sm:$0xff] }
  0x57   :  { %5806 = vmatpush3.bf16.msk.msra.mxu1 %vm5803_vm15, %v6411_v10  ;;  %5776 = vmatprep.subr.msk.bf16.mxu0 %vm6554_vm0, %v6411_v10  ;;  %vm6589_vm7 = vmpackc.low %vm151_vm5, %vm150_vm4  ;;  %vm103_vm15 = vcmp.eq.s32.totalorder %v6601_v21, %v6503_v7  ;;  %vm104_vm4 = vcmp.eq.s32.totalorder %v6632_v24, %v6503_v7  ;;  %vm105_vm5 = vcmp.eq.s32.totalorder %v6635_v25, %v6503_v7  ;;  %v7002_v30 = vld [vmem:[#allocation7 + $0x70] sm:$0xff]  ;;  %v7023_v35 = vld [vmem:[#allocation7 + $0x78] sm:$0xff] }
  0x58   :  { %5808 = vmatprep.subr.msk.bf16.mxu1 %vm6558_vm1, %v6411_v10  ;;  %vm6619_vm12 = vmpackc.low %vm101_vm9, %vm100_vm8  ;;  %v7010_v34 = vld [vmem:[#allocation8 + $0x70] sm:$0xff]  ;;  %v7937_v19 = vld [vmem:[#allocation8 + $0x28] sm:$0xff] }
  0x59   :  { %vm6623_vm13 = vmpackc.low %vm153_vm11, %vm152_vm10  ;;  %vm106_vm10 = vcmp.eq.s32.totalorder %v6666_v28, %v6503_v7  ;;  %vm107_vm11 = vcmp.eq.s32.totalorder %v6669_v29, %v6503_v7  ;;  %v6936_v7 = vld [vmem:[#allocation7 + $0x58] sm:$0xff]  ;;  %v7267_v46 = vld [vmem:[#allocation2 + $0x3] ss:$0 sm:$0xff] }
  0x5a   :  { %5778 = vmatpush3.bf16.msk.msra.mxu0 %vm6554_vm0, %v6411_v10  ;;  %vm154_vm0 = vcmp.eq.s32.totalorder %v6598_v20, %v6505_v8  ;;  %vm6653_vm2 = vmpackc.low %vm103_vm15, %vm102_vm14  ;;  %v7527_v54 = vld [vmem:[#allocation2 + $0x4] ss:$0 sm:$0xff]  ;;  %v7963_v42 = vld [vmem:[#allocation7 + $0x38] sm:$0xff] }
  0x5b   :  { %5810 = vmatpush3.bf16.msk.msra.mxu1 %vm6558_vm1, %v6411_v10  ;;  %5780 = vmatprep.subr.msk.bf16.mxu0 %vm6585_vm6, %v6411_v10  ;;  %vm155_vm1 = vcmp.eq.s32.totalorder %v6601_v21, %v6505_v8  ;;  %vm6687_vm8 = vmpackc.low %vm105_vm5, %vm104_vm4  ;;  %v7947_v23 = vld [vmem:[#allocation7 + $0x30] sm:$0xff]  ;;  %v7987_v52 = vld [vmem:[#allocation7 + $0x40] sm:$0xff] }
  0x5c   :  { %5812 = vmatprep.subr.msk.bf16.mxu1 %vm6589_vm7, %v6411_v10  ;;  %vm6657_vm3 = vmpackc.low %vm155_vm1, %vm154_vm0  ;;  %vm558_vm0 = vcmp.eq.s32.totalorder %v6486_v1, %v6706_v32  ;;  %vm559_vm1 = vcmp.eq.s32.totalorder %v6489_v2, %v6706_v32  ;;  %v8003_v58 = vld [vmem:[#allocation7 + $0x48] sm:$0xff]  ;;  %v8027_v0 = vld [vmem:[#allocation7 + $0x50] sm:$0xff] }
  0x5d   :  { %vm5795_vm14 = vmpackc.low %vm107_vm11, %vm106_vm10  ;;  %v8017_v60 = vld [vmem:[#allocation8 + $0x48] sm:$0xff] }
  0x5e   :  { %5782 = vmatpush3.bf16.msk.msra.mxu0 %vm6585_vm6, %v6411_v10  ;;  %vm156_vm6 = vcmp.eq.s32.totalorder %v6632_v24, %v6505_v8  ;;  %vm6735_vm4 = vmpackc.low %vm559_vm1, %vm558_vm0 }
  0x5f   :  { %5814 = vmatpush3.bf16.msk.msra.mxu1 %vm6589_vm7, %v6411_v10  ;;  %5784 = vmatprep.subr.msk.bf16.mxu0 %vm6619_vm12, %v6411_v10  ;;  %vm157_vm7 = vcmp.eq.s32.totalorder %v6635_v25, %v6505_v8 }
  0x60   :  { %5816 = vmatprep.subr.msk.bf16.mxu1 %vm6623_vm13, %v6411_v10  ;;  %vm6691_vm9 = vmpackc.low %vm157_vm7, %vm156_vm6  ;;  %vm560_vm6 = vcmp.eq.s32.totalorder %v6492_v3, %v6706_v32  ;;  %vm561_vm7 = vcmp.eq.s32.totalorder %v6495_v4, %v6706_v32 }
  0x61   :  { %vm6768_vm10 = vmpackc.low %vm561_vm7, %vm560_vm6 }
  0x62   :  { %5786 = vmatpush3.bf16.msk.msra.mxu0 %vm6619_vm12, %v6411_v10  ;;  %vm158_vm12 = vcmp.eq.s32.totalorder %v6666_v28, %v6505_v8 }
  0x63   :  { %5818 = vmatpush3.bf16.msk.msra.mxu1 %vm6623_vm13, %v6411_v10  ;;  %5788 = vmatprep.subr.msk.bf16.mxu0 %vm6653_vm2, %v6411_v10  ;;  %vm159_vm13 = vcmp.eq.s32.totalorder %v6669_v29, %v6505_v8 }
  0x64   :  { %5820 = vmatprep.subr.msk.bf16.mxu1 %vm6657_vm3, %v6411_v10  ;;  %vm5827_vm15 = vmpackc.low %vm159_vm13, %vm158_vm12  ;;  %vm562_vm12 = vcmp.eq.s32.totalorder %v6498_v5, %v6706_v32  ;;  %vm563_vm13 = vcmp.eq.s32.totalorder %v6501_v6, %v6706_v32 }
  0x65   :  { %vm6808_vm0 = vmpackc.low %vm563_vm13, %vm562_vm12 }
  0x66   :  { %5790 = vmatpush3.bf16.msk.msra.mxu0 %vm6653_vm2, %v6411_v10  ;;  %vm610_vm2 = vcmp.eq.s32.totalorder %v6486_v1, %v6714_v33 }
  0x67   :  { %5822 = vmatpush3.bf16.msk.msra.mxu1 %vm6657_vm3, %v6411_v10  ;;  %5792 = vmatprep.subr.msk.bf16.mxu0 %vm6687_vm8, %v6411_v10  ;;  %vm611_vm3 = vcmp.eq.s32.totalorder %v6489_v2, %v6714_v33 }
  0x68   :  { %5824 = vmatprep.subr.msk.bf16.mxu1 %vm6691_vm9, %v6411_v10  ;;  %vm6739_vm5 = vmpackc.low %vm611_vm3, %vm610_vm2  ;;  %vm564_vm2 = vcmp.eq.s32.totalorder %v6532_v11, %v6706_v32  ;;  %vm565_vm3 = vcmp.eq.s32.totalorder %v6535_v12, %v6706_v32 }
  0x69   :  { %vm6848_vm6 = vmpackc.low %vm565_vm3, %vm564_vm2 }
  0x6a   :  { %5794 = vmatpush3.bf16.msk.msra.mxu0 %vm6687_vm8, %v6411_v10  ;;  %vm612_vm8 = vcmp.eq.s32.totalorder %v6492_v3, %v6714_v33 }
  0x6b   :  { %5826 = vmatpush3.bf16.msk.msra.mxu1 %vm6691_vm9, %v6411_v10  ;;  %5796 = vmatprep.subr.msk.bf16.mxu0 %vm5795_vm14, %v6411_v10  ;;  %vm613_vm9 = vcmp.eq.s32.totalorder %v6495_v4, %v6714_v33 }
  0x6c   :  { %5828 = vmatprep.subr.msk.bf16.mxu1 %vm5827_vm15, %v6411_v10  ;;  %vm6778_vm11 = vmpackc.low %vm613_vm9, %vm612_vm8  ;;  %vm566_vm8 = vcmp.eq.s32.totalorder %v6567_v16, %v6706_v32  ;;  %vm567_vm9 = vcmp.eq.s32.totalorder %v6570_v17, %v6706_v32 }
  0x6d   :  { %vm6888_vm12 = vmpackc.low %vm567_vm9, %vm566_vm8 }
  0x6e   :  { %5798 = vmatpush3.bf16.msk.msra.mxu0 %vm5795_vm14, %v6411_v10  ;;  %vm614_vm14 = vcmp.eq.s32.totalorder %v6498_v5, %v6714_v33 }
  0x6f   :  { %5830 = vmatpush3.bf16.msk.msra.mxu1 %vm5827_vm15, %v6411_v10  ;;  %5832 = vmatprep.subr.msk.bf16.mxu0 %vm6735_vm4, %v6411_v10  ;;  %vm615_vm15 = vcmp.eq.s32.totalorder %v6501_v6, %v6714_v33 }
  0x70   :  { %5864 = vmatprep.subr.msk.bf16.mxu1 %vm6739_vm5, %v6411_v10  ;;  %vm6818_vm1 = vmpackc.low %vm615_vm15, %vm614_vm14  ;;  %vm568_vm14 = vcmp.eq.s32.totalorder %v6598_v20, %v6706_v32  ;;  %vm569_vm15 = vcmp.eq.s32.totalorder %v6601_v21, %v6706_v32 }
  0x71   :  { %4904 = vmatmul.mubr.f32.vlgmr.msra.gmra.mrb[0].mxu0 %v6744_v36  ;;  %vm6928_vm2 = vmpackc.low %vm569_vm15, %vm568_vm14 }
  0x72   :  { %4960 = vmatmul.mubr.f32.vlgmr.msra.gmra.mrb[0].mxu1 %v6751_v37  ;;  %5834 = vmatpush3.bf16.msk.msra.mxu0 %vm6735_vm4, %v6411_v10  ;;  %vm616_vm4 = vcmp.eq.s32.totalorder %v6532_v11, %v6714_v33 }
  0x73   :  { %5866 = vmatpush3.bf16.msk.msra.mxu1 %vm6739_vm5, %v6411_v10  ;;  %4906 = vmatprep.mubr.f32.mxu0 %v6763_v38  ;;  %vm617_vm5 = vcmp.eq.s32.totalorder %v6535_v12, %v6714_v33 }
  0x74   :  { %4962 = vmatprep.mubr.f32.mxu1 %v6766_v39  ;;  %5836 = vmatprep.subr.msk.bf16.mxu0 %vm6768_vm10, %v6411_v10  ;;  %vm6858_vm7 = vmpackc.low %vm617_vm5, %vm616_vm4  ;;  %vm570_vm4 = vcmp.eq.s32.totalorder %v6632_v24, %v6706_v32  ;;  %vm571_vm5 = vcmp.eq.s32.totalorder %v6635_v25, %v6706_v32 }
  0x75   :  { %4907 = vmatmul.mubr.f32.gmra.mrb[2].mxu0 %v6776_v41  ;;  %5868 = vmatprep.subr.msk.bf16.mxu1 %vm6778_vm11, %v6411_v10  ;;  %vm6968_vm8 = vmpackc.low %vm571_vm5, %vm570_vm4 }
  0x76   :  { %4963 = vmatmul.mubr.f32.gmra.mrb[2].mxu1 %v6790_v43  ;;  %5838 = vmatpush3.bf16.msk.msra.mxu0 %vm6768_vm10, %v6411_v10  ;;  %vm618_vm10 = vcmp.eq.s32.totalorder %v6567_v16, %v6714_v33 }
  0x77   :  { %5870 = vmatpush3.bf16.msk.msra.mxu1 %vm6778_vm11, %v6411_v10  ;;  %4909 = vmatprep.mubr.f32.mxu0 %v6800_v44  ;;  %vm619_vm11 = vcmp.eq.s32.totalorder %v6570_v17, %v6714_v33 }
  0x78   :  { %4965 = vmatprep.mubr.f32.mxu1 %v6806_v45  ;;  %5840 = vmatprep.subr.msk.bf16.mxu0 %vm6808_vm0, %v6411_v10  ;;  %vm6898_vm13 = vmpackc.low %vm619_vm11, %vm618_vm10  ;;  %vm572_vm10 = vcmp.eq.s32.totalorder %v6666_v28, %v6706_v32  ;;  %vm573_vm11 = vcmp.eq.s32.totalorder %v6669_v29, %v6706_v32  ;;  %v7037_v32 = vld [vmem:[#allocation8 + $0x78] sm:$0xff] }
  0x79   :  { %4910 = vmatmul.mubr.f32.gmra.mrb[4].mxu0 %v6816_v47  ;;  %5872 = vmatprep.subr.msk.bf16.mxu1 %vm6818_vm1, %v6411_v10  ;;  %vm7015_vm14 = vmpackc.low %vm573_vm11, %vm572_vm10 }
  0x7a   :  { %4966 = vmatmul.mubr.f32.gmra.mrb[4].mxu1 %v6830_v49  ;;  %5842 = vmatpush3.bf16.msk.msra.mxu0 %vm6808_vm0, %v6411_v10  ;;  %vm620_vm0 = vcmp.eq.s32.totalorder %v6598_v20, %v6714_v33 }
  0x7b   :  { %5874 = vmatpush3.bf16.msk.msra.mxu1 %vm6818_vm1, %v6411_v10  ;;  %4912 = vmatprep.mubr.f32.mxu0 %v6840_v50  ;;  %vm621_vm1 = vcmp.eq.s32.totalorder %v6601_v21, %v6714_v33 }
  0x7c   :  { %4968 = vmatprep.mubr.f32.mxu1 %v6846_v51  ;;  %5844 = vmatprep.subr.msk.bf16.mxu0 %vm6848_vm6, %v6411_v10  ;;  %vm6938_vm3 = vmpackc.low %vm621_vm1, %vm620_vm0  ;;  %vm1024_vm0 = vcmp.eq.s32.totalorder %v6486_v1, %v6996_v27  ;;  %vm1025_vm1 = vcmp.eq.s32.totalorder %v6489_v2, %v6996_v27 }
  0x7d   :  { %4913 = vmatmul.mubr.f32.gmra.mrb[6].mxu0 %v6856_v53  ;;  %5876 = vmatprep.subr.msk.bf16.mxu1 %vm6858_vm7, %v6411_v10  ;;  %vm7051_vm4 = vmpackc.low %vm1025_vm1, %vm1024_vm0 }
  0x7e   :  { %4969 = vmatmul.mubr.f32.gmra.mrb[6].mxu1 %v6870_v55  ;;  %5846 = vmatpush3.bf16.msk.msra.mxu0 %vm6848_vm6, %v6411_v10  ;;  %vm622_vm6 = vcmp.eq.s32.totalorder %v6632_v24, %v6714_v33 }
  0x7f   :  { %5878 = vmatpush3.bf16.msk.msra.mxu1 %vm6858_vm7, %v6411_v10  ;;  %4915 = vmatprep.mubr.f32.mxu0 %v6880_v56  ;;  %vm623_vm7 = vcmp.eq.s32.totalorder %v6635_v25, %v6714_v33 }
  0x80   :  { %4971 = vmatprep.mubr.f32.mxu1 %v6886_v57  ;;  %5848 = vmatprep.subr.msk.bf16.mxu0 %vm6888_vm12, %v6411_v10  ;;  %vm6978_vm9 = vmpackc.low %vm623_vm7, %vm622_vm6  ;;  %vm1026_vm6 = vcmp.eq.s32.totalorder %v6492_v3, %v6996_v27  ;;  %vm1027_vm7 = vcmp.eq.s32.totalorder %v6495_v4, %v6996_v27 }
  0x81   :  { %4916 = vmatmul.mubr.f32.gmra.mrb[8].mxu0 %v6896_v59  ;;  %5880 = vmatprep.subr.msk.bf16.mxu1 %vm6898_vm13, %v6411_v10  ;;  %vm7083_vm10 = vmpackc.low %vm1027_vm7, %vm1026_vm6 }
  0x82   :  { %4972 = vmatmul.mubr.f32.gmra.mrb[8].mxu1 %v6910_v61  ;;  %5850 = vmatpush3.bf16.msk.msra.mxu0 %vm6888_vm12, %v6411_v10  ;;  %vm624_vm12 = vcmp.eq.s32.totalorder %v6666_v28, %v6714_v33 }
  0x83   :  { %5882 = vmatpush3.bf16.msk.msra.mxu1 %vm6898_vm13, %v6411_v10  ;;  %4918 = vmatprep.mubr.f32.mxu0 %v6920_v62  ;;  %vm625_vm13 = vcmp.eq.s32.totalorder %v6669_v29, %v6714_v33  ;;  %v7953_v33 = vld [vmem:[#allocation8 + $0x30] sm:$0xff] }
  0x84   :  { %4974 = vmatprep.mubr.f32.mxu1 %v6926_v63  ;;  %5852 = vmatprep.subr.msk.bf16.mxu0 %vm6928_vm2, %v6411_v10  ;;  %vm7025_vm15 = vmpackc.low %vm625_vm13, %vm624_vm12  ;;  %vm1028_vm12 = vcmp.eq.s32.totalorder %v6498_v5, %v6996_v27  ;;  %vm1029_vm13 = vcmp.eq.s32.totalorder %v6501_v6, %v6996_v27 }
  0x85   :  { %4919 = vmatmul.mubr.f32.gmra.mrb[10].mxu0 %v6936_v7  ;;  %5884 = vmatprep.subr.msk.bf16.mxu1 %vm6938_vm3, %v6411_v10  ;;  %vm7115_vm0 = vmpackc.low %vm1029_vm13, %vm1028_vm12 }
  0x86   :  { %4975 = vmatmul.mubr.f32.gmra.mrb[10].mxu1 %v6950_v14  ;;  %5854 = vmatpush3.bf16.msk.msra.mxu0 %vm6928_vm2, %v6411_v10  ;;  %vm1076_vm2 = vcmp.eq.s32.totalorder %v6486_v1, %v7004_v31 }
  0x87   :  { %5886 = vmatpush3.bf16.msk.msra.mxu1 %vm6938_vm3, %v6411_v10  ;;  %4921 = vmatprep.mubr.f32.mxu0 %v6960_v15  ;;  %vm1077_vm3 = vcmp.eq.s32.totalorder %v6489_v2, %v7004_v31 }
  0x88   :  { %4977 = vmatprep.mubr.f32.mxu1 %v6966_v18  ;;  %5856 = vmatprep.subr.msk.bf16.mxu0 %vm6968_vm8, %v6411_v10  ;;  %vm7059_vm5 = vmpackc.low %vm1077_vm3, %vm1076_vm2  ;;  %vm1030_vm2 = vcmp.eq.s32.totalorder %v6532_v11, %v6996_v27  ;;  %vm1031_vm3 = vcmp.eq.s32.totalorder %v6535_v12, %v6996_v27 }
  0x89   :  { %4922 = vmatmul.mubr.f32.gmra.mrb[12].mxu0 %v6976_v22  ;;  %5888 = vmatprep.subr.msk.bf16.mxu1 %vm6978_vm9, %v6411_v10  ;;  %vm7147_vm6 = vmpackc.low %vm1031_vm3, %vm1030_vm2 }
  0x8a   :  { %4978 = vmatmul.mubr.f32.gmra.mrb[12].mxu1 %v6990_v26  ;;  %5858 = vmatpush3.bf16.msk.msra.mxu0 %vm6968_vm8, %v6411_v10  ;;  %vm1078_vm8 = vcmp.eq.s32.totalorder %v6492_v3, %v7004_v31 }
  0x8b   :  { %5890 = vmatpush3.bf16.msk.msra.mxu1 %vm6978_vm9, %v6411_v10  ;;  %4924 = vmatprep.mubr.f32.mxu0 %v7002_v30  ;;  %vm1079_vm9 = vcmp.eq.s32.totalorder %v6495_v4, %v7004_v31 }
  0x8c   :  { %4980 = vmatprep.mubr.f32.mxu1 %v7010_v34  ;;  %5860 = vmatprep.subr.msk.bf16.mxu0 %vm7015_vm14, %v6411_v10  ;;  %vm7091_vm11 = vmpackc.low %vm1079_vm9, %vm1078_vm8  ;;  %vm1032_vm8 = vcmp.eq.s32.totalorder %v6567_v16, %v6996_v27  ;;  %vm1033_vm9 = vcmp.eq.s32.totalorder %v6570_v17, %v6996_v27 }
  0x8d   :  { %4925 = vmatmul.mubr.f32.gmra.mrb[14].mxu0 %v7023_v35  ;;  %5892 = vmatprep.subr.msk.bf16.mxu1 %vm7025_vm15, %v6411_v10  ;;  %vm7179_vm12 = vmpackc.low %vm1033_vm9, %vm1032_vm8 }
  0x8e   :  { %4981 = vmatmul.mubr.f32.gmra.mrb[14].mxu1 %v7037_v32  ;;  %5862 = vmatpush3.bf16.msk.msra.mxu0 %vm7015_vm14, %v6411_v10  ;;  %vm1080_vm14 = vcmp.eq.s32.totalorder %v6498_v5, %v7004_v31 }
  0x8f   :  { %5894 = vmatpush3.bf16.msk.msra.mxu1 %vm7025_vm15, %v6411_v10  ;;  %5015 = vmatprep.mubr.f32.mxu0 %v6515_v9  ;;  %vm1081_vm15 = vcmp.eq.s32.totalorder %v6501_v6, %v7004_v31 }
  0x90   :  { %5071 = vmatprep.mubr.f32.mxu1 %v6543_v13  ;;  %5896 = vmatprep.subr.msk.bf16.mxu0 %vm7051_vm4, %v6411_v10  ;;  %vm7123_vm1 = vmpackc.low %vm1081_vm15, %vm1080_vm14  ;;  %vm1034_vm14 = vcmp.eq.s32.totalorder %v6598_v20, %v6996_v27  ;;  %vm1035_vm15 = vcmp.eq.s32.totalorder %v6601_v21, %v6996_v27 }
  0x91   :  { %5016 = vmatmul.mubr.f32.vlgmr.msra.gmra.mrb[16].mxu0 %v6744_v36  ;;  %5928 = vmatprep.subr.msk.bf16.mxu1 %vm7059_vm5, %v6411_v10  ;;  %vm7211_vm2 = vmpackc.low %vm1035_vm15, %vm1034_vm14 }
  0x92   :  { %5072 = vmatmul.mubr.f32.vlgmr.msra.gmra.mrb[16].mxu1 %v6751_v37  ;;  %5898 = vmatpush3.bf16.msk.msra.mxu0 %vm7051_vm4, %v6411_v10  ;;  %vm1082_vm4 = vcmp.eq.s32.totalorder %v6532_v11, %v7004_v31 }
  0x93   :  { %5930 = vmatpush3.bf16.msk.msra.mxu1 %vm7059_vm5, %v6411_v10  ;;  %5018 = vmatprep.mubr.f32.mxu0 %v6763_v38  ;;  %vm1083_vm5 = vcmp.eq.s32.totalorder %v6535_v12, %v7004_v31 }
  0x94   :  { %5074 = vmatprep.mubr.f32.mxu1 %v6766_v39  ;;  %5900 = vmatprep.subr.msk.bf16.mxu0 %vm7083_vm10, %v6411_v10  ;;  %vm7155_vm7 = vmpackc.low %vm1083_vm5, %vm1082_vm4  ;;  %vm1036_vm4 = vcmp.eq.s32.totalorder %v6632_v24, %v6996_v27  ;;  %vm1037_vm5 = vcmp.eq.s32.totalorder %v6635_v25, %v6996_v27 }
  0x95   :  { %5019 = vmatmul.mubr.f32.gmra.mrb[18].mxu0 %v6776_v41  ;;  %5932 = vmatprep.subr.msk.bf16.mxu1 %vm7091_vm11, %v6411_v10  ;;  %vm7243_vm8 = vmpackc.low %vm1037_vm5, %vm1036_vm4 }
  0x96   :  { %5075 = vmatmul.mubr.f32.gmra.mrb[18].mxu1 %v6790_v43  ;;  %5902 = vmatpush3.bf16.msk.msra.mxu0 %vm7083_vm10, %v6411_v10  ;;  %vm1084_vm10 = vcmp.eq.s32.totalorder %v6567_v16, %v7004_v31 }
  0x97   :  { %5934 = vmatpush3.bf16.msk.msra.mxu1 %vm7091_vm11, %v6411_v10  ;;  %5021 = vmatprep.mubr.f32.mxu0 %v6800_v44  ;;  %vm1085_vm11 = vcmp.eq.s32.totalorder %v6570_v17, %v7004_v31 }
  0x98   :  { %5077 = vmatprep.mubr.f32.mxu1 %v6806_v45  ;;  %5904 = vmatprep.subr.msk.bf16.mxu0 %vm7115_vm0, %v6411_v10  ;;  %vm7187_vm13 = vmpackc.low %vm1085_vm11, %vm1084_vm10  ;;  %vm1038_vm10 = vcmp.eq.s32.totalorder %v6666_v28, %v6996_v27  ;;  %vm1039_vm11 = vcmp.eq.s32.totalorder %v6669_v29, %v6996_v27  ;;  %v7273_v27 = vld [vmem:[#allocation5 + $0x3] ss:$0 sm:$0xff] }
  0x99   :  { %5022 = vmatmul.mubr.f32.gmra.mrb[20].mxu0 %v6816_v47  ;;  %5936 = vmatprep.subr.msk.bf16.mxu1 %vm7123_vm1, %v6411_v10  ;;  %vm7279_vm14 = vmpackc.low %vm1039_vm11, %vm1038_vm10 }
  0x9a   :  { %5078 = vmatmul.mubr.f32.gmra.mrb[20].mxu1 %v6830_v49  ;;  %5906 = vmatpush3.bf16.msk.msra.mxu0 %vm7115_vm0, %v6411_v10  ;;  %vm1086_vm0 = vcmp.eq.s32.totalorder %v6598_v20, %v7004_v31 }
  0x9b   :  { %5938 = vmatpush3.bf16.msk.msra.mxu1 %vm7123_vm1, %v6411_v10  ;;  %5024 = vmatprep.mubr.f32.mxu0 %v6840_v50  ;;  %vm1087_vm1 = vcmp.eq.s32.totalorder %v6601_v21, %v7004_v31 }
  0x9c   :  { %5080 = vmatprep.mubr.f32.mxu1 %v6846_v51  ;;  %5908 = vmatprep.subr.msk.bf16.mxu0 %vm7147_vm6, %v6411_v10  ;;  %vm7219_vm3 = vmpackc.low %vm1087_vm1, %vm1086_vm0  ;;  %vm1490_vm0 = vcmp.eq.s32.totalorder %v6486_v1, %v7267_v46  ;;  %vm1491_vm1 = vcmp.eq.s32.totalorder %v6489_v2, %v7267_v46 }
  0x9d   :  { %5025 = vmatmul.mubr.f32.gmra.mrb[22].mxu0 %v6856_v53  ;;  %5940 = vmatprep.subr.msk.bf16.mxu1 %vm7155_vm7, %v6411_v10  ;;  %vm7311_vm4 = vmpackc.low %vm1491_vm1, %vm1490_vm0 }
  0x9e   :  { %5081 = vmatmul.mubr.f32.gmra.mrb[22].mxu1 %v6870_v55  ;;  %5910 = vmatpush3.bf16.msk.msra.mxu0 %vm7147_vm6, %v6411_v10  ;;  %vm1088_vm6 = vcmp.eq.s32.totalorder %v6632_v24, %v7004_v31 }
  0x9f   :  { %5942 = vmatpush3.bf16.msk.msra.mxu1 %vm7155_vm7, %v6411_v10  ;;  %5027 = vmatprep.mubr.f32.mxu0 %v6880_v56  ;;  %vm1089_vm7 = vcmp.eq.s32.totalorder %v6635_v25, %v7004_v31 }
  0xa0   :  { %5083 = vmatprep.mubr.f32.mxu1 %v6886_v57  ;;  %5912 = vmatprep.subr.msk.bf16.mxu0 %vm7179_vm12, %v6411_v10  ;;  %vm7251_vm9 = vmpackc.low %vm1089_vm7, %vm1088_vm6  ;;  %vm1492_vm6 = vcmp.eq.s32.totalorder %v6492_v3, %v7267_v46  ;;  %vm1493_vm7 = vcmp.eq.s32.totalorder %v6495_v4, %v7267_v46 }
  0xa1   :  { %5028 = vmatmul.mubr.f32.gmra.mrb[24].mxu0 %v6896_v59  ;;  %5944 = vmatprep.subr.msk.bf16.mxu1 %vm7187_vm13, %v6411_v10  ;;  %vm7343_vm10 = vmpackc.low %vm1493_vm7, %vm1492_vm6 }
  0xa2   :  { %5084 = vmatmul.mubr.f32.gmra.mrb[24].mxu1 %v6910_v61  ;;  %5914 = vmatpush3.bf16.msk.msra.mxu0 %vm7179_vm12, %v6411_v10  ;;  %vm1090_vm12 = vcmp.eq.s32.totalorder %v6666_v28, %v7004_v31 }
  0xa3   :  { %5946 = vmatpush3.bf16.msk.msra.mxu1 %vm7187_vm13, %v6411_v10  ;;  %5030 = vmatprep.mubr.f32.mxu0 %v6920_v62  ;;  %vm1091_vm13 = vcmp.eq.s32.totalorder %v6669_v29, %v7004_v31  ;;  %v7977_v31 = vld [vmem:[#allocation8 + $0x38] sm:$0xff] }
  0xa4   :  { %5086 = vmatprep.mubr.f32.mxu1 %v6926_v63  ;;  %5916 = vmatprep.subr.msk.bf16.mxu0 %vm7211_vm2, %v6411_v10  ;;  %vm7287_vm15 = vmpackc.low %vm1091_vm13, %vm1090_vm12  ;;  %vm1494_vm12 = vcmp.eq.s32.totalorder %v6498_v5, %v7267_v46  ;;  %vm1495_vm13 = vcmp.eq.s32.totalorder %v6501_v6, %v7267_v46 }
  0xa5   :  { %5031 = vmatmul.mubr.f32.gmra.mrb[26].mxu0 %v6936_v7  ;;  %5948 = vmatprep.subr.msk.bf16.mxu1 %vm7219_vm3, %v6411_v10  ;;  %vm7375_vm0 = vmpackc.low %vm1495_vm13, %vm1494_vm12 }
  0xa6   :  { %5087 = vmatmul.mubr.f32.gmra.mrb[26].mxu1 %v6950_v14  ;;  %5918 = vmatpush3.bf16.msk.msra.mxu0 %vm7211_vm2, %v6411_v10  ;;  %vm1542_vm2 = vcmp.eq.s32.totalorder %v6486_v1, %v7273_v27 }
  0xa7   :  { %5950 = vmatpush3.bf16.msk.msra.mxu1 %vm7219_vm3, %v6411_v10  ;;  %5033 = vmatprep.mubr.f32.mxu0 %v6960_v15  ;;  %vm1543_vm3 = vcmp.eq.s32.totalorder %v6489_v2, %v7273_v27 }
  0xa8   :  { %5089 = vmatprep.mubr.f32.mxu1 %v6966_v18  ;;  %5920 = vmatprep.subr.msk.bf16.mxu0 %vm7243_vm8, %v6411_v10  ;;  %vm7319_vm5 = vmpackc.low %vm1543_vm3, %vm1542_vm2  ;;  %vm1496_vm2 = vcmp.eq.s32.totalorder %v6532_v11, %v7267_v46  ;;  %vm1497_vm3 = vcmp.eq.s32.totalorder %v6535_v12, %v7267_v46 }
  0xa9   :  { %5034 = vmatmul.mubr.f32.gmra.mrb[28].mxu0 %v6976_v22  ;;  %5952 = vmatprep.subr.msk.bf16.mxu1 %vm7251_vm9, %v6411_v10  ;;  %vm7407_vm6 = vmpackc.low %vm1497_vm3, %vm1496_vm2 }
  0xaa   :  { %5090 = vmatmul.mubr.f32.gmra.mrb[28].mxu1 %v6990_v26  ;;  %5922 = vmatpush3.bf16.msk.msra.mxu0 %vm7243_vm8, %v6411_v10  ;;  %vm1544_vm8 = vcmp.eq.s32.totalorder %v6492_v3, %v7273_v27 }
  0xab   :  { %5954 = vmatpush3.bf16.msk.msra.mxu1 %vm7251_vm9, %v6411_v10  ;;  %5036 = vmatprep.mubr.f32.mxu0 %v7002_v30  ;;  %vm1545_vm9 = vcmp.eq.s32.totalorder %v6495_v4, %v7273_v27 }
  0xac   :  { %5092 = vmatprep.mubr.f32.mxu1 %v7010_v34  ;;  %5924 = vmatprep.subr.msk.bf16.mxu0 %vm7279_vm14, %v6411_v10  ;;  %vm7351_vm11 = vmpackc.low %vm1545_vm9, %vm1544_vm8  ;;  %vm1498_vm8 = vcmp.eq.s32.totalorder %v6567_v16, %v7267_v46  ;;  %vm1499_vm9 = vcmp.eq.s32.totalorder %v6570_v17, %v7267_v46 }
  0xad   :  { %5037 = vmatmul.mubr.f32.gmra.mrb[30].mxu0 %v7023_v35  ;;  %5956 = vmatprep.subr.msk.bf16.mxu1 %vm7287_vm15, %v6411_v10  ;;  %vm7439_vm12 = vmpackc.low %vm1499_vm9, %vm1498_vm8 }
  0xae   :  { %5093 = vmatmul.mubr.f32.gmra.mrb[30].mxu1 %v7037_v32  ;;  %5926 = vmatpush3.bf16.msk.msra.mxu0 %vm7279_vm14, %v6411_v10  ;;  %vm1546_vm14 = vcmp.eq.s32.totalorder %v6498_v5, %v7273_v27 }
  0xaf   :  { %5958 = vmatpush3.bf16.msk.msra.mxu1 %vm7287_vm15, %v6411_v10  ;;  %5127 = vmatprep.mubr.f32.mxu0 %v6515_v9  ;;  %vm1547_vm15 = vcmp.eq.s32.totalorder %v6501_v6, %v7273_v27 }
  0xb0   :  { %5183 = vmatprep.mubr.f32.mxu1 %v6543_v13  ;;  %5960 = vmatprep.subr.msk.bf16.mxu0 %vm7311_vm4, %v6411_v10  ;;  %vm7383_vm1 = vmpackc.low %vm1547_vm15, %vm1546_vm14  ;;  %vm1500_vm14 = vcmp.eq.s32.totalorder %v6598_v20, %v7267_v46  ;;  %vm1501_vm15 = vcmp.eq.s32.totalorder %v6601_v21, %v7267_v46 }
  0xb1   :  { %5128 = vmatmul.mubr.f32.vlgmr.msra.gmra.mrb[32].mxu0 %v6744_v36  ;;  %5992 = vmatprep.subr.msk.bf16.mxu1 %vm7319_vm5, %v6411_v10  ;;  %vm7471_vm2 = vmpackc.low %vm1501_vm15, %vm1500_vm14 }
  0xb2   :  { %5184 = vmatmul.mubr.f32.vlgmr.msra.gmra.mrb[32].mxu1 %v6751_v37  ;;  %5962 = vmatpush3.bf16.msk.msra.mxu0 %vm7311_vm4, %v6411_v10  ;;  %vm1548_vm4 = vcmp.eq.s32.totalorder %v6532_v11, %v7273_v27 }
  0xb3   :  { %5994 = vmatpush3.bf16.msk.msra.mxu1 %vm7319_vm5, %v6411_v10  ;;  %5130 = vmatprep.mubr.f32.mxu0 %v6763_v38  ;;  %vm1549_vm5 = vcmp.eq.s32.totalorder %v6535_v12, %v7273_v27 }
  0xb4   :  { %5186 = vmatprep.mubr.f32.mxu1 %v6766_v39  ;;  %5964 = vmatprep.subr.msk.bf16.mxu0 %vm7343_vm10, %v6411_v10  ;;  %vm7415_vm7 = vmpackc.low %vm1549_vm5, %vm1548_vm4  ;;  %vm1502_vm4 = vcmp.eq.s32.totalorder %v6632_v24, %v7267_v46  ;;  %vm1503_vm5 = vcmp.eq.s32.totalorder %v6635_v25, %v7267_v46 }
  0xb5   :  { %5131 = vmatmul.mubr.f32.gmra.mrb[34].mxu0 %v6776_v41  ;;  %5996 = vmatprep.subr.msk.bf16.mxu1 %vm7351_vm11, %v6411_v10  ;;  %vm7503_vm8 = vmpackc.low %vm1503_vm5, %vm1502_vm4 }
  0xb6   :  { %5187 = vmatmul.mubr.f32.gmra.mrb[34].mxu1 %v6790_v43  ;;  %5966 = vmatpush3.bf16.msk.msra.mxu0 %vm7343_vm10, %v6411_v10  ;;  %vm1550_vm10 = vcmp.eq.s32.totalorder %v6567_v16, %v7273_v27 }
  0xb7   :  { %5998 = vmatpush3.bf16.msk.msra.mxu1 %vm7351_vm11, %v6411_v10  ;;  %5133 = vmatprep.mubr.f32.mxu0 %v6800_v44  ;;  %vm1551_vm11 = vcmp.eq.s32.totalorder %v6570_v17, %v7273_v27 }
  0xb8   :  { %5189 = vmatprep.mubr.f32.mxu1 %v6806_v45  ;;  %5968 = vmatprep.subr.msk.bf16.mxu0 %vm7375_vm0, %v6411_v10  ;;  %vm7447_vm13 = vmpackc.low %vm1551_vm11, %vm1550_vm10  ;;  %vm1504_vm10 = vcmp.eq.s32.totalorder %v6666_v28, %v7267_v46  ;;  %vm1505_vm11 = vcmp.eq.s32.totalorder %v6669_v29, %v7267_v46  ;;  %v7533_v46 = vld [vmem:[#allocation5 + $0x4] ss:$0 sm:$0xff] }
  0xb9   :  { %5134 = vmatmul.mubr.f32.gmra.mrb[36].mxu0 %v6816_v47  ;;  %6000 = vmatprep.subr.msk.bf16.mxu1 %vm7383_vm1, %v6411_v10  ;;  %vm7539_vm14 = vmpackc.low %vm1505_vm11, %vm1504_vm10 }
  0xba   :  { %5190 = vmatmul.mubr.f32.gmra.mrb[36].mxu1 %v6830_v49  ;;  %5970 = vmatpush3.bf16.msk.msra.mxu0 %vm7375_vm0, %v6411_v10  ;;  %vm1552_vm0 = vcmp.eq.s32.totalorder %v6598_v20, %v7273_v27 }
  0xbb   :  { %6002 = vmatpush3.bf16.msk.msra.mxu1 %vm7383_vm1, %v6411_v10  ;;  %5136 = vmatprep.mubr.f32.mxu0 %v6840_v50  ;;  %vm1553_vm1 = vcmp.eq.s32.totalorder %v6601_v21, %v7273_v27 }
  0xbc   :  { %5192 = vmatprep.mubr.f32.mxu1 %v6846_v51  ;;  %5972 = vmatprep.subr.msk.bf16.mxu0 %vm7407_vm6, %v6411_v10  ;;  %vm7479_vm3 = vmpackc.low %vm1553_vm1, %vm1552_vm0  ;;  %vm1956_vm0 = vcmp.eq.s32.totalorder %v6486_v1, %v7527_v54  ;;  %vm1957_vm1 = vcmp.eq.s32.totalorder %v6489_v2, %v7527_v54 }
  0xbd   :  { %5137 = vmatmul.mubr.f32.gmra.mrb[38].mxu0 %v6856_v53  ;;  %6004 = vmatprep.subr.msk.bf16.mxu1 %vm7415_vm7, %v6411_v10  ;;  %vm7571_vm4 = vmpackc.low %vm1957_vm1, %vm1956_vm0 }
  0xbe   :  { %5193 = vmatmul.mubr.f32.gmra.mrb[38].mxu1 %v6870_v55  ;;  %5974 = vmatpush3.bf16.msk.msra.mxu0 %vm7407_vm6, %v6411_v10  ;;  %vm1554_vm6 = vcmp.eq.s32.totalorder %v6632_v24, %v7273_v27 }
  0xbf   :  { %6006 = vmatpush3.bf16.msk.msra.mxu1 %vm7415_vm7, %v6411_v10  ;;  %5139 = vmatprep.mubr.f32.mxu0 %v6880_v56  ;;  %vm1555_vm7 = vcmp.eq.s32.totalorder %v6635_v25, %v7273_v27 }
  0xc0   :  { %5195 = vmatprep.mubr.f32.mxu1 %v6886_v57  ;;  %5976 = vmatprep.subr.msk.bf16.mxu0 %vm7439_vm12, %v6411_v10  ;;  %vm7511_vm9 = vmpackc.low %vm1555_vm7, %vm1554_vm6  ;;  %vm1958_vm6 = vcmp.eq.s32.totalorder %v6492_v3, %v7527_v54  ;;  %vm1959_vm7 = vcmp.eq.s32.totalorder %v6495_v4, %v7527_v54 }
  0xc1   :  { %5140 = vmatmul.mubr.f32.gmra.mrb[40].mxu0 %v6896_v59  ;;  %6008 = vmatprep.subr.msk.bf16.mxu1 %vm7447_vm13, %v6411_v10  ;;  %vm7603_vm10 = vmpackc.low %vm1959_vm7, %vm1958_vm6 }
  0xc2   :  { %5196 = vmatmul.mubr.f32.gmra.mrb[40].mxu1 %v6910_v61  ;;  %5978 = vmatpush3.bf16.msk.msra.mxu0 %vm7439_vm12, %v6411_v10  ;;  %vm1556_vm12 = vcmp.eq.s32.totalorder %v6666_v28, %v7273_v27 }
  0xc3   :  { %6010 = vmatpush3.bf16.msk.msra.mxu1 %vm7447_vm13, %v6411_v10  ;;  %5142 = vmatprep.mubr.f32.mxu0 %v6920_v62  ;;  %vm1557_vm13 = vcmp.eq.s32.totalorder %v6669_v29, %v7273_v27 }
  0xc4   :  { %5198 = vmatprep.mubr.f32.mxu1 %v6926_v63  ;;  %5980 = vmatprep.subr.msk.bf16.mxu0 %vm7471_vm2, %v6411_v10  ;;  %vm7547_vm15 = vmpackc.low %vm1557_vm13, %vm1556_vm12  ;;  %vm1960_vm12 = vcmp.eq.s32.totalorder %v6498_v5, %v7527_v54  ;;  %vm1961_vm13 = vcmp.eq.s32.totalorder %v6501_v6, %v7527_v54 }
  0xc5   :  { %5143 = vmatmul.mubr.f32.gmra.mrb[42].mxu0 %v6936_v7  ;;  %6012 = vmatprep.subr.msk.bf16.mxu1 %vm7479_vm3, %v6411_v10  ;;  %vm7635_vm0 = vmpackc.low %vm1961_vm13, %vm1960_vm12 }
  0xc6   :  { %5199 = vmatmul.mubr.f32.gmra.mrb[42].mxu1 %v6950_v14  ;;  %5982 = vmatpush3.bf16.msk.msra.mxu0 %vm7471_vm2, %v6411_v10  ;;  %vm2008_vm2 = vcmp.eq.s32.totalorder %v6486_v1, %v7533_v46 }
  0xc7   :  { %6014 = vmatpush3.bf16.msk.msra.mxu1 %vm7479_vm3, %v6411_v10  ;;  %5145 = vmatprep.mubr.f32.mxu0 %v6960_v15  ;;  %vm2009_vm3 = vcmp.eq.s32.totalorder %v6489_v2, %v7533_v46 }
  0xc8   :  { %5201 = vmatprep.mubr.f32.mxu1 %v6966_v18  ;;  %5984 = vmatprep.subr.msk.bf16.mxu0 %vm7503_vm8, %v6411_v10  ;;  %vm7579_vm5 = vmpackc.low %vm2009_vm3, %vm2008_vm2  ;;  %vm1962_vm2 = vcmp.eq.s32.totalorder %v6532_v11, %v7527_v54  ;;  %vm1963_vm3 = vcmp.eq.s32.totalorder %v6535_v12, %v7527_v54 }
  0xc9   :  { %5146 = vmatmul.mubr.f32.gmra.mrb[44].mxu0 %v6976_v22  ;;  %6016 = vmatprep.subr.msk.bf16.mxu1 %vm7511_vm9, %v6411_v10  ;;  %vm7667_vm6 = vmpackc.low %vm1963_vm3, %vm1962_vm2 }
  0xca   :  { %5202 = vmatmul.mubr.f32.gmra.mrb[44].mxu1 %v6990_v26  ;;  %5986 = vmatpush3.bf16.msk.msra.mxu0 %vm7503_vm8, %v6411_v10  ;;  %vm2010_vm8 = vcmp.eq.s32.totalorder %v6492_v3, %v7533_v46 }
  0xcb   :  { %6018 = vmatpush3.bf16.msk.msra.mxu1 %vm7511_vm9, %v6411_v10  ;;  %5148 = vmatprep.mubr.f32.mxu0 %v7002_v30  ;;  %vm2011_vm9 = vcmp.eq.s32.totalorder %v6495_v4, %v7533_v46 }
  0xcc   :  { %5204 = vmatprep.mubr.f32.mxu1 %v7010_v34  ;;  %5988 = vmatprep.subr.msk.bf16.mxu0 %vm7539_vm14, %v6411_v10  ;;  %vm7611_vm11 = vmpackc.low %vm2011_vm9, %vm2010_vm8  ;;  %vm1964_vm8 = vcmp.eq.s32.totalorder %v6567_v16, %v7527_v54  ;;  %vm1965_vm9 = vcmp.eq.s32.totalorder %v6570_v17, %v7527_v54 }
  0xcd   :  { %5149 = vmatmul.mubr.f32.gmra.mrb[46].mxu0 %v7023_v35  ;;  %6020 = vmatprep.subr.msk.bf16.mxu1 %vm7547_vm15, %v6411_v10  ;;  %vm7699_vm12 = vmpackc.low %vm1965_vm9, %vm1964_vm8 }
  0xce   :  { %5205 = vmatmul.mubr.f32.gmra.mrb[46].mxu1 %v7037_v32  ;;  %5990 = vmatpush3.bf16.msk.msra.mxu0 %vm7539_vm14, %v6411_v10  ;;  %vm2012_vm14 = vcmp.eq.s32.totalorder %v6498_v5, %v7533_v46 }
  0xcf   :  { %6022 = vmatpush3.bf16.msk.msra.mxu1 %vm7547_vm15, %v6411_v10  ;;  %5239 = vmatprep.mubr.f32.mxu0 %v6515_v9  ;;  %vm2013_vm15 = vcmp.eq.s32.totalorder %v6501_v6, %v7533_v46  ;;  %v8033_v9 = vld [vmem:[#allocation8 + $0x50] sm:$0xff] }
  0xd0   :  { %5295 = vmatprep.mubr.f32.mxu1 %v6543_v13  ;;  %6024 = vmatprep.subr.msk.bf16.mxu0 %vm7571_vm4, %v6411_v10  ;;  %vm7643_vm1 = vmpackc.low %vm2013_vm15, %vm2012_vm14  ;;  %vm1966_vm14 = vcmp.eq.s32.totalorder %v6598_v20, %v7527_v54  ;;  %vm1967_vm15 = vcmp.eq.s32.totalorder %v6601_v21, %v7527_v54 }
  0xd1   :  { %5240 = vmatmul.mubr.f32.vlgmr.msra.gmra.mrb[48].mxu0 %v6744_v36  ;;  %6056 = vmatprep.subr.msk.bf16.mxu1 %vm7579_vm5, %v6411_v10  ;;  %vm7731_vm2 = vmpackc.low %vm1967_vm15, %vm1966_vm14  ;;  %v8043_v36 = vld [vmem:[#allocation7 + $0x58] sm:$0xff] }
  0xd2   :  { %5296 = vmatmul.mubr.f32.vlgmr.msra.gmra.mrb[48].mxu1 %v6751_v37  ;;  %6026 = vmatpush3.bf16.msk.msra.mxu0 %vm7571_vm4, %v6411_v10  ;;  %vm2014_vm4 = vcmp.eq.s32.totalorder %v6532_v11, %v7533_v46 }
  0xd3   :  { %6058 = vmatpush3.bf16.msk.msra.mxu1 %vm7579_vm5, %v6411_v10  ;;  %5242 = vmatprep.mubr.f32.mxu0 %v6763_v38  ;;  %vm2015_vm5 = vcmp.eq.s32.totalorder %v6535_v12, %v7533_v46  ;;  %v8057_v38 = vld [vmem:[#allocation8 + $0x58] sm:$0xff] }
  0xd4   :  { %5298 = vmatprep.mubr.f32.mxu1 %v6766_v39  ;;  %6028 = vmatprep.subr.msk.bf16.mxu0 %vm7603_vm10, %v6411_v10  ;;  %vm7675_vm7 = vmpackc.low %vm2015_vm5, %vm2014_vm4  ;;  %vm1968_vm4 = vcmp.eq.s32.totalorder %v6632_v24, %v7527_v54  ;;  %vm1969_vm5 = vcmp.eq.s32.totalorder %v6635_v25, %v7527_v54  ;;  %v8067_v39 = vld [vmem:[#allocation7 + $0x60] sm:$0xff] }
  0xd5   :  { %5243 = vmatmul.mubr.f32.gmra.mrb[50].mxu0 %v6776_v41  ;;  %6060 = vmatprep.subr.msk.bf16.mxu1 %vm7611_vm11, %v6411_v10  ;;  %vm7763_vm8 = vmpackc.low %vm1969_vm5, %vm1968_vm4  ;;  %v8073_v41 = vld [vmem:[#allocation8 + $0x60] sm:$0xff] }
  0xd6   :  { %5299 = vmatmul.mubr.f32.gmra.mrb[50].mxu1 %v6790_v43  ;;  %6030 = vmatpush3.bf16.msk.msra.mxu0 %vm7603_vm10, %v6411_v10  ;;  %vm2016_vm10 = vcmp.eq.s32.totalorder %v6567_v16, %v7533_v46 }
  0xd7   :  { %6062 = vmatpush3.bf16.msk.msra.mxu1 %vm7611_vm11, %v6411_v10  ;;  %5245 = vmatprep.mubr.f32.mxu0 %v6800_v44  ;;  %vm2017_vm11 = vcmp.eq.s32.totalorder %v6570_v17, %v7533_v46  ;;  %v8083_v44 = vld [vmem:[#allocation7 + $0x68] sm:$0xff] }
  0xd8   :  { %5301 = vmatprep.mubr.f32.mxu1 %v6806_v45  ;;  %6032 = vmatprep.subr.msk.bf16.mxu0 %vm7635_vm0, %v6411_v10  ;;  %vm7707_vm13 = vmpackc.low %vm2017_vm11, %vm2016_vm10  ;;  %vm1970_vm10 = vcmp.eq.s32.totalorder %v6666_v28, %v7527_v54  ;;  %vm1971_vm11 = vcmp.eq.s32.totalorder %v6669_v29, %v7527_v54  ;;  %v7993_v54 = vld [vmem:[#allocation8 + $0x40] sm:$0xff] }
  0xd9   :  { %5246 = vmatmul.mubr.f32.gmra.mrb[52].mxu0 %v6816_v47  ;;  %6064 = vmatprep.subr.msk.bf16.mxu1 %vm7643_vm1, %v6411_v10  ;;  %vm7799_vm14 = vmpackc.low %vm1971_vm11, %vm1970_vm10  ;;  %v8097_v47 = vld [vmem:[#allocation8 + $0x68] sm:$0xff] }
  0xda   :  { %5302 = vmatmul.mubr.f32.gmra.mrb[52].mxu1 %v6830_v49  ;;  %6034 = vmatpush3.bf16.msk.msra.mxu0 %vm7635_vm0, %v6411_v10  ;;  %vm2018_vm0 = vcmp.eq.s32.totalorder %v6598_v20, %v7533_v46  ;;  %v8103_v49 = vld [vmem:[#allocation2 + $0x6] ss:$0 sm:$0xff] }
  0xdb   :  { %6066 = vmatpush3.bf16.msk.msra.mxu1 %vm7643_vm1, %v6411_v10  ;;  %5248 = vmatprep.mubr.f32.mxu0 %v6840_v50  ;;  %vm2019_vm1 = vcmp.eq.s32.totalorder %v6601_v21, %v7533_v46  ;;  %v7787_v50 = vld [vmem:[#allocation2 + $0x5] ss:$0 sm:$0xff] }
  0xdc   :  { %5304 = vmatprep.mubr.f32.mxu1 %v6846_v51  ;;  %6036 = vmatprep.subr.msk.bf16.mxu0 %vm7667_vm6, %v6411_v10  ;;  %vm7739_vm3 = vmpackc.low %vm2019_vm1, %vm2018_vm0  ;;  %v7793_v51 = vld [vmem:[#allocation5 + $0x5] ss:$0 sm:$0xff]  ;;  %vm2422_vm0 = vcmp.eq.s32.totalorder %v6486_v1, %v7787_v50  ;;  %vm2423_vm1 = vcmp.eq.s32.totalorder %v6489_v2, %v7787_v50 }
  0xdd   :  { %5249 = vmatmul.mubr.f32.gmra.mrb[54].mxu0 %v6856_v53  ;;  %6068 = vmatprep.subr.msk.bf16.mxu1 %vm7675_vm7, %v6411_v10  ;;  %vm7835_vm4 = vmpackc.low %vm2423_vm1, %vm2422_vm0  ;;  %v8109_v53 = vld [vmem:[#allocation7 + $0x70] sm:$0xff] }
  0xde   :  { %5305 = vmatmul.mubr.f32.gmra.mrb[54].mxu1 %v6870_v55  ;;  %6038 = vmatpush3.bf16.msk.msra.mxu0 %vm7667_vm6, %v6411_v10  ;;  %vm2020_vm6 = vcmp.eq.s32.totalorder %v6632_v24, %v7533_v46  ;;  %v8111_v55 = vld [vmem:[#allocation5 + $0x6] ss:$0 sm:$0xff] }
  0xdf   :  { %6070 = vmatpush3.bf16.msk.msra.mxu1 %vm7675_vm7, %v6411_v10  ;;  %5251 = vmatprep.mubr.f32.mxu0 %v6880_v56  ;;  %vm2021_vm7 = vcmp.eq.s32.totalorder %v6635_v25, %v7533_v46  ;;  %v7827_v56 = vld [vmem:[#allocation7] sm:$0xff] }
  0xe0   :  { %5307 = vmatprep.mubr.f32.mxu1 %v6886_v57  ;;  %6040 = vmatprep.subr.msk.bf16.mxu0 %vm7699_vm12, %v6411_v10  ;;  %vm7771_vm9 = vmpackc.low %vm2021_vm7, %vm2020_vm6  ;;  %v7833_v57 = vld [vmem:[#allocation8] sm:$0xff]  ;;  %vm2424_vm6 = vcmp.eq.s32.totalorder %v6492_v3, %v7787_v50  ;;  %vm2425_vm7 = vcmp.eq.s32.totalorder %v6495_v4, %v7787_v50 }
  0xe1   :  { %5252 = vmatmul.mubr.f32.gmra.mrb[56].mxu0 %v6896_v59  ;;  %6072 = vmatprep.subr.msk.bf16.mxu1 %vm7707_vm13, %v6411_v10  ;;  %vm7875_vm10 = vmpackc.low %vm2425_vm7, %vm2424_vm6  ;;  %v8117_v59 = vld [vmem:[#allocation8 + $0x70] sm:$0xff] }
  0xe2   :  { %5308 = vmatmul.mubr.f32.gmra.mrb[56].mxu1 %v6910_v61  ;;  %6042 = vmatpush3.bf16.msk.msra.mxu0 %vm7699_vm12, %v6411_v10  ;;  %vm2022_vm12 = vcmp.eq.s32.totalorder %v6666_v28, %v7533_v46  ;;  %v7843_v61 = vld [vmem:[#allocation7 + $0x8] sm:$0xff] }
  0xe3   :  { %6074 = vmatpush3.bf16.msk.msra.mxu1 %vm7707_vm13, %v6411_v10  ;;  %5254 = vmatprep.mubr.f32.mxu0 %v6920_v62  ;;  %vm2023_vm13 = vcmp.eq.s32.totalorder %v6669_v29, %v7533_v46  ;;  %v8130_v62 = vld [vmem:[#allocation7 + $0x78] sm:$0xff] }
  0xe4   :  { %5310 = vmatprep.mubr.f32.mxu1 %v6926_v63  ;;  %6044 = vmatprep.subr.msk.bf16.mxu0 %vm7731_vm2, %v6411_v10  ;;  %vm7807_vm15 = vmpackc.low %vm2023_vm13, %vm2022_vm12  ;;  %v7857_v63 = vld [vmem:[#allocation8 + $0x8] sm:$0xff]  ;;  %vm2426_vm12 = vcmp.eq.s32.totalorder %v6498_v5, %v7787_v50  ;;  %vm2427_vm13 = vcmp.eq.s32.totalorder %v6501_v6, %v7787_v50 }
  0xe5   :  { %5255 = vmatmul.mubr.f32.gmra.mrb[58].mxu0 %v6936_v7  ;;  %6076 = vmatprep.subr.msk.bf16.mxu1 %vm7739_vm3, %v6411_v10  ;;  %v7867_v7 = vld [vmem:[#allocation7 + $0x10] sm:$0xff]  ;;  %vm7915_vm0 = vmpackc.low %vm2427_vm13, %vm2426_vm12 }
  0xe6   :  { %5311 = vmatmul.mubr.f32.gmra.mrb[58].mxu1 %v6950_v14  ;;  %6046 = vmatpush3.bf16.msk.msra.mxu0 %vm7731_vm2, %v6411_v10  ;;  %vm2474_vm2 = vcmp.eq.s32.totalorder %v6486_v1, %v7793_v51  ;;  %v7873_v14 = vld [vmem:[#allocation8 + $0x10] sm:$0xff] }
  0xe7   :  { %6078 = vmatpush3.bf16.msk.msra.mxu1 %vm7739_vm3, %v6411_v10  ;;  %5257 = vmatprep.mubr.f32.mxu0 %v6960_v15  ;;  %vm2475_vm3 = vcmp.eq.s32.totalorder %v6489_v2, %v7793_v51 }
  0xe8   :  { %5313 = vmatprep.mubr.f32.mxu1 %v6966_v18  ;;  %6048 = vmatprep.subr.msk.bf16.mxu0 %vm7763_vm8, %v6411_v10  ;;  %vm7845_vm5 = vmpackc.low %vm2475_vm3, %vm2474_vm2  ;;  %v7883_v18 = vld [vmem:[#allocation7 + $0x18] sm:$0xff]  ;;  %vm2428_vm2 = vcmp.eq.s32.totalorder %v6532_v11, %v7787_v50  ;;  %vm2429_vm3 = vcmp.eq.s32.totalorder %v6535_v12, %v7787_v50 }
  0xe9   :  { %5258 = vmatmul.mubr.f32.gmra.mrb[60].mxu0 %v6976_v22  ;;  %6080 = vmatprep.subr.msk.bf16.mxu1 %vm7771_vm9, %v6411_v10  ;;  %vm7955_vm6 = vmpackc.low %vm2429_vm3, %vm2428_vm2 }
  0xea   :  { %5314 = vmatmul.mubr.f32.gmra.mrb[60].mxu1 %v6990_v26  ;;  %6050 = vmatpush3.bf16.msk.msra.mxu0 %vm7763_vm8, %v6411_v10  ;;  %vm2476_vm8 = vcmp.eq.s32.totalorder %v6492_v3, %v7793_v51  ;;  %v7897_v26 = vld [vmem:[#allocation8 + $0x18] sm:$0xff] }
  0xeb   :  { %6082 = vmatpush3.bf16.msk.msra.mxu1 %vm7771_vm9, %v6411_v10  ;;  %5260 = vmatprep.mubr.f32.mxu0 %v7002_v30  ;;  %vm2477_vm9 = vcmp.eq.s32.totalorder %v6495_v4, %v7793_v51  ;;  %v7907_v30 = vld [vmem:[#allocation7 + $0x20] sm:$0xff] }
  0xec   :  { %5316 = vmatprep.mubr.f32.mxu1 %v7010_v34  ;;  %6052 = vmatprep.subr.msk.bf16.mxu0 %vm7799_vm14, %v6411_v10  ;;  %vm7885_vm11 = vmpackc.low %vm2477_vm9, %vm2476_vm8  ;;  %v7913_v34 = vld [vmem:[#allocation8 + $0x20] sm:$0xff]  ;;  %vm2430_vm8 = vcmp.eq.s32.totalorder %v6567_v16, %v7787_v50  ;;  %vm2431_vm9 = vcmp.eq.s32.totalorder %v6570_v17, %v7787_v50 }
  0xed   :  { %5261 = vmatmul.mubr.f32.gmra.mrb[62].mxu0 %v7023_v35  ;;  %6084 = vmatprep.subr.msk.bf16.mxu1 %vm7807_vm15, %v6411_v10  ;;  %vm7995_vm12 = vmpackc.low %vm2431_vm9, %vm2430_vm8  ;;  %v8374_v35 = vld [vmem:[#allocation2 + $0x7] ss:$0 sm:$0xff] }
  0xee   :  { %5317 = vmatmul.mubr.f32.gmra.mrb[62].mxu1 %v7037_v32  ;;  %6054 = vmatpush3.bf16.msk.msra.mxu0 %vm7799_vm14, %v6411_v10  ;;  %vm2478_vm14 = vcmp.eq.s32.totalorder %v6498_v5, %v7793_v51  ;;  %v7923_v32 = vld [vmem:[#allocation7 + $0x28] sm:$0xff] }
  0xef   :  { %6086 = vmatpush3.bf16.msk.msra.mxu1 %vm7807_vm15, %v6411_v10  ;;  %5351 = vmatprep.mubr.f32.mxu0 %v7827_v56  ;;  %vm2479_vm15 = vcmp.eq.s32.totalorder %v6501_v6, %v7793_v51 }
  0xf0   :  { %5407 = vmatprep.mubr.f32.mxu1 %v7833_v57  ;;  %6088 = vmatprep.subr.msk.bf16.mxu0 %vm7835_vm4, %v6411_v10  ;;  %vm7925_vm1 = vmpackc.low %vm2479_vm15, %vm2478_vm14  ;;  %vm2432_vm14 = vcmp.eq.s32.totalorder %v6598_v20, %v7787_v50  ;;  %vm2433_vm15 = vcmp.eq.s32.totalorder %v6601_v21, %v7787_v50 }
  0xf1   :  { %5352 = vmatmul.mubr.f32.vlgmr.msra.gmra.mrb[64].mxu0 %v7843_v61  ;;  %6120 = vmatprep.subr.msk.bf16.mxu1 %vm7845_vm5, %v6411_v10  ;;  %vm8035_vm2 = vmpackc.low %vm2433_vm15, %vm2432_vm14 }
  0xf2   :  { %5408 = vmatmul.mubr.f32.vlgmr.msra.gmra.mrb[64].mxu1 %v7857_v63  ;;  %6090 = vmatpush3.bf16.msk.msra.mxu0 %vm7835_vm4, %v6411_v10  ;;  %vm2480_vm4 = vcmp.eq.s32.totalorder %v6532_v11, %v7793_v51 }
  0xf3   :  { %6122 = vmatpush3.bf16.msk.msra.mxu1 %vm7845_vm5, %v6411_v10  ;;  %5354 = vmatprep.mubr.f32.mxu0 %v7867_v7  ;;  %vm2481_vm5 = vcmp.eq.s32.totalorder %v6535_v12, %v7793_v51 }
  0xf4   :  { %5410 = vmatprep.mubr.f32.mxu1 %v7873_v14  ;;  %6092 = vmatprep.subr.msk.bf16.mxu0 %vm7875_vm10, %v6411_v10  ;;  %vm7965_vm7 = vmpackc.low %vm2481_vm5, %vm2480_vm4  ;;  %vm2434_vm4 = vcmp.eq.s32.totalorder %v6632_v24, %v7787_v50  ;;  %vm2435_vm5 = vcmp.eq.s32.totalorder %v6635_v25, %v7787_v50 }
  0xf5   :  { %5355 = vmatmul.mubr.f32.gmra.mrb[66].mxu0 %v7883_v18  ;;  %6124 = vmatprep.subr.msk.bf16.mxu1 %vm7885_vm11, %v6411_v10  ;;  %vm8075_vm8 = vmpackc.low %vm2435_vm5, %vm2434_vm4 }
  0xf6   :  { %5411 = vmatmul.mubr.f32.gmra.mrb[66].mxu1 %v7897_v26  ;;  %6094 = vmatpush3.bf16.msk.msra.mxu0 %vm7875_vm10, %v6411_v10  ;;  %vm2482_vm10 = vcmp.eq.s32.totalorder %v6567_v16, %v7793_v51 }
  0xf7   :  { %6126 = vmatpush3.bf16.msk.msra.mxu1 %vm7885_vm11, %v6411_v10  ;;  %5357 = vmatprep.mubr.f32.mxu0 %v7907_v30  ;;  %vm2483_vm11 = vcmp.eq.s32.totalorder %v6570_v17, %v7793_v51 }
  0xf8   :  { %5413 = vmatprep.mubr.f32.mxu1 %v7913_v34  ;;  %6096 = vmatprep.subr.msk.bf16.mxu0 %vm7915_vm0, %v6411_v10  ;;  %vm8005_vm13 = vmpackc.low %vm2483_vm11, %vm2482_vm10  ;;  %vm2436_vm10 = vcmp.eq.s32.totalorder %v6666_v28, %v7787_v50  ;;  %vm2437_vm11 = vcmp.eq.s32.totalorder %v6669_v29, %v7787_v50  ;;  %v8144_v50 = vld [vmem:[#allocation8 + $0x78] sm:$0xff] }
  0xf9   :  { %5358 = vmatmul.mubr.f32.gmra.mrb[68].mxu0 %v7923_v32  ;;  %6128 = vmatprep.subr.msk.bf16.mxu1 %vm7925_vm1, %v6411_v10  ;;  %vm8122_vm14 = vmpackc.low %vm2437_vm11, %vm2436_vm10 }
  0xfa   :  { %5414 = vmatmul.mubr.f32.gmra.mrb[68].mxu1 %v7937_v19  ;;  %6098 = vmatpush3.bf16.msk.msra.mxu0 %vm7915_vm0, %v6411_v10  ;;  %vm2484_vm0 = vcmp.eq.s32.totalorder %v6598_v20, %v7793_v51 }
  0xfb   :  { %6130 = vmatpush3.bf16.msk.msra.mxu1 %vm7925_vm1, %v6411_v10  ;;  %5360 = vmatprep.mubr.f32.mxu0 %v7947_v23  ;;  %vm2485_vm1 = vcmp.eq.s32.totalorder %v6601_v21, %v7793_v51 }
  0xfc   :  { %5416 = vmatprep.mubr.f32.mxu1 %v7953_v33  ;;  %6100 = vmatprep.subr.msk.bf16.mxu0 %vm7955_vm6, %v6411_v10  ;;  %vm8045_vm3 = vmpackc.low %vm2485_vm1, %vm2484_vm0  ;;  %vm2888_vm0 = vcmp.eq.s32.totalorder %v6486_v1, %v8103_v49  ;;  %vm2889_vm1 = vcmp.eq.s32.totalorder %v6489_v2, %v8103_v49 }
  0xfd   :  { %5361 = vmatmul.mubr.f32.gmra.mrb[70].mxu0 %v7963_v42  ;;  %6132 = vmatprep.subr.msk.bf16.mxu1 %vm7965_vm7, %v6411_v10  ;;  %vm8158_vm4 = vmpackc.low %vm2889_vm1, %vm2888_vm0 }
  0xfe   :  { %5417 = vmatmul.mubr.f32.gmra.mrb[70].mxu1 %v7977_v31  ;;  %6102 = vmatpush3.bf16.msk.msra.mxu0 %vm7955_vm6, %v6411_v10  ;;  %vm2486_vm6 = vcmp.eq.s32.totalorder %v6632_v24, %v7793_v51 }
  0xff   :  { %6134 = vmatpush3.bf16.msk.msra.mxu1 %vm7965_vm7, %v6411_v10  ;;  %5363 = vmatprep.mubr.f32.mxu0 %v7987_v52  ;;  %vm2487_vm7 = vcmp.eq.s32.totalorder %v6635_v25, %v7793_v51 }
 0x100   :  { %5419 = vmatprep.mubr.f32.mxu1 %v7993_v54  ;;  %6104 = vmatprep.subr.msk.bf16.mxu0 %vm7995_vm12, %v6411_v10  ;;  %vm8085_vm9 = vmpackc.low %vm2487_vm7, %vm2486_vm6  ;;  %vm2890_vm6 = vcmp.eq.s32.totalorder %v6492_v3, %v8103_v49  ;;  %vm2891_vm7 = vcmp.eq.s32.totalorder %v6495_v4, %v8103_v49 }
 0x101   :  { %5364 = vmatmul.mubr.f32.gmra.mrb[72].mxu0 %v8003_v58  ;;  %6136 = vmatprep.subr.msk.bf16.mxu1 %vm8005_vm13, %v6411_v10  ;;  %vm8190_vm10 = vmpackc.low %vm2891_vm7, %vm2890_vm6 }
 0x102   :  { %5420 = vmatmul.mubr.f32.gmra.mrb[72].mxu1 %v8017_v60  ;;  %6106 = vmatpush3.bf16.msk.msra.mxu0 %vm7995_vm12, %v6411_v10  ;;  %vm2488_vm12 = vcmp.eq.s32.totalorder %v6666_v28, %v7793_v51 }
 0x103   :  { %6138 = vmatpush3.bf16.msk.msra.mxu1 %vm8005_vm13, %v6411_v10  ;;  %5366 = vmatprep.mubr.f32.mxu0 %v8027_v0  ;;  %vm2489_vm13 = vcmp.eq.s32.totalorder %v6669_v29, %v7793_v51 }
 0x104   :  { %5422 = vmatprep.mubr.f32.mxu1 %v8033_v9  ;;  %6108 = vmatprep.subr.msk.bf16.mxu0 %vm8035_vm2, %v6411_v10  ;;  %vm8132_vm15 = vmpackc.low %vm2489_vm13, %vm2488_vm12  ;;  %vm2892_vm12 = vcmp.eq.s32.totalorder %v6498_v5, %v8103_v49  ;;  %vm2893_vm13 = vcmp.eq.s32.totalorder %v6501_v6, %v8103_v49 }
 0x105   :  { %5367 = vmatmul.mubr.f32.gmra.mrb[74].mxu0 %v8043_v36  ;;  %6140 = vmatprep.subr.msk.bf16.mxu1 %vm8045_vm3, %v6411_v10  ;;  %vm8222_vm0 = vmpackc.low %vm2893_vm13, %vm2892_vm12 }
 0x106   :  { %5423 = vmatmul.mubr.f32.gmra.mrb[74].mxu1 %v8057_v38  ;;  %6110 = vmatpush3.bf16.msk.msra.mxu0 %vm8035_vm2, %v6411_v10  ;;  %vm2940_vm2 = vcmp.eq.s32.totalorder %v6486_v1, %v8111_v55 }
 0x107   :  { %6142 = vmatpush3.bf16.msk.msra.mxu1 %vm8045_vm3, %v6411_v10  ;;  %5369 = vmatprep.mubr.f32.mxu0 %v8067_v39  ;;  %vm2941_vm3 = vcmp.eq.s32.totalorder %v6489_v2, %v8111_v55 }
 0x108   :  { %5425 = vmatprep.mubr.f32.mxu1 %v8073_v41  ;;  %6112 = vmatprep.subr.msk.bf16.mxu0 %vm8075_vm8, %v6411_v10  ;;  %vm8166_vm5 = vmpackc.low %vm2941_vm3, %vm2940_vm2  ;;  %vm2894_vm2 = vcmp.eq.s32.totalorder %v6532_v11, %v8103_v49  ;;  %vm2895_vm3 = vcmp.eq.s32.totalorder %v6535_v12, %v8103_v49 }
 0x109   :  { %5370 = vmatmul.mubr.f32.gmra.mrb[76].mxu0 %v8083_v44  ;;  %6144 = vmatprep.subr.msk.bf16.mxu1 %vm8085_vm9, %v6411_v10  ;;  %vm8254_vm6 = vmpackc.low %vm2895_vm3, %vm2894_vm2 }
 0x10a   :  { %5426 = vmatmul.mubr.f32.gmra.mrb[76].mxu1 %v8097_v47  ;;  %6114 = vmatpush3.bf16.msk.msra.mxu0 %vm8075_vm8, %v6411_v10  ;;  %vm2942_vm8 = vcmp.eq.s32.totalorder %v6492_v3, %v8111_v55 }
 0x10b   :  { %6146 = vmatpush3.bf16.msk.msra.mxu1 %vm8085_vm9, %v6411_v10  ;;  %5372 = vmatprep.mubr.f32.mxu0 %v8109_v53  ;;  %vm2943_vm9 = vcmp.eq.s32.totalorder %v6495_v4, %v8111_v55 }
 0x10c   :  { %5428 = vmatprep.mubr.f32.mxu1 %v8117_v59  ;;  %6116 = vmatprep.subr.msk.bf16.mxu0 %vm8122_vm14, %v6411_v10  ;;  %vm8198_vm11 = vmpackc.low %vm2943_vm9, %vm2942_vm8  ;;  %vm2896_vm8 = vcmp.eq.s32.totalorder %v6567_v16, %v8103_v49  ;;  %vm2897_vm9 = vcmp.eq.s32.totalorder %v6570_v17, %v8103_v49 }
 0x10d   :  { %5373 = vmatmul.mubr.f32.gmra.mrb[78].mxu0 %v8130_v62  ;;  %6148 = vmatprep.subr.msk.bf16.mxu1 %vm8132_vm15, %v6411_v10  ;;  %vm8286_vm12 = vmpackc.low %vm2897_vm9, %vm2896_vm8 }
 0x10e   :  { %5429 = vmatmul.mubr.f32.gmra.mrb[78].mxu1 %v8144_v50  ;;  %6118 = vmatpush3.bf16.msk.msra.mxu0 %vm8122_vm14, %v6411_v10  ;;  %vm2944_vm14 = vcmp.eq.s32.totalorder %v6498_v5, %v8111_v55 }
 0x10f   :  { %6150 = vmatpush3.bf16.msk.msra.mxu1 %vm8132_vm15, %v6411_v10  ;;  %5463 = vmatprep.mubr.f32.mxu0 %v7827_v56  ;;  %vm2945_vm15 = vcmp.eq.s32.totalorder %v6501_v6, %v8111_v55 }
 0x110   :  { %5519 = vmatprep.mubr.f32.mxu1 %v7833_v57  ;;  %6152 = vmatprep.subr.msk.bf16.mxu0 %vm8158_vm4, %v6411_v10  ;;  %vm8230_vm1 = vmpackc.low %vm2945_vm15, %vm2944_vm14  ;;  %vm2898_vm14 = vcmp.eq.s32.totalorder %v6598_v20, %v8103_v49  ;;  %vm2899_vm15 = vcmp.eq.s32.totalorder %v6601_v21, %v8103_v49 }
 0x111   :  { %5464 = vmatmul.mubr.f32.vlgmr.msra.gmra.mrb[80].mxu0 %v7843_v61  ;;  %6184 = vmatprep.subr.msk.bf16.mxu1 %vm8166_vm5, %v6411_v10  ;;  %vm8318_vm2 = vmpackc.low %vm2899_vm15, %vm2898_vm14 }
 0x112   :  { %5520 = vmatmul.mubr.f32.vlgmr.msra.gmra.mrb[80].mxu1 %v7857_v63  ;;  %6154 = vmatpush3.bf16.msk.msra.mxu0 %vm8158_vm4, %v6411_v10  ;;  %vm2946_vm4 = vcmp.eq.s32.totalorder %v6532_v11, %v8111_v55 }
 0x113   :  { %6186 = vmatpush3.bf16.msk.msra.mxu1 %vm8166_vm5, %v6411_v10  ;;  %5466 = vmatprep.mubr.f32.mxu0 %v7867_v7  ;;  %vm2947_vm5 = vcmp.eq.s32.totalorder %v6535_v12, %v8111_v55 }
 0x114   :  { %5522 = vmatprep.mubr.f32.mxu1 %v7873_v14  ;;  %6156 = vmatprep.subr.msk.bf16.mxu0 %vm8190_vm10, %v6411_v10  ;;  %vm8262_vm7 = vmpackc.low %vm2947_vm5, %vm2946_vm4  ;;  %vm2900_vm4 = vcmp.eq.s32.totalorder %v6632_v24, %v8103_v49  ;;  %vm2901_vm5 = vcmp.eq.s32.totalorder %v6635_v25, %v8103_v49 }
 0x115   :  { %5467 = vmatmul.mubr.f32.gmra.mrb[82].mxu0 %v7883_v18  ;;  %6188 = vmatprep.subr.msk.bf16.mxu1 %vm8198_vm11, %v6411_v10  ;;  %vm8350_vm8 = vmpackc.low %vm2901_vm5, %vm2900_vm4 }
 0x116   :  { %5523 = vmatmul.mubr.f32.gmra.mrb[82].mxu1 %v7897_v26  ;;  %6158 = vmatpush3.bf16.msk.msra.mxu0 %vm8190_vm10, %v6411_v10  ;;  %vm2948_vm10 = vcmp.eq.s32.totalorder %v6567_v16, %v8111_v55 }
 0x117   :  { %6190 = vmatpush3.bf16.msk.msra.mxu1 %vm8198_vm11, %v6411_v10  ;;  %5469 = vmatprep.mubr.f32.mxu0 %v7907_v30  ;;  %vm2949_vm11 = vcmp.eq.s32.totalorder %v6570_v17, %v8111_v55 }
 0x118   :  { %5525 = vmatprep.mubr.f32.mxu1 %v7913_v34  ;;  %6160 = vmatprep.subr.msk.bf16.mxu0 %vm8222_vm0, %v6411_v10  ;;  %vm8294_vm13 = vmpackc.low %vm2949_vm11, %vm2948_vm10  ;;  %vm2902_vm10 = vcmp.eq.s32.totalorder %v6666_v28, %v8103_v49  ;;  %vm2903_vm11 = vcmp.eq.s32.totalorder %v6669_v29, %v8103_v49  ;;  %v8380_v49 = vld [vmem:[#allocation5 + $0x7] ss:$0 sm:$0xff] }
 0x119   :  { %5470 = vmatmul.mubr.f32.gmra.mrb[84].mxu0 %v7923_v32  ;;  %6192 = vmatprep.subr.msk.bf16.mxu1 %vm8230_vm1, %v6411_v10  ;;  %vm8386_vm14 = vmpackc.low %vm2903_vm11, %vm2902_vm10 }
 0x11a   :  { %5526 = vmatmul.mubr.f32.gmra.mrb[84].mxu1 %v7937_v19  ;;  %6162 = vmatpush3.bf16.msk.msra.mxu0 %vm8222_vm0, %v6411_v10  ;;  %vm2950_vm0 = vcmp.eq.s32.totalorder %v6598_v20, %v8111_v55 }
 0x11b   :  { %6194 = vmatpush3.bf16.msk.msra.mxu1 %vm8230_vm1, %v6411_v10  ;;  %5472 = vmatprep.mubr.f32.mxu0 %v7947_v23  ;;  %vm2951_vm1 = vcmp.eq.s32.totalorder %v6601_v21, %v8111_v55 }
 0x11c   :  { %5528 = vmatprep.mubr.f32.mxu1 %v7953_v33  ;;  %6164 = vmatprep.subr.msk.bf16.mxu0 %vm8254_vm6, %v6411_v10  ;;  %vm8326_vm3 = vmpackc.low %vm2951_vm1, %vm2950_vm0  ;;  %vm3354_vm0 = vcmp.eq.s32.totalorder %v6486_v1, %v8374_v35  ;;  %vm3355_vm1 = vcmp.eq.s32.totalorder %v6489_v2, %v8374_v35 }
 0x11d   :  { %5473 = vmatmul.mubr.f32.gmra.mrb[86].mxu0 %v7963_v42  ;;  %6196 = vmatprep.subr.msk.bf16.mxu1 %vm8262_vm7, %v6411_v10  ;;  %vm8418_vm4 = vmpackc.low %vm3355_vm1, %vm3354_vm0 }
 0x11e   :  { %5529 = vmatmul.mubr.f32.gmra.mrb[86].mxu1 %v7977_v31  ;;  %6166 = vmatpush3.bf16.msk.msra.mxu0 %vm8254_vm6, %v6411_v10  ;;  %vm2952_vm6 = vcmp.eq.s32.totalorder %v6632_v24, %v8111_v55 }
 0x11f   :  { %6198 = vmatpush3.bf16.msk.msra.mxu1 %vm8262_vm7, %v6411_v10  ;;  %5475 = vmatprep.mubr.f32.mxu0 %v7987_v52  ;;  %vm2953_vm7 = vcmp.eq.s32.totalorder %v6635_v25, %v8111_v55 }
 0x120   :  { %5531 = vmatprep.mubr.f32.mxu1 %v7993_v54  ;;  %6168 = vmatprep.subr.msk.bf16.mxu0 %vm8286_vm12, %v6411_v10  ;;  %vm8358_vm9 = vmpackc.low %vm2953_vm7, %vm2952_vm6  ;;  %vm3356_vm6 = vcmp.eq.s32.totalorder %v6492_v3, %v8374_v35  ;;  %vm3357_vm7 = vcmp.eq.s32.totalorder %v6495_v4, %v8374_v35 }
 0x121   :  { %5476 = vmatmul.mubr.f32.gmra.mrb[88].mxu0 %v8003_v58  ;;  %6200 = vmatprep.subr.msk.bf16.mxu1 %vm8294_vm13, %v6411_v10  ;;  %vm8450_vm10 = vmpackc.low %vm3357_vm7, %vm3356_vm6 }
 0x122   :  { %5532 = vmatmul.mubr.f32.gmra.mrb[88].mxu1 %v8017_v60  ;;  %6170 = vmatpush3.bf16.msk.msra.mxu0 %vm8286_vm12, %v6411_v10  ;;  %vm2954_vm12 = vcmp.eq.s32.totalorder %v6666_v28, %v8111_v55 }
 0x123   :  { %6202 = vmatpush3.bf16.msk.msra.mxu1 %vm8294_vm13, %v6411_v10  ;;  %5478 = vmatprep.mubr.f32.mxu0 %v8027_v0  ;;  %vm2955_vm13 = vcmp.eq.s32.totalorder %v6669_v29, %v8111_v55 }
 0x124   :  { %5534 = vmatprep.mubr.f32.mxu1 %v8033_v9  ;;  %6172 = vmatprep.subr.msk.bf16.mxu0 %vm8318_vm2, %v6411_v10  ;;  %vm8394_vm15 = vmpackc.low %vm2955_vm13, %vm2954_vm12  ;;  %vm3358_vm12 = vcmp.eq.s32.totalorder %v6498_v5, %v8374_v35  ;;  %vm3359_vm13 = vcmp.eq.s32.totalorder %v6501_v6, %v8374_v35 }
 0x125   :  { %5479 = vmatmul.mubr.f32.gmra.mrb[90].mxu0 %v8043_v36  ;;  %6204 = vmatprep.subr.msk.bf16.mxu1 %vm8326_vm3, %v6411_v10  ;;  %vm8482_vm0 = vmpackc.low %vm3359_vm13, %vm3358_vm12 }
 0x126   :  { %5535 = vmatmul.mubr.f32.gmra.mrb[90].mxu1 %v8057_v38  ;;  %6174 = vmatpush3.bf16.msk.msra.mxu0 %vm8318_vm2, %v6411_v10  ;;  %vm3406_vm2 = vcmp.eq.s32.totalorder %v6486_v1, %v8380_v49 }
 0x127   :  { %6206 = vmatpush3.bf16.msk.msra.mxu1 %vm8326_vm3, %v6411_v10  ;;  %5481 = vmatprep.mubr.f32.mxu0 %v8067_v39  ;;  %vm3407_vm3 = vcmp.eq.s32.totalorder %v6489_v2, %v8380_v49 }
 0x128   :  { %5537 = vmatprep.mubr.f32.mxu1 %v8073_v41  ;;  %6176 = vmatprep.subr.msk.bf16.mxu0 %vm8350_vm8, %v6411_v10  ;;  %vm8426_vm5 = vmpackc.low %vm3407_vm3, %vm3406_vm2  ;;  %vm3360_vm2 = vcmp.eq.s32.totalorder %v6532_v11, %v8374_v35  ;;  %vm3361_vm3 = vcmp.eq.s32.totalorder %v6535_v12, %v8374_v35 }
 0x129   :  { %5482 = vmatmul.mubr.f32.gmra.mrb[92].mxu0 %v8083_v44  ;;  %6208 = vmatprep.subr.msk.bf16.mxu1 %vm8358_vm9, %v6411_v10  ;;  %vm8514_vm6 = vmpackc.low %vm3361_vm3, %vm3360_vm2 }
 0x12a   :  { %5538 = vmatmul.mubr.f32.gmra.mrb[92].mxu1 %v8097_v47  ;;  %6178 = vmatpush3.bf16.msk.msra.mxu0 %vm8350_vm8, %v6411_v10  ;;  %vm3408_vm8 = vcmp.eq.s32.totalorder %v6492_v3, %v8380_v49 }
 0x12b   :  { %6210 = vmatpush3.bf16.msk.msra.mxu1 %vm8358_vm9, %v6411_v10  ;;  %5484 = vmatprep.mubr.f32.mxu0 %v8109_v53  ;;  %vm3409_vm9 = vcmp.eq.s32.totalorder %v6495_v4, %v8380_v49 }
 0x12c   :  { %5540 = vmatprep.mubr.f32.mxu1 %v8117_v59  ;;  %6180 = vmatprep.subr.msk.bf16.mxu0 %vm8386_vm14, %v6411_v10  ;;  %vm8458_vm11 = vmpackc.low %vm3409_vm9, %vm3408_vm8  ;;  %vm3362_vm8 = vcmp.eq.s32.totalorder %v6567_v16, %v8374_v35  ;;  %vm3363_vm9 = vcmp.eq.s32.totalorder %v6570_v17, %v8374_v35 }
 0x12d   :  { %5485 = vmatmul.mubr.f32.gmra.mrb[94].mxu0 %v8130_v62  ;;  %6212 = vmatprep.subr.msk.bf16.mxu1 %vm8394_vm15, %v6411_v10  ;;  %vm8546_vm12 = vmpackc.low %vm3363_vm9, %vm3362_vm8 }
 0x12e   :  { %5541 = vmatmul.mubr.f32.gmra.mrb[94].mxu1 %v8144_v50  ;;  %6182 = vmatpush3.bf16.msk.msra.mxu0 %vm8386_vm14, %v6411_v10  ;;  %vm3410_vm14 = vcmp.eq.s32.totalorder %v6498_v5, %v8380_v49 }
 0x12f   :  { %6214 = vmatpush3.bf16.msk.msra.mxu1 %vm8394_vm15, %v6411_v10  ;;  %5575 = vmatprep.mubr.f32.mxu0 %v7827_v56  ;;  %vm3411_vm15 = vcmp.eq.s32.totalorder %v6501_v6, %v8380_v49 }
 0x130   :  { %5631 = vmatprep.mubr.f32.mxu1 %v7833_v57  ;;  %6216 = vmatprep.subr.msk.bf16.mxu0 %vm8418_vm4, %v6411_v10  ;;  %vm8490_vm1 = vmpackc.low %vm3411_vm15, %vm3410_vm14  ;;  %vm3364_vm14 = vcmp.eq.s32.totalorder %v6598_v20, %v8374_v35  ;;  %vm3365_vm15 = vcmp.eq.s32.totalorder %v6601_v21, %v8374_v35 }
 0x131   :  { %5576 = vmatmul.mubr.f32.vlgmr.msra.gmra.mrb[96].mxu0 %v7843_v61  ;;  %6248 = vmatprep.subr.msk.bf16.mxu1 %vm8426_vm5, %v6411_v10  ;;  %vm8578_vm2 = vmpackc.low %vm3365_vm15, %vm3364_vm14 }
 0x132   :  { %5632 = vmatmul.mubr.f32.vlgmr.msra.gmra.mrb[96].mxu1 %v7857_v63  ;;  %6218 = vmatpush3.bf16.msk.msra.mxu0 %vm8418_vm4, %v6411_v10  ;;  %vm3412_vm4 = vcmp.eq.s32.totalorder %v6532_v11, %v8380_v49 }
 0x133   :  { %6250 = vmatpush3.bf16.msk.msra.mxu1 %vm8426_vm5, %v6411_v10  ;;  %5578 = vmatprep.mubr.f32.mxu0 %v7867_v7  ;;  %vm3413_vm5 = vcmp.eq.s32.totalorder %v6535_v12, %v8380_v49 }
 0x134   :  { %5634 = vmatprep.mubr.f32.mxu1 %v7873_v14  ;;  %6220 = vmatprep.subr.msk.bf16.mxu0 %vm8450_vm10, %v6411_v10  ;;  %vm8522_vm7 = vmpackc.low %vm3413_vm5, %vm3412_vm4  ;;  %vm3366_vm4 = vcmp.eq.s32.totalorder %v6632_v24, %v8374_v35  ;;  %vm3367_vm5 = vcmp.eq.s32.totalorder %v6635_v25, %v8374_v35 }
 0x135   :  { %5579 = vmatmul.mubr.f32.gmra.mrb[98].mxu0 %v7883_v18  ;;  %6252 = vmatprep.subr.msk.bf16.mxu1 %vm8458_vm11, %v6411_v10  ;;  %vm8610_vm8 = vmpackc.low %vm3367_vm5, %vm3366_vm4 }
 0x136   :  { %5635 = vmatmul.mubr.f32.gmra.mrb[98].mxu1 %v7897_v26  ;;  %6222 = vmatpush3.bf16.msk.msra.mxu0 %vm8450_vm10, %v6411_v10  ;;  %vm3414_vm10 = vcmp.eq.s32.totalorder %v6567_v16, %v8380_v49 }
 0x137   :  { %6254 = vmatpush3.bf16.msk.msra.mxu1 %vm8458_vm11, %v6411_v10  ;;  %5581 = vmatprep.mubr.f32.mxu0 %v7907_v30  ;;  %vm3415_vm11 = vcmp.eq.s32.totalorder %v6570_v17, %v8380_v49 }
 0x138   :  { %5637 = vmatprep.mubr.f32.mxu1 %v7913_v34  ;;  %6224 = vmatprep.subr.msk.bf16.mxu0 %vm8482_vm0, %v6411_v10  ;;  %vm8554_vm13 = vmpackc.low %vm3415_vm11, %vm3414_vm10  ;;  %vm3368_vm10 = vcmp.eq.s32.totalorder %v6666_v28, %v8374_v35  ;;  %vm3369_vm11 = vcmp.eq.s32.totalorder %v6669_v29, %v8374_v35 }
 0x139   :  { %5582 = vmatmul.mubr.f32.gmra.mrb[100].mxu0 %v7923_v32  ;;  %6256 = vmatprep.subr.msk.bf16.mxu1 %vm8490_vm1, %v6411_v10  ;;  %vm8645_vm14 = vmpackc.low %vm3369_vm11, %vm3368_vm10 }
 0x13a   :  { %5638 = vmatmul.mubr.f32.gmra.mrb[100].mxu1 %v7937_v19  ;;  %6226 = vmatpush3.bf16.msk.msra.mxu0 %vm8482_vm0, %v6411_v10  ;;  %vm3416_vm0 = vcmp.eq.s32.totalorder %v6598_v20, %v8380_v49 }
 0x13b   :  { %6258 = vmatpush3.bf16.msk.msra.mxu1 %vm8490_vm1, %v6411_v10  ;;  %5584 = vmatprep.mubr.f32.mxu0 %v7947_v23  ;;  %vm3417_vm1 = vcmp.eq.s32.totalorder %v6601_v21, %v8380_v49 }
 0x13c   :  { %5640 = vmatprep.mubr.f32.mxu1 %v7953_v33  ;;  %6228 = vmatprep.subr.msk.bf16.mxu0 %vm8514_vm6, %v6411_v10  ;;  %vm8586_vm3 = vmpackc.low %vm3417_vm1, %vm3416_vm0 }
 0x13d   :  { %5585 = vmatmul.mubr.f32.gmra.mrb[102].mxu0 %v7963_v42  ;;  %6260 = vmatprep.subr.msk.bf16.mxu1 %vm8522_vm7, %v6411_v10 }
 0x13e   :  { %5641 = vmatmul.mubr.f32.gmra.mrb[102].mxu1 %v7977_v31  ;;  %6230 = vmatpush3.bf16.msk.msra.mxu0 %vm8514_vm6, %v6411_v10  ;;  %vm3418_vm6 = vcmp.eq.s32.totalorder %v6632_v24, %v8380_v49 }
 0x13f   :  { %6262 = vmatpush3.bf16.msk.msra.mxu1 %vm8522_vm7, %v6411_v10  ;;  %5587 = vmatprep.mubr.f32.mxu0 %v7987_v52  ;;  %vm3419_vm7 = vcmp.eq.s32.totalorder %v6635_v25, %v8380_v49 }
 0x140   :  { %5643 = vmatprep.mubr.f32.mxu1 %v7993_v54  ;;  %6232 = vmatprep.subr.msk.bf16.mxu0 %vm8546_vm12, %v6411_v10  ;;  %vm8618_vm9 = vmpackc.low %vm3419_vm7, %vm3418_vm6 }
 0x141   :  { %5588 = vmatmul.mubr.f32.gmra.mrb[104].mxu0 %v8003_v58  ;;  %6264 = vmatprep.subr.msk.bf16.mxu1 %vm8554_vm13, %v6411_v10 }
 0x142   :  { %5644 = vmatmul.mubr.f32.gmra.mrb[104].mxu1 %v8017_v60  ;;  %6234 = vmatpush3.bf16.msk.msra.mxu0 %vm8546_vm12, %v6411_v10  ;;  %vm3420_vm12 = vcmp.eq.s32.totalorder %v6666_v28, %v8380_v49 }
 0x143   :  { %6266 = vmatpush3.bf16.msk.msra.mxu1 %vm8554_vm13, %v6411_v10  ;;  %5590 = vmatprep.mubr.f32.mxu0 %v8027_v0  ;;  %vm3421_vm13 = vcmp.eq.s32.totalorder %v6669_v29, %v8380_v49 }
 0x144   :  { %v4905_v21 = vpop.f32.mrb[0].mxu0  ;;  %5646 = vmatprep.mubr.f32.mxu1 %v8033_v9  ;;  %6236 = vmatprep.subr.msk.bf16.mxu0 %vm8578_vm2, %v6411_v10  ;;  %vm8656_vm15 = vmpackc.low %vm3421_vm13, %vm3420_vm12 }
 0x145   :  { %v4961_v48 = vpop.f32.mrb[0].mxu1  ;;  %v274_v46 = vpop.f32.mrb[1].mxu0  ;;  %5591 = vmatmul.mubr.f32.gmra.mrb[106].mxu0 %v8043_v36  ;;  %6268 = vmatprep.subr.msk.bf16.mxu1 %vm8586_vm3, %v6411_v10 }
 0x146   :  { %v515_v25 = vmul.f32 %v4961_v48, %v4905_v21  ;;  %v435_v27 = vpop.f32.mrb[1].mxu1  ;;  %5647 = vmatmul.mubr.f32.gmra.mrb[106].mxu1 %v8057_v38  ;;  %6238 = vmatpush3.bf16.msk.msra.mxu0 %vm8578_vm2, %v6411_v10 }
 0x147   :  { %v514_v37 = vmul.f32 %v435_v27, %v274_v46  ;;  %6270 = vmatpush3.bf16.msk.msra.mxu1 %vm8586_vm3, %v6411_v10  ;;  %5593 = vmatprep.mubr.f32.mxu0 %v8067_v39 }
 0x148   :  { %v4908_v43 = vpop.f32.mrb[2].mxu0  ;;  %5649 = vmatprep.mubr.f32.mxu1 %v8073_v41  ;;  %6240 = vmatprep.subr.msk.bf16.mxu0 %vm8610_vm8, %v6411_v10 }
 0x149   :  { %v530_v45 = vadd.f32 %v515_v25, %v514_v37  ;;  %v4964_v51 = vpop.f32.mrb[2].mxu1  ;;  %v284_v15 = vpop.f32.mrb[3].mxu0  ;;  %5594 = vmatmul.mubr.f32.gmra.mrb[108].mxu0 %v8083_v44  ;;  %6272 = vmatprep.subr.msk.bf16.mxu1 %vm8618_vm9, %v6411_v10 }
 0x14a   :  { %v517_v22 = vmul.f32 %v4964_v51, %v4908_v43  ;;  %v445_v8 = vpop.f32.mrb[3].mxu1  ;;  %5650 = vmatmul.mubr.f32.gmra.mrb[108].mxu1 %v8097_v47  ;;  %6242 = vmatpush3.bf16.msk.msra.mxu0 %vm8610_vm8, %v6411_v10 }
 0x14b   :  { %v516_v35 = vmul.f32 %v445_v8, %v284_v15  ;;  %6274 = vmatpush3.bf16.msk.msra.mxu1 %vm8618_vm9, %v6411_v10  ;;  %5596 = vmatprep.mubr.f32.mxu0 %v8109_v53 }
 0x14c   :  { %v4911_v40 = vpop.f32.mrb[4].mxu0  ;;  %5652 = vmatprep.mubr.f32.mxu1 %v8117_v59  ;;  %6244 = vmatprep.subr.msk.bf16.mxu0 %vm8645_vm14, %v6411_v10 }
 0x14d   :  { %v531_v1 = vadd.f32 %v530_v45, %v516_v35  ;;  %v4967_v28 = vpop.f32.mrb[4].mxu1  ;;  %v294_v49 = vpop.f32.mrb[5].mxu0  ;;  %5597 = vmatmul.mubr.f32.gmra.mrb[110].mxu0 %v8130_v62  ;;  %6276 = vmatprep.subr.msk.bf16.mxu1 %vm8656_vm15, %v6411_v10 }
 0x14e   :  { %v519_v2 = vmul.f32 %v4967_v28, %v4911_v40  ;;  %v455_v3 = vpop.f32.mrb[5].mxu1  ;;  %5653 = vmatmul.mubr.f32.gmra.mrb[110].mxu1 %v8144_v50  ;;  %6246 = vmatpush3.bf16.msk.msra.mxu0 %vm8645_vm14, %v6411_v10 }
 0x14f   :  { %v518_v4 = vmul.f32 %v455_v3, %v294_v49  ;;  %v532_v5 = vadd.f32 %v531_v1, %v517_v22  ;;  %6278 = vmatpush3.bf16.msk.msra.mxu1 %vm8656_vm15, %v6411_v10  ;;  %5687 = vmatprep.mubr.f32.mxu0 %v7827_v56 }
 0x150   :  { %v4914_v6 = vpop.f32.mrb[6].mxu0  ;;  %5743 = vmatprep.mubr.f32.mxu1 %v7833_v57 }
 0x151   :  { %v533_v11 = vadd.f32 %v532_v5, %v518_v4  ;;  %v4970_v12 = vpop.f32.mrb[6].mxu1  ;;  %v304_v16 = vpop.f32.mrb[7].mxu0  ;;  %5688 = vmatmul.mubr.f32.vlgmr.msra.gmra.mrb[112].mxu0 %v7843_v61 }
 0x152   :  { %v521_v17 = vmul.f32 %v4970_v12, %v4914_v6  ;;  %v465_v20 = vpop.f32.mrb[7].mxu1  ;;  %5744 = vmatmul.mubr.f32.vlgmr.msra.gmra.mrb[112].mxu1 %v7857_v63  ;;  %5690 = vmatprep.mubr.f32.mxu0 %v7867_v7 }
 0x153   :  { %v520_v21 = vmul.f32 %v465_v20, %v304_v16  ;;  %v534_v48 = vadd.f32 %v533_v11, %v519_v2  ;;  %5746 = vmatprep.mubr.f32.mxu1 %v7873_v14 }
 0x154   :  { %v4917_v10 = vpop.f32.mrb[8].mxu0 }
 0x155   :  { %v535_v56 = vadd.f32 %v534_v48, %v520_v21  ;;  %v4973_v46 = vpop.f32.mrb[8].mxu1  ;;  %v314_v24 = vpop.f32.mrb[9].mxu0  ;;  %5691 = vmatmul.mubr.f32.gmra.mrb[114].mxu0 %v7883_v18 }
 0x156   :  { %v523_v57 = vmul.f32 %v4973_v46, %v4917_v10  ;;  %v475_v25 = vpop.f32.mrb[9].mxu1  ;;  %5747 = vmatmul.mubr.f32.gmra.mrb[114].mxu1 %v7897_v26  ;;  %5693 = vmatprep.mubr.f32.mxu0 %v7907_v30 }
 0x157   :  { %v522_v61 = vmul.f32 %v475_v25, %v314_v24  ;;  %v536_v63 = vadd.f32 %v535_v56, %v521_v17  ;;  %5749 = vmatprep.mubr.f32.mxu1 %v7913_v34 }
 0x158   :  { %v4920_v7 = vpop.f32.mrb[10].mxu0 }
 0x159   :  { %v537_v27 = vadd.f32 %v536_v63, %v522_v61  ;;  %v4976_v13 = vpop.f32.mrb[10].mxu1  ;;  %v324_v14 = vpop.f32.mrb[11].mxu0  ;;  %5694 = vmatmul.mubr.f32.gmra.mrb[116].mxu0 %v7923_v32 }
 0x15a   :  { %v525_v37 = vmul.f32 %v4976_v13, %v4920_v7  ;;  %v485_v43 = vpop.f32.mrb[11].mxu1  ;;  %5750 = vmatmul.mubr.f32.gmra.mrb[116].mxu1 %v7937_v19  ;;  %5696 = vmatprep.mubr.f32.mxu0 %v7947_v23 }
 0x15b   :  { %v524_v18 = vmul.f32 %v485_v43, %v324_v14  ;;  %v538_v26 = vadd.f32 %v537_v27, %v523_v57  ;;  %5752 = vmatprep.mubr.f32.mxu1 %v7953_v33 }
 0x15c   :  { %v4923_v30 = vpop.f32.mrb[12].mxu0 }
 0x15d   :  { %v539_v45 = vadd.f32 %v538_v26, %v524_v18  ;;  %v4979_v51 = vpop.f32.mrb[12].mxu1  ;;  %v334_v34 = vpop.f32.mrb[13].mxu0  ;;  %5697 = vmatmul.mubr.f32.gmra.mrb[118].mxu0 %v7963_v42 }
 0x15e   :  { %v527_v15 = vmul.f32 %v4979_v51, %v4923_v30  ;;  %v495_v29 = vpop.f32.mrb[13].mxu1  ;;  %5753 = vmatmul.mubr.f32.gmra.mrb[118].mxu1 %v7977_v31  ;;  %5699 = vmatprep.mubr.f32.mxu0 %v7987_v52 }
 0x15f   :  { %v526_v32 = vmul.f32 %v495_v29, %v334_v34  ;;  %v540_v19 = vadd.f32 %v539_v45, %v525_v37  ;;  %5755 = vmatprep.mubr.f32.mxu1 %v7993_v54 }
 0x160   :  { %v4926_v23 = vpop.f32.mrb[14].mxu0 }
 0x161   :  { %v541_v22 = vadd.f32 %v540_v19, %v526_v32  ;;  %v4982_v8 = vpop.f32.mrb[14].mxu1  ;;  %v344_v33 = vpop.f32.mrb[15].mxu0  ;;  %5700 = vmatmul.mubr.f32.gmra.mrb[120].mxu0 %v8003_v58 }
 0x162   :  { %v529_v55 = vmul.f32 %v4982_v8, %v4926_v23  ;;  %v505_v35 = vpop.f32.mrb[15].mxu1  ;;  %5756 = vmatmul.mubr.f32.gmra.mrb[120].mxu1 %v8017_v60  ;;  %5702 = vmatprep.mubr.f32.mxu0 %v8027_v0 }
 0x163   :  { %v528_v42 = vmul.f32 %v505_v35, %v344_v33  ;;  %v542_v31 = vadd.f32 %v541_v22, %v527_v15  ;;  %5758 = vmatprep.mubr.f32.mxu1 %v8033_v9 }
 0x164   :  { %v5017_v52 = vpop.f32.mrb[16].mxu0 }
 0x165   :  { %v543_v40 = vadd.f32 %v542_v31, %v528_v42  ;;  %v5073_v1 = vpop.f32.mrb[16].mxu1  ;;  %v740_v54 = vpop.f32.mrb[17].mxu0  ;;  %5703 = vmatmul.mubr.f32.gmra.mrb[122].mxu0 %v8043_v36 }
 0x166   :  { %v981_v28 = vmul.f32 %v5073_v1, %v5017_v52  ;;  %v901_v49 = vpop.f32.mrb[17].mxu1  ;;  %5759 = vmatmul.mubr.f32.gmra.mrb[122].mxu1 %v8057_v38  ;;  %5705 = vmatprep.mubr.f32.mxu0 %v8067_v39 }
 0x167   :  { %v544_v58 = vadd.f32 %v543_v40, %v529_v55  ;;  %v980_v60 = vmul.f32 %v901_v49, %v740_v54  ;;  %5761 = vmatprep.mubr.f32.mxu1 %v8073_v41 }
 0x168   :  { %v5020_v0 = vpop.f32.mrb[18].mxu0 }
 0x169   :  { %v545_v2 = vrot.slane %v544_v58, 4  ;;  %v996_v3 = vadd.f32 %v981_v28, %v980_v60  ;;  %v5076_v9 = vpop.f32.mrb[18].mxu1  ;;  %v750_v4 = vpop.f32.mrb[19].mxu0  ;;  %5706 = vmatmul.mubr.f32.gmra.mrb[124].mxu0 %v8083_v44 }
 0x16a   :  { %v983_v5 = vmul.f32 %v5076_v9, %v5020_v0  ;;  %v911_v6 = vpop.f32.mrb[19].mxu1  ;;  %5762 = vmatmul.mubr.f32.gmra.mrb[124].mxu1 %v8097_v47  ;;  %5708 = vmatprep.mubr.f32.mxu0 %v8109_v53 }
 0x16b   :  { %v546_v36 = vadd.f32 %v545_v2, %v544_v58  ;;  %v982_v38 = vmul.f32 %v911_v6, %v750_v4  ;;  %5764 = vmatprep.mubr.f32.mxu1 %v8117_v59 }
 0x16c   :  { %v5023_v39 = vpop.f32.mrb[20].mxu0 }
 0x16d   :  { %v547_v11 = vrot.slane %v546_v36, 2  ;;  %v997_v41 = vadd.f32 %v996_v3, %v982_v38  ;;  %v5079_v12 = vpop.f32.mrb[20].mxu1  ;;  %v760_v16 = vpop.f32.mrb[21].mxu0  ;;  %5709 = vmatmul.mubr.f32.gmra.mrb[126].mxu0 %v8130_v62 }
 0x16e   :  { %v985_v17 = vmul.f32 %v5079_v12, %v5023_v39  ;;  %v921_v20 = vpop.f32.mrb[21].mxu1  ;;  %5765 = vmatmul.mubr.f32.gmra.mrb[126].mxu1 %v8144_v50 }
 0x16f   :  { %v548_v44 = vadd.f32 %v547_v11, %v546_v36  ;;  %v984_v21 = vmul.f32 %v921_v20, %v760_v16  ;;  %v998_v47 = vadd.f32 %v997_v41, %v983_v5 }
 0x170   :  { %v5026_v48 = vpop.f32.mrb[22].mxu0 }
 0x171   :  { %v549_v53 = vrot.slane %v548_v44, 1  ;;  %v999_v10 = vadd.f32 %v998_v47, %v984_v21  ;;  %v5082_v56 = vpop.f32.mrb[22].mxu1  ;;  %v770_v46 = vpop.f32.mrb[23].mxu0 }
 0x172   :  { %v987_v59 = vmul.f32 %v5082_v56, %v5026_v48  ;;  %v931_v24 = vpop.f32.mrb[23].mxu1 }
 0x173   :  { %v550_v57 = vadd.f32 %v549_v53, %v548_v44  ;;  %v986_v25 = vmul.f32 %v931_v24, %v770_v46  ;;  %v1000_v61 = vadd.f32 %v999_v10, %v985_v17 }
 0x174   :  { %v5029_v63 = vpop.f32.mrb[24].mxu0 }
 0x175   :  { %551 = vst [vmem:[#allocation10] sm:$0x1] %v550_v57  ;;  %v1001_v62 = vadd.f32 %v1000_v61, %v986_v25  ;;  %v5085_v7 = vpop.f32.mrb[24].mxu1  ;;  %v780_v27 = vpop.f32.mrb[25].mxu0 }
 0x176   :  { %v989_v13 = vmul.f32 %v5085_v7, %v5029_v63  ;;  %v941_v50 = vpop.f32.mrb[25].mxu1 }
 0x177   :  { %v988_v14 = vmul.f32 %v941_v50, %v780_v27  ;;  %v1002_v37 = vadd.f32 %v1001_v62, %v987_v59 }
 0x178   :  { %v5032_v43 = vpop.f32.mrb[26].mxu0 }
 0x179   :  { %v1003_v18 = vadd.f32 %v1002_v37, %v988_v14  ;;  %v5088_v26 = vpop.f32.mrb[26].mxu1  ;;  %v790_v30 = vpop.f32.mrb[27].mxu0 }
 0x17a   :  { %v991_v45 = vmul.f32 %v5088_v26, %v5032_v43  ;;  %v951_v51 = vpop.f32.mrb[27].mxu1 }
 0x17b   :  { %v990_v34 = vmul.f32 %v951_v51, %v790_v30  ;;  %v1004_v15 = vadd.f32 %v1003_v18, %v989_v13 }
 0x17c   :  { %v5035_v29 = vpop.f32.mrb[28].mxu0 }
 0x17d   :  { %v1005_v32 = vadd.f32 %v1004_v15, %v990_v34  ;;  %v5091_v19 = vpop.f32.mrb[28].mxu1  ;;  %v800_v23 = vpop.f32.mrb[29].mxu0 }
 0x17e   :  { %v993_v22 = vmul.f32 %v5091_v19, %v5035_v29  ;;  %v961_v8 = vpop.f32.mrb[29].mxu1 }
 0x17f   :  { %v992_v33 = vmul.f32 %v961_v8, %v800_v23  ;;  %v1006_v55 = vadd.f32 %v1005_v32, %v991_v45 }
 0x180   :  { %v5038_v35 = vpop.f32.mrb[30].mxu0 }
 0x181   :  { %v1007_v42 = vadd.f32 %v1006_v55, %v992_v33  ;;  %v5094_v31 = vpop.f32.mrb[30].mxu1  ;;  %v810_v52 = vpop.f32.mrb[31].mxu0 }
 0x182   :  { %v995_v40 = vmul.f32 %v5094_v31, %v5038_v35  ;;  %v971_v1 = vpop.f32.mrb[31].mxu1 }
 0x183   :  { %v994_v54 = vmul.f32 %v971_v1, %v810_v52  ;;  %v1008_v28 = vadd.f32 %v1007_v42, %v993_v22 }
 0x184   :  { %v5129_v49 = vpop.f32.mrb[32].mxu0 }
 0x185   :  { %v1009_v58 = vadd.f32 %v1008_v28, %v994_v54  ;;  %v5185_v60 = vpop.f32.mrb[32].mxu1  ;;  %v1206_v0 = vpop.f32.mrb[33].mxu0 }
 0x186   :  { %v1447_v2 = vmul.f32 %v5185_v60, %v5129_v49  ;;  %v1367_v3 = vpop.f32.mrb[33].mxu1 }
 0x187   :  { %v1010_v9 = vadd.f32 %v1009_v58, %v995_v40  ;;  %v1446_v4 = vmul.f32 %v1367_v3, %v1206_v0 }
 0x188   :  { %v5132_v5 = vpop.f32.mrb[34].mxu0 }
 0x189   :  { %v1011_v6 = vrot.slane %v1010_v9, 4  ;;  %v1462_v36 = vadd.f32 %v1447_v2, %v1446_v4  ;;  %v5188_v38 = vpop.f32.mrb[34].mxu1  ;;  %v1216_v39 = vpop.f32.mrb[35].mxu0 }
 0x18a   :  { %v1449_v11 = vmul.f32 %v5188_v38, %v5132_v5  ;;  %v1377_v41 = vpop.f32.mrb[35].mxu1 }
 0x18b   :  { %v1012_v12 = vadd.f32 %v1011_v6, %v1010_v9  ;;  %v1448_v16 = vmul.f32 %v1377_v41, %v1216_v39 }
 0x18c   :  { %v5135_v17 = vpop.f32.mrb[36].mxu0 }
 0x18d   :  { %v1013_v20 = vrot.slane %v1012_v12, 2  ;;  %v1463_v44 = vadd.f32 %v1462_v36, %v1448_v16  ;;  %v5191_v21 = vpop.f32.mrb[36].mxu1  ;;  %v1226_v47 = vpop.f32.mrb[37].mxu0 }
 0x18e   :  { %v1451_v48 = vmul.f32 %v5191_v21, %v5135_v17  ;;  %v1387_v53 = vpop.f32.mrb[37].mxu1 }
 0x18f   :  { %v1014_v10 = vadd.f32 %v1013_v20, %v1012_v12  ;;  %v1450_v56 = vmul.f32 %v1387_v53, %v1226_v47  ;;  %v1464_v46 = vadd.f32 %v1463_v44, %v1449_v11 }
 0x190   :  { %v5138_v59 = vpop.f32.mrb[38].mxu0 }
 0x191   :  { %v1015_v24 = vrot.slane %v1014_v10, 1  ;;  %v1465_v57 = vadd.f32 %v1464_v46, %v1450_v56  ;;  %v5194_v25 = vpop.f32.mrb[38].mxu1  ;;  %v1236_v61 = vpop.f32.mrb[39].mxu0 }
 0x192   :  { %v1453_v63 = vmul.f32 %v5194_v25, %v5138_v59  ;;  %v1397_v62 = vpop.f32.mrb[39].mxu1 }
 0x193   :  { %v1016_v7 = vadd.f32 %v1015_v24, %v1014_v10  ;;  %v1452_v27 = vmul.f32 %v1397_v62, %v1236_v61  ;;  %v1466_v13 = vadd.f32 %v1465_v57, %v1451_v48 }
 0x194   :  { %v5141_v50 = vpop.f32.mrb[40].mxu0 }
 0x195   :  { %1017 = vst [vmem:[#allocation10 + $0x1] sm:$0x1] %v1016_v7  ;;  %v1467_v14 = vadd.f32 %v1466_v13, %v1452_v27  ;;  %v5197_v37 = vpop.f32.mrb[40].mxu1  ;;  %v1246_v43 = vpop.f32.mrb[41].mxu0 }
 0x196   :  { %v1455_v18 = vmul.f32 %v5197_v37, %v5141_v50  ;;  %v1407_v26 = vpop.f32.mrb[41].mxu1 }
 0x197   :  { %v1454_v30 = vmul.f32 %v1407_v26, %v1246_v43  ;;  %v1468_v45 = vadd.f32 %v1467_v14, %v1453_v63 }
 0x198   :  { %v5144_v51 = vpop.f32.mrb[42].mxu0 }
 0x199   :  { %v1469_v34 = vadd.f32 %v1468_v45, %v1454_v30  ;;  %v5200_v15 = vpop.f32.mrb[42].mxu1  ;;  %v1256_v29 = vpop.f32.mrb[43].mxu0 }
 0x19a   :  { %v1457_v32 = vmul.f32 %v5200_v15, %v5144_v51  ;;  %v1417_v19 = vpop.f32.mrb[43].mxu1 }
 0x19b   :  { %v1456_v23 = vmul.f32 %v1417_v19, %v1256_v29  ;;  %v1470_v22 = vadd.f32 %v1469_v34, %v1455_v18 }
 0x19c   :  { %v5147_v8 = vpop.f32.mrb[44].mxu0 }
 0x19d   :  { %v1471_v33 = vadd.f32 %v1470_v22, %v1456_v23  ;;  %v5203_v55 = vpop.f32.mrb[44].mxu1  ;;  %v1266_v35 = vpop.f32.mrb[45].mxu0 }
 0x19e   :  { %v1459_v42 = vmul.f32 %v5203_v55, %v5147_v8  ;;  %v1427_v31 = vpop.f32.mrb[45].mxu1 }
 0x19f   :  { %v1458_v52 = vmul.f32 %v1427_v31, %v1266_v35  ;;  %v1472_v40 = vadd.f32 %v1471_v33, %v1457_v32 }
 0x1a0   :  { %v5150_v1 = vpop.f32.mrb[46].mxu0 }
 0x1a1   :  { %v1473_v54 = vadd.f32 %v1472_v40, %v1458_v52  ;;  %v5206_v28 = vpop.f32.mrb[46].mxu1  ;;  %v1276_v49 = vpop.f32.mrb[47].mxu0 }
 0x1a2   :  { %v1461_v58 = vmul.f32 %v5206_v28, %v5150_v1  ;;  %v1437_v60 = vpop.f32.mrb[47].mxu1 }
 0x1a3   :  { %v1460_v0 = vmul.f32 %v1437_v60, %v1276_v49  ;;  %v1474_v2 = vadd.f32 %v1473_v54, %v1459_v42 }
 0x1a4   :  { %v5241_v3 = vpop.f32.mrb[48].mxu0 }
 0x1a5   :  { %v1475_v9 = vadd.f32 %v1474_v2, %v1460_v0  ;;  %v5297_v4 = vpop.f32.mrb[48].mxu1  ;;  %v1672_v5 = vpop.f32.mrb[49].mxu0 }
 0x1a6   :  { %v1913_v6 = vmul.f32 %v5297_v4, %v5241_v3  ;;  %v1833_v36 = vpop.f32.mrb[49].mxu1 }
 0x1a7   :  { %v1476_v38 = vadd.f32 %v1475_v9, %v1461_v58  ;;  %v1912_v39 = vmul.f32 %v1833_v36, %v1672_v5 }
 0x1a8   :  { %v5244_v11 = vpop.f32.mrb[50].mxu0 }
 0x1a9   :  { %v1477_v41 = vrot.slane %v1476_v38, 4  ;;  %v1928_v12 = vadd.f32 %v1913_v6, %v1912_v39  ;;  %v5300_v16 = vpop.f32.mrb[50].mxu1  ;;  %v1682_v17 = vpop.f32.mrb[51].mxu0 }
 0x1aa   :  { %v1915_v20 = vmul.f32 %v5300_v16, %v5244_v11  ;;  %v1843_v44 = vpop.f32.mrb[51].mxu1 }
 0x1ab   :  { %v1478_v21 = vadd.f32 %v1477_v41, %v1476_v38  ;;  %v1914_v47 = vmul.f32 %v1843_v44, %v1682_v17 }
 0x1ac   :  { %v5247_v48 = vpop.f32.mrb[52].mxu0 }
 0x1ad   :  { %v1479_v53 = vrot.slane %v1478_v21, 2  ;;  %v1929_v10 = vadd.f32 %v1928_v12, %v1914_v47  ;;  %v5303_v56 = vpop.f32.mrb[52].mxu1  ;;  %v1692_v46 = vpop.f32.mrb[53].mxu0 }
 0x1ae   :  { %v1917_v59 = vmul.f32 %v5303_v56, %v5247_v48  ;;  %v1853_v24 = vpop.f32.mrb[53].mxu1 }
 0x1af   :  { %v1480_v57 = vadd.f32 %v1479_v53, %v1478_v21  ;;  %v1916_v25 = vmul.f32 %v1853_v24, %v1692_v46  ;;  %v1930_v61 = vadd.f32 %v1929_v10, %v1915_v20 }
 0x1b0   :  { %v5250_v63 = vpop.f32.mrb[54].mxu0 }
 0x1b1   :  { %v1481_v62 = vrot.slane %v1480_v57, 1  ;;  %v1931_v7 = vadd.f32 %v1930_v61, %v1916_v25  ;;  %v5306_v27 = vpop.f32.mrb[54].mxu1  ;;  %v1702_v13 = vpop.f32.mrb[55].mxu0 }
 0x1b2   :  { %v1919_v50 = vmul.f32 %v5306_v27, %v5250_v63  ;;  %v1863_v14 = vpop.f32.mrb[55].mxu1 }
 0x1b3   :  { %v1482_v37 = vadd.f32 %v1481_v62, %v1480_v57  ;;  %v1918_v43 = vmul.f32 %v1863_v14, %v1702_v13  ;;  %v1932_v18 = vadd.f32 %v1931_v7, %v1917_v59 }
 0x1b4   :  { %v5253_v26 = vpop.f32.mrb[56].mxu0 }
 0x1b5   :  { %1483 = vst [vmem:[#allocation10 + $0x2] sm:$0x1] %v1482_v37  ;;  %v1933_v30 = vadd.f32 %v1932_v18, %v1918_v43  ;;  %v5309_v45 = vpop.f32.mrb[56].mxu1  ;;  %v1712_v51 = vpop.f32.mrb[57].mxu0 }
 0x1b6   :  { %v1921_v34 = vmul.f32 %v5309_v45, %v5253_v26  ;;  %v1873_v15 = vpop.f32.mrb[57].mxu1 }
 0x1b7   :  { %v1920_v29 = vmul.f32 %v1873_v15, %v1712_v51  ;;  %v1934_v32 = vadd.f32 %v1933_v30, %v1919_v50 }
 0x1b8   :  { %v5256_v19 = vpop.f32.mrb[58].mxu0 }
 0x1b9   :  { %v1935_v23 = vadd.f32 %v1934_v32, %v1920_v29  ;;  %v5312_v22 = vpop.f32.mrb[58].mxu1  ;;  %v1722_v8 = vpop.f32.mrb[59].mxu0 }
 0x1ba   :  { %v1923_v33 = vmul.f32 %v5312_v22, %v5256_v19  ;;  %v1883_v55 = vpop.f32.mrb[59].mxu1 }
 0x1bb   :  { %v1922_v35 = vmul.f32 %v1883_v55, %v1722_v8  ;;  %v1936_v42 = vadd.f32 %v1935_v23, %v1921_v34 }
 0x1bc   :  { %v5259_v31 = vpop.f32.mrb[60].mxu0 }
 0x1bd   :  { %v1937_v52 = vadd.f32 %v1936_v42, %v1922_v35  ;;  %v5315_v40 = vpop.f32.mrb[60].mxu1  ;;  %v1732_v1 = vpop.f32.mrb[61].mxu0 }
 0x1be   :  { %v1925_v54 = vmul.f32 %v5315_v40, %v5259_v31  ;;  %v1893_v28 = vpop.f32.mrb[61].mxu1 }
 0x1bf   :  { %v1924_v49 = vmul.f32 %v1893_v28, %v1732_v1  ;;  %v1938_v58 = vadd.f32 %v1937_v52, %v1923_v33 }
 0x1c0   :  { %v5262_v60 = vpop.f32.mrb[62].mxu0 }
 0x1c1   :  { %v1939_v0 = vadd.f32 %v1938_v58, %v1924_v49  ;;  %v5318_v2 = vpop.f32.mrb[62].mxu1  ;;  %v1742_v3 = vpop.f32.mrb[63].mxu0 }
 0x1c2   :  { %v1927_v9 = vmul.f32 %v5318_v2, %v5262_v60  ;;  %v1903_v4 = vpop.f32.mrb[63].mxu1 }
 0x1c3   :  { %v1926_v5 = vmul.f32 %v1903_v4, %v1742_v3  ;;  %v1940_v6 = vadd.f32 %v1939_v0, %v1925_v54 }
 0x1c4   :  { %v5353_v36 = vpop.f32.mrb[64].mxu0 }
 0x1c5   :  { %v1941_v38 = vadd.f32 %v1940_v6, %v1926_v5  ;;  %v5409_v39 = vpop.f32.mrb[64].mxu1  ;;  %v2138_v11 = vpop.f32.mrb[65].mxu0 }
 0x1c6   :  { %v2379_v41 = vmul.f32 %v5409_v39, %v5353_v36  ;;  %v2299_v12 = vpop.f32.mrb[65].mxu1 }
 0x1c7   :  { %v1942_v16 = vadd.f32 %v1941_v38, %v1927_v9  ;;  %v2378_v17 = vmul.f32 %v2299_v12, %v2138_v11 }
 0x1c8   :  { %v5356_v20 = vpop.f32.mrb[66].mxu0 }
 0x1c9   :  { %v1943_v44 = vrot.slane %v1942_v16, 4  ;;  %v2394_v21 = vadd.f32 %v2379_v41, %v2378_v17  ;;  %v5412_v47 = vpop.f32.mrb[66].mxu1  ;;  %v2148_v48 = vpop.f32.mrb[67].mxu0 }
 0x1ca   :  { %v2381_v53 = vmul.f32 %v5412_v47, %v5356_v20  ;;  %v2309_v10 = vpop.f32.mrb[67].mxu1 }
 0x1cb   :  { %v1944_v56 = vadd.f32 %v1943_v44, %v1942_v16  ;;  %v2380_v46 = vmul.f32 %v2309_v10, %v2148_v48 }
 0x1cc   :  { %v5359_v59 = vpop.f32.mrb[68].mxu0 }
 0x1cd   :  { %v1945_v24 = vrot.slane %v1944_v56, 2  ;;  %v2395_v57 = vadd.f32 %v2394_v21, %v2380_v46  ;;  %v5415_v25 = vpop.f32.mrb[68].mxu1  ;;  %v2158_v61 = vpop.f32.mrb[69].mxu0 }
 0x1ce   :  { %v2383_v63 = vmul.f32 %v5415_v25, %v5359_v59  ;;  %v2319_v62 = vpop.f32.mrb[69].mxu1 }
 0x1cf   :  { %v1946_v7 = vadd.f32 %v1945_v24, %v1944_v56  ;;  %v2382_v27 = vmul.f32 %v2319_v62, %v2158_v61  ;;  %v2396_v13 = vadd.f32 %v2395_v57, %v2381_v53 }
 0x1d0   :  { %v5362_v50 = vpop.f32.mrb[70].mxu0 }
 0x1d1   :  { %v1947_v14 = vrot.slane %v1946_v7, 1  ;;  %v2397_v37 = vadd.f32 %v2396_v13, %v2382_v27  ;;  %v5418_v43 = vpop.f32.mrb[70].mxu1  ;;  %v2168_v18 = vpop.f32.mrb[71].mxu0 }
 0x1d2   :  { %v2385_v26 = vmul.f32 %v5418_v43, %v5362_v50  ;;  %v2329_v30 = vpop.f32.mrb[71].mxu1 }
 0x1d3   :  { %v1948_v45 = vadd.f32 %v1947_v14, %v1946_v7  ;;  %v2384_v51 = vmul.f32 %v2329_v30, %v2168_v18  ;;  %v2398_v34 = vadd.f32 %v2397_v37, %v2383_v63 }
 0x1d4   :  { %v5365_v15 = vpop.f32.mrb[72].mxu0 }
 0x1d5   :  { %1949 = vst [vmem:[#allocation10 + $0x3] sm:$0x1] %v1948_v45  ;;  %v2399_v29 = vadd.f32 %v2398_v34, %v2384_v51  ;;  %v5421_v32 = vpop.f32.mrb[72].mxu1  ;;  %v2178_v19 = vpop.f32.mrb[73].mxu0 }
 0x1d6   :  { %v2387_v23 = vmul.f32 %v5421_v32, %v5365_v15  ;;  %v2339_v22 = vpop.f32.mrb[73].mxu1 }
 0x1d7   :  { %v2386_v8 = vmul.f32 %v2339_v22, %v2178_v19  ;;  %v2400_v33 = vadd.f32 %v2399_v29, %v2385_v26 }
 0x1d8   :  { %v5368_v55 = vpop.f32.mrb[74].mxu0 }
 0x1d9   :  { %v2401_v35 = vadd.f32 %v2400_v33, %v2386_v8  ;;  %v5424_v42 = vpop.f32.mrb[74].mxu1  ;;  %v2188_v31 = vpop.f32.mrb[75].mxu0 }
 0x1da   :  { %v2389_v52 = vmul.f32 %v5424_v42, %v5368_v55  ;;  %v2349_v40 = vpop.f32.mrb[75].mxu1 }
 0x1db   :  { %v2388_v1 = vmul.f32 %v2349_v40, %v2188_v31  ;;  %v2402_v54 = vadd.f32 %v2401_v35, %v2387_v23 }
 0x1dc   :  { %v5371_v28 = vpop.f32.mrb[76].mxu0 }
 0x1dd   :  { %v2403_v49 = vadd.f32 %v2402_v54, %v2388_v1  ;;  %v5427_v58 = vpop.f32.mrb[76].mxu1  ;;  %v2198_v60 = vpop.f32.mrb[77].mxu0 }
 0x1de   :  { %v2391_v0 = vmul.f32 %v5427_v58, %v5371_v28  ;;  %v2359_v2 = vpop.f32.mrb[77].mxu1 }
 0x1df   :  { %v2390_v3 = vmul.f32 %v2359_v2, %v2198_v60  ;;  %v2404_v9 = vadd.f32 %v2403_v49, %v2389_v52 }
 0x1e0   :  { %v5374_v4 = vpop.f32.mrb[78].mxu0 }
 0x1e1   :  { %v2405_v5 = vadd.f32 %v2404_v9, %v2390_v3  ;;  %v5430_v6 = vpop.f32.mrb[78].mxu1  ;;  %v2208_v36 = vpop.f32.mrb[79].mxu0 }
 0x1e2   :  { %v2393_v38 = vmul.f32 %v5430_v6, %v5374_v4  ;;  %v2369_v39 = vpop.f32.mrb[79].mxu1 }
 0x1e3   :  { %v2392_v11 = vmul.f32 %v2369_v39, %v2208_v36  ;;  %v2406_v41 = vadd.f32 %v2405_v5, %v2391_v0 }
 0x1e4   :  { %v5465_v12 = vpop.f32.mrb[80].mxu0 }
 0x1e5   :  { %v2407_v16 = vadd.f32 %v2406_v41, %v2392_v11  ;;  %v5521_v17 = vpop.f32.mrb[80].mxu1  ;;  %v2604_v20 = vpop.f32.mrb[81].mxu0 }
 0x1e6   :  { %v2845_v44 = vmul.f32 %v5521_v17, %v5465_v12  ;;  %v2765_v21 = vpop.f32.mrb[81].mxu1 }
 0x1e7   :  { %v2408_v47 = vadd.f32 %v2407_v16, %v2393_v38  ;;  %v2844_v48 = vmul.f32 %v2765_v21, %v2604_v20 }
 0x1e8   :  { %v5468_v53 = vpop.f32.mrb[82].mxu0 }
 0x1e9   :  { %v2409_v10 = vrot.slane %v2408_v47, 4  ;;  %v2860_v56 = vadd.f32 %v2845_v44, %v2844_v48  ;;  %v5524_v46 = vpop.f32.mrb[82].mxu1  ;;  %v2614_v59 = vpop.f32.mrb[83].mxu0 }
 0x1ea   :  { %v2847_v24 = vmul.f32 %v5524_v46, %v5468_v53  ;;  %v2775_v57 = vpop.f32.mrb[83].mxu1 }
 0x1eb   :  { %v2410_v25 = vadd.f32 %v2409_v10, %v2408_v47  ;;  %v2846_v61 = vmul.f32 %v2775_v57, %v2614_v59 }
 0x1ec   :  { %v5471_v63 = vpop.f32.mrb[84].mxu0 }
 0x1ed   :  { %v2411_v62 = vrot.slane %v2410_v25, 2  ;;  %v2861_v7 = vadd.f32 %v2860_v56, %v2846_v61  ;;  %v5527_v27 = vpop.f32.mrb[84].mxu1  ;;  %v2624_v13 = vpop.f32.mrb[85].mxu0 }
 0x1ee   :  { %v2849_v50 = vmul.f32 %v5527_v27, %v5471_v63  ;;  %v2785_v14 = vpop.f32.mrb[85].mxu1 }
 0x1ef   :  { %v2412_v37 = vadd.f32 %v2411_v62, %v2410_v25  ;;  %v2848_v43 = vmul.f32 %v2785_v14, %v2624_v13  ;;  %v2862_v18 = vadd.f32 %v2861_v7, %v2847_v24 }
 0x1f0   :  { %v5474_v26 = vpop.f32.mrb[86].mxu0 }
 0x1f1   :  { %v2413_v30 = vrot.slane %v2412_v37, 1  ;;  %v2863_v45 = vadd.f32 %v2862_v18, %v2848_v43  ;;  %v5530_v51 = vpop.f32.mrb[86].mxu1  ;;  %v2634_v34 = vpop.f32.mrb[87].mxu0 }
 0x1f2   :  { %v2851_v15 = vmul.f32 %v5530_v51, %v5474_v26  ;;  %v2795_v29 = vpop.f32.mrb[87].mxu1 }
 0x1f3   :  { %v2414_v32 = vadd.f32 %v2413_v30, %v2412_v37  ;;  %v2850_v19 = vmul.f32 %v2795_v29, %v2634_v34  ;;  %v2864_v23 = vadd.f32 %v2863_v45, %v2849_v50 }
 0x1f4   :  { %v5477_v22 = vpop.f32.mrb[88].mxu0 }
 0x1f5   :  { %2415 = vst [vmem:[#allocation10 + $0x4] sm:$0x1] %v2414_v32  ;;  %v2865_v8 = vadd.f32 %v2864_v23, %v2850_v19  ;;  %v5533_v33 = vpop.f32.mrb[88].mxu1  ;;  %v2644_v55 = vpop.f32.mrb[89].mxu0 }
 0x1f6   :  { %v2853_v35 = vmul.f32 %v5533_v33, %v5477_v22  ;;  %v2805_v42 = vpop.f32.mrb[89].mxu1 }
 0x1f7   :  { %v2852_v31 = vmul.f32 %v2805_v42, %v2644_v55  ;;  %v2866_v52 = vadd.f32 %v2865_v8, %v2851_v15 }
 0x1f8   :  { %v5480_v40 = vpop.f32.mrb[90].mxu0 }
 0x1f9   :  { %v2867_v1 = vadd.f32 %v2866_v52, %v2852_v31  ;;  %v5536_v54 = vpop.f32.mrb[90].mxu1  ;;  %v2654_v28 = vpop.f32.mrb[91].mxu0 }
 0x1fa   :  { %v2855_v49 = vmul.f32 %v5536_v54, %v5480_v40  ;;  %v2815_v58 = vpop.f32.mrb[91].mxu1 }
 0x1fb   :  { %v2854_v60 = vmul.f32 %v2815_v58, %v2654_v28  ;;  %v2868_v0 = vadd.f32 %v2867_v1, %v2853_v35 }
 0x1fc   :  { %v5483_v2 = vpop.f32.mrb[92].mxu0 }
 0x1fd   :  { %v2869_v3 = vadd.f32 %v2868_v0, %v2854_v60  ;;  %v5539_v9 = vpop.f32.mrb[92].mxu1  ;;  %v2664_v4 = vpop.f32.mrb[93].mxu0 }
 0x1fe   :  { %v2857_v5 = vmul.f32 %v5539_v9, %v5483_v2  ;;  %v2825_v6 = vpop.f32.mrb[93].mxu1 }
 0x1ff   :  { %v2856_v36 = vmul.f32 %v2825_v6, %v2664_v4  ;;  %v2870_v38 = vadd.f32 %v2869_v3, %v2855_v49 }
 0x200   :  { %v5486_v39 = vpop.f32.mrb[94].mxu0 }
 0x201   :  { %v2871_v11 = vadd.f32 %v2870_v38, %v2856_v36  ;;  %v5542_v41 = vpop.f32.mrb[94].mxu1  ;;  %v2674_v12 = vpop.f32.mrb[95].mxu0 }
 0x202   :  { %v2859_v16 = vmul.f32 %v5542_v41, %v5486_v39  ;;  %v2835_v17 = vpop.f32.mrb[95].mxu1 }
 0x203   :  { %v2858_v20 = vmul.f32 %v2835_v17, %v2674_v12  ;;  %v2872_v44 = vadd.f32 %v2871_v11, %v2857_v5 }
 0x204   :  { %v5577_v21 = vpop.f32.mrb[96].mxu0 }
 0x205   :  { %v2873_v47 = vadd.f32 %v2872_v44, %v2858_v20  ;;  %v5633_v48 = vpop.f32.mrb[96].mxu1  ;;  %v3070_v53 = vpop.f32.mrb[97].mxu0 }
 0x206   :  { %v3311_v10 = vmul.f32 %v5633_v48, %v5577_v21  ;;  %v3231_v56 = vpop.f32.mrb[97].mxu1 }
 0x207   :  { %v2874_v46 = vadd.f32 %v2873_v47, %v2859_v16  ;;  %v3310_v59 = vmul.f32 %v3231_v56, %v3070_v53 }
 0x208   :  { %v5580_v24 = vpop.f32.mrb[98].mxu0 }
 0x209   :  { %v2875_v57 = vrot.slane %v2874_v46, 4  ;;  %v3326_v25 = vadd.f32 %v3311_v10, %v3310_v59  ;;  %v5636_v61 = vpop.f32.mrb[98].mxu1  ;;  %v3080_v63 = vpop.f32.mrb[99].mxu0 }
 0x20a   :  { %v3313_v62 = vmul.f32 %v5636_v61, %v5580_v24  ;;  %v3241_v7 = vpop.f32.mrb[99].mxu1 }
 0x20b   :  { %v2876_v27 = vadd.f32 %v2875_v57, %v2874_v46  ;;  %v3312_v13 = vmul.f32 %v3241_v7, %v3080_v63 }
 0x20c   :  { %v5583_v50 = vpop.f32.mrb[100].mxu0 }
 0x20d   :  { %v2877_v14 = vrot.slane %v2876_v27, 2  ;;  %v3327_v37 = vadd.f32 %v3326_v25, %v3312_v13  ;;  %v5639_v43 = vpop.f32.mrb[100].mxu1  ;;  %v3090_v18 = vpop.f32.mrb[101].mxu0 }
 0x20e   :  { %v3315_v26 = vmul.f32 %v5639_v43, %v5583_v50  ;;  %v3251_v30 = vpop.f32.mrb[101].mxu1 }
 0x20f   :  { %v2878_v45 = vadd.f32 %v2877_v14, %v2876_v27  ;;  %v3314_v51 = vmul.f32 %v3251_v30, %v3090_v18  ;;  %v3328_v34 = vadd.f32 %v3327_v37, %v3313_v62 }
 0x210   :  { %v5586_v15 = vpop.f32.mrb[102].mxu0 }
 0x211   :  { %v2879_v29 = vrot.slane %v2878_v45, 1  ;;  %v3329_v32 = vadd.f32 %v3328_v34, %v3314_v51  ;;  %v5642_v19 = vpop.f32.mrb[102].mxu1  ;;  %v3100_v23 = vpop.f32.mrb[103].mxu0 }
 0x212   :  { %v3317_v22 = vmul.f32 %v5642_v19, %v5586_v15  ;;  %v3261_v8 = vpop.f32.mrb[103].mxu1 }
 0x213   :  { %v2880_v33 = vadd.f32 %v2879_v29, %v2878_v45  ;;  %v3316_v55 = vmul.f32 %v3261_v8, %v3100_v23  ;;  %v3330_v35 = vadd.f32 %v3329_v32, %v3315_v26 }
 0x214   :  { %v5589_v42 = vpop.f32.mrb[104].mxu0 }
 0x215   :  { %2881 = vst [vmem:[#allocation10 + $0x5] sm:$0x1] %v2880_v33  ;;  %v3331_v31 = vadd.f32 %v3330_v35, %v3316_v55  ;;  %v5645_v52 = vpop.f32.mrb[104].mxu1  ;;  %v3110_v40 = vpop.f32.mrb[105].mxu0 }
 0x216   :  { %v3319_v1 = vmul.f32 %v5645_v52, %v5589_v42  ;;  %v3271_v54 = vpop.f32.mrb[105].mxu1 }
 0x217   :  { %v3318_v28 = vmul.f32 %v3271_v54, %v3110_v40  ;;  %v3332_v49 = vadd.f32 %v3331_v31, %v3317_v22 }
 0x218   :  { %v5592_v58 = vpop.f32.mrb[106].mxu0 }
 0x219   :  { %v3333_v60 = vadd.f32 %v3332_v49, %v3318_v28  ;;  %v5648_v0 = vpop.f32.mrb[106].mxu1  ;;  %v3120_v2 = vpop.f32.mrb[107].mxu0 }
 0x21a   :  { %v3321_v3 = vmul.f32 %v5648_v0, %v5592_v58  ;;  %v3281_v9 = vpop.f32.mrb[107].mxu1 }
 0x21b   :  { %v3320_v4 = vmul.f32 %v3281_v9, %v3120_v2  ;;  %v3334_v5 = vadd.f32 %v3333_v60, %v3319_v1 }
 0x21c   :  { %v5595_v6 = vpop.f32.mrb[108].mxu0 }
 0x21d   :  { %v3335_v36 = vadd.f32 %v3334_v5, %v3320_v4  ;;  %v5651_v38 = vpop.f32.mrb[108].mxu1  ;;  %v3130_v39 = vpop.f32.mrb[109].mxu0 }
 0x21e   :  { %v3323_v11 = vmul.f32 %v5651_v38, %v5595_v6  ;;  %v3291_v41 = vpop.f32.mrb[109].mxu1 }
 0x21f   :  { %v3322_v12 = vmul.f32 %v3291_v41, %v3130_v39  ;;  %v3336_v16 = vadd.f32 %v3335_v36, %v3321_v3 }
 0x220   :  { %v5598_v17 = vpop.f32.mrb[110].mxu0 }
 0x221   :  { %v3337_v20 = vadd.f32 %v3336_v16, %v3322_v12  ;;  %v5654_v44 = vpop.f32.mrb[110].mxu1  ;;  %v3140_v21 = vpop.f32.mrb[111].mxu0 }
 0x222   :  { %v3325_v47 = vmul.f32 %v5654_v44, %v5598_v17  ;;  %v3301_v48 = vpop.f32.mrb[111].mxu1 }
 0x223   :  { %v3324_v53 = vmul.f32 %v3301_v48, %v3140_v21  ;;  %v3338_v10 = vadd.f32 %v3337_v20, %v3323_v11 }
 0x224   :  { %v5689_v56 = vpop.f32.mrb[112].mxu0 }
 0x225   :  { %v3339_v46 = vadd.f32 %v3338_v10, %v3324_v53  ;;  %v5745_v59 = vpop.f32.mrb[112].mxu1  ;;  %v3536_v24 = vpop.f32.mrb[113].mxu0 }
 0x226   :  { %v3777_v57 = vmul.f32 %v5745_v59, %v5689_v56  ;;  %v3697_v25 = vpop.f32.mrb[113].mxu1 }
 0x227   :  { %v3340_v61 = vadd.f32 %v3339_v46, %v3325_v47  ;;  %v3776_v63 = vmul.f32 %v3697_v25, %v3536_v24 }
 0x228   :  { %v5692_v62 = vpop.f32.mrb[114].mxu0 }
 0x229   :  { %v3341_v7 = vrot.slane %v3340_v61, 4  ;;  %v3792_v27 = vadd.f32 %v3777_v57, %v3776_v63  ;;  %v5748_v13 = vpop.f32.mrb[114].mxu1  ;;  %v3546_v50 = vpop.f32.mrb[115].mxu0 }
 0x22a   :  { %v3779_v14 = vmul.f32 %v5748_v13, %v5692_v62  ;;  %v3707_v37 = vpop.f32.mrb[115].mxu1 }
 0x22b   :  { %v3342_v43 = vadd.f32 %v3341_v7, %v3340_v61  ;;  %v3778_v18 = vmul.f32 %v3707_v37, %v3546_v50 }
 0x22c   :  { %v5695_v26 = vpop.f32.mrb[116].mxu0 }
 0x22d   :  { %v3343_v30 = vrot.slane %v3342_v43, 2  ;;  %v3793_v45 = vadd.f32 %v3792_v27, %v3778_v18  ;;  %v5751_v51 = vpop.f32.mrb[116].mxu1  ;;  %v3556_v34 = vpop.f32.mrb[117].mxu0 }
 0x22e   :  { %v3781_v15 = vmul.f32 %v5751_v51, %v5695_v26  ;;  %v3717_v29 = vpop.f32.mrb[117].mxu1 }
 0x22f   :  { %v3344_v32 = vadd.f32 %v3343_v30, %v3342_v43  ;;  %v3780_v19 = vmul.f32 %v3717_v29, %v3556_v34  ;;  %v3794_v23 = vadd.f32 %v3793_v45, %v3779_v14 }
 0x230   :  { %v5698_v22 = vpop.f32.mrb[118].mxu0 }
 0x231   :  { %v3345_v8 = vrot.slane %v3344_v32, 1  ;;  %v3795_v33 = vadd.f32 %v3794_v23, %v3780_v19  ;;  %v5754_v55 = vpop.f32.mrb[118].mxu1  ;;  %v3566_v35 = vpop.f32.mrb[119].mxu0 }
 0x232   :  { %v3783_v42 = vmul.f32 %v5754_v55, %v5698_v22  ;;  %v3727_v31 = vpop.f32.mrb[119].mxu1 }
 0x233   :  { %v3346_v52 = vadd.f32 %v3345_v8, %v3344_v32  ;;  %v3782_v40 = vmul.f32 %v3727_v31, %v3566_v35  ;;  %v3796_v1 = vadd.f32 %v3795_v33, %v3781_v15 }
 0x234   :  { %v5701_v54 = vpop.f32.mrb[120].mxu0 }
 0x235   :  { %3347 = vst [vmem:[#allocation10 + $0x6] sm:$0x1] %v3346_v52  ;;  %v3797_v28 = vadd.f32 %v3796_v1, %v3782_v40  ;;  %v5757_v49 = vpop.f32.mrb[120].mxu1  ;;  %v3576_v58 = vpop.f32.mrb[121].mxu0 }
 0x236   :  { %v3785_v60 = vmul.f32 %v5757_v49, %v5701_v54  ;;  %v3737_v0 = vpop.f32.mrb[121].mxu1 }
 0x237   :  { %v3784_v2 = vmul.f32 %v3737_v0, %v3576_v58  ;;  %v3798_v3 = vadd.f32 %v3797_v28, %v3783_v42 }
 0x238   :  { %v5704_v9 = vpop.f32.mrb[122].mxu0 }
 0x239   :  { %v3799_v4 = vadd.f32 %v3798_v3, %v3784_v2  ;;  %v5760_v5 = vpop.f32.mrb[122].mxu1  ;;  %v3586_v6 = vpop.f32.mrb[123].mxu0 }
 0x23a   :  { %v3787_v36 = vmul.f32 %v5760_v5, %v5704_v9  ;;  %v3747_v38 = vpop.f32.mrb[123].mxu1 }
 0x23b   :  { %v3786_v39 = vmul.f32 %v3747_v38, %v3586_v6  ;;  %v3800_v11 = vadd.f32 %v3799_v4, %v3785_v60 }
 0x23c   :  { %v5707_v41 = vpop.f32.mrb[124].mxu0 }
 0x23d   :  { %v3801_v12 = vadd.f32 %v3800_v11, %v3786_v39  ;;  %v5763_v16 = vpop.f32.mrb[124].mxu1  ;;  %v3596_v17 = vpop.f32.mrb[125].mxu0 }
 0x23e   :  { %v3789_v20 = vmul.f32 %v5763_v16, %v5707_v41  ;;  %v3757_v44 = vpop.f32.mrb[125].mxu1 }
 0x23f   :  { %v3788_v21 = vmul.f32 %v3757_v44, %v3596_v17  ;;  %v3802_v47 = vadd.f32 %v3801_v12, %v3787_v36 }
 0x240   :  { %v5710_v48 = vpop.f32.mrb[126].mxu0 }
 0x241   :  { %v3803_v53 = vadd.f32 %v3802_v47, %v3788_v21  ;;  %v5766_v10 = vpop.f32.mrb[126].mxu1  ;;  %v3606_v56 = vpop.f32.mrb[127].mxu0 }
 0x242   :  { %v3791_v46 = vmul.f32 %v5766_v10, %v5710_v48  ;;  %v3767_v59 = vpop.f32.mrb[127].mxu1 }
 0x243   :  { %v3790_v24 = vmul.f32 %v3767_v59, %v3606_v56  ;;  %v3804_v57 = vadd.f32 %v3803_v53, %v3789_v20 }
 0x245   :  { %v3805_v25 = vadd.f32 %v3804_v57, %v3790_v24 }
 0x247   :  { %v3806_v61 = vadd.f32 %v3805_v25, %v3791_v46 }
 0x249   :  { %v3807_v63 = vrot.slane %v3806_v61, 4 }
 0x24b   :  { %v3808_v62 = vadd.f32 %v3807_v63, %v3806_v61 }
 0x24d   :  { %v3809_v7 = vrot.slane %v3808_v62, 2 }
 0x24f   :  { %v3810_v27 = vadd.f32 %v3809_v7, %v3808_v62 }
 0x251   :  { %v3811_v13 = vrot.slane %v3810_v27, 1 }
 0x253   :  { %v3812_v50 = vadd.f32 %v3811_v13, %v3810_v27 }
 0x255   :  { %3813 = vst [vmem:[#allocation10 + $0x7] sm:$0x1] %v3812_v50 }
 0x256   :  { %6386 = shalt.err (!%p6383_p8)
}
 0x257   :  { %s6387_s13 = scalar_lea.hbm %s8727_s4, 128 }
 0x258   :  { %p6388_p9 = scmp.ne.s32.totalorder %s8727_s4, %s6387_s13  ;;  %p6391_p10 = scmp.lt.u32.totalorder %s6387_s13, %s8727_s4 }
 0x25a   :  { %p6393_p11 = pnand %p6391_p10, %p6388_p9 }
 0x25c   :  { %6396 = shalt.err (!%p6393_p11)
}
 0x25d   :  { %3823 = dma.vmem_to_hbm [thread:$0]  %s3821_s10, 128, %s8727_s4, [#allocation4]  }
 0x25e   :  { %6403 = dma.done.wait [#allocation4], 128  }
 0x25f   :  { %6404 = vsyncadd [#allocation4], 4294967168 }
 0x260   :  { %3827 = vsyncpa [#allocation3], 1 }
 0x261   :  { %3828 = vsyncpa [#allocation6], 1 }
 0x262   :  { %3829 = vsyncpa [#allocation9], 1 }
 0x263   :  { %3830 = vsyncpa [#allocation4], 1 }

// kernel: tpu_custom_call.1
= control target key start
LH: loop header
LB: loop body
LE: loop exit
PB: predicated region body
PF: predicated region fallthrough
CT: control target
= control target key end

     0   :  { %9 = vsyncpa [#allocation3], 0  ;;  %s8723_s0 = inlined_call_operand.hbm [shape: s32[8,128], index: 0, kind: input, shape index: {}]   ;;  %s8724_s1 = inlined_call_operand.hbm [shape: s32[8,128], index: 1, kind: input, shape index: {}]   ;;  %s8725_s2 = inlined_call_operand.hbm [shape: f32[128,128], index: 2, kind: input, shape index: {}]   ;;  %s8726_s3 = inlined_call_operand.hbm [shape: f32[128,128], index: 3, kind: input, shape index: {}]   ;;  %s8727_s4 = inlined_call_operand.hbm [shape: f32[8,128], index: 4, kind: output, shape index: {}]  }
   0x1   :  { %10 = vsyncpa [#allocation6], 0 }
   0x2   :  { %11 = vsyncpa [#allocation9], 0 }
   0x3   :  { %12 = vsyncpa [#allocation4], 0  ;;  %s6405_s15 = smov [#allocation5]   ;;  %s6406_s17 = smov [#allocation2]  }
   0x4   :  { %s29_s16 = sshll.u32 %s6405_s15, 4  ;;  %s19_s18 = sshll.u32 %s6406_s17, 4  ;;  %s30_s16 = int_to_ptr.vmem [resolvable:$true] %s29_s16  ;;  %s20_s18 = int_to_ptr.vmem [resolvable:$true] %s19_s18 }
   0x5   :  { %s6287_s21 = scalar_lea.hbm %s8724_s1, 128 }
   0x6   :  { %p6288_p0 = scmp.ne.s32.totalorder %s8724_s1, %s6287_s21  ;;  %p6291_p1 = scmp.lt.u32.totalorder %s6287_s21, %s8724_s1 }
   0x8   :  { %p6293_p2 = pnand %p6291_p1, %p6288_p0 }
   0xa   :  { %6296 = shalt.err (!%p6293_p2)
}
   0xb   :  { %s6297_s26 = scalar_lea.vmem %s30_s16, 128  ;;  %p6302_p4 = scmp.lt.s32.totalorder %s30_s16, %s30_s16 }
   0xc   :  { %p6298_p3 = scmp.ne.s32.totalorder %s30_s16, %s6297_s26  ;;  %p6303_p5 = scmp.lt.s32.totalorder %s6297_s26, %s6297_s26 }
   0xe   :  { %p6304_p6 = por %p6303_p5, %p6302_p4 }
  0x10   :  { %p6305_p7 = pnand %p6304_p6, %p6298_p3 }
  0x12   :  { %6308 = shalt.err (!%p6305_p7)
}
  0x13   :  { %32 = dma.hbm_to_vmem [thread:$0]  %s8724_s1, 128, %s30_s16, [#allocation6]  }
  0x14   :  { %s6309_s5 = scalar_lea.hbm %s8723_s0, 128 }
  0x15   :  { %p6310_p8 = scmp.ne.s32.totalorder %s8723_s0, %s6309_s5  ;;  %p6313_p9 = scmp.lt.u32.totalorder %s6309_s5, %s8723_s0 }
  0x17   :  { %p6315_p10 = pnand %p6313_p9, %p6310_p8 }
  0x19   :  { %6318 = shalt.err (!%p6315_p10)
}
  0x1a   :  { %s6319_s10 = scalar_lea.vmem %s20_s18, 128  ;;  %p6324_p12 = scmp.lt.s32.totalorder %s20_s18, %s20_s18 }
  0x1b   :  { %p6320_p11 = scmp.ne.s32.totalorder %s20_s18, %s6319_s10  ;;  %p6325_p13 = scmp.lt.s32.totalorder %s6319_s10, %s6319_s10 }
  0x1d   :  { %p6326_p0 = por %p6325_p13, %p6324_p12 }
  0x1f   :  { %p6327_p1 = pnand %p6326_p0, %p6320_p11 }
  0x21   :  { %6330 = shalt.err (!%p6327_p1)
}
  0x22   :  { %22 = dma.hbm_to_vmem [thread:$0]  %s8723_s0, 128, %s20_s18, [#allocation3]  }
  0x23   :  { %s6407_s12 = smov [#allocation7]   ;;  %s6331_s16 = scalar_lea.hbm %s8725_s2, 2048 }
  0x24   :  { %s38_s13 = sshll.u32 %s6407_s12, 4  ;;  %p6332_p2 = scmp.ne.s32.totalorder %s8725_s2, %s6331_s16  ;;  %s39_s13 = int_to_ptr.vmem [resolvable:$true] %s38_s13 }
  0x25   :  { %p6335_p3 = scmp.lt.u32.totalorder %s6331_s16, %s8725_s2 }
  0x27   :  { %p6337_p4 = pnand %p6335_p3, %p6332_p2 }
  0x29   :  { %6340 = shalt.err (!%p6337_p4)
}
  0x2a   :  { %s6341_s22 = scalar_lea.vmem %s39_s13, 2048  ;;  %p6346_p6 = scmp.lt.s32.totalorder %s39_s13, %s39_s13 }
  0x2b   :  { %p6342_p5 = scmp.ne.s32.totalorder %s39_s13, %s6341_s22  ;;  %p6347_p7 = scmp.lt.s32.totalorder %s6341_s22, %s6341_s22 }
  0x2d   :  { %p6348_p8 = por %p6347_p7, %p6346_p6 }
  0x2f   :  { %p6349_p9 = pnand %p6348_p8, %p6342_p5 }
  0x31   :  { %6352 = shalt.err (!%p6349_p9)
}
  0x32   :  { %s6408_s0 = smov 128   ;;  %s6409_s18 = smov 8  }
  0x33   :  { %44 = dma.hbm_to_vmem [thread:$0]  %s8725_s2, 2048, %s39_s13, [#allocation6], %s6408_s0, %s6408_s0, %s6409_s18  }
  0x34   :  { %s6410_s25 = smov [#allocation8]   ;;  %s6353_s29 = scalar_lea.hbm %s8726_s3, 2048 }
  0x35   :  { %s50_s26 = sshll.u32 %s6410_s25, 4  ;;  %p6354_p10 = scmp.ne.s32.totalorder %s8726_s3, %s6353_s29  ;;  %s51_s26 = int_to_ptr.vmem [resolvable:$true] %s50_s26 }
  0x36   :  { %p6357_p11 = scmp.lt.u32.totalorder %s6353_s29, %s8726_s3 }
  0x38   :  { %p6359_p12 = pnand %p6357_p11, %p6354_p10 }
  0x3a   :  { %6362 = shalt.err (!%p6359_p12)
}
  0x3b   :  { %s6363_s8 = scalar_lea.vmem %s51_s26, 2048  ;;  %p6368_p0 = scmp.lt.s32.totalorder %s51_s26, %s51_s26 }
  0x3c   :  { %p6364_p13 = scmp.ne.s32.totalorder %s51_s26, %s6363_s8  ;;  %p6369_p1 = scmp.lt.s32.totalorder %s6363_s8, %s6363_s8 }
  0x3e   :  { %p6370_p2 = por %p6369_p1, %p6368_p0 }
  0x40   :  { %p6371_p3 = pnand %p6370_p2, %p6364_p13 }
  0x42   :  { %6374 = shalt.err (!%p6371_p3)
}
  0x43   :  { %56 = dma.hbm_to_vmem [thread:$0]  %s8726_s3, 2048, %s51_s26, [#allocation9], %s6408_s0, %s6408_s0, %s6409_s18  }
  0x44   :  { %6397 = dma.done.wait [#allocation3], 128  }
  0x45   :  { %6398 = vsyncadd [#allocation3], 4294967168 }
  0x46   :  { %6399 = dma.done.wait [#allocation6], 2176  }
  0x47   :  { %6400 = vsyncadd [#allocation6], 4294965120 }
  0x48   :  { %6401 = dma.done.wait [#allocation9], 2048  }
  0x49   :  { %6402 = vsyncadd [#allocation9], 4294965248  ;;  %v69_v0 = vlaneseq  ;;  %v6503_v7 = vld [vmem:[#allocation2] ss:$0 sm:$0xff]  ;;  %v6505_v8 = vld [vmem:[#allocation5] ss:$0 sm:$0xff] }
  0x4a   :  { %v6515_v9 = vld [vmem:[#allocation7] sm:$0xff]  ;;  %v6411_v10 = vmov 1.0|1.0   ;;  %v6706_v32 = vld [vmem:[#allocation2 + $0x1] ss:$0 sm:$0xff]  ;;  %v6744_v36 = vld [vmem:[#allocation7 + $0x8] sm:$0xff] }
  0x4b   :  { %v6486_v1 = vshrl.u32 %v69_v0, 7  ;;  %4903 = vmatprep.mubr.f32.mxu0 %v6515_v9  ;;  %v6543_v13 = vld [vmem:[#allocation8] sm:$0xff]  ;;  %v6714_v33 = vld [vmem:[#allocation5 + $0x1] ss:$0 sm:$0xff]  ;;  %v6751_v37 = vld [vmem:[#allocation8 + $0x8] sm:$0xff]  ;;  %s6412_s3 = smov [#allocation10]  }
  0x4c   :  { %4959 = vmatprep.mubr.f32.mxu1 %v6543_v13  ;;  %v6763_v38 = vld [vmem:[#allocation7 + $0x10] sm:$0xff]  ;;  %v6776_v41 = vld [vmem:[#allocation7 + $0x18] sm:$0xff]  ;;  %v6800_v44 = vld [vmem:[#allocation7 + $0x20] sm:$0xff]  ;;  %s3820_s10 = sshll.u32 %s6412_s3, 4  ;;  %s3821_s10 = int_to_ptr.vmem [resolvable:$true] %s3820_s10 }
  0x4d   :  { %v6489_v2 = vadd.s32 8, %v6486_v1  ;;  %v6492_v3 = vadd.s32 16, %v6486_v1  ;;  %v6495_v4 = vadd.s32 24, %v6486_v1  ;;  %v6498_v5 = vadd.s32 32, %v6486_v1  ;;  %v6766_v39 = vld [vmem:[#allocation8 + $0x10] sm:$0xff]  ;;  %v6790_v43 = vld [vmem:[#allocation8 + $0x18] sm:$0xff]  ;;  %p6380_p5 = scmp.lt.s32.totalorder %s3821_s10, %s3821_s10 }
  0x4e   :  { %v6501_v6 = vadd.s32 40, %v6486_v1  ;;  %vm92_vm0 = vcmp.eq.s32.totalorder %v6486_v1, %v6503_v7  ;;  %vm144_vm2 = vcmp.eq.s32.totalorder %v6486_v1, %v6505_v8  ;;  %v6532_v11 = vadd.s32 48, %v6486_v1  ;;  %v6806_v45 = vld [vmem:[#allocation8 + $0x20] sm:$0xff]  ;;  %v6816_v47 = vld [vmem:[#allocation7 + $0x28] sm:$0xff]  ;;  %v6840_v50 = vld [vmem:[#allocation7 + $0x30] sm:$0xff]  ;;  %s6375_s1 = scalar_lea.vmem %s3821_s10, 128 }
  0x4f   :  { %vm93_vm1 = vcmp.eq.s32.totalorder %v6489_v2, %v6503_v7  ;;  %vm145_vm3 = vcmp.eq.s32.totalorder %v6489_v2, %v6505_v8  ;;  %vm94_vm5 = vcmp.eq.s32.totalorder %v6492_v3, %v6503_v7  ;;  %vm95_vm6 = vcmp.eq.s32.totalorder %v6495_v4, %v6503_v7  ;;  %v6830_v49 = vld [vmem:[#allocation8 + $0x28] sm:$0xff]  ;;  %v6846_v51 = vld [vmem:[#allocation8 + $0x30] sm:$0xff]  ;;  %v6856_v53 = vld [vmem:[#allocation7 + $0x38] sm:$0xff]  ;;  %p6376_p4 = scmp.ne.s32.totalorder %s3821_s10, %s6375_s1  ;;  %p6381_p6 = scmp.lt.s32.totalorder %s6375_s1, %s6375_s1 }
  0x50   :  { %vm5767_vm4 = vmpackc.low %vm93_vm1, %vm92_vm0  ;;  %vm146_vm7 = vcmp.eq.s32.totalorder %v6492_v3, %v6505_v8  ;;  %vm147_vm8 = vcmp.eq.s32.totalorder %v6495_v4, %v6505_v8  ;;  %vm96_vm10 = vcmp.eq.s32.totalorder %v6498_v5, %v6503_v7  ;;  %vm97_vm11 = vcmp.eq.s32.totalorder %v6501_v6, %v6503_v7  ;;  %v6870_v55 = vld [vmem:[#allocation8 + $0x38] sm:$0xff]  ;;  %v6880_v56 = vld [vmem:[#allocation7 + $0x40] sm:$0xff] }
  0x51   :  { %5768 = vmatprep.subr.msk.bf16.mxu0 %vm5767_vm4, %v6411_v10  ;;  %vm5799_vm9 = vmpackc.low %vm145_vm3, %vm144_vm2  ;;  %v6535_v12 = vadd.s32 56, %v6486_v1  ;;  %vm148_vm13 = vcmp.eq.s32.totalorder %v6498_v5, %v6505_v8  ;;  %vm149_vm14 = vcmp.eq.s32.totalorder %v6501_v6, %v6505_v8  ;;  %vm98_vm2 = vcmp.eq.s32.totalorder %v6532_v11, %v6503_v7  ;;  %v6886_v57 = vld [vmem:[#allocation8 + $0x40] sm:$0xff]  ;;  %v6896_v59 = vld [vmem:[#allocation7 + $0x48] sm:$0xff]  ;;  %p6382_p7 = por %p6381_p6, %p6380_p5 }
  0x52   :  { %5800 = vmatprep.subr.msk.bf16.mxu1 %vm5799_vm9, %v6411_v10  ;;  %5770 = vmatpush3.bf16.msk.msra.mxu0 %vm5767_vm4, %v6411_v10  ;;  %vm5771_vm12 = vmpackc.low %vm95_vm6, %vm94_vm5  ;;  %v6567_v16 = vadd.s32 64, %v6486_v1  ;;  %v6570_v17 = vadd.s32 72, %v6486_v1  ;;  %vm150_vm4 = vcmp.eq.s32.totalorder %v6532_v11, %v6505_v8  ;;  %v6598_v20 = vadd.s32 80, %v6486_v1  ;;  %v6910_v61 = vld [vmem:[#allocation8 + $0x48] sm:$0xff]  ;;  %v6920_v62 = vld [vmem:[#allocation7 + $0x50] sm:$0xff] }
  0x53   :  { %5802 = vmatpush3.bf16.msk.msra.mxu1 %vm5799_vm9, %v6411_v10  ;;  %5772 = vmatprep.subr.msk.bf16.mxu0 %vm5771_vm12, %v6411_v10  ;;  %vm5803_vm15 = vmpackc.low %vm147_vm8, %vm146_vm7  ;;  %vm99_vm3 = vcmp.eq.s32.totalorder %v6535_v12, %v6503_v7  ;;  %vm151_vm5 = vcmp.eq.s32.totalorder %v6535_v12, %v6505_v8  ;;  %v6601_v21 = vadd.s32 88, %v6486_v1  ;;  %v6632_v24 = vadd.s32 96, %v6486_v1  ;;  %v6926_v63 = vld [vmem:[#allocation8 + $0x50] sm:$0xff]  ;;  %v6950_v14 = vld [vmem:[#allocation8 + $0x58] sm:$0xff]  ;;  %p6383_p8 = pnand %p6382_p7, %p6376_p4 }
  0x54   :  { %5804 = vmatprep.subr.msk.bf16.mxu1 %vm5803_vm15, %v6411_v10  ;;  %vm6554_vm0 = vmpackc.low %vm97_vm11, %vm96_vm10  ;;  %vm100_vm8 = vcmp.eq.s32.totalorder %v6567_v16, %v6503_v7  ;;  %vm101_vm9 = vcmp.eq.s32.totalorder %v6570_v17, %v6503_v7  ;;  %vm152_vm10 = vcmp.eq.s32.totalorder %v6567_v16, %v6505_v8  ;;  %vm153_vm11 = vcmp.eq.s32.totalorder %v6570_v17, %v6505_v8  ;;  %v6960_v15 = vld [vmem:[#allocation7 + $0x60] sm:$0xff]  ;;  %v6976_v22 = vld [vmem:[#allocation7 + $0x68] sm:$0xff] }
  0x55   :  { %vm6558_vm1 = vmpackc.low %vm149_vm14, %vm148_vm13  ;;  %vm102_vm14 = vcmp.eq.s32.totalorder %v6598_v20, %v6503_v7  ;;  %v6635_v25 = vadd.s32 104, %v6486_v1  ;;  %v6666_v28 = vadd.s32 112, %v6486_v1  ;;  %v6669_v29 = vadd.s32 120, %v6486_v1  ;;  %v6966_v18 = vld [vmem:[#allocation8 + $0x60] sm:$0xff]  ;;  %v6990_v26 = vld [vmem:[#allocation8 + $0x68] sm:$0xff] }
  0x56   :  { %5774 = vmatpush3.bf16.msk.msra.mxu0 %vm5771_vm12, %v6411_v10  ;;  %vm6585_vm6 = vmpackc.low %vm99_vm3, %vm98_vm2  ;;  %v6996_v27 = vld [vmem:[#allocation2 + $0x2] ss:$0 sm:$0xff]  ;;  %v7004_v31 = vld [vmem:[#allocation5 + $0x2] ss:$0 sm:$0xff] }
  0x57   :  { %5806 = vmatpush3.bf16.msk.msra.mxu1 %vm5803_vm15, %v6411_v10  ;;  %5776 = vmatprep.subr.msk.bf16.mxu0 %vm6554_vm0, %v6411_v10  ;;  %vm6589_vm7 = vmpackc.low %vm151_vm5, %vm150_vm4  ;;  %vm103_vm15 = vcmp.eq.s32.totalorder %v6601_v21, %v6503_v7  ;;  %vm104_vm4 = vcmp.eq.s32.totalorder %v6632_v24, %v6503_v7  ;;  %vm105_vm5 = vcmp.eq.s32.totalorder %v6635_v25, %v6503_v7  ;;  %v7002_v30 = vld [vmem:[#allocation7 + $0x70] sm:$0xff]  ;;  %v7023_v35 = vld [vmem:[#allocation7 + $0x78] sm:$0xff] }
  0x58   :  { %5808 = vmatprep.subr.msk.bf16.mxu1 %vm6558_vm1, %v6411_v10  ;;  %vm6619_vm12 = vmpackc.low %vm101_vm9, %vm100_vm8  ;;  %v7010_v34 = vld [vmem:[#allocation8 + $0x70] sm:$0xff]  ;;  %v7937_v19 = vld [vmem:[#allocation8 + $0x28] sm:$0xff] }
  0x59   :  { %vm6623_vm13 = vmpackc.low %vm153_vm11, %vm152_vm10  ;;  %vm106_vm10 = vcmp.eq.s32.totalorder %v6666_v28, %v6503_v7  ;;  %vm107_vm11 = vcmp.eq.s32.totalorder %v6669_v29, %v6503_v7  ;;  %v6936_v7 = vld [vmem:[#allocation7 + $0x58] sm:$0xff]  ;;  %v7267_v46 = vld [vmem:[#allocation2 + $0x3] ss:$0 sm:$0xff] }
  0x5a   :  { %5778 = vmatpush3.bf16.msk.msra.mxu0 %vm6554_vm0, %v6411_v10  ;;  %vm154_vm0 = vcmp.eq.s32.totalorder %v6598_v20, %v6505_v8  ;;  %vm6653_vm2 = vmpackc.low %vm103_vm15, %vm102_vm14  ;;  %v7527_v54 = vld [vmem:[#allocation2 + $0x4] ss:$0 sm:$0xff]  ;;  %v7963_v42 = vld [vmem:[#allocation7 + $0x38] sm:$0xff] }
  0x5b   :  { %5810 = vmatpush3.bf16.msk.msra.mxu1 %vm6558_vm1, %v6411_v10  ;;  %5780 = vmatprep.subr.msk.bf16.mxu0 %vm6585_vm6, %v6411_v10  ;;  %vm155_vm1 = vcmp.eq.s32.totalorder %v6601_v21, %v6505_v8  ;;  %vm6687_vm8 = vmpackc.low %vm105_vm5, %vm104_vm4  ;;  %v7947_v23 = vld [vmem:[#allocation7 + $0x30] sm:$0xff]  ;;  %v7987_v52 = vld [vmem:[#allocation7 + $0x40] sm:$0xff] }
  0x5c   :  { %5812 = vmatprep.subr.msk.bf16.mxu1 %vm6589_vm7, %v6411_v10  ;;  %vm6657_vm3 = vmpackc.low %vm155_vm1, %vm154_vm0  ;;  %vm558_vm0 = vcmp.eq.s32.totalorder %v6486_v1, %v6706_v32  ;;  %vm559_vm1 = vcmp.eq.s32.totalorder %v6489_v2, %v6706_v32  ;;  %v8003_v58 = vld [vmem:[#allocation7 + $0x48] sm:$0xff]  ;;  %v8027_v0 = vld [vmem:[#allocation7 + $0x50] sm:$0xff] }
  0x5d   :  { %vm5795_vm14 = vmpackc.low %vm107_vm11, %vm106_vm10  ;;  %v8017_v60 = vld [vmem:[#allocation8 + $0x48] sm:$0xff] }
  0x5e   :  { %5782 = vmatpush3.bf16.msk.msra.mxu0 %vm6585_vm6, %v6411_v10  ;;  %vm156_vm6 = vcmp.eq.s32.totalorder %v6632_v24, %v6505_v8  ;;  %vm6735_vm4 = vmpackc.low %vm559_vm1, %vm558_vm0 }
  0x5f   :  { %5814 = vmatpush3.bf16.msk.msra.mxu1 %vm6589_vm7, %v6411_v10  ;;  %5784 = vmatprep.subr.msk.bf16.mxu0 %vm6619_vm12, %v6411_v10  ;;  %vm157_vm7 = vcmp.eq.s32.totalorder %v6635_v25, %v6505_v8 }
  0x60   :  { %5816 = vmatprep.subr.msk.bf16.mxu1 %vm6623_vm13, %v6411_v10  ;;  %vm6691_vm9 = vmpackc.low %vm157_vm7, %vm156_vm6  ;;  %vm560_vm6 = vcmp.eq.s32.totalorder %v6492_v3, %v6706_v32  ;;  %vm561_vm7 = vcmp.eq.s32.totalorder %v6495_v4, %v6706_v32 }
  0x61   :  { %vm6768_vm10 = vmpackc.low %vm561_vm7, %vm560_vm6 }
  0x62   :  { %5786 = vmatpush3.bf16.msk.msra.mxu0 %vm6619_vm12, %v6411_v10  ;;  %vm158_vm12 = vcmp.eq.s32.totalorder %v6666_v28, %v6505_v8 }
  0x63   :  { %5818 = vmatpush3.bf16.msk.msra.mxu1 %vm6623_vm13, %v6411_v10  ;;  %5788 = vmatprep.subr.msk.bf16.mxu0 %vm6653_vm2, %v6411_v10  ;;  %vm159_vm13 = vcmp.eq.s32.totalorder %v6669_v29, %v6505_v8 }
  0x64   :  { %5820 = vmatprep.subr.msk.bf16.mxu1 %vm6657_vm3, %v6411_v10  ;;  %vm5827_vm15 = vmpackc.low %vm159_vm13, %vm158_vm12  ;;  %vm562_vm12 = vcmp.eq.s32.totalorder %v6498_v5, %v6706_v32  ;;  %vm563_vm13 = vcmp.eq.s32.totalorder %v6501_v6, %v6706_v32 }
  0x65   :  { %vm6808_vm0 = vmpackc.low %vm563_vm13, %vm562_vm12 }
  0x66   :  { %5790 = vmatpush3.bf16.msk.msra.mxu0 %vm6653_vm2, %v6411_v10  ;;  %vm610_vm2 = vcmp.eq.s32.totalorder %v6486_v1, %v6714_v33 }
  0x67   :  { %5822 = vmatpush3.bf16.msk.msra.mxu1 %vm6657_vm3, %v6411_v10  ;;  %5792 = vmatprep.subr.msk.bf16.mxu0 %vm6687_vm8, %v6411_v10  ;;  %vm611_vm3 = vcmp.eq.s32.totalorder %v6489_v2, %v6714_v33 }
  0x68   :  { %5824 = vmatprep.subr.msk.bf16.mxu1 %vm6691_vm9, %v6411_v10  ;;  %vm6739_vm5 = vmpackc.low %vm611_vm3, %vm610_vm2  ;;  %vm564_vm2 = vcmp.eq.s32.totalorder %v6532_v11, %v6706_v32  ;;  %vm565_vm3 = vcmp.eq.s32.totalorder %v6535_v12, %v6706_v32 }
  0x69   :  { %vm6848_vm6 = vmpackc.low %vm565_vm3, %vm564_vm2 }
  0x6a   :  { %5794 = vmatpush3.bf16.msk.msra.mxu0 %vm6687_vm8, %v6411_v10  ;;  %vm612_vm8 = vcmp.eq.s32.totalorder %v6492_v3, %v6714_v33 }
  0x6b   :  { %5826 = vmatpush3.bf16.msk.msra.mxu1 %vm6691_vm9, %v6411_v10  ;;  %5796 = vmatprep.subr.msk.bf16.mxu0 %vm5795_vm14, %v6411_v10  ;;  %vm613_vm9 = vcmp.eq.s32.totalorder %v6495_v4, %v6714_v33 }
  0x6c   :  { %5828 = vmatprep.subr.msk.bf16.mxu1 %vm5827_vm15, %v6411_v10  ;;  %vm6778_vm11 = vmpackc.low %vm613_vm9, %vm612_vm8  ;;  %vm566_vm8 = vcmp.eq.s32.totalorder %v6567_v16, %v6706_v32  ;;  %vm567_vm9 = vcmp.eq.s32.totalorder %v6570_v17, %v6706_v32 }
  0x6d   :  { %vm6888_vm12 = vmpackc.low %vm567_vm9, %vm566_vm8 }
  0x6e   :  { %5798 = vmatpush3.bf16.msk.msra.mxu0 %vm5795_vm14, %v6411_v10  ;;  %vm614_vm14 = vcmp.eq.s32.totalorder %v6498_v5, %v6714_v33 }
  0x6f   :  { %5830 = vmatpush3.bf16.msk.msra.mxu1 %vm5827_vm15, %v6411_v10  ;;  %5832 = vmatprep.subr.msk.bf16.mxu0 %vm6735_vm4, %v6411_v10  ;;  %vm615_vm15 = vcmp.eq.s32.totalorder %v6501_v6, %v6714_v33 }
  0x70   :  { %5864 = vmatprep.subr.msk.bf16.mxu1 %vm6739_vm5, %v6411_v10  ;;  %vm6818_vm1 = vmpackc.low %vm615_vm15, %vm614_vm14  ;;  %vm568_vm14 = vcmp.eq.s32.totalorder %v6598_v20, %v6706_v32  ;;  %vm569_vm15 = vcmp.eq.s32.totalorder %v6601_v21, %v6706_v32 }
  0x71   :  { %4904 = vmatmul.mubr.f32.vlgmr.msra.gmra.mrb[0].mxu0 %v6744_v36  ;;  %vm6928_vm2 = vmpackc.low %vm569_vm15, %vm568_vm14 }
  0x72   :  { %4960 = vmatmul.mubr.f32.vlgmr.msra.gmra.mrb[0].mxu1 %v6751_v37  ;;  %5834 = vmatpush3.bf16.msk.msra.mxu0 %vm6735_vm4, %v6411_v10  ;;  %vm616_vm4 = vcmp.eq.s32.totalorder %v6532_v11, %v6714_v33 }
  0x73   :  { %5866 = vmatpush3.bf16.msk.msra.mxu1 %vm6739_vm5, %v6411_v10  ;;  %4906 = vmatprep.mubr.f32.mxu0 %v6763_v38  ;;  %vm617_vm5 = vcmp.eq.s32.totalorder %v6535_v12, %v6714_v33 }
  0x74   :  { %4962 = vmatprep.mubr.f32.mxu1 %v6766_v39  ;;  %5836 = vmatprep.subr.msk.bf16.mxu0 %vm6768_vm10, %v6411_v10  ;;  %vm6858_vm7 = vmpackc.low %vm617_vm5, %vm616_vm4  ;;  %vm570_vm4 = vcmp.eq.s32.totalorder %v6632_v24, %v6706_v32  ;;  %vm571_vm5 = vcmp.eq.s32.totalorder %v6635_v25, %v6706_v32 }
  0x75   :  { %4907 = vmatmul.mubr.f32.gmra.mrb[2].mxu0 %v6776_v41  ;;  %5868 = vmatprep.subr.msk.bf16.mxu1 %vm6778_vm11, %v6411_v10  ;;  %vm6968_vm8 = vmpackc.low %vm571_vm5, %vm570_vm4 }
  0x76   :  { %4963 = vmatmul.mubr.f32.gmra.mrb[2].mxu1 %v6790_v43  ;;  %5838 = vmatpush3.bf16.msk.msra.mxu0 %vm6768_vm10, %v6411_v10  ;;  %vm618_vm10 = vcmp.eq.s32.totalorder %v6567_v16, %v6714_v33 }
  0x77   :  { %5870 = vmatpush3.bf16.msk.msra.mxu1 %vm6778_vm11, %v6411_v10  ;;  %4909 = vmatprep.mubr.f32.mxu0 %v6800_v44  ;;  %vm619_vm11 = vcmp.eq.s32.totalorder %v6570_v17, %v6714_v33 }
  0x78   :  { %4965 = vmatprep.mubr.f32.mxu1 %v6806_v45  ;;  %5840 = vmatprep.subr.msk.bf16.mxu0 %vm6808_vm0, %v6411_v10  ;;  %vm6898_vm13 = vmpackc.low %vm619_vm11, %vm618_vm10  ;;  %vm572_vm10 = vcmp.eq.s32.totalorder %v6666_v28, %v6706_v32  ;;  %vm573_vm11 = vcmp.eq.s32.totalorder %v6669_v29, %v6706_v32  ;;  %v7037_v32 = vld [vmem:[#allocation8 + $0x78] sm:$0xff] }
  0x79   :  { %4910 = vmatmul.mubr.f32.gmra.mrb[4].mxu0 %v6816_v47  ;;  %5872 = vmatprep.subr.msk.bf16.mxu1 %vm6818_vm1, %v6411_v10  ;;  %vm7015_vm14 = vmpackc.low %vm573_vm11, %vm572_vm10 }
  0x7a   :  { %4966 = vmatmul.mubr.f32.gmra.mrb[4].mxu1 %v6830_v49  ;;  %5842 = vmatpush3.bf16.msk.msra.mxu0 %vm6808_vm0, %v6411_v10  ;;  %vm620_vm0 = vcmp.eq.s32.totalorder %v6598_v20, %v6714_v33 }
  0x7b   :  { %5874 = vmatpush3.bf16.msk.msra.mxu1 %vm6818_vm1, %v6411_v10  ;;  %4912 = vmatprep.mubr.f32.mxu0 %v6840_v50  ;;  %vm621_vm1 = vcmp.eq.s32.totalorder %v6601_v21, %v6714_v33 }
  0x7c   :  { %4968 = vmatprep.mubr.f32.mxu1 %v6846_v51  ;;  %5844 = vmatprep.subr.msk.bf16.mxu0 %vm6848_vm6, %v6411_v10  ;;  %vm6938_vm3 = vmpackc.low %vm621_vm1, %vm620_vm0  ;;  %vm1024_vm0 = vcmp.eq.s32.totalorder %v6486_v1, %v6996_v27  ;;  %vm1025_vm1 = vcmp.eq.s32.totalorder %v6489_v2, %v6996_v27 }
  0x7d   :  { %4913 = vmatmul.mubr.f32.gmra.mrb[6].mxu0 %v6856_v53  ;;  %5876 = vmatprep.subr.msk.bf16.mxu1 %vm6858_vm7, %v6411_v10  ;;  %vm7051_vm4 = vmpackc.low %vm1025_vm1, %vm1024_vm0 }
  0x7e   :  { %4969 = vmatmul.mubr.f32.gmra.mrb[6].mxu1 %v6870_v55  ;;  %5846 = vmatpush3.bf16.msk.msra.mxu0 %vm6848_vm6, %v6411_v10  ;;  %vm622_vm6 = vcmp.eq.s32.totalorder %v6632_v24, %v6714_v33 }
  0x7f   :  { %5878 = vmatpush3.bf16.msk.msra.mxu1 %vm6858_vm7, %v6411_v10  ;;  %4915 = vmatprep.mubr.f32.mxu0 %v6880_v56  ;;  %vm623_vm7 = vcmp.eq.s32.totalorder %v6635_v25, %v6714_v33 }
  0x80   :  { %4971 = vmatprep.mubr.f32.mxu1 %v6886_v57  ;;  %5848 = vmatprep.subr.msk.bf16.mxu0 %vm6888_vm12, %v6411_v10  ;;  %vm6978_vm9 = vmpackc.low %vm623_vm7, %vm622_vm6  ;;  %vm1026_vm6 = vcmp.eq.s32.totalorder %v6492_v3, %v6996_v27  ;;  %vm1027_vm7 = vcmp.eq.s32.totalorder %v6495_v4, %v6996_v27 }
  0x81   :  { %4916 = vmatmul.mubr.f32.gmra.mrb[8].mxu0 %v6896_v59  ;;  %5880 = vmatprep.subr.msk.bf16.mxu1 %vm6898_vm13, %v6411_v10  ;;  %vm7083_vm10 = vmpackc.low %vm1027_vm7, %vm1026_vm6 }
  0x82   :  { %4972 = vmatmul.mubr.f32.gmra.mrb[8].mxu1 %v6910_v61  ;;  %5850 = vmatpush3.bf16.msk.msra.mxu0 %vm6888_vm12, %v6411_v10  ;;  %vm624_vm12 = vcmp.eq.s32.totalorder %v6666_v28, %v6714_v33 }
  0x83   :  { %5882 = vmatpush3.bf16.msk.msra.mxu1 %vm6898_vm13, %v6411_v10  ;;  %4918 = vmatprep.mubr.f32.mxu0 %v6920_v62  ;;  %vm625_vm13 = vcmp.eq.s32.totalorder %v6669_v29, %v6714_v33  ;;  %v7953_v33 = vld [vmem:[#allocation8 + $0x30] sm:$0xff] }
  0x84   :  { %4974 = vmatprep.mubr.f32.mxu1 %v6926_v63  ;;  %5852 = vmatprep.subr.msk.bf16.mxu0 %vm6928_vm2, %v6411_v10  ;;  %vm7025_vm15 = vmpackc.low %vm625_vm13, %vm624_vm12  ;;  %vm1028_vm12 = vcmp.eq.s32.totalorder %v6498_v5, %v6996_v27  ;;  %vm1029_vm13 = vcmp.eq.s32.totalorder %v6501_v6, %v6996_v27 }
  0x85   :  { %4919 = vmatmul.mubr.f32.gmra.mrb[10].mxu0 %v6936_v7  ;;  %5884 = vmatprep.subr.msk.bf16.mxu1 %vm6938_vm3, %v6411_v10  ;;  %vm7115_vm0 = vmpackc.low %vm1029_vm13, %vm1028_vm12 }
  0x86   :  { %4975 = vmatmul.mubr.f32.gmra.mrb[10].mxu1 %v6950_v14  ;;  %5854 = vmatpush3.bf16.msk.msra.mxu0 %vm6928_vm2, %v6411_v10  ;;  %vm1076_vm2 = vcmp.eq.s32.totalorder %v6486_v1, %v7004_v31 }
  0x87   :  { %5886 = vmatpush3.bf16.msk.msra.mxu1 %vm6938_vm3, %v6411_v10  ;;  %4921 = vmatprep.mubr.f32.mxu0 %v6960_v15  ;;  %vm1077_vm3 = vcmp.eq.s32.totalorder %v6489_v2, %v7004_v31 }
  0x88   :  { %4977 = vmatprep.mubr.f32.mxu1 %v6966_v18  ;;  %5856 = vmatprep.subr.msk.bf16.mxu0 %vm6968_vm8, %v6411_v10  ;;  %vm7059_vm5 = vmpackc.low %vm1077_vm3, %vm1076_vm2  ;;  %vm1030_vm2 = vcmp.eq.s32.totalorder %v6532_v11, %v6996_v27  ;;  %vm1031_vm3 = vcmp.eq.s32.totalorder %v6535_v12, %v6996_v27 }
  0x89   :  { %4922 = vmatmul.mubr.f32.gmra.mrb[12].mxu0 %v6976_v22  ;;  %5888 = vmatprep.subr.msk.bf16.mxu1 %vm6978_vm9, %v6411_v10  ;;  %vm7147_vm6 = vmpackc.low %vm1031_vm3, %vm1030_vm2 }
  0x8a   :  { %4978 = vmatmul.mubr.f32.gmra.mrb[12].mxu1 %v6990_v26  ;;  %5858 = vmatpush3.bf16.msk.msra.mxu0 %vm6968_vm8, %v6411_v10  ;;  %vm1078_vm8 = vcmp.eq.s32.totalorder %v6492_v3, %v7004_v31 }
  0x8b   :  { %5890 = vmatpush3.bf16.msk.msra.mxu1 %vm6978_vm9, %v6411_v10  ;;  %4924 = vmatprep.mubr.f32.mxu0 %v7002_v30  ;;  %vm1079_vm9 = vcmp.eq.s32.totalorder %v6495_v4, %v7004_v31 }
  0x8c   :  { %4980 = vmatprep.mubr.f32.mxu1 %v7010_v34  ;;  %5860 = vmatprep.subr.msk.bf16.mxu0 %vm7015_vm14, %v6411_v10  ;;  %vm7091_vm11 = vmpackc.low %vm1079_vm9, %vm1078_vm8  ;;  %vm1032_vm8 = vcmp.eq.s32.totalorder %v6567_v16, %v6996_v27  ;;  %vm1033_vm9 = vcmp.eq.s32.totalorder %v6570_v17, %v6996_v27 }
  0x8d   :  { %4925 = vmatmul.mubr.f32.gmra.mrb[14].mxu0 %v7023_v35  ;;  %5892 = vmatprep.subr.msk.bf16.mxu1 %vm7025_vm15, %v6411_v10  ;;  %vm7179_vm12 = vmpackc.low %vm1033_vm9, %vm1032_vm8 }
  0x8e   :  { %4981 = vmatmul.mubr.f32.gmra.mrb[14].mxu1 %v7037_v32  ;;  %5862 = vmatpush3.bf16.msk.msra.mxu0 %vm7015_vm14, %v6411_v10  ;;  %vm1080_vm14 = vcmp.eq.s32.totalorder %v6498_v5, %v7004_v31 }
  0x8f   :  { %5894 = vmatpush3.bf16.msk.msra.mxu1 %vm7025_vm15, %v6411_v10  ;;  %5015 = vmatprep.mubr.f32.mxu0 %v6515_v9  ;;  %vm1081_vm15 = vcmp.eq.s32.totalorder %v6501_v6, %v7004_v31 }
  0x90   :  { %5071 = vmatprep.mubr.f32.mxu1 %v6543_v13  ;;  %5896 = vmatprep.subr.msk.bf16.mxu0 %vm7051_vm4, %v6411_v10  ;;  %vm7123_vm1 = vmpackc.low %vm1081_vm15, %vm1080_vm14  ;;  %vm1034_vm14 = vcmp.eq.s32.totalorder %v6598_v20, %v6996_v27  ;;  %vm1035_vm15 = vcmp.eq.s32.totalorder %v6601_v21, %v6996_v27 }
  0x91   :  { %5016 = vmatmul.mubr.f32.vlgmr.msra.gmra.mrb[16].mxu0 %v6744_v36  ;;  %5928 = vmatprep.subr.msk.bf16.mxu1 %vm7059_vm5, %v6411_v10  ;;  %vm7211_vm2 = vmpackc.low %vm1035_vm15, %vm1034_vm14 }
  0x92   :  { %5072 = vmatmul.mubr.f32.vlgmr.msra.gmra.mrb[16].mxu1 %v6751_v37  ;;  %5898 = vmatpush3.bf16.msk.msra.mxu0 %vm7051_vm4, %v6411_v10  ;;  %vm1082_vm4 = vcmp.eq.s32.totalorder %v6532_v11, %v7004_v31 }
  0x93   :  { %5930 = vmatpush3.bf16.msk.msra.mxu1 %vm7059_vm5, %v6411_v10  ;;  %5018 = vmatprep.mubr.f32.mxu0 %v6763_v38  ;;  %vm1083_vm5 = vcmp.eq.s32.totalorder %v6535_v12, %v7004_v31 }
  0x94   :  { %5074 = vmatprep.mubr.f32.mxu1 %v6766_v39  ;;  %5900 = vmatprep.subr.msk.bf16.mxu0 %vm7083_vm10, %v6411_v10  ;;  %vm7155_vm7 = vmpackc.low %vm1083_vm5, %vm1082_vm4  ;;  %vm1036_vm4 = vcmp.eq.s32.totalorder %v6632_v24, %v6996_v27  ;;  %vm1037_vm5 = vcmp.eq.s32.totalorder %v6635_v25, %v6996_v27 }
  0x95   :  { %5019 = vmatmul.mubr.f32.gmra.mrb[18].mxu0 %v6776_v41  ;;  %5932 = vmatprep.subr.msk.bf16.mxu1 %vm7091_vm11, %v6411_v10  ;;  %vm7243_vm8 = vmpackc.low %vm1037_vm5, %vm1036_vm4 }
  0x96   :  { %5075 = vmatmul.mubr.f32.gmra.mrb[18].mxu1 %v6790_v43  ;;  %5902 = vmatpush3.bf16.msk.msra.mxu0 %vm7083_vm10, %v6411_v10  ;;  %vm1084_vm10 = vcmp.eq.s32.totalorder %v6567_v16, %v7004_v31 }
  0x97   :  { %5934 = vmatpush3.bf16.msk.msra.mxu1 %vm7091_vm11, %v6411_v10  ;;  %5021 = vmatprep.mubr.f32.mxu0 %v6800_v44  ;;  %vm1085_vm11 = vcmp.eq.s32.totalorder %v6570_v17, %v7004_v31 }
  0x98   :  { %5077 = vmatprep.mubr.f32.mxu1 %v6806_v45  ;;  %5904 = vmatprep.subr.msk.bf16.mxu0 %vm7115_vm0, %v6411_v10  ;;  %vm7187_vm13 = vmpackc.low %vm1085_vm11, %vm1084_vm10  ;;  %vm1038_vm10 = vcmp.eq.s32.totalorder %v6666_v28, %v6996_v27  ;;  %vm1039_vm11 = vcmp.eq.s32.totalorder %v6669_v29, %v6996_v27  ;;  %v7273_v27 = vld [vmem:[#allocation5 + $0x3] ss:$0 sm:$0xff] }
  0x99   :  { %5022 = vmatmul.mubr.f32.gmra.mrb[20].mxu0 %v6816_v47  ;;  %5936 = vmatprep.subr.msk.bf16.mxu1 %vm7123_vm1, %v6411_v10  ;;  %vm7279_vm14 = vmpackc.low %vm1039_vm11, %vm1038_vm10 }
  0x9a   :  { %5078 = vmatmul.mubr.f32.gmra.mrb[20].mxu1 %v6830_v49  ;;  %5906 = vmatpush3.bf16.msk.msra.mxu0 %vm7115_vm0, %v6411_v10  ;;  %vm1086_vm0 = vcmp.eq.s32.totalorder %v6598_v20, %v7004_v31 }
  0x9b   :  { %5938 = vmatpush3.bf16.msk.msra.mxu1 %vm7123_vm1, %v6411_v10  ;;  %5024 = vmatprep.mubr.f32.mxu0 %v6840_v50  ;;  %vm1087_vm1 = vcmp.eq.s32.totalorder %v6601_v21, %v7004_v31 }
  0x9c   :  { %5080 = vmatprep.mubr.f32.mxu1 %v6846_v51  ;;  %5908 = vmatprep.subr.msk.bf16.mxu0 %vm7147_vm6, %v6411_v10  ;;  %vm7219_vm3 = vmpackc.low %vm1087_vm1, %vm1086_vm0  ;;  %vm1490_vm0 = vcmp.eq.s32.totalorder %v6486_v1, %v7267_v46  ;;  %vm1491_vm1 = vcmp.eq.s32.totalorder %v6489_v2, %v7267_v46 }
  0x9d   :  { %5025 = vmatmul.mubr.f32.gmra.mrb[22].mxu0 %v6856_v53  ;;  %5940 = vmatprep.subr.msk.bf16.mxu1 %vm7155_vm7, %v6411_v10  ;;  %vm7311_vm4 = vmpackc.low %vm1491_vm1, %vm1490_vm0 }
  0x9e   :  { %5081 = vmatmul.mubr.f32.gmra.mrb[22].mxu1 %v6870_v55  ;;  %5910 = vmatpush3.bf16.msk.msra.mxu0 %vm7147_vm6, %v6411_v10  ;;  %vm1088_vm6 = vcmp.eq.s32.totalorder %v6632_v24, %v7004_v31 }
  0x9f   :  { %5942 = vmatpush3.bf16.msk.msra.mxu1 %vm7155_vm7, %v6411_v10  ;;  %5027 = vmatprep.mubr.f32.mxu0 %v6880_v56  ;;  %vm1089_vm7 = vcmp.eq.s32.totalorder %v6635_v25, %v7004_v31 }
  0xa0   :  { %5083 = vmatprep.mubr.f32.mxu1 %v6886_v57  ;;  %5912 = vmatprep.subr.msk.bf16.mxu0 %vm7179_vm12, %v6411_v10  ;;  %vm7251_vm9 = vmpackc.low %vm1089_vm7, %vm1088_vm6  ;;  %vm1492_vm6 = vcmp.eq.s32.totalorder %v6492_v3, %v7267_v46  ;;  %vm1493_vm7 = vcmp.eq.s32.totalorder %v6495_v4, %v7267_v46 }
  0xa1   :  { %5028 = vmatmul.mubr.f32.gmra.mrb[24].mxu0 %v6896_v59  ;;  %5944 = vmatprep.subr.msk.bf16.mxu1 %vm7187_vm13, %v6411_v10  ;;  %vm7343_vm10 = vmpackc.low %vm1493_vm7, %vm1492_vm6 }
  0xa2   :  { %5084 = vmatmul.mubr.f32.gmra.mrb[24].mxu1 %v6910_v61  ;;  %5914 = vmatpush3.bf16.msk.msra.mxu0 %vm7179_vm12, %v6411_v10  ;;  %vm1090_vm12 = vcmp.eq.s32.totalorder %v6666_v28, %v7004_v31 }
  0xa3   :  { %5946 = vmatpush3.bf16.msk.msra.mxu1 %vm7187_vm13, %v6411_v10  ;;  %5030 = vmatprep.mubr.f32.mxu0 %v6920_v62  ;;  %vm1091_vm13 = vcmp.eq.s32.totalorder %v6669_v29, %v7004_v31  ;;  %v7977_v31 = vld [vmem:[#allocation8 + $0x38] sm:$0xff] }
  0xa4   :  { %5086 = vmatprep.mubr.f32.mxu1 %v6926_v63  ;;  %5916 = vmatprep.subr.msk.bf16.mxu0 %vm7211_vm2, %v6411_v10  ;;  %vm7287_vm15 = vmpackc.low %vm1091_vm13, %vm1090_vm12  ;;  %vm1494_vm12 = vcmp.eq.s32.totalorder %v6498_v5, %v7267_v46  ;;  %vm1495_vm13 = vcmp.eq.s32.totalorder %v6501_v6, %v7267_v46 }
  0xa5   :  { %5031 = vmatmul.mubr.f32.gmra.mrb[26].mxu0 %v6936_v7  ;;  %5948 = vmatprep.subr.msk.bf16.mxu1 %vm7219_vm3, %v6411_v10  ;;  %vm7375_vm0 = vmpackc.low %vm1495_vm13, %vm1494_vm12 }
  0xa6   :  { %5087 = vmatmul.mubr.f32.gmra.mrb[26].mxu1 %v6950_v14  ;;  %5918 = vmatpush3.bf16.msk.msra.mxu0 %vm7211_vm2, %v6411_v10  ;;  %vm1542_vm2 = vcmp.eq.s32.totalorder %v6486_v1, %v7273_v27 }
  0xa7   :  { %5950 = vmatpush3.bf16.msk.msra.mxu1 %vm7219_vm3, %v6411_v10  ;;  %5033 = vmatprep.mubr.f32.mxu0 %v6960_v15  ;;  %vm1543_vm3 = vcmp.eq.s32.totalorder %v6489_v2, %v7273_v27 }
  0xa8   :  { %5089 = vmatprep.mubr.f32.mxu1 %v6966_v18  ;;  %5920 = vmatprep.subr.msk.bf16.mxu0 %vm7243_vm8, %v6411_v10  ;;  %vm7319_vm5 = vmpackc.low %vm1543_vm3, %vm1542_vm2  ;;  %vm1496_vm2 = vcmp.eq.s32.totalorder %v6532_v11, %v7267_v46  ;;  %vm1497_vm3 = vcmp.eq.s32.totalorder %v6535_v12, %v7267_v46 }
  0xa9   :  { %5034 = vmatmul.mubr.f32.gmra.mrb[28].mxu0 %v6976_v22  ;;  %5952 = vmatprep.subr.msk.bf16.mxu1 %vm7251_vm9, %v6411_v10  ;;  %vm7407_vm6 = vmpackc.low %vm1497_vm3, %vm1496_vm2 }
  0xaa   :  { %5090 = vmatmul.mubr.f32.gmra.mrb[28].mxu1 %v6990_v26  ;;  %5922 = vmatpush3.bf16.msk.msra.mxu0 %vm7243_vm8, %v6411_v10  ;;  %vm1544_vm8 = vcmp.eq.s32.totalorder %v6492_v3, %v7273_v27 }
  0xab   :  { %5954 = vmatpush3.bf16.msk.msra.mxu1 %vm7251_vm9, %v6411_v10  ;;  %5036 = vmatprep.mubr.f32.mxu0 %v7002_v30  ;;  %vm1545_vm9 = vcmp.eq.s32.totalorder %v6495_v4, %v7273_v27 }
  0xac   :  { %5092 = vmatprep.mubr.f32.mxu1 %v7010_v34  ;;  %5924 = vmatprep.subr.msk.bf16.mxu0 %vm7279_vm14, %v6411_v10  ;;  %vm7351_vm11 = vmpackc.low %vm1545_vm9, %vm1544_vm8  ;;  %vm1498_vm8 = vcmp.eq.s32.totalorder %v6567_v16, %v7267_v46  ;;  %vm1499_vm9 = vcmp.eq.s32.totalorder %v6570_v17, %v7267_v46 }
  0xad   :  { %5037 = vmatmul.mubr.f32.gmra.mrb[30].mxu0 %v7023_v35  ;;  %5956 = vmatprep.subr.msk.bf16.mxu1 %vm7287_vm15, %v6411_v10  ;;  %vm7439_vm12 = vmpackc.low %vm1499_vm9, %vm1498_vm8 }
  0xae   :  { %5093 = vmatmul.mubr.f32.gmra.mrb[30].mxu1 %v7037_v32  ;;  %5926 = vmatpush3.bf16.msk.msra.mxu0 %vm7279_vm14, %v6411_v10  ;;  %vm1546_vm14 = vcmp.eq.s32.totalorder %v6498_v5, %v7273_v27 }
  0xaf   :  { %5958 = vmatpush3.bf16.msk.msra.mxu1 %vm7287_vm15, %v6411_v10  ;;  %5127 = vmatprep.mubr.f32.mxu0 %v6515_v9  ;;  %vm1547_vm15 = vcmp.eq.s32.totalorder %v6501_v6, %v7273_v27 }
  0xb0   :  { %5183 = vmatprep.mubr.f32.mxu1 %v6543_v13  ;;  %5960 = vmatprep.subr.msk.bf16.mxu0 %vm7311_vm4, %v6411_v10  ;;  %vm7383_vm1 = vmpackc.low %vm1547_vm15, %vm1546_vm14  ;;  %vm1500_vm14 = vcmp.eq.s32.totalorder %v6598_v20, %v7267_v46  ;;  %vm1501_vm15 = vcmp.eq.s32.totalorder %v6601_v21, %v7267_v46 }
  0xb1   :  { %5128 = vmatmul.mubr.f32.vlgmr.msra.gmra.mrb[32].mxu0 %v6744_v36  ;;  %5992 = vmatprep.subr.msk.bf16.mxu1 %vm7319_vm5, %v6411_v10  ;;  %vm7471_vm2 = vmpackc.low %vm1501_vm15, %vm1500_vm14 }
  0xb2   :  { %5184 = vmatmul.mubr.f32.vlgmr.msra.gmra.mrb[32].mxu1 %v6751_v37  ;;  %5962 = vmatpush3.bf16.msk.msra.mxu0 %vm7311_vm4, %v6411_v10  ;;  %vm1548_vm4 = vcmp.eq.s32.totalorder %v6532_v11, %v7273_v27 }
  0xb3   :  { %5994 = vmatpush3.bf16.msk.msra.mxu1 %vm7319_vm5, %v6411_v10  ;;  %5130 = vmatprep.mubr.f32.mxu0 %v6763_v38  ;;  %vm1549_vm5 = vcmp.eq.s32.totalorder %v6535_v12, %v7273_v27 }
  0xb4   :  { %5186 = vmatprep.mubr.f32.mxu1 %v6766_v39  ;;  %5964 = vmatprep.subr.msk.bf16.mxu0 %vm7343_vm10, %v6411_v10  ;;  %vm7415_vm7 = vmpackc.low %vm1549_vm5, %vm1548_vm4  ;;  %vm1502_vm4 = vcmp.eq.s32.totalorder %v6632_v24, %v7267_v46  ;;  %vm1503_vm5 = vcmp.eq.s32.totalorder %v6635_v25, %v7267_v46 }
  0xb5   :  { %5131 = vmatmul.mubr.f32.gmra.mrb[34].mxu0 %v6776_v41  ;;  %5996 = vmatprep.subr.msk.bf16.mxu1 %vm7351_vm11, %v6411_v10  ;;  %vm7503_vm8 = vmpackc.low %vm1503_vm5, %vm1502_vm4 }
  0xb6   :  { %5187 = vmatmul.mubr.f32.gmra.mrb[34].mxu1 %v6790_v43  ;;  %5966 = vmatpush3.bf16.msk.msra.mxu0 %vm7343_vm10, %v6411_v10  ;;  %vm1550_vm10 = vcmp.eq.s32.totalorder %v6567_v16, %v7273_v27 }
  0xb7   :  { %5998 = vmatpush3.bf16.msk.msra.mxu1 %vm7351_vm11, %v6411_v10  ;;  %5133 = vmatprep.mubr.f32.mxu0 %v6800_v44  ;;  %vm1551_vm11 = vcmp.eq.s32.totalorder %v6570_v17, %v7273_v27 }
  0xb8   :  { %5189 = vmatprep.mubr.f32.mxu1 %v6806_v45  ;;  %5968 = vmatprep.subr.msk.bf16.mxu0 %vm7375_vm0, %v6411_v10  ;;  %vm7447_vm13 = vmpackc.low %vm1551_vm11, %vm1550_vm10  ;;  %vm1504_vm10 = vcmp.eq.s32.totalorder %v6666_v28, %v7267_v46  ;;  %vm1505_vm11 = vcmp.eq.s32.totalorder %v6669_v29, %v7267_v46  ;;  %v7533_v46 = vld [vmem:[#allocation5 + $0x4] ss:$0 sm:$0xff] }
  0xb9   :  { %5134 = vmatmul.mubr.f32.gmra.mrb[36].mxu0 %v6816_v47  ;;  %6000 = vmatprep.subr.msk.bf16.mxu1 %vm7383_vm1, %v6411_v10  ;;  %vm7539_vm14 = vmpackc.low %vm1505_vm11, %vm1504_vm10 }
  0xba   :  { %5190 = vmatmul.mubr.f32.gmra.mrb[36].mxu1 %v6830_v49  ;;  %5970 = vmatpush3.bf16.msk.msra.mxu0 %vm7375_vm0, %v6411_v10  ;;  %vm1552_vm0 = vcmp.eq.s32.totalorder %v6598_v20, %v7273_v27 }
  0xbb   :  { %6002 = vmatpush3.bf16.msk.msra.mxu1 %vm7383_vm1, %v6411_v10  ;;  %5136 = vmatprep.mubr.f32.mxu0 %v6840_v50  ;;  %vm1553_vm1 = vcmp.eq.s32.totalorder %v6601_v21, %v7273_v27 }
  0xbc   :  { %5192 = vmatprep.mubr.f32.mxu1 %v6846_v51  ;;  %5972 = vmatprep.subr.msk.bf16.mxu0 %vm7407_vm6, %v6411_v10  ;;  %vm7479_vm3 = vmpackc.low %vm1553_vm1, %vm1552_vm0  ;;  %vm1956_vm0 = vcmp.eq.s32.totalorder %v6486_v1, %v7527_v54  ;;  %vm1957_vm1 = vcmp.eq.s32.totalorder %v6489_v2, %v7527_v54 }
  0xbd   :  { %5137 = vmatmul.mubr.f32.gmra.mrb[38].mxu0 %v6856_v53  ;;  %6004 = vmatprep.subr.msk.bf16.mxu1 %vm7415_vm7, %v6411_v10  ;;  %vm7571_vm4 = vmpackc.low %vm1957_vm1, %vm1956_vm0 }
  0xbe   :  { %5193 = vmatmul.mubr.f32.gmra.mrb[38].mxu1 %v6870_v55  ;;  %5974 = vmatpush3.bf16.msk.msra.mxu0 %vm7407_vm6, %v6411_v10  ;;  %vm1554_vm6 = vcmp.eq.s32.totalorder %v6632_v24, %v7273_v27 }
  0xbf   :  { %6006 = vmatpush3.bf16.msk.msra.mxu1 %vm7415_vm7, %v6411_v10  ;;  %5139 = vmatprep.mubr.f32.mxu0 %v6880_v56  ;;  %vm1555_vm7 = vcmp.eq.s32.totalorder %v6635_v25, %v7273_v27 }
  0xc0   :  { %5195 = vmatprep.mubr.f32.mxu1 %v6886_v57  ;;  %5976 = vmatprep.subr.msk.bf16.mxu0 %vm7439_vm12, %v6411_v10  ;;  %vm7511_vm9 = vmpackc.low %vm1555_vm7, %vm1554_vm6  ;;  %vm1958_vm6 = vcmp.eq.s32.totalorder %v6492_v3, %v7527_v54  ;;  %vm1959_vm7 = vcmp.eq.s32.totalorder %v6495_v4, %v7527_v54 }
  0xc1   :  { %5140 = vmatmul.mubr.f32.gmra.mrb[40].mxu0 %v6896_v59  ;;  %6008 = vmatprep.subr.msk.bf16.mxu1 %vm7447_vm13, %v6411_v10  ;;  %vm7603_vm10 = vmpackc.low %vm1959_vm7, %vm1958_vm6 }
  0xc2   :  { %5196 = vmatmul.mubr.f32.gmra.mrb[40].mxu1 %v6910_v61  ;;  %5978 = vmatpush3.bf16.msk.msra.mxu0 %vm7439_vm12, %v6411_v10  ;;  %vm1556_vm12 = vcmp.eq.s32.totalorder %v6666_v28, %v7273_v27 }
  0xc3   :  { %6010 = vmatpush3.bf16.msk.msra.mxu1 %vm7447_vm13, %v6411_v10  ;;  %5142 = vmatprep.mubr.f32.mxu0 %v6920_v62  ;;  %vm1557_vm13 = vcmp.eq.s32.totalorder %v6669_v29, %v7273_v27 }
  0xc4   :  { %5198 = vmatprep.mubr.f32.mxu1 %v6926_v63  ;;  %5980 = vmatprep.subr.msk.bf16.mxu0 %vm7471_vm2, %v6411_v10  ;;  %vm7547_vm15 = vmpackc.low %vm1557_vm13, %vm1556_vm12  ;;  %vm1960_vm12 = vcmp.eq.s32.totalorder %v6498_v5, %v7527_v54  ;;  %vm1961_vm13 = vcmp.eq.s32.totalorder %v6501_v6, %v7527_v54 }
  0xc5   :  { %5143 = vmatmul.mubr.f32.gmra.mrb[42].mxu0 %v6936_v7  ;;  %6012 = vmatprep.subr.msk.bf16.mxu1 %vm7479_vm3, %v6411_v10  ;;  %vm7635_vm0 = vmpackc.low %vm1961_vm13, %vm1960_vm12 }
  0xc6   :  { %5199 = vmatmul.mubr.f32.gmra.mrb[42].mxu1 %v6950_v14  ;;  %5982 = vmatpush3.bf16.msk.msra.mxu0 %vm7471_vm2, %v6411_v10  ;;  %vm2008_vm2 = vcmp.eq.s32.totalorder %v6486_v1, %v7533_v46 }
  0xc7   :  { %6014 = vmatpush3.bf16.msk.msra.mxu1 %vm7479_vm3, %v6411_v10  ;;  %5145 = vmatprep.mubr.f32.mxu0 %v6960_v15  ;;  %vm2009_vm3 = vcmp.eq.s32.totalorder %v6489_v2, %v7533_v46 }
  0xc8   :  { %5201 = vmatprep.mubr.f32.mxu1 %v6966_v18  ;;  %5984 = vmatprep.subr.msk.bf16.mxu0 %vm7503_vm8, %v6411_v10  ;;  %vm7579_vm5 = vmpackc.low %vm2009_vm3, %vm2008_vm2  ;;  %vm1962_vm2 = vcmp.eq.s32.totalorder %v6532_v11, %v7527_v54  ;;  %vm1963_vm3 = vcmp.eq.s32.totalorder %v6535_v12, %v7527_v54 }
  0xc9   :  { %5146 = vmatmul.mubr.f32.gmra.mrb[44].mxu0 %v6976_v22  ;;  %6016 = vmatprep.subr.msk.bf16.mxu1 %vm7511_vm9, %v6411_v10  ;;  %vm7667_vm6 = vmpackc.low %vm1963_vm3, %vm1962_vm2 }
  0xca   :  { %5202 = vmatmul.mubr.f32.gmra.mrb[44].mxu1 %v6990_v26  ;;  %5986 = vmatpush3.bf16.msk.msra.mxu0 %vm7503_vm8, %v6411_v10  ;;  %vm2010_vm8 = vcmp.eq.s32.totalorder %v6492_v3, %v7533_v46 }
  0xcb   :  { %6018 = vmatpush3.bf16.msk.msra.mxu1 %vm7511_vm9, %v6411_v10  ;;  %5148 = vmatprep.mubr.f32.mxu0 %v7002_v30  ;;  %vm2011_vm9 = vcmp.eq.s32.totalorder %v6495_v4, %v7533_v46 }
  0xcc   :  { %5204 = vmatprep.mubr.f32.mxu1 %v7010_v34  ;;  %5988 = vmatprep.subr.msk.bf16.mxu0 %vm7539_vm14, %v6411_v10  ;;  %vm7611_vm11 = vmpackc.low %vm2011_vm9, %vm2010_vm8  ;;  %vm1964_vm8 = vcmp.eq.s32.totalorder %v6567_v16, %v7527_v54  ;;  %vm1965_vm9 = vcmp.eq.s32.totalorder %v6570_v17, %v7527_v54 }
  0xcd   :  { %5149 = vmatmul.mubr.f32.gmra.mrb[46].mxu0 %v7023_v35  ;;  %6020 = vmatprep.subr.msk.bf16.mxu1 %vm7547_vm15, %v6411_v10  ;;  %vm7699_vm12 = vmpackc.low %vm1965_vm9, %vm1964_vm8 }
  0xce   :  { %5205 = vmatmul.mubr.f32.gmra.mrb[46].mxu1 %v7037_v32  ;;  %5990 = vmatpush3.bf16.msk.msra.mxu0 %vm7539_vm14, %v6411_v10  ;;  %vm2012_vm14 = vcmp.eq.s32.totalorder %v6498_v5, %v7533_v46 }
  0xcf   :  { %6022 = vmatpush3.bf16.msk.msra.mxu1 %vm7547_vm15, %v6411_v10  ;;  %5239 = vmatprep.mubr.f32.mxu0 %v6515_v9  ;;  %vm2013_vm15 = vcmp.eq.s32.totalorder %v6501_v6, %v7533_v46  ;;  %v8033_v9 = vld [vmem:[#allocation8 + $0x50] sm:$0xff] }
  0xd0   :  { %5295 = vmatprep.mubr.f32.mxu1 %v6543_v13  ;;  %6024 = vmatprep.subr.msk.bf16.mxu0 %vm7571_vm4, %v6411_v10  ;;  %vm7643_vm1 = vmpackc.low %vm2013_vm15, %vm2012_vm14  ;;  %vm1966_vm14 = vcmp.eq.s32.totalorder %v6598_v20, %v7527_v54  ;;  %vm1967_vm15 = vcmp.eq.s32.totalorder %v6601_v21, %v7527_v54 }
  0xd1   :  { %5240 = vmatmul.mubr.f32.vlgmr.msra.gmra.mrb[48].mxu0 %v6744_v36  ;;  %6056 = vmatprep.subr.msk.bf16.mxu1 %vm7579_vm5, %v6411_v10  ;;  %vm7731_vm2 = vmpackc.low %vm1967_vm15, %vm1966_vm14  ;;  %v8043_v36 = vld [vmem:[#allocation7 + $0x58] sm:$0xff] }
  0xd2   :  { %5296 = vmatmul.mubr.f32.vlgmr.msra.gmra.mrb[48].mxu1 %v6751_v37  ;;  %6026 = vmatpush3.bf16.msk.msra.mxu0 %vm7571_vm4, %v6411_v10  ;;  %vm2014_vm4 = vcmp.eq.s32.totalorder %v6532_v11, %v7533_v46 }
  0xd3   :  { %6058 = vmatpush3.bf16.msk.msra.mxu1 %vm7579_vm5, %v6411_v10  ;;  %5242 = vmatprep.mubr.f32.mxu0 %v6763_v38  ;;  %vm2015_vm5 = vcmp.eq.s32.totalorder %v6535_v12, %v7533_v46  ;;  %v8057_v38 = vld [vmem:[#allocation8 + $0x58] sm:$0xff] }
  0xd4   :  { %5298 = vmatprep.mubr.f32.mxu1 %v6766_v39  ;;  %6028 = vmatprep.subr.msk.bf16.mxu0 %vm7603_vm10, %v6411_v10  ;;  %vm7675_vm7 = vmpackc.low %vm2015_vm5, %vm2014_vm4  ;;  %vm1968_vm4 = vcmp.eq.s32.totalorder %v6632_v24, %v7527_v54  ;;  %vm1969_vm5 = vcmp.eq.s32.totalorder %v6635_v25, %v7527_v54  ;;  %v8067_v39 = vld [vmem:[#allocation7 + $0x60] sm:$0xff] }
  0xd5   :  { %5243 = vmatmul.mubr.f32.gmra.mrb[50].mxu0 %v6776_v41  ;;  %6060 = vmatprep.subr.msk.bf16.mxu1 %vm7611_vm11, %v6411_v10  ;;  %vm7763_vm8 = vmpackc.low %vm1969_vm5, %vm1968_vm4  ;;  %v8073_v41 = vld [vmem:[#allocation8 + $0x60] sm:$0xff] }
  0xd6   :  { %5299 = vmatmul.mubr.f32.gmra.mrb[50].mxu1 %v6790_v43  ;;  %6030 = vmatpush3.bf16.msk.msra.mxu0 %vm7603_vm10, %v6411_v10  ;;  %vm2016_vm10 = vcmp.eq.s32.totalorder %v6567_v16, %v7533_v46 }
  0xd7   :  { %6062 = vmatpush3.bf16.msk.msra.mxu1 %vm7611_vm11, %v6411_v10  ;;  %5245 = vmatprep.mubr.f32.mxu0 %v6800_v44  ;;  %vm2017_vm11 = vcmp.eq.s32.totalorder %v6570_v17, %v7533_v46  ;;  %v8083_v44 = vld [vmem:[#allocation7 + $0x68] sm:$0xff] }
  0xd8   :  { %5301 = vmatprep.mubr.f32.mxu1 %v6806_v45  ;;  %6032 = vmatprep.subr.msk.bf16.mxu0 %vm7635_vm0, %v6411_v10  ;;  %vm7707_vm13 = vmpackc.low %vm2017_vm11, %vm2016_vm10  ;;  %vm1970_vm10 = vcmp.eq.s32.totalorder %v6666_v28, %v7527_v54  ;;  %vm1971_vm11 = vcmp.eq.s32.totalorder %v6669_v29, %v7527_v54  ;;  %v7993_v54 = vld [vmem:[#allocation8 + $0x40] sm:$0xff] }
  0xd9   :  { %5246 = vmatmul.mubr.f32.gmra.mrb[52].mxu0 %v6816_v47  ;;  %6064 = vmatprep.subr.msk.bf16.mxu1 %vm7643_vm1, %v6411_v10  ;;  %vm7799_vm14 = vmpackc.low %vm1971_vm11, %vm1970_vm10  ;;  %v8097_v47 = vld [vmem:[#allocation8 + $0x68] sm:$0xff] }
  0xda   :  { %5302 = vmatmul.mubr.f32.gmra.mrb[52].mxu1 %v6830_v49  ;;  %6034 = vmatpush3.bf16.msk.msra.mxu0 %vm7635_vm0, %v6411_v10  ;;  %vm2018_vm0 = vcmp.eq.s32.totalorder %v6598_v20, %v7533_v46  ;;  %v8103_v49 = vld [vmem:[#allocation2 + $0x6] ss:$0 sm:$0xff] }
  0xdb   :  { %6066 = vmatpush3.bf16.msk.msra.mxu1 %vm7643_vm1, %v6411_v10  ;;  %5248 = vmatprep.mubr.f32.mxu0 %v6840_v50  ;;  %vm2019_vm1 = vcmp.eq.s32.totalorder %v6601_v21, %v7533_v46  ;;  %v7787_v50 = vld [vmem:[#allocation2 + $0x5] ss:$0 sm:$0xff] }
  0xdc   :  { %5304 = vmatprep.mubr.f32.mxu1 %v6846_v51  ;;  %6036 = vmatprep.subr.msk.bf16.mxu0 %vm7667_vm6, %v6411_v10  ;;  %vm7739_vm3 = vmpackc.low %vm2019_vm1, %vm2018_vm0  ;;  %v7793_v51 = vld [vmem:[#allocation5 + $0x5] ss:$0 sm:$0xff]  ;;  %vm2422_vm0 = vcmp.eq.s32.totalorder %v6486_v1, %v7787_v50  ;;  %vm2423_vm1 = vcmp.eq.s32.totalorder %v6489_v2, %v7787_v50 }
  0xdd   :  { %5249 = vmatmul.mubr.f32.gmra.mrb[54].mxu0 %v6856_v53  ;;  %6068 = vmatprep.subr.msk.bf16.mxu1 %vm7675_vm7, %v6411_v10  ;;  %vm7835_vm4 = vmpackc.low %vm2423_vm1, %vm2422_vm0  ;;  %v8109_v53 = vld [vmem:[#allocation7 + $0x70] sm:$0xff] }
  0xde   :  { %5305 = vmatmul.mubr.f32.gmra.mrb[54].mxu1 %v6870_v55  ;;  %6038 = vmatpush3.bf16.msk.msra.mxu0 %vm7667_vm6, %v6411_v10  ;;  %vm2020_vm6 = vcmp.eq.s32.totalorder %v6632_v24, %v7533_v46  ;;  %v8111_v55 = vld [vmem:[#allocation5 + $0x6] ss:$0 sm:$0xff] }
  0xdf   :  { %6070 = vmatpush3.bf16.msk.msra.mxu1 %vm7675_vm7, %v6411_v10  ;;  %5251 = vmatprep.mubr.f32.mxu0 %v6880_v56  ;;  %vm2021_vm7 = vcmp.eq.s32.totalorder %v6635_v25, %v7533_v46  ;;  %v7827_v56 = vld [vmem:[#allocation7] sm:$0xff] }
  0xe0   :  { %5307 = vmatprep.mubr.f32.mxu1 %v6886_v57  ;;  %6040 = vmatprep.subr.msk.bf16.mxu0 %vm7699_vm12, %v6411_v10  ;;  %vm7771_vm9 = vmpackc.low %vm2021_vm7, %vm2020_vm6  ;;  %v7833_v57 = vld [vmem:[#allocation8] sm:$0xff]  ;;  %vm2424_vm6 = vcmp.eq.s32.totalorder %v6492_v3, %v7787_v50  ;;  %vm2425_vm7 = vcmp.eq.s32.totalorder %v6495_v4, %v7787_v50 }
  0xe1   :  { %5252 = vmatmul.mubr.f32.gmra.mrb[56].mxu0 %v6896_v59  ;;  %6072 = vmatprep.subr.msk.bf16.mxu1 %vm7707_vm13, %v6411_v10  ;;  %vm7875_vm10 = vmpackc.low %vm2425_vm7, %vm2424_vm6  ;;  %v8117_v59 = vld [vmem:[#allocation8 + $0x70] sm:$0xff] }
  0xe2   :  { %5308 = vmatmul.mubr.f32.gmra.mrb[56].mxu1 %v6910_v61  ;;  %6042 = vmatpush3.bf16.msk.msra.mxu0 %vm7699_vm12, %v6411_v10  ;;  %vm2022_vm12 = vcmp.eq.s32.totalorder %v6666_v28, %v7533_v46  ;;  %v7843_v61 = vld [vmem:[#allocation7 + $0x8] sm:$0xff] }
  0xe3   :  { %6074 = vmatpush3.bf16.msk.msra.mxu1 %vm7707_vm13, %v6411_v10  ;;  %5254 = vmatprep.mubr.f32.mxu0 %v6920_v62  ;;  %vm2023_vm13 = vcmp.eq.s32.totalorder %v6669_v29, %v7533_v46  ;;  %v8130_v62 = vld [vmem:[#allocation7 + $0x78] sm:$0xff] }
  0xe4   :  { %5310 = vmatprep.mubr.f32.mxu1 %v6926_v63  ;;  %6044 = vmatprep.subr.msk.bf16.mxu0 %vm7731_vm2, %v6411_v10  ;;  %vm7807_vm15 = vmpackc.low %vm2023_vm13, %vm2022_vm12  ;;  %v7857_v63 = vld [vmem:[#allocation8 + $0x8] sm:$0xff]  ;;  %vm2426_vm12 = vcmp.eq.s32.totalorder %v6498_v5, %v7787_v50  ;;  %vm2427_vm13 = vcmp.eq.s32.totalorder %v6501_v6, %v7787_v50 }
  0xe5   :  { %5255 = vmatmul.mubr.f32.gmra.mrb[58].mxu0 %v6936_v7  ;;  %6076 = vmatprep.subr.msk.bf16.mxu1 %vm7739_vm3, %v6411_v10  ;;  %v7867_v7 = vld [vmem:[#allocation7 + $0x10] sm:$0xff]  ;;  %vm7915_vm0 = vmpackc.low %vm2427_vm13, %vm2426_vm12 }
  0xe6   :  { %5311 = vmatmul.mubr.f32.gmra.mrb[58].mxu1 %v6950_v14  ;;  %6046 = vmatpush3.bf16.msk.msra.mxu0 %vm7731_vm2, %v6411_v10  ;;  %vm2474_vm2 = vcmp.eq.s32.totalorder %v6486_v1, %v7793_v51  ;;  %v7873_v14 = vld [vmem:[#allocation8 + $0x10] sm:$0xff] }
  0xe7   :  { %6078 = vmatpush3.bf16.msk.msra.mxu1 %vm7739_vm3, %v6411_v10  ;;  %5257 = vmatprep.mubr.f32.mxu0 %v6960_v15  ;;  %vm2475_vm3 = vcmp.eq.s32.totalorder %v6489_v2, %v7793_v51 }
  0xe8   :  { %5313 = vmatprep.mubr.f32.mxu1 %v6966_v18  ;;  %6048 = vmatprep.subr.msk.bf16.mxu0 %vm7763_vm8, %v6411_v10  ;;  %vm7845_vm5 = vmpackc.low %vm2475_vm3, %vm2474_vm2  ;;  %v7883_v18 = vld [vmem:[#allocation7 + $0x18] sm:$0xff]  ;;  %vm2428_vm2 = vcmp.eq.s32.totalorder %v6532_v11, %v7787_v50  ;;  %vm2429_vm3 = vcmp.eq.s32.totalorder %v6535_v12, %v7787_v50 }
  0xe9   :  { %5258 = vmatmul.mubr.f32.gmra.mrb[60].mxu0 %v6976_v22  ;;  %6080 = vmatprep.subr.msk.bf16.mxu1 %vm7771_vm9, %v6411_v10  ;;  %vm7955_vm6 = vmpackc.low %vm2429_vm3, %vm2428_vm2 }
  0xea   :  { %5314 = vmatmul.mubr.f32.gmra.mrb[60].mxu1 %v6990_v26  ;;  %6050 = vmatpush3.bf16.msk.msra.mxu0 %vm7763_vm8, %v6411_v10  ;;  %vm2476_vm8 = vcmp.eq.s32.totalorder %v6492_v3, %v7793_v51  ;;  %v7897_v26 = vld [vmem:[#allocation8 + $0x18] sm:$0xff] }
  0xeb   :  { %6082 = vmatpush3.bf16.msk.msra.mxu1 %vm7771_vm9, %v6411_v10  ;;  %5260 = vmatprep.mubr.f32.mxu0 %v7002_v30  ;;  %vm2477_vm9 = vcmp.eq.s32.totalorder %v6495_v4, %v7793_v51  ;;  %v7907_v30 = vld [vmem:[#allocation7 + $0x20] sm:$0xff] }
  0xec   :  { %5316 = vmatprep.mubr.f32.mxu1 %v7010_v34  ;;  %6052 = vmatprep.subr.msk.bf16.mxu0 %vm7799_vm14, %v6411_v10  ;;  %vm7885_vm11 = vmpackc.low %vm2477_vm9, %vm2476_vm8  ;;  %v7913_v34 = vld [vmem:[#allocation8 + $0x20] sm:$0xff]  ;;  %vm2430_vm8 = vcmp.eq.s32.totalorder %v6567_v16, %v7787_v50  ;;  %vm2431_vm9 = vcmp.eq.s32.totalorder %v6570_v17, %v7787_v50 }
  0xed   :  { %5261 = vmatmul.mubr.f32.gmra.mrb[62].mxu0 %v7023_v35  ;;  %6084 = vmatprep.subr.msk.bf16.mxu1 %vm7807_vm15, %v6411_v10  ;;  %vm7995_vm12 = vmpackc.low %vm2431_vm9, %vm2430_vm8  ;;  %v8374_v35 = vld [vmem:[#allocation2 + $0x7] ss:$0 sm:$0xff] }
  0xee   :  { %5317 = vmatmul.mubr.f32.gmra.mrb[62].mxu1 %v7037_v32  ;;  %6054 = vmatpush3.bf16.msk.msra.mxu0 %vm7799_vm14, %v6411_v10  ;;  %vm2478_vm14 = vcmp.eq.s32.totalorder %v6498_v5, %v7793_v51  ;;  %v7923_v32 = vld [vmem:[#allocation7 + $0x28] sm:$0xff] }
  0xef   :  { %6086 = vmatpush3.bf16.msk.msra.mxu1 %vm7807_vm15, %v6411_v10  ;;  %5351 = vmatprep.mubr.f32.mxu0 %v7827_v56  ;;  %vm2479_vm15 = vcmp.eq.s32.totalorder %v6501_v6, %v7793_v51 }
  0xf0   :  { %5407 = vmatprep.mubr.f32.mxu1 %v7833_v57  ;;  %6088 = vmatprep.subr.msk.bf16.mxu0 %vm7835_vm4, %v6411_v10  ;;  %vm7925_vm1 = vmpackc.low %vm2479_vm15, %vm2478_vm14  ;;  %vm2432_vm14 = vcmp.eq.s32.totalorder %v6598_v20, %v7787_v50  ;;  %vm2433_vm15 = vcmp.eq.s32.totalorder %v6601_v21, %v7787_v50 }
  0xf1   :  { %5352 = vmatmul.mubr.f32.vlgmr.msra.gmra.mrb[64].mxu0 %v7843_v61  ;;  %6120 = vmatprep.subr.msk.bf16.mxu1 %vm7845_vm5, %v6411_v10  ;;  %vm8035_vm2 = vmpackc.low %vm2433_vm15, %vm2432_vm14 }
  0xf2   :  { %5408 = vmatmul.mubr.f32.vlgmr.msra.gmra.mrb[64].mxu1 %v7857_v63  ;;  %6090 = vmatpush3.bf16.msk.msra.mxu0 %vm7835_vm4, %v6411_v10  ;;  %vm2480_vm4 = vcmp.eq.s32.totalorder %v6532_v11, %v7793_v51 }
  0xf3   :  { %6122 = vmatpush3.bf16.msk.msra.mxu1 %vm7845_vm5, %v6411_v10  ;;  %5354 = vmatprep.mubr.f32.mxu0 %v7867_v7  ;;  %vm2481_vm5 = vcmp.eq.s32.totalorder %v6535_v12, %v7793_v51 }
  0xf4   :  { %5410 = vmatprep.mubr.f32.mxu1 %v7873_v14  ;;  %6092 = vmatprep.subr.msk.bf16.mxu0 %vm7875_vm10, %v6411_v10  ;;  %vm7965_vm7 = vmpackc.low %vm2481_vm5, %vm2480_vm4  ;;  %vm2434_vm4 = vcmp.eq.s32.totalorder %v6632_v24, %v7787_v50  ;;  %vm2435_vm5 = vcmp.eq.s32.totalorder %v6635_v25, %v7787_v50 }
  0xf5   :  { %5355 = vmatmul.mubr.f32.gmra.mrb[66].mxu0 %v7883_v18  ;;  %6124 = vmatprep.subr.msk.bf16.mxu1 %vm7885_vm11, %v6411_v10  ;;  %vm8075_vm8 = vmpackc.low %vm2435_vm5, %vm2434_vm4 }
  0xf6   :  { %5411 = vmatmul.mubr.f32.gmra.mrb[66].mxu1 %v7897_v26  ;;  %6094 = vmatpush3.bf16.msk.msra.mxu0 %vm7875_vm10, %v6411_v10  ;;  %vm2482_vm10 = vcmp.eq.s32.totalorder %v6567_v16, %v7793_v51 }
  0xf7   :  { %6126 = vmatpush3.bf16.msk.msra.mxu1 %vm7885_vm11, %v6411_v10  ;;  %5357 = vmatprep.mubr.f32.mxu0 %v7907_v30  ;;  %vm2483_vm11 = vcmp.eq.s32.totalorder %v6570_v17, %v7793_v51 }
  0xf8   :  { %5413 = vmatprep.mubr.f32.mxu1 %v7913_v34  ;;  %6096 = vmatprep.subr.msk.bf16.mxu0 %vm7915_vm0, %v6411_v10  ;;  %vm8005_vm13 = vmpackc.low %vm2483_vm11, %vm2482_vm10  ;;  %vm2436_vm10 = vcmp.eq.s32.totalorder %v6666_v28, %v7787_v50  ;;  %vm2437_vm11 = vcmp.eq.s32.totalorder %v6669_v29, %v7787_v50  ;;  %v8144_v50 = vld [vmem:[#allocation8 + $0x78] sm:$0xff] }
  0xf9   :  { %5358 = vmatmul.mubr.f32.gmra.mrb[68].mxu0 %v7923_v32  ;;  %6128 = vmatprep.subr.msk.bf16.mxu1 %vm7925_vm1, %v6411_v10  ;;  %vm8122_vm14 = vmpackc.low %vm2437_vm11, %vm2436_vm10 }
  0xfa   :  { %5414 = vmatmul.mubr.f32.gmra.mrb[68].mxu1 %v7937_v19  ;;  %6098 = vmatpush3.bf16.msk.msra.mxu0 %vm7915_vm0, %v6411_v10  ;;  %vm2484_vm0 = vcmp.eq.s32.totalorder %v6598_v20, %v7793_v51 }
  0xfb   :  { %6130 = vmatpush3.bf16.msk.msra.mxu1 %vm7925_vm1, %v6411_v10  ;;  %5360 = vmatprep.mubr.f32.mxu0 %v7947_v23  ;;  %vm2485_vm1 = vcmp.eq.s32.totalorder %v6601_v21, %v7793_v51 }
  0xfc   :  { %5416 = vmatprep.mubr.f32.mxu1 %v7953_v33  ;;  %6100 = vmatprep.subr.msk.bf16.mxu0 %vm7955_vm6, %v6411_v10  ;;  %vm8045_vm3 = vmpackc.low %vm2485_vm1, %vm2484_vm0  ;;  %vm2888_vm0 = vcmp.eq.s32.totalorder %v6486_v1, %v8103_v49  ;;  %vm2889_vm1 = vcmp.eq.s32.totalorder %v6489_v2, %v8103_v49 }
  0xfd   :  { %5361 = vmatmul.mubr.f32.gmra.mrb[70].mxu0 %v7963_v42  ;;  %6132 = vmatprep.subr.msk.bf16.mxu1 %vm7965_vm7, %v6411_v10  ;;  %vm8158_vm4 = vmpackc.low %vm2889_vm1, %vm2888_vm0 }
  0xfe   :  { %5417 = vmatmul.mubr.f32.gmra.mrb[70].mxu1 %v7977_v31  ;;  %6102 = vmatpush3.bf16.msk.msra.mxu0 %vm7955_vm6, %v6411_v10  ;;  %vm2486_vm6 = vcmp.eq.s32.totalorder %v6632_v24, %v7793_v51 }
  0xff   :  { %6134 = vmatpush3.bf16.msk.msra.mxu1 %vm7965_vm7, %v6411_v10  ;;  %5363 = vmatprep.mubr.f32.mxu0 %v7987_v52  ;;  %vm2487_vm7 = vcmp.eq.s32.totalorder %v6635_v25, %v7793_v51 }
 0x100   :  { %5419 = vmatprep.mubr.f32.mxu1 %v7993_v54  ;;  %6104 = vmatprep.subr.msk.bf16.mxu0 %vm7995_vm12, %v6411_v10  ;;  %vm8085_vm9 = vmpackc.low %vm2487_vm7, %vm2486_vm6  ;;  %vm2890_vm6 = vcmp.eq.s32.totalorder %v6492_v3, %v8103_v49  ;;  %vm2891_vm7 = vcmp.eq.s32.totalorder %v6495_v4, %v8103_v49 }
 0x101   :  { %5364 = vmatmul.mubr.f32.gmra.mrb[72].mxu0 %v8003_v58  ;;  %6136 = vmatprep.subr.msk.bf16.mxu1 %vm8005_vm13, %v6411_v10  ;;  %vm8190_vm10 = vmpackc.low %vm2891_vm7, %vm2890_vm6 }
 0x102   :  { %5420 = vmatmul.mubr.f32.gmra.mrb[72].mxu1 %v8017_v60  ;;  %6106 = vmatpush3.bf16.msk.msra.mxu0 %vm7995_vm12, %v6411_v10  ;;  %vm2488_vm12 = vcmp.eq.s32.totalorder %v6666_v28, %v7793_v51 }
 0x103   :  { %6138 = vmatpush3.bf16.msk.msra.mxu1 %vm8005_vm13, %v6411_v10  ;;  %5366 = vmatprep.mubr.f32.mxu0 %v8027_v0  ;;  %vm2489_vm13 = vcmp.eq.s32.totalorder %v6669_v29, %v7793_v51 }
 0x104   :  { %5422 = vmatprep.mubr.f32.mxu1 %v8033_v9  ;;  %6108 = vmatprep.subr.msk.bf16.mxu0 %vm8035_vm2, %v6411_v10  ;;  %vm8132_vm15 = vmpackc.low %vm2489_vm13, %vm2488_vm12  ;;  %vm2892_vm12 = vcmp.eq.s32.totalorder %v6498_v5, %v8103_v49  ;;  %vm2893_vm13 = vcmp.eq.s32.totalorder %v6501_v6, %v8103_v49 }
 0x105   :  { %5367 = vmatmul.mubr.f32.gmra.mrb[74].mxu0 %v8043_v36  ;;  %6140 = vmatprep.subr.msk.bf16.mxu1 %vm8045_vm3, %v6411_v10  ;;  %vm8222_vm0 = vmpackc.low %vm2893_vm13, %vm2892_vm12 }
 0x106   :  { %5423 = vmatmul.mubr.f32.gmra.mrb[74].mxu1 %v8057_v38  ;;  %6110 = vmatpush3.bf16.msk.msra.mxu0 %vm8035_vm2, %v6411_v10  ;;  %vm2940_vm2 = vcmp.eq.s32.totalorder %v6486_v1, %v8111_v55 }
 0x107   :  { %6142 = vmatpush3.bf16.msk.msra.mxu1 %vm8045_vm3, %v6411_v10  ;;  %5369 = vmatprep.mubr.f32.mxu0 %v8067_v39  ;;  %vm2941_vm3 = vcmp.eq.s32.totalorder %v6489_v2, %v8111_v55 }
 0x108   :  { %5425 = vmatprep.mubr.f32.mxu1 %v8073_v41  ;;  %6112 = vmatprep.subr.msk.bf16.mxu0 %vm8075_vm8, %v6411_v10  ;;  %vm8166_vm5 = vmpackc.low %vm2941_vm3, %vm2940_vm2  ;;  %vm2894_vm2 = vcmp.eq.s32.totalorder %v6532_v11, %v8103_v49  ;;  %vm2895_vm3 = vcmp.eq.s32.totalorder %v6535_v12, %v8103_v49 }
 0x109   :  { %5370 = vmatmul.mubr.f32.gmra.mrb[76].mxu0 %v8083_v44  ;;  %6144 = vmatprep.subr.msk.bf16.mxu1 %vm8085_vm9, %v6411_v10  ;;  %vm8254_vm6 = vmpackc.low %vm2895_vm3, %vm2894_vm2 }
 0x10a   :  { %5426 = vmatmul.mubr.f32.gmra.mrb[76].mxu1 %v8097_v47  ;;  %6114 = vmatpush3.bf16.msk.msra.mxu0 %vm8075_vm8, %v6411_v10  ;;  %vm2942_vm8 = vcmp.eq.s32.totalorder %v6492_v3, %v8111_v55 }
 0x10b   :  { %6146 = vmatpush3.bf16.msk.msra.mxu1 %vm8085_vm9, %v6411_v10  ;;  %5372 = vmatprep.mubr.f32.mxu0 %v8109_v53  ;;  %vm2943_vm9 = vcmp.eq.s32.totalorder %v6495_v4, %v8111_v55 }
 0x10c   :  { %5428 = vmatprep.mubr.f32.mxu1 %v8117_v59  ;;  %6116 = vmatprep.subr.msk.bf16.mxu0 %vm8122_vm14, %v6411_v10  ;;  %vm8198_vm11 = vmpackc.low %vm2943_vm9, %vm2942_vm8  ;;  %vm2896_vm8 = vcmp.eq.s32.totalorder %v6567_v16, %v8103_v49  ;;  %vm2897_vm9 = vcmp.eq.s32.totalorder %v6570_v17, %v8103_v49 }
 0x10d   :  { %5373 = vmatmul.mubr.f32.gmra.mrb[78].mxu0 %v8130_v62  ;;  %6148 = vmatprep.subr.msk.bf16.mxu1 %vm8132_vm15, %v6411_v10  ;;  %vm8286_vm12 = vmpackc.low %vm2897_vm9, %vm2896_vm8 }
 0x10e   :  { %5429 = vmatmul.mubr.f32.gmra.mrb[78].mxu1 %v8144_v50  ;;  %6118 = vmatpush3.bf16.msk.msra.mxu0 %vm8122_vm14, %v6411_v10  ;;  %vm2944_vm14 = vcmp.eq.s32.totalorder %v6498_v5, %v8111_v55 }
 0x10f   :  { %6150 = vmatpush3.bf16.msk.msra.mxu1 %vm8132_vm15, %v6411_v10  ;;  %5463 = vmatprep.mubr.f32.mxu0 %v7827_v56  ;;  %vm2945_vm15 = vcmp.eq.s32.totalorder %v6501_v6, %v8111_v55 }
 0x110   :  { %5519 = vmatprep.mubr.f32.mxu1 %v7833_v57  ;;  %6152 = vmatprep.subr.msk.bf16.mxu0 %vm8158_vm4, %v6411_v10  ;;  %vm8230_vm1 = vmpackc.low %vm2945_vm15, %vm2944_vm14  ;;  %vm2898_vm14 = vcmp.eq.s32.totalorder %v6598_v20, %v8103_v49  ;;  %vm2899_vm15 = vcmp.eq.s32.totalorder %v6601_v21, %v8103_v49 }
 0x111   :  { %5464 = vmatmul.mubr.f32.vlgmr.msra.gmra.mrb[80].mxu0 %v7843_v61  ;;  %6184 = vmatprep.subr.msk.bf16.mxu1 %vm8166_vm5, %v6411_v10  ;;  %vm8318_vm2 = vmpackc.low %vm2899_vm15, %vm2898_vm14 }
 0x112   :  { %5520 = vmatmul.mubr.f32.vlgmr.msra.gmra.mrb[80].mxu1 %v7857_v63  ;;  %6154 = vmatpush3.bf16.msk.msra.mxu0 %vm8158_vm4, %v6411_v10  ;;  %vm2946_vm4 = vcmp.eq.s32.totalorder %v6532_v11, %v8111_v55 }
 0x113   :  { %6186 = vmatpush3.bf16.msk.msra.mxu1 %vm8166_vm5, %v6411_v10  ;;  %5466 = vmatprep.mubr.f32.mxu0 %v7867_v7  ;;  %vm2947_vm5 = vcmp.eq.s32.totalorder %v6535_v12, %v8111_v55 }
 0x114   :  { %5522 = vmatprep.mubr.f32.mxu1 %v7873_v14  ;;  %6156 = vmatprep.subr.msk.bf16.mxu0 %vm8190_vm10, %v6411_v10  ;;  %vm8262_vm7 = vmpackc.low %vm2947_vm5, %vm2946_vm4  ;;  %vm2900_vm4 = vcmp.eq.s32.totalorder %v6632_v24, %v8103_v49  ;;  %vm2901_vm5 = vcmp.eq.s32.totalorder %v6635_v25, %v8103_v49 }
 0x115   :  { %5467 = vmatmul.mubr.f32.gmra.mrb[82].mxu0 %v7883_v18  ;;  %6188 = vmatprep.subr.msk.bf16.mxu1 %vm8198_vm11, %v6411_v10  ;;  %vm8350_vm8 = vmpackc.low %vm2901_vm5, %vm2900_vm4 }
 0x116   :  { %5523 = vmatmul.mubr.f32.gmra.mrb[82].mxu1 %v7897_v26  ;;  %6158 = vmatpush3.bf16.msk.msra.mxu0 %vm8190_vm10, %v6411_v10  ;;  %vm2948_vm10 = vcmp.eq.s32.totalorder %v6567_v16, %v8111_v55 }
 0x117   :  { %6190 = vmatpush3.bf16.msk.msra.mxu1 %vm8198_vm11, %v6411_v10  ;;  %5469 = vmatprep.mubr.f32.mxu0 %v7907_v30  ;;  %vm2949_vm11 = vcmp.eq.s32.totalorder %v6570_v17, %v8111_v55 }
 0x118   :  { %5525 = vmatprep.mubr.f32.mxu1 %v7913_v34  ;;  %6160 = vmatprep.subr.msk.bf16.mxu0 %vm8222_vm0, %v6411_v10  ;;  %vm8294_vm13 = vmpackc.low %vm2949_vm11, %vm2948_vm10  ;;  %vm2902_vm10 = vcmp.eq.s32.totalorder %v6666_v28, %v8103_v49  ;;  %vm2903_vm11 = vcmp.eq.s32.totalorder %v6669_v29, %v8103_v49  ;;  %v8380_v49 = vld [vmem:[#allocation5 + $0x7] ss:$0 sm:$0xff] }
 0x119   :  { %5470 = vmatmul.mubr.f32.gmra.mrb[84].mxu0 %v7923_v32  ;;  %6192 = vmatprep.subr.msk.bf16.mxu1 %vm8230_vm1, %v6411_v10  ;;  %vm8386_vm14 = vmpackc.low %vm2903_vm11, %vm2902_vm10 }
 0x11a   :  { %5526 = vmatmul.mubr.f32.gmra.mrb[84].mxu1 %v7937_v19  ;;  %6162 = vmatpush3.bf16.msk.msra.mxu0 %vm8222_vm0, %v6411_v10  ;;  %vm2950_vm0 = vcmp.eq.s32.totalorder %v6598_v20, %v8111_v55 }
 0x11b   :  { %6194 = vmatpush3.bf16.msk.msra.mxu1 %vm8230_vm1, %v6411_v10  ;;  %5472 = vmatprep.mubr.f32.mxu0 %v7947_v23  ;;  %vm2951_vm1 = vcmp.eq.s32.totalorder %v6601_v21, %v8111_v55 }
 0x11c   :  { %5528 = vmatprep.mubr.f32.mxu1 %v7953_v33  ;;  %6164 = vmatprep.subr.msk.bf16.mxu0 %vm8254_vm6, %v6411_v10  ;;  %vm8326_vm3 = vmpackc.low %vm2951_vm1, %vm2950_vm0  ;;  %vm3354_vm0 = vcmp.eq.s32.totalorder %v6486_v1, %v8374_v35  ;;  %vm3355_vm1 = vcmp.eq.s32.totalorder %v6489_v2, %v8374_v35 }
 0x11d   :  { %5473 = vmatmul.mubr.f32.gmra.mrb[86].mxu0 %v7963_v42  ;;  %6196 = vmatprep.subr.msk.bf16.mxu1 %vm8262_vm7, %v6411_v10  ;;  %vm8418_vm4 = vmpackc.low %vm3355_vm1, %vm3354_vm0 }
 0x11e   :  { %5529 = vmatmul.mubr.f32.gmra.mrb[86].mxu1 %v7977_v31  ;;  %6166 = vmatpush3.bf16.msk.msra.mxu0 %vm8254_vm6, %v6411_v10  ;;  %vm2952_vm6 = vcmp.eq.s32.totalorder %v6632_v24, %v8111_v55 }
 0x11f   :  { %6198 = vmatpush3.bf16.msk.msra.mxu1 %vm8262_vm7, %v6411_v10  ;;  %5475 = vmatprep.mubr.f32.mxu0 %v7987_v52  ;;  %vm2953_vm7 = vcmp.eq.s32.totalorder %v6635_v25, %v8111_v55 }
 0x120   :  { %5531 = vmatprep.mubr.f32.mxu1 %v7993_v54  ;;  %6168 = vmatprep.subr.msk.bf16.mxu0 %vm8286_vm12, %v6411_v10  ;;  %vm8358_vm9 = vmpackc.low %vm2953_vm7, %vm2952_vm6  ;;  %vm3356_vm6 = vcmp.eq.s32.totalorder %v6492_v3, %v8374_v35  ;;  %vm3357_vm7 = vcmp.eq.s32.totalorder %v6495_v4, %v8374_v35 }
 0x121   :  { %5476 = vmatmul.mubr.f32.gmra.mrb[88].mxu0 %v8003_v58  ;;  %6200 = vmatprep.subr.msk.bf16.mxu1 %vm8294_vm13, %v6411_v10  ;;  %vm8450_vm10 = vmpackc.low %vm3357_vm7, %vm3356_vm6 }
 0x122   :  { %5532 = vmatmul.mubr.f32.gmra.mrb[88].mxu1 %v8017_v60  ;;  %6170 = vmatpush3.bf16.msk.msra.mxu0 %vm8286_vm12, %v6411_v10  ;;  %vm2954_vm12 = vcmp.eq.s32.totalorder %v6666_v28, %v8111_v55 }
 0x123   :  { %6202 = vmatpush3.bf16.msk.msra.mxu1 %vm8294_vm13, %v6411_v10  ;;  %5478 = vmatprep.mubr.f32.mxu0 %v8027_v0  ;;  %vm2955_vm13 = vcmp.eq.s32.totalorder %v6669_v29, %v8111_v55 }
 0x124   :  { %5534 = vmatprep.mubr.f32.mxu1 %v8033_v9  ;;  %6172 = vmatprep.subr.msk.bf16.mxu0 %vm8318_vm2, %v6411_v10  ;;  %vm8394_vm15 = vmpackc.low %vm2955_vm13, %vm2954_vm12  ;;  %vm3358_vm12 = vcmp.eq.s32.totalorder %v6498_v5, %v8374_v35  ;;  %vm3359_vm13 = vcmp.eq.s32.totalorder %v6501_v6, %v8374_v35 }
 0x125   :  { %5479 = vmatmul.mubr.f32.gmra.mrb[90].mxu0 %v8043_v36  ;;  %6204 = vmatprep.subr.msk.bf16.mxu1 %vm8326_vm3, %v6411_v10  ;;  %vm8482_vm0 = vmpackc.low %vm3359_vm13, %vm3358_vm12 }
 0x126   :  { %5535 = vmatmul.mubr.f32.gmra.mrb[90].mxu1 %v8057_v38  ;;  %6174 = vmatpush3.bf16.msk.msra.mxu0 %vm8318_vm2, %v6411_v10  ;;  %vm3406_vm2 = vcmp.eq.s32.totalorder %v6486_v1, %v8380_v49 }
 0x127   :  { %6206 = vmatpush3.bf16.msk.msra.mxu1 %vm8326_vm3, %v6411_v10  ;;  %5481 = vmatprep.mubr.f32.mxu0 %v8067_v39  ;;  %vm3407_vm3 = vcmp.eq.s32.totalorder %v6489_v2, %v8380_v49 }
 0x128   :  { %5537 = vmatprep.mubr.f32.mxu1 %v8073_v41  ;;  %6176 = vmatprep.subr.msk.bf16.mxu0 %vm8350_vm8, %v6411_v10  ;;  %vm8426_vm5 = vmpackc.low %vm3407_vm3, %vm3406_vm2  ;;  %vm3360_vm2 = vcmp.eq.s32.totalorder %v6532_v11, %v8374_v35  ;;  %vm3361_vm3 = vcmp.eq.s32.totalorder %v6535_v12, %v8374_v35 }
 0x129   :  { %5482 = vmatmul.mubr.f32.gmra.mrb[92].mxu0 %v8083_v44  ;;  %6208 = vmatprep.subr.msk.bf16.mxu1 %vm8358_vm9, %v6411_v10  ;;  %vm8514_vm6 = vmpackc.low %vm3361_vm3, %vm3360_vm2 }
 0x12a   :  { %5538 = vmatmul.mubr.f32.gmra.mrb[92].mxu1 %v8097_v47  ;;  %6178 = vmatpush3.bf16.msk.msra.mxu0 %vm8350_vm8, %v6411_v10  ;;  %vm3408_vm8 = vcmp.eq.s32.totalorder %v6492_v3, %v8380_v49 }
 0x12b   :  { %6210 = vmatpush3.bf16.msk.msra.mxu1 %vm8358_vm9, %v6411_v10  ;;  %5484 = vmatprep.mubr.f32.mxu0 %v8109_v53  ;;  %vm3409_vm9 = vcmp.eq.s32.totalorder %v6495_v4, %v8380_v49 }
 0x12c   :  { %5540 = vmatprep.mubr.f32.mxu1 %v8117_v59  ;;  %6180 = vmatprep.subr.msk.bf16.mxu0 %vm8386_vm14, %v6411_v10  ;;  %vm8458_vm11 = vmpackc.low %vm3409_vm9, %vm3408_vm8  ;;  %vm3362_vm8 = vcmp.eq.s32.totalorder %v6567_v16, %v8374_v35  ;;  %vm3363_vm9 = vcmp.eq.s32.totalorder %v6570_v17, %v8374_v35 }
 0x12d   :  { %5485 = vmatmul.mubr.f32.gmra.mrb[94].mxu0 %v8130_v62  ;;  %6212 = vmatprep.subr.msk.bf16.mxu1 %vm8394_vm15, %v6411_v10  ;;  %vm8546_vm12 = vmpackc.low %vm3363_vm9, %vm3362_vm8 }
 0x12e   :  { %5541 = vmatmul.mubr.f32.gmra.mrb[94].mxu1 %v8144_v50  ;;  %6182 = vmatpush3.bf16.msk.msra.mxu0 %vm8386_vm14, %v6411_v10  ;;  %vm3410_vm14 = vcmp.eq.s32.totalorder %v6498_v5, %v8380_v49 }
 0x12f   :  { %6214 = vmatpush3.bf16.msk.msra.mxu1 %vm8394_vm15, %v6411_v10  ;;  %5575 = vmatprep.mubr.f32.mxu0 %v7827_v56  ;;  %vm3411_vm15 = vcmp.eq.s32.totalorder %v6501_v6, %v8380_v49 }
 0x130   :  { %5631 = vmatprep.mubr.f32.mxu1 %v7833_v57  ;;  %6216 = vmatprep.subr.msk.bf16.mxu0 %vm8418_vm4, %v6411_v10  ;;  %vm8490_vm1 = vmpackc.low %vm3411_vm15, %vm3410_vm14  ;;  %vm3364_vm14 = vcmp.eq.s32.totalorder %v6598_v20, %v8374_v35  ;;  %vm3365_vm15 = vcmp.eq.s32.totalorder %v6601_v21, %v8374_v35 }
 0x131   :  { %5576 = vmatmul.mubr.f32.vlgmr.msra.gmra.mrb[96].mxu0 %v7843_v61  ;;  %6248 = vmatprep.subr.msk.bf16.mxu1 %vm8426_vm5, %v6411_v10  ;;  %vm8578_vm2 = vmpackc.low %vm3365_vm15, %vm3364_vm14 }
 0x132   :  { %5632 = vmatmul.mubr.f32.vlgmr.msra.gmra.mrb[96].mxu1 %v7857_v63  ;;  %6218 = vmatpush3.bf16.msk.msra.mxu0 %vm8418_vm4, %v6411_v10  ;;  %vm3412_vm4 = vcmp.eq.s32.totalorder %v6532_v11, %v8380_v49 }
 0x133   :  { %6250 = vmatpush3.bf16.msk.msra.mxu1 %vm8426_vm5, %v6411_v10  ;;  %5578 = vmatprep.mubr.f32.mxu0 %v7867_v7  ;;  %vm3413_vm5 = vcmp.eq.s32.totalorder %v6535_v12, %v8380_v49 }
 0x134   :  { %5634 = vmatprep.mubr.f32.mxu1 %v7873_v14  ;;  %6220 = vmatprep.subr.msk.bf16.mxu0 %vm8450_vm10, %v6411_v10  ;;  %vm8522_vm7 = vmpackc.low %vm3413_vm5, %vm3412_vm4  ;;  %vm3366_vm4 = vcmp.eq.s32.totalorder %v6632_v24, %v8374_v35  ;;  %vm3367_vm5 = vcmp.eq.s32.totalorder %v6635_v25, %v8374_v35 }
 0x135   :  { %5579 = vmatmul.mubr.f32.gmra.mrb[98].mxu0 %v7883_v18  ;;  %6252 = vmatprep.subr.msk.bf16.mxu1 %vm8458_vm11, %v6411_v10  ;;  %vm8610_vm8 = vmpackc.low %vm3367_vm5, %vm3366_vm4 }
 0x136   :  { %5635 = vmatmul.mubr.f32.gmra.mrb[98].mxu1 %v7897_v26  ;;  %6222 = vmatpush3.bf16.msk.msra.mxu0 %vm8450_vm10, %v6411_v10  ;;  %vm3414_vm10 = vcmp.eq.s32.totalorder %v6567_v16, %v8380_v49 }
 0x137   :  { %6254 = vmatpush3.bf16.msk.msra.mxu1 %vm8458_vm11, %v6411_v10  ;;  %5581 = vmatprep.mubr.f32.mxu0 %v7907_v30  ;;  %vm3415_vm11 = vcmp.eq.s32.totalorder %v6570_v17, %v8380_v49 }
 0x138   :  { %5637 = vmatprep.mubr.f32.mxu1 %v7913_v34  ;;  %6224 = vmatprep.subr.msk.bf16.mxu0 %vm8482_vm0, %v6411_v10  ;;  %vm8554_vm13 = vmpackc.low %vm3415_vm11, %vm3414_vm10  ;;  %vm3368_vm10 = vcmp.eq.s32.totalorder %v6666_v28, %v8374_v35  ;;  %vm3369_vm11 = vcmp.eq.s32.totalorder %v6669_v29, %v8374_v35 }
 0x139   :  { %5582 = vmatmul.mubr.f32.gmra.mrb[100].mxu0 %v7923_v32  ;;  %6256 = vmatprep.subr.msk.bf16.mxu1 %vm8490_vm1, %v6411_v10  ;;  %vm8645_vm14 = vmpackc.low %vm3369_vm11, %vm3368_vm10 }
 0x13a   :  { %5638 = vmatmul.mubr.f32.gmra.mrb[100].mxu1 %v7937_v19  ;;  %6226 = vmatpush3.bf16.msk.msra.mxu0 %vm8482_vm0, %v6411_v10  ;;  %vm3416_vm0 = vcmp.eq.s32.totalorder %v6598_v20, %v8380_v49 }
 0x13b   :  { %6258 = vmatpush3.bf16.msk.msra.mxu1 %vm8490_vm1, %v6411_v10  ;;  %5584 = vmatprep.mubr.f32.mxu0 %v7947_v23  ;;  %vm3417_vm1 = vcmp.eq.s32.totalorder %v6601_v21, %v8380_v49 }
 0x13c   :  { %5640 = vmatprep.mubr.f32.mxu1 %v7953_v33  ;;  %6228 = vmatprep.subr.msk.bf16.mxu0 %vm8514_vm6, %v6411_v10  ;;  %vm8586_vm3 = vmpackc.low %vm3417_vm1, %vm3416_vm0 }
 0x13d   :  { %5585 = vmatmul.mubr.f32.gmra.mrb[102].mxu0 %v7963_v42  ;;  %6260 = vmatprep.subr.msk.bf16.mxu1 %vm8522_vm7, %v6411_v10 }
 0x13e   :  { %5641 = vmatmul.mubr.f32.gmra.mrb[102].mxu1 %v7977_v31  ;;  %6230 = vmatpush3.bf16.msk.msra.mxu0 %vm8514_vm6, %v6411_v10  ;;  %vm3418_vm6 = vcmp.eq.s32.totalorder %v6632_v24, %v8380_v49 }
 0x13f   :  { %6262 = vmatpush3.bf16.msk.msra.mxu1 %vm8522_vm7, %v6411_v10  ;;  %5587 = vmatprep.mubr.f32.mxu0 %v7987_v52  ;;  %vm3419_vm7 = vcmp.eq.s32.totalorder %v6635_v25, %v8380_v49 }
 0x140   :  { %5643 = vmatprep.mubr.f32.mxu1 %v7993_v54  ;;  %6232 = vmatprep.subr.msk.bf16.mxu0 %vm8546_vm12, %v6411_v10  ;;  %vm8618_vm9 = vmpackc.low %vm3419_vm7, %vm3418_vm6 }
 0x141   :  { %5588 = vmatmul.mubr.f32.gmra.mrb[104].mxu0 %v8003_v58  ;;  %6264 = vmatprep.subr.msk.bf16.mxu1 %vm8554_vm13, %v6411_v10 }
 0x142   :  { %5644 = vmatmul.mubr.f32.gmra.mrb[104].mxu1 %v8017_v60  ;;  %6234 = vmatpush3.bf16.msk.msra.mxu0 %vm8546_vm12, %v6411_v10  ;;  %vm3420_vm12 = vcmp.eq.s32.totalorder %v6666_v28, %v8380_v49 }
 0x143   :  { %6266 = vmatpush3.bf16.msk.msra.mxu1 %vm8554_vm13, %v6411_v10  ;;  %5590 = vmatprep.mubr.f32.mxu0 %v8027_v0  ;;  %vm3421_vm13 = vcmp.eq.s32.totalorder %v6669_v29, %v8380_v49 }
 0x144   :  { %v4905_v21 = vpop.f32.mrb[0].mxu0  ;;  %5646 = vmatprep.mubr.f32.mxu1 %v8033_v9  ;;  %6236 = vmatprep.subr.msk.bf16.mxu0 %vm8578_vm2, %v6411_v10  ;;  %vm8656_vm15 = vmpackc.low %vm3421_vm13, %vm3420_vm12 }
 0x145   :  { %v4961_v48 = vpop.f32.mrb[0].mxu1  ;;  %v274_v46 = vpop.f32.mrb[1].mxu0  ;;  %5591 = vmatmul.mubr.f32.gmra.mrb[106].mxu0 %v8043_v36  ;;  %6268 = vmatprep.subr.msk.bf16.mxu1 %vm8586_vm3, %v6411_v10 }
 0x146   :  { %v515_v25 = vmul.f32 %v4961_v48, %v4905_v21  ;;  %v435_v27 = vpop.f32.mrb[1].mxu1  ;;  %5647 = vmatmul.mubr.f32.gmra.mrb[106].mxu1 %v8057_v38  ;;  %6238 = vmatpush3.bf16.msk.msra.mxu0 %vm8578_vm2, %v6411_v10 }
 0x147   :  { %v514_v37 = vmul.f32 %v435_v27, %v274_v46  ;;  %6270 = vmatpush3.bf16.msk.msra.mxu1 %vm8586_vm3, %v6411_v10  ;;  %5593 = vmatprep.mubr.f32.mxu0 %v8067_v39 }
 0x148   :  { %v4908_v43 = vpop.f32.mrb[2].mxu0  ;;  %5649 = vmatprep.mubr.f32.mxu1 %v8073_v41  ;;  %6240 = vmatprep.subr.msk.bf16.mxu0 %vm8610_vm8, %v6411_v10 }
 0x149   :  { %v530_v45 = vadd.f32 %v515_v25, %v514_v37  ;;  %v4964_v51 = vpop.f32.mrb[2].mxu1  ;;  %v284_v15 = vpop.f32.mrb[3].mxu0  ;;  %5594 = vmatmul.mubr.f32.gmra.mrb[108].mxu0 %v8083_v44  ;;  %6272 = vmatprep.subr.msk.bf16.mxu1 %vm8618_vm9, %v6411_v10 }
 0x14a   :  { %v517_v22 = vmul.f32 %v4964_v51, %v4908_v43  ;;  %v445_v8 = vpop.f32.mrb[3].mxu1  ;;  %5650 = vmatmul.mubr.f32.gmra.mrb[108].mxu1 %v8097_v47  ;;  %6242 = vmatpush3.bf16.msk.msra.mxu0 %vm8610_vm8, %v6411_v10 }
 0x14b   :  { %v516_v35 = vmul.f32 %v445_v8, %v284_v15  ;;  %6274 = vmatpush3.bf16.msk.msra.mxu1 %vm8618_vm9, %v6411_v10  ;;  %5596 = vmatprep.mubr.f32.mxu0 %v8109_v53 }
 0x14c   :  { %v4911_v40 = vpop.f32.mrb[4].mxu0  ;;  %5652 = vmatprep.mubr.f32.mxu1 %v8117_v59  ;;  %6244 = vmatprep.subr.msk.bf16.mxu0 %vm8645_vm14, %v6411_v10 }
 0x14d   :  { %v531_v1 = vadd.f32 %v530_v45, %v516_v35  ;;  %v4967_v28 = vpop.f32.mrb[4].mxu1  ;;  %v294_v49 = vpop.f32.mrb[5].mxu0  ;;  %5597 = vmatmul.mubr.f32.gmra.mrb[110].mxu0 %v8130_v62  ;;  %6276 = vmatprep.subr.msk.bf16.mxu1 %vm8656_vm15, %v6411_v10 }
 0x14e   :  { %v519_v2 = vmul.f32 %v4967_v28, %v4911_v40  ;;  %v455_v3 = vpop.f32.mrb[5].mxu1  ;;  %5653 = vmatmul.mubr.f32.gmra.mrb[110].mxu1 %v8144_v50  ;;  %6246 = vmatpush3.bf16.msk.msra.mxu0 %vm8645_vm14, %v6411_v10 }
 0x14f   :  { %v518_v4 = vmul.f32 %v455_v3, %v294_v49  ;;  %v532_v5 = vadd.f32 %v531_v1, %v517_v22  ;;  %6278 = vmatpush3.bf16.msk.msra.mxu1 %vm8656_vm15, %v6411_v10  ;;  %5687 = vmatprep.mubr.f32.mxu0 %v7827_v56 }
 0x150   :  { %v4914_v6 = vpop.f32.mrb[6].mxu0  ;;  %5743 = vmatprep.mubr.f32.mxu1 %v7833_v57 }
 0x151   :  { %v533_v11 = vadd.f32 %v532_v5, %v518_v4  ;;  %v4970_v12 = vpop.f32.mrb[6].mxu1  ;;  %v304_v16 = vpop.f32.mrb[7].mxu0  ;;  %5688 = vmatmul.mubr.f32.vlgmr.msra.gmra.mrb[112].mxu0 %v7843_v61 }
 0x152   :  { %v521_v17 = vmul.f32 %v4970_v12, %v4914_v6  ;;  %v465_v20 = vpop.f32.mrb[7].mxu1  ;;  %5744 = vmatmul.mubr.f32.vlgmr.msra.gmra.mrb[112].mxu1 %v7857_v63  ;;  %5690 = vmatprep.mubr.f32.mxu0 %v7867_v7 }
 0x153   :  { %v520_v21 = vmul.f32 %v465_v20, %v304_v16  ;;  %v534_v48 = vadd.f32 %v533_v11, %v519_v2  ;;  %5746 = vmatprep.mubr.f32.mxu1 %v7873_v14 }
 0x154   :  { %v4917_v10 = vpop.f32.mrb[8].mxu0 }
 0x155   :  { %v535_v56 = vadd.f32 %v534_v48, %v520_v21  ;;  %v4973_v46 = vpop.f32.mrb[8].mxu1  ;;  %v314_v24 = vpop.f32.mrb[9].mxu0  ;;  %5691 = vmatmul.mubr.f32.gmra.mrb[114].mxu0 %v7883_v18 }
 0x156   :  { %v523_v57 = vmul.f32 %v4973_v46, %v4917_v10  ;;  %v475_v25 = vpop.f32.mrb[9].mxu1  ;;  %5747 = vmatmul.mubr.f32.gmra.mrb[114].mxu1 %v7897_v26  ;;  %5693 = vmatprep.mubr.f32.mxu0 %v7907_v30 }
 0x157   :  { %v522_v61 = vmul.f32 %v475_v25, %v314_v24  ;;  %v536_v63 = vadd.f32 %v535_v56, %v521_v17  ;;  %5749 = vmatprep.mubr.f32.mxu1 %v7913_v34 }
 0x158   :  { %v4920_v7 = vpop.f32.mrb[10].mxu0 }
 0x159   :  { %v537_v27 = vadd.f32 %v536_v63, %v522_v61  ;;  %v4976_v13 = vpop.f32.mrb[10].mxu1  ;;  %v324_v14 = vpop.f32.mrb[11].mxu0  ;;  %5694 = vmatmul.mubr.f32.gmra.mrb[116].mxu0 %v7923_v32 }
 0x15a   :  { %v525_v37 = vmul.f32 %v4976_v13, %v4920_v7  ;;  %v485_v43 = vpop.f32.mrb[11].mxu1  ;;  %5750 = vmatmul.mubr.f32.gmra.mrb[116].mxu1 %v7937_v19  ;;  %5696 = vmatprep.mubr.f32.mxu0 %v7947_v23 }
 0x15b   :  { %v524_v18 = vmul.f32 %v485_v43, %v324_v14  ;;  %v538_v26 = vadd.f32 %v537_v27, %v523_v57  ;;  %5752 = vmatprep.mubr.f32.mxu1 %v7953_v33 }
 0x15c   :  { %v4923_v30 = vpop.f32.mrb[12].mxu0 }
 0x15d   :  { %v539_v45 = vadd.f32 %v538_v26, %v524_v18  ;;  %v4979_v51 = vpop.f32.mrb[12].mxu1  ;;  %v334_v34 = vpop.f32.mrb[13].mxu0  ;;  %5697 = vmatmul.mubr.f32.gmra.mrb[118].mxu0 %v7963_v42 }
 0x15e   :  { %v527_v15 = vmul.f32 %v4979_v51, %v4923_v30  ;;  %v495_v29 = vpop.f32.mrb[13].mxu1  ;;  %5753 = vmatmul.mubr.f32.gmra.mrb[118].mxu1 %v7977_v31  ;;  %5699 = vmatprep.mubr.f32.mxu0 %v7987_v52 }
 0x15f   :  { %v526_v32 = vmul.f32 %v495_v29, %v334_v34  ;;  %v540_v19 = vadd.f32 %v539_v45, %v525_v37  ;;  %5755 = vmatprep.mubr.f32.mxu1 %v7993_v54 }
 0x160   :  { %v4926_v23 = vpop.f32.mrb[14].mxu0 }
 0x161   :  { %v541_v22 = vadd.f32 %v540_v19, %v526_v32  ;;  %v4982_v8 = vpop.f32.mrb[14].mxu1  ;;  %v344_v33 = vpop.f32.mrb[15].mxu0  ;;  %5700 = vmatmul.mubr.f32.gmra.mrb[120].mxu0 %v8003_v58 }
 0x162   :  { %v529_v55 = vmul.f32 %v4982_v8, %v4926_v23  ;;  %v505_v35 = vpop.f32.mrb[15].mxu1  ;;  %5756 = vmatmul.mubr.f32.gmra.mrb[120].mxu1 %v8017_v60  ;;  %5702 = vmatprep.mubr.f32.mxu0 %v8027_v0 }
 0x163   :  { %v528_v42 = vmul.f32 %v505_v35, %v344_v33  ;;  %v542_v31 = vadd.f32 %v541_v22, %v527_v15  ;;  %5758 = vmatprep.mubr.f32.mxu1 %v8033_v9 }
 0x164   :  { %v5017_v52 = vpop.f32.mrb[16].mxu0 }
 0x165   :  { %v543_v40 = vadd.f32 %v542_v31, %v528_v42  ;;  %v5073_v1 = vpop.f32.mrb[16].mxu1  ;;  %v740_v54 = vpop.f32.mrb[17].mxu0  ;;  %5703 = vmatmul.mubr.f32.gmra.mrb[122].mxu0 %v8043_v36 }
 0x166   :  { %v981_v28 = vmul.f32 %v5073_v1, %v5017_v52  ;;  %v901_v49 = vpop.f32.mrb[17].mxu1  ;;  %5759 = vmatmul.mubr.f32.gmra.mrb[122].mxu1 %v8057_v38  ;;  %5705 = vmatprep.mubr.f32.mxu0 %v8067_v39 }
 0x167   :  { %v544_v58 = vadd.f32 %v543_v40, %v529_v55  ;;  %v980_v60 = vmul.f32 %v901_v49, %v740_v54  ;;  %5761 = vmatprep.mubr.f32.mxu1 %v8073_v41 }
 0x168   :  { %v5020_v0 = vpop.f32.mrb[18].mxu0 }
 0x169   :  { %v545_v2 = vrot.slane %v544_v58, 4  ;;  %v996_v3 = vadd.f32 %v981_v28, %v980_v60  ;;  %v5076_v9 = vpop.f32.mrb[18].mxu1  ;;  %v750_v4 = vpop.f32.mrb[19].mxu0  ;;  %5706 = vmatmul.mubr.f32.gmra.mrb[124].mxu0 %v8083_v44 }
 0x16a   :  { %v983_v5 = vmul.f32 %v5076_v9, %v5020_v0  ;;  %v911_v6 = vpop.f32.mrb[19].mxu1  ;;  %5762 = vmatmul.mubr.f32.gmra.mrb[124].mxu1 %v8097_v47  ;;  %5708 = vmatprep.mubr.f32.mxu0 %v8109_v53 }
 0x16b   :  { %v546_v36 = vadd.f32 %v545_v2, %v544_v58  ;;  %v982_v38 = vmul.f32 %v911_v6, %v750_v4  ;;  %5764 = vmatprep.mubr.f32.mxu1 %v8117_v59 }
 0x16c   :  { %v5023_v39 = vpop.f32.mrb[20].mxu0 }
 0x16d   :  { %v547_v11 = vrot.slane %v546_v36, 2  ;;  %v997_v41 = vadd.f32 %v996_v3, %v982_v38  ;;  %v5079_v12 = vpop.f32.mrb[20].mxu1  ;;  %v760_v16 = vpop.f32.mrb[21].mxu0  ;;  %5709 = vmatmul.mubr.f32.gmra.mrb[126].mxu0 %v8130_v62 }
 0x16e   :  { %v985_v17 = vmul.f32 %v5079_v12, %v5023_v39  ;;  %v921_v20 = vpop.f32.mrb[21].mxu1  ;;  %5765 = vmatmul.mubr.f32.gmra.mrb[126].mxu1 %v8144_v50 }
 0x16f   :  { %v548_v44 = vadd.f32 %v547_v11, %v546_v36  ;;  %v984_v21 = vmul.f32 %v921_v20, %v760_v16  ;;  %v998_v47 = vadd.f32 %v997_v41, %v983_v5 }
 0x170   :  { %v5026_v48 = vpop.f32.mrb[22].mxu0 }
 0x171   :  { %v549_v53 = vrot.slane %v548_v44, 1  ;;  %v999_v10 = vadd.f32 %v998_v47, %v984_v21  ;;  %v5082_v56 = vpop.f32.mrb[22].mxu1  ;;  %v770_v46 = vpop.f32.mrb[23].mxu0 }
 0x172   :  { %v987_v59 = vmul.f32 %v5082_v56, %v5026_v48  ;;  %v931_v24 = vpop.f32.mrb[23].mxu1 }
 0x173   :  { %v550_v57 = vadd.f32 %v549_v53, %v548_v44  ;;  %v986_v25 = vmul.f32 %v931_v24, %v770_v46  ;;  %v1000_v61 = vadd.f32 %v999_v10, %v985_v17 }
 0x174   :  { %v5029_v63 = vpop.f32.mrb[24].mxu0 }
 0x175   :  { %551 = vst [vmem:[#allocation10] sm:$0x1] %v550_v57  ;;  %v1001_v62 = vadd.f32 %v1000_v61, %v986_v25  ;;  %v5085_v7 = vpop.f32.mrb[24].mxu1  ;;  %v780_v27 = vpop.f32.mrb[25].mxu0 }
 0x176   :  { %v989_v13 = vmul.f32 %v5085_v7, %v5029_v63  ;;  %v941_v50 = vpop.f32.mrb[25].mxu1 }
 0x177   :  { %v988_v14 = vmul.f32 %v941_v50, %v780_v27  ;;  %v1002_v37 = vadd.f32 %v1001_v62, %v987_v59 }
 0x178   :  { %v5032_v43 = vpop.f32.mrb[26].mxu0 }
 0x179   :  { %v1003_v18 = vadd.f32 %v1002_v37, %v988_v14  ;;  %v5088_v26 = vpop.f32.mrb[26].mxu1  ;;  %v790_v30 = vpop.f32.mrb[27].mxu0 }
 0x17a   :  { %v991_v45 = vmul.f32 %v5088_v26, %v5032_v43  ;;  %v951_v51 = vpop.f32.mrb[27].mxu1 }
 0x17b   :  { %v990_v34 = vmul.f32 %v951_v51, %v790_v30  ;;  %v1004_v15 = vadd.f32 %v1003_v18, %v989_v13 }
 0x17c   :  { %v5035_v29 = vpop.f32.mrb[28].mxu0 }
 0x17d   :  { %v1005_v32 = vadd.f32 %v1004_v15, %v990_v34  ;;  %v5091_v19 = vpop.f32.mrb[28].mxu1  ;;  %v800_v23 = vpop.f32.mrb[29].mxu0 }
 0x17e   :  { %v993_v22 = vmul.f32 %v5091_v19, %v5035_v29  ;;  %v961_v8 = vpop.f32.mrb[29].mxu1 }
 0x17f   :  { %v992_v33 = vmul.f32 %v961_v8, %v800_v23  ;;  %v1006_v55 = vadd.f32 %v1005_v32, %v991_v45 }
 0x180   :  { %v5038_v35 = vpop.f32.mrb[30].mxu0 }
 0x181   :  { %v1007_v42 = vadd.f32 %v1006_v55, %v992_v33  ;;  %v5094_v31 = vpop.f32.mrb[30].mxu1  ;;  %v810_v52 = vpop.f32.mrb[31].mxu0 }
 0x182   :  { %v995_v40 = vmul.f32 %v5094_v31, %v5038_v35  ;;  %v971_v1 = vpop.f32.mrb[31].mxu1 }
 0x183   :  { %v994_v54 = vmul.f32 %v971_v1, %v810_v52  ;;  %v1008_v28 = vadd.f32 %v1007_v42, %v993_v22 }
 0x184   :  { %v5129_v49 = vpop.f32.mrb[32].mxu0 }
 0x185   :  { %v1009_v58 = vadd.f32 %v1008_v28, %v994_v54  ;;  %v5185_v60 = vpop.f32.mrb[32].mxu1  ;;  %v1206_v0 = vpop.f32.mrb[33].mxu0 }
 0x186   :  { %v1447_v2 = vmul.f32 %v5185_v60, %v5129_v49  ;;  %v1367_v3 = vpop.f32.mrb[33].mxu1 }
 0x187   :  { %v1010_v9 = vadd.f32 %v1009_v58, %v995_v40  ;;  %v1446_v4 = vmul.f32 %v1367_v3, %v1206_v0 }
 0x188   :  { %v5132_v5 = vpop.f32.mrb[34].mxu0 }
 0x189   :  { %v1011_v6 = vrot.slane %v1010_v9, 4  ;;  %v1462_v36 = vadd.f32 %v1447_v2, %v1446_v4  ;;  %v5188_v38 = vpop.f32.mrb[34].mxu1  ;;  %v1216_v39 = vpop.f32.mrb[35].mxu0 }
 0x18a   :  { %v1449_v11 = vmul.f32 %v5188_v38, %v5132_v5  ;;  %v1377_v41 = vpop.f32.mrb[35].mxu1 }
 0x18b   :  { %v1012_v12 = vadd.f32 %v1011_v6, %v1010_v9  ;;  %v1448_v16 = vmul.f32 %v1377_v41, %v1216_v39 }
 0x18c   :  { %v5135_v17 = vpop.f32.mrb[36].mxu0 }
 0x18d   :  { %v1013_v20 = vrot.slane %v1012_v12, 2  ;;  %v1463_v44 = vadd.f32 %v1462_v36, %v1448_v16  ;;  %v5191_v21 = vpop.f32.mrb[36].mxu1  ;;  %v1226_v47 = vpop.f32.mrb[37].mxu0 }
 0x18e   :  { %v1451_v48 = vmul.f32 %v5191_v21, %v5135_v17  ;;  %v1387_v53 = vpop.f32.mrb[37].mxu1 }
 0x18f   :  { %v1014_v10 = vadd.f32 %v1013_v20, %v1012_v12  ;;  %v1450_v56 = vmul.f32 %v1387_v53, %v1226_v47  ;;  %v1464_v46 = vadd.f32 %v1463_v44, %v1449_v11 }
 0x190   :  { %v5138_v59 = vpop.f32.mrb[38].mxu0 }
 0x191   :  { %v1015_v24 = vrot.slane %v1014_v10, 1  ;;  %v1465_v57 = vadd.f32 %v1464_v46, %v1450_v56  ;;  %v5194_v25 = vpop.f32.mrb[38].mxu1  ;;  %v1236_v61 = vpop.f32.mrb[39].mxu0 }
 0x192   :  { %v1453_v63 = vmul.f32 %v5194_v25, %v5138_v59  ;;  %v1397_v62 = vpop.f32.mrb[39].mxu1 }
 0x193   :  { %v1016_v7 = vadd.f32 %v1015_v24, %v1014_v10  ;;  %v1452_v27 = vmul.f32 %v1397_v62, %v1236_v61  ;;  %v1466_v13 = vadd.f32 %v1465_v57, %v1451_v48 }
 0x194   :  { %v5141_v50 = vpop.f32.mrb[40].mxu0 }
 0x195   :  { %1017 = vst [vmem:[#allocation10 + $0x1] sm:$0x1] %v1016_v7  ;;  %v1467_v14 = vadd.f32 %v1466_v13, %v1452_v27  ;;  %v5197_v37 = vpop.f32.mrb[40].mxu1  ;;  %v1246_v43 = vpop.f32.mrb[41].mxu0 }
 0x196   :  { %v1455_v18 = vmul.f32 %v5197_v37, %v5141_v50  ;;  %v1407_v26 = vpop.f32.mrb[41].mxu1 }
 0x197   :  { %v1454_v30 = vmul.f32 %v1407_v26, %v1246_v43  ;;  %v1468_v45 = vadd.f32 %v1467_v14, %v1453_v63 }
 0x198   :  { %v5144_v51 = vpop.f32.mrb[42].mxu0 }
 0x199   :  { %v1469_v34 = vadd.f32 %v1468_v45, %v1454_v30  ;;  %v5200_v15 = vpop.f32.mrb[42].mxu1  ;;  %v1256_v29 = vpop.f32.mrb[43].mxu0 }
 0x19a   :  { %v1457_v32 = vmul.f32 %v5200_v15, %v5144_v51  ;;  %v1417_v19 = vpop.f32.mrb[43].mxu1 }
 0x19b   :  { %v1456_v23 = vmul.f32 %v1417_v19, %v1256_v29  ;;  %v1470_v22 = vadd.f32 %v1469_v34, %v1455_v18 }
 0x19c   :  { %v5147_v8 = vpop.f32.mrb[44].mxu0 }
 0x19d   :  { %v1471_v33 = vadd.f32 %v1470_v22, %v1456_v23  ;;  %v5203_v55 = vpop.f32.mrb[44].mxu1  ;;  %v1266_v35 = vpop.f32.mrb[45].mxu0 }
 0x19e   :  { %v1459_v42 = vmul.f32 %v5203_v55, %v5147_v8  ;;  %v1427_v31 = vpop.f32.mrb[45].mxu1 }
 0x19f   :  { %v1458_v52 = vmul.f32 %v1427_v31, %v1266_v35  ;;  %v1472_v40 = vadd.f32 %v1471_v33, %v1457_v32 }
 0x1a0   :  { %v5150_v1 = vpop.f32.mrb[46].mxu0 }
 0x1a1   :  { %v1473_v54 = vadd.f32 %v1472_v40, %v1458_v52  ;;  %v5206_v28 = vpop.f32.mrb[46].mxu1  ;;  %v1276_v49 = vpop.f32.mrb[47].mxu0 }
 0x1a2   :  { %v1461_v58 = vmul.f32 %v5206_v28, %v5150_v1  ;;  %v1437_v60 = vpop.f32.mrb[47].mxu1 }
 0x1a3   :  { %v1460_v0 = vmul.f32 %v1437_v60, %v1276_v49  ;;  %v1474_v2 = vadd.f32 %v1473_v54, %v1459_v42 }
 0x1a4   :  { %v5241_v3 = vpop.f32.mrb[48].mxu0 }
 0x1a5   :  { %v1475_v9 = vadd.f32 %v1474_v2, %v1460_v0  ;;  %v5297_v4 = vpop.f32.mrb[48].mxu1  ;;  %v1672_v5 = vpop.f32.mrb[49].mxu0 }
 0x1a6   :  { %v1913_v6 = vmul.f32 %v5297_v4, %v5241_v3  ;;  %v1833_v36 = vpop.f32.mrb[49].mxu1 }
 0x1a7   :  { %v1476_v38 = vadd.f32 %v1475_v9, %v1461_v58  ;;  %v1912_v39 = vmul.f32 %v1833_v36, %v1672_v5 }
 0x1a8   :  { %v5244_v11 = vpop.f32.mrb[50].mxu0 }
 0x1a9   :  { %v1477_v41 = vrot.slane %v1476_v38, 4  ;;  %v1928_v12 = vadd.f32 %v1913_v6, %v1912_v39  ;;  %v5300_v16 = vpop.f32.mrb[50].mxu1  ;;  %v1682_v17 = vpop.f32.mrb[51].mxu0 }
 0x1aa   :  { %v1915_v20 = vmul.f32 %v5300_v16, %v5244_v11  ;;  %v1843_v44 = vpop.f32.mrb[51].mxu1 }
 0x1ab   :  { %v1478_v21 = vadd.f32 %v1477_v41, %v1476_v38  ;;  %v1914_v47 = vmul.f32 %v1843_v44, %v1682_v17 }
 0x1ac   :  { %v5247_v48 = vpop.f32.mrb[52].mxu0 }
 0x1ad   :  { %v1479_v53 = vrot.slane %v1478_v21, 2  ;;  %v1929_v10 = vadd.f32 %v1928_v12, %v1914_v47  ;;  %v5303_v56 = vpop.f32.mrb[52].mxu1  ;;  %v1692_v46 = vpop.f32.mrb[53].mxu0 }
 0x1ae   :  { %v1917_v59 = vmul.f32 %v5303_v56, %v5247_v48  ;;  %v1853_v24 = vpop.f32.mrb[53].mxu1 }
 0x1af   :  { %v1480_v57 = vadd.f32 %v1479_v53, %v1478_v21  ;;  %v1916_v25 = vmul.f32 %v1853_v24, %v1692_v46  ;;  %v1930_v61 = vadd.f32 %v1929_v10, %v1915_v20 }
 0x1b0   :  { %v5250_v63 = vpop.f32.mrb[54].mxu0 }
 0x1b1   :  { %v1481_v62 = vrot.slane %v1480_v57, 1  ;;  %v1931_v7 = vadd.f32 %v1930_v61, %v1916_v25  ;;  %v5306_v27 = vpop.f32.mrb[54].mxu1  ;;  %v1702_v13 = vpop.f32.mrb[55].mxu0 }
 0x1b2   :  { %v1919_v50 = vmul.f32 %v5306_v27, %v5250_v63  ;;  %v1863_v14 = vpop.f32.mrb[55].mxu1 }
 0x1b3   :  { %v1482_v37 = vadd.f32 %v1481_v62, %v1480_v57  ;;  %v1918_v43 = vmul.f32 %v1863_v14, %v1702_v13  ;;  %v1932_v18 = vadd.f32 %v1931_v7, %v1917_v59 }
 0x1b4   :  { %v5253_v26 = vpop.f32.mrb[56].mxu0 }
 0x1b5   :  { %1483 = vst [vmem:[#allocation10 + $0x2] sm:$0x1] %v1482_v37  ;;  %v1933_v30 = vadd.f32 %v1932_v18, %v1918_v43  ;;  %v5309_v45 = vpop.f32.mrb[56].mxu1  ;;  %v1712_v51 = vpop.f32.mrb[57].mxu0 }
 0x1b6   :  { %v1921_v34 = vmul.f32 %v5309_v45, %v5253_v26  ;;  %v1873_v15 = vpop.f32.mrb[57].mxu1 }
 0x1b7   :  { %v1920_v29 = vmul.f32 %v1873_v15, %v1712_v51  ;;  %v1934_v32 = vadd.f32 %v1933_v30, %v1919_v50 }
 0x1b8   :  { %v5256_v19 = vpop.f32.mrb[58].mxu0 }
 0x1b9   :  { %v1935_v23 = vadd.f32 %v1934_v32, %v1920_v29  ;;  %v5312_v22 = vpop.f32.mrb[58].mxu1  ;;  %v1722_v8 = vpop.f32.mrb[59].mxu0 }
 0x1ba   :  { %v1923_v33 = vmul.f32 %v5312_v22, %v5256_v19  ;;  %v1883_v55 = vpop.f32.mrb[59].mxu1 }
 0x1bb   :  { %v1922_v35 = vmul.f32 %v1883_v55, %v1722_v8  ;;  %v1936_v42 = vadd.f32 %v1935_v23, %v1921_v34 }
 0x1bc   :  { %v5259_v31 = vpop.f32.mrb[60].mxu0 }
 0x1bd   :  { %v1937_v52 = vadd.f32 %v1936_v42, %v1922_v35  ;;  %v5315_v40 = vpop.f32.mrb[60].mxu1  ;;  %v1732_v1 = vpop.f32.mrb[61].mxu0 }
 0x1be   :  { %v1925_v54 = vmul.f32 %v5315_v40, %v5259_v31  ;;  %v1893_v28 = vpop.f32.mrb[61].mxu1 }
 0x1bf   :  { %v1924_v49 = vmul.f32 %v1893_v28, %v1732_v1  ;;  %v1938_v58 = vadd.f32 %v1937_v52, %v1923_v33 }
 0x1c0   :  { %v5262_v60 = vpop.f32.mrb[62].mxu0 }
 0x1c1   :  { %v1939_v0 = vadd.f32 %v1938_v58, %v1924_v49  ;;  %v5318_v2 = vpop.f32.mrb[62].mxu1  ;;  %v1742_v3 = vpop.f32.mrb[63].mxu0 }
 0x1c2   :  { %v1927_v9 = vmul.f32 %v5318_v2, %v5262_v60  ;;  %v1903_v4 = vpop.f32.mrb[63].mxu1 }
 0x1c3   :  { %v1926_v5 = vmul.f32 %v1903_v4, %v1742_v3  ;;  %v1940_v6 = vadd.f32 %v1939_v0, %v1925_v54 }
 0x1c4   :  { %v5353_v36 = vpop.f32.mrb[64].mxu0 }
 0x1c5   :  { %v1941_v38 = vadd.f32 %v1940_v6, %v1926_v5  ;;  %v5409_v39 = vpop.f32.mrb[64].mxu1  ;;  %v2138_v11 = vpop.f32.mrb[65].mxu0 }
 0x1c6   :  { %v2379_v41 = vmul.f32 %v5409_v39, %v5353_v36  ;;  %v2299_v12 = vpop.f32.mrb[65].mxu1 }
 0x1c7   :  { %v1942_v16 = vadd.f32 %v1941_v38, %v1927_v9  ;;  %v2378_v17 = vmul.f32 %v2299_v12, %v2138_v11 }
 0x1c8   :  { %v5356_v20 = vpop.f32.mrb[66].mxu0 }
 0x1c9   :  { %v1943_v44 = vrot.slane %v1942_v16, 4  ;;  %v2394_v21 = vadd.f32 %v2379_v41, %v2378_v17  ;;  %v5412_v47 = vpop.f32.mrb[66].mxu1  ;;  %v2148_v48 = vpop.f32.mrb[67].mxu0 }
 0x1ca   :  { %v2381_v53 = vmul.f32 %v5412_v47, %v5356_v20  ;;  %v2309_v10 = vpop.f32.mrb[67].mxu1 }
 0x1cb   :  { %v1944_v56 = vadd.f32 %v1943_v44, %v1942_v16  ;;  %v2380_v46 = vmul.f32 %v2309_v10, %v2148_v48 }
 0x1cc   :  { %v5359_v59 = vpop.f32.mrb[68].mxu0 }
 0x1cd   :  { %v1945_v24 = vrot.slane %v1944_v56, 2  ;;  %v2395_v57 = vadd.f32 %v2394_v21, %v2380_v46  ;;  %v5415_v25 = vpop.f32.mrb[68].mxu1  ;;  %v2158_v61 = vpop.f32.mrb[69].mxu0 }
 0x1ce   :  { %v2383_v63 = vmul.f32 %v5415_v25, %v5359_v59  ;;  %v2319_v62 = vpop.f32.mrb[69].mxu1 }
 0x1cf   :  { %v1946_v7 = vadd.f32 %v1945_v24, %v1944_v56  ;;  %v2382_v27 = vmul.f32 %v2319_v62, %v2158_v61  ;;  %v2396_v13 = vadd.f32 %v2395_v57, %v2381_v53 }
 0x1d0   :  { %v5362_v50 = vpop.f32.mrb[70].mxu0 }
 0x1d1   :  { %v1947_v14 = vrot.slane %v1946_v7, 1  ;;  %v2397_v37 = vadd.f32 %v2396_v13, %v2382_v27  ;;  %v5418_v43 = vpop.f32.mrb[70].mxu1  ;;  %v2168_v18 = vpop.f32.mrb[71].mxu0 }
 0x1d2   :  { %v2385_v26 = vmul.f32 %v5418_v43, %v5362_v50  ;;  %v2329_v30 = vpop.f32.mrb[71].mxu1 }
 0x1d3   :  { %v1948_v45 = vadd.f32 %v1947_v14, %v1946_v7  ;;  %v2384_v51 = vmul.f32 %v2329_v30, %v2168_v18  ;;  %v2398_v34 = vadd.f32 %v2397_v37, %v2383_v63 }
 0x1d4   :  { %v5365_v15 = vpop.f32.mrb[72].mxu0 }
 0x1d5   :  { %1949 = vst [vmem:[#allocation10 + $0x3] sm:$0x1] %v1948_v45  ;;  %v2399_v29 = vadd.f32 %v2398_v34, %v2384_v51  ;;  %v5421_v32 = vpop.f32.mrb[72].mxu1  ;;  %v2178_v19 = vpop.f32.mrb[73].mxu0 }
 0x1d6   :  { %v2387_v23 = vmul.f32 %v5421_v32, %v5365_v15  ;;  %v2339_v22 = vpop.f32.mrb[73].mxu1 }
 0x1d7   :  { %v2386_v8 = vmul.f32 %v2339_v22, %v2178_v19  ;;  %v2400_v33 = vadd.f32 %v2399_v29, %v2385_v26 }
 0x1d8   :  { %v5368_v55 = vpop.f32.mrb[74].mxu0 }
 0x1d9   :  { %v2401_v35 = vadd.f32 %v2400_v33, %v2386_v8  ;;  %v5424_v42 = vpop.f32.mrb[74].mxu1  ;;  %v2188_v31 = vpop.f32.mrb[75].mxu0 }
 0x1da   :  { %v2389_v52 = vmul.f32 %v5424_v42, %v5368_v55  ;;  %v2349_v40 = vpop.f32.mrb[75].mxu1 }
 0x1db   :  { %v2388_v1 = vmul.f32 %v2349_v40, %v2188_v31  ;;  %v2402_v54 = vadd.f32 %v2401_v35, %v2387_v23 }
 0x1dc   :  { %v5371_v28 = vpop.f32.mrb[76].mxu0 }
 0x1dd   :  { %v2403_v49 = vadd.f32 %v2402_v54, %v2388_v1  ;;  %v5427_v58 = vpop.f32.mrb[76].mxu1  ;;  %v2198_v60 = vpop.f32.mrb[77].mxu0 }
 0x1de   :  { %v2391_v0 = vmul.f32 %v5427_v58, %v5371_v28  ;;  %v2359_v2 = vpop.f32.mrb[77].mxu1 }
 0x1df   :  { %v2390_v3 = vmul.f32 %v2359_v2, %v2198_v60  ;;  %v2404_v9 = vadd.f32 %v2403_v49, %v2389_v52 }
 0x1e0   :  { %v5374_v4 = vpop.f32.mrb[78].mxu0 }
 0x1e1   :  { %v2405_v5 = vadd.f32 %v2404_v9, %v2390_v3  ;;  %v5430_v6 = vpop.f32.mrb[78].mxu1  ;;  %v2208_v36 = vpop.f32.mrb[79].mxu0 }
 0x1e2   :  { %v2393_v38 = vmul.f32 %v5430_v6, %v5374_v4  ;;  %v2369_v39 = vpop.f32.mrb[79].mxu1 }
 0x1e3   :  { %v2392_v11 = vmul.f32 %v2369_v39, %v2208_v36  ;;  %v2406_v41 = vadd.f32 %v2405_v5, %v2391_v0 }
 0x1e4   :  { %v5465_v12 = vpop.f32.mrb[80].mxu0 }
 0x1e5   :  { %v2407_v16 = vadd.f32 %v2406_v41, %v2392_v11  ;;  %v5521_v17 = vpop.f32.mrb[80].mxu1  ;;  %v2604_v20 = vpop.f32.mrb[81].mxu0 }
 0x1e6   :  { %v2845_v44 = vmul.f32 %v5521_v17, %v5465_v12  ;;  %v2765_v21 = vpop.f32.mrb[81].mxu1 }
 0x1e7   :  { %v2408_v47 = vadd.f32 %v2407_v16, %v2393_v38  ;;  %v2844_v48 = vmul.f32 %v2765_v21, %v2604_v20 }
 0x1e8   :  { %v5468_v53 = vpop.f32.mrb[82].mxu0 }
 0x1e9   :  { %v2409_v10 = vrot.slane %v2408_v47, 4  ;;  %v2860_v56 = vadd.f32 %v2845_v44, %v2844_v48  ;;  %v5524_v46 = vpop.f32.mrb[82].mxu1  ;;  %v2614_v59 = vpop.f32.mrb[83].mxu0 }
 0x1ea   :  { %v2847_v24 = vmul.f32 %v5524_v46, %v5468_v53  ;;  %v2775_v57 = vpop.f32.mrb[83].mxu1 }
 0x1eb   :  { %v2410_v25 = vadd.f32 %v2409_v10, %v2408_v47  ;;  %v2846_v61 = vmul.f32 %v2775_v57, %v2614_v59 }
 0x1ec   :  { %v5471_v63 = vpop.f32.mrb[84].mxu0 }
 0x1ed   :  { %v2411_v62 = vrot.slane %v2410_v25, 2  ;;  %v2861_v7 = vadd.f32 %v2860_v56, %v2846_v61  ;;  %v5527_v27 = vpop.f32.mrb[84].mxu1  ;;  %v2624_v13 = vpop.f32.mrb[85].mxu0 }
 0x1ee   :  { %v2849_v50 = vmul.f32 %v5527_v27, %v5471_v63  ;;  %v2785_v14 = vpop.f32.mrb[85].mxu1 }
 0x1ef   :  { %v2412_v37 = vadd.f32 %v2411_v62, %v2410_v25  ;;  %v2848_v43 = vmul.f32 %v2785_v14, %v2624_v13  ;;  %v2862_v18 = vadd.f32 %v2861_v7, %v2847_v24 }
 0x1f0   :  { %v5474_v26 = vpop.f32.mrb[86].mxu0 }
 0x1f1   :  { %v2413_v30 = vrot.slane %v2412_v37, 1  ;;  %v2863_v45 = vadd.f32 %v2862_v18, %v2848_v43  ;;  %v5530_v51 = vpop.f32.mrb[86].mxu1  ;;  %v2634_v34 = vpop.f32.mrb[87].mxu0 }
 0x1f2   :  { %v2851_v15 = vmul.f32 %v5530_v51, %v5474_v26  ;;  %v2795_v29 = vpop.f32.mrb[87].mxu1 }
 0x1f3   :  { %v2414_v32 = vadd.f32 %v2413_v30, %v2412_v37  ;;  %v2850_v19 = vmul.f32 %v2795_v29, %v2634_v34  ;;  %v2864_v23 = vadd.f32 %v2863_v45, %v2849_v50 }
 0x1f4   :  { %v5477_v22 = vpop.f32.mrb[88].mxu0 }
 0x1f5   :  { %2415 = vst [vmem:[#allocation10 + $0x4] sm:$0x1] %v2414_v32  ;;  %v2865_v8 = vadd.f32 %v2864_v23, %v2850_v19  ;;  %v5533_v33 = vpop.f32.mrb[88].mxu1  ;;  %v2644_v55 = vpop.f32.mrb[89].mxu0 }
 0x1f6   :  { %v2853_v35 = vmul.f32 %v5533_v33, %v5477_v22  ;;  %v2805_v42 = vpop.f32.mrb[89].mxu1 }
 0x1f7   :  { %v2852_v31 = vmul.f32 %v2805_v42, %v2644_v55  ;;  %v2866_v52 = vadd.f32 %v2865_v8, %v2851_v15 }
 0x1f8   :  { %v5480_v40 = vpop.f32.mrb[90].mxu0 }
 0x1f9   :  { %v2867_v1 = vadd.f32 %v2866_v52, %v2852_v31  ;;  %v5536_v54 = vpop.f32.mrb[90].mxu1  ;;  %v2654_v28 = vpop.f32.mrb[91].mxu0 }
 0x1fa   :  { %v2855_v49 = vmul.f32 %v5536_v54, %v5480_v40  ;;  %v2815_v58 = vpop.f32.mrb[91].mxu1 }
 0x1fb   :  { %v2854_v60 = vmul.f32 %v2815_v58, %v2654_v28  ;;  %v2868_v0 = vadd.f32 %v2867_v1, %v2853_v35 }
 0x1fc   :  { %v5483_v2 = vpop.f32.mrb[92].mxu0 }
 0x1fd   :  { %v2869_v3 = vadd.f32 %v2868_v0, %v2854_v60  ;;  %v5539_v9 = vpop.f32.mrb[92].mxu1  ;;  %v2664_v4 = vpop.f32.mrb[93].mxu0 }
 0x1fe   :  { %v2857_v5 = vmul.f32 %v5539_v9, %v5483_v2  ;;  %v2825_v6 = vpop.f32.mrb[93].mxu1 }
 0x1ff   :  { %v2856_v36 = vmul.f32 %v2825_v6, %v2664_v4  ;;  %v2870_v38 = vadd.f32 %v2869_v3, %v2855_v49 }
 0x200   :  { %v5486_v39 = vpop.f32.mrb[94].mxu0 }
 0x201   :  { %v2871_v11 = vadd.f32 %v2870_v38, %v2856_v36  ;;  %v5542_v41 = vpop.f32.mrb[94].mxu1  ;;  %v2674_v12 = vpop.f32.mrb[95].mxu0 }
 0x202   :  { %v2859_v16 = vmul.f32 %v5542_v41, %v5486_v39  ;;  %v2835_v17 = vpop.f32.mrb[95].mxu1 }
 0x203   :  { %v2858_v20 = vmul.f32 %v2835_v17, %v2674_v12  ;;  %v2872_v44 = vadd.f32 %v2871_v11, %v2857_v5 }
 0x204   :  { %v5577_v21 = vpop.f32.mrb[96].mxu0 }
 0x205   :  { %v2873_v47 = vadd.f32 %v2872_v44, %v2858_v20  ;;  %v5633_v48 = vpop.f32.mrb[96].mxu1  ;;  %v3070_v53 = vpop.f32.mrb[97].mxu0 }
 0x206   :  { %v3311_v10 = vmul.f32 %v5633_v48, %v5577_v21  ;;  %v3231_v56 = vpop.f32.mrb[97].mxu1 }
 0x207   :  { %v2874_v46 = vadd.f32 %v2873_v47, %v2859_v16  ;;  %v3310_v59 = vmul.f32 %v3231_v56, %v3070_v53 }
 0x208   :  { %v5580_v24 = vpop.f32.mrb[98].mxu0 }
 0x209   :  { %v2875_v57 = vrot.slane %v2874_v46, 4  ;;  %v3326_v25 = vadd.f32 %v3311_v10, %v3310_v59  ;;  %v5636_v61 = vpop.f32.mrb[98].mxu1  ;;  %v3080_v63 = vpop.f32.mrb[99].mxu0 }
 0x20a   :  { %v3313_v62 = vmul.f32 %v5636_v61, %v5580_v24  ;;  %v3241_v7 = vpop.f32.mrb[99].mxu1 }
 0x20b   :  { %v2876_v27 = vadd.f32 %v2875_v57, %v2874_v46  ;;  %v3312_v13 = vmul.f32 %v3241_v7, %v3080_v63 }
 0x20c   :  { %v5583_v50 = vpop.f32.mrb[100].mxu0 }
 0x20d   :  { %v2877_v14 = vrot.slane %v2876_v27, 2  ;;  %v3327_v37 = vadd.f32 %v3326_v25, %v3312_v13  ;;  %v5639_v43 = vpop.f32.mrb[100].mxu1  ;;  %v3090_v18 = vpop.f32.mrb[101].mxu0 }
 0x20e   :  { %v3315_v26 = vmul.f32 %v5639_v43, %v5583_v50  ;;  %v3251_v30 = vpop.f32.mrb[101].mxu1 }
 0x20f   :  { %v2878_v45 = vadd.f32 %v2877_v14, %v2876_v27  ;;  %v3314_v51 = vmul.f32 %v3251_v30, %v3090_v18  ;;  %v3328_v34 = vadd.f32 %v3327_v37, %v3313_v62 }
 0x210   :  { %v5586_v15 = vpop.f32.mrb[102].mxu0 }
 0x211   :  { %v2879_v29 = vrot.slane %v2878_v45, 1  ;;  %v3329_v32 = vadd.f32 %v3328_v34, %v3314_v51  ;;  %v5642_v19 = vpop.f32.mrb[102].mxu1  ;;  %v3100_v23 = vpop.f32.mrb[103].mxu0 }
 0x212   :  { %v3317_v22 = vmul.f32 %v5642_v19, %v5586_v15  ;;  %v3261_v8 = vpop.f32.mrb[103].mxu1 }
 0x213   :  { %v2880_v33 = vadd.f32 %v2879_v29, %v2878_v45  ;;  %v3316_v55 = vmul.f32 %v3261_v8, %v3100_v23  ;;  %v3330_v35 = vadd.f32 %v3329_v32, %v3315_v26 }
 0x214   :  { %v5589_v42 = vpop.f32.mrb[104].mxu0 }
 0x215   :  { %2881 = vst [vmem:[#allocation10 + $0x5] sm:$0x1] %v2880_v33  ;;  %v3331_v31 = vadd.f32 %v3330_v35, %v3316_v55  ;;  %v5645_v52 = vpop.f32.mrb[104].mxu1  ;;  %v3110_v40 = vpop.f32.mrb[105].mxu0 }
 0x216   :  { %v3319_v1 = vmul.f32 %v5645_v52, %v5589_v42  ;;  %v3271_v54 = vpop.f32.mrb[105].mxu1 }
 0x217   :  { %v3318_v28 = vmul.f32 %v3271_v54, %v3110_v40  ;;  %v3332_v49 = vadd.f32 %v3331_v31, %v3317_v22 }
 0x218   :  { %v5592_v58 = vpop.f32.mrb[106].mxu0 }
 0x219   :  { %v3333_v60 = vadd.f32 %v3332_v49, %v3318_v28  ;;  %v5648_v0 = vpop.f32.mrb[106].mxu1  ;;  %v3120_v2 = vpop.f32.mrb[107].mxu0 }
 0x21a   :  { %v3321_v3 = vmul.f32 %v5648_v0, %v5592_v58  ;;  %v3281_v9 = vpop.f32.mrb[107].mxu1 }
 0x21b   :  { %v3320_v4 = vmul.f32 %v3281_v9, %v3120_v2  ;;  %v3334_v5 = vadd.f32 %v3333_v60, %v3319_v1 }
 0x21c   :  { %v5595_v6 = vpop.f32.mrb[108].mxu0 }
 0x21d   :  { %v3335_v36 = vadd.f32 %v3334_v5, %v3320_v4  ;;  %v5651_v38 = vpop.f32.mrb[108].mxu1  ;;  %v3130_v39 = vpop.f32.mrb[109].mxu0 }
 0x21e   :  { %v3323_v11 = vmul.f32 %v5651_v38, %v5595_v6  ;;  %v3291_v41 = vpop.f32.mrb[109].mxu1 }
 0x21f   :  { %v3322_v12 = vmul.f32 %v3291_v41, %v3130_v39  ;;  %v3336_v16 = vadd.f32 %v3335_v36, %v3321_v3 }
 0x220   :  { %v5598_v17 = vpop.f32.mrb[110].mxu0 }
 0x221   :  { %v3337_v20 = vadd.f32 %v3336_v16, %v3322_v12  ;;  %v5654_v44 = vpop.f32.mrb[110].mxu1  ;;  %v3140_v21 = vpop.f32.mrb[111].mxu0 }
 0x222   :  { %v3325_v47 = vmul.f32 %v5654_v44, %v5598_v17  ;;  %v3301_v48 = vpop.f32.mrb[111].mxu1 }
 0x223   :  { %v3324_v53 = vmul.f32 %v3301_v48, %v3140_v21  ;;  %v3338_v10 = vadd.f32 %v3337_v20, %v3323_v11 }
 0x224   :  { %v5689_v56 = vpop.f32.mrb[112].mxu0 }
 0x225   :  { %v3339_v46 = vadd.f32 %v3338_v10, %v3324_v53  ;;  %v5745_v59 = vpop.f32.mrb[112].mxu1  ;;  %v3536_v24 = vpop.f32.mrb[113].mxu0 }
 0x226   :  { %v3777_v57 = vmul.f32 %v5745_v59, %v5689_v56  ;;  %v3697_v25 = vpop.f32.mrb[113].mxu1 }
 0x227   :  { %v3340_v61 = vadd.f32 %v3339_v46, %v3325_v47  ;;  %v3776_v63 = vmul.f32 %v3697_v25, %v3536_v24 }
 0x228   :  { %v5692_v62 = vpop.f32.mrb[114].mxu0 }
 0x229   :  { %v3341_v7 = vrot.slane %v3340_v61, 4  ;;  %v3792_v27 = vadd.f32 %v3777_v57, %v3776_v63  ;;  %v5748_v13 = vpop.f32.mrb[114].mxu1  ;;  %v3546_v50 = vpop.f32.mrb[115].mxu0 }
 0x22a   :  { %v3779_v14 = vmul.f32 %v5748_v13, %v5692_v62  ;;  %v3707_v37 = vpop.f32.mrb[115].mxu1 }
 0x22b   :  { %v3342_v43 = vadd.f32 %v3341_v7, %v3340_v61  ;;  %v3778_v18 = vmul.f32 %v3707_v37, %v3546_v50 }
 0x22c   :  { %v5695_v26 = vpop.f32.mrb[116].mxu0 }
 0x22d   :  { %v3343_v30 = vrot.slane %v3342_v43, 2  ;;  %v3793_v45 = vadd.f32 %v3792_v27, %v3778_v18  ;;  %v5751_v51 = vpop.f32.mrb[116].mxu1  ;;  %v3556_v34 = vpop.f32.mrb[117].mxu0 }
 0x22e   :  { %v3781_v15 = vmul.f32 %v5751_v51, %v5695_v26  ;;  %v3717_v29 = vpop.f32.mrb[117].mxu1 }
 0x22f   :  { %v3344_v32 = vadd.f32 %v3343_v30, %v3342_v43  ;;  %v3780_v19 = vmul.f32 %v3717_v29, %v3556_v34  ;;  %v3794_v23 = vadd.f32 %v3793_v45, %v3779_v14 }
 0x230   :  { %v5698_v22 = vpop.f32.mrb[118].mxu0 }
 0x231   :  { %v3345_v8 = vrot.slane %v3344_v32, 1  ;;  %v3795_v33 = vadd.f32 %v3794_v23, %v3780_v19  ;;  %v5754_v55 = vpop.f32.mrb[118].mxu1  ;;  %v3566_v35 = vpop.f32.mrb[119].mxu0 }
 0x232   :  { %v3783_v42 = vmul.f32 %v5754_v55, %v5698_v22  ;;  %v3727_v31 = vpop.f32.mrb[119].mxu1 }
 0x233   :  { %v3346_v52 = vadd.f32 %v3345_v8, %v3344_v32  ;;  %v3782_v40 = vmul.f32 %v3727_v31, %v3566_v35  ;;  %v3796_v1 = vadd.f32 %v3795_v33, %v3781_v15 }
 0x234   :  { %v5701_v54 = vpop.f32.mrb[120].mxu0 }
 0x235   :  { %3347 = vst [vmem:[#allocation10 + $0x6] sm:$0x1] %v3346_v52  ;;  %v3797_v28 = vadd.f32 %v3796_v1, %v3782_v40  ;;  %v5757_v49 = vpop.f32.mrb[120].mxu1  ;;  %v3576_v58 = vpop.f32.mrb[121].mxu0 }
 0x236   :  { %v3785_v60 = vmul.f32 %v5757_v49, %v5701_v54  ;;  %v3737_v0 = vpop.f32.mrb[121].mxu1 }
 0x237   :  { %v3784_v2 = vmul.f32 %v3737_v0, %v3576_v58  ;;  %v3798_v3 = vadd.f32 %v3797_v28, %v3783_v42 }
 0x238   :  { %v5704_v9 = vpop.f32.mrb[122].mxu0 }
 0x239   :  { %v3799_v4 = vadd.f32 %v3798_v3, %v3784_v2  ;;  %v5760_v5 = vpop.f32.mrb[122].mxu1  ;;  %v3586_v6 = vpop.f32.mrb[123].mxu0 }
 0x23a   :  { %v3787_v36 = vmul.f32 %v5760_v5, %v5704_v9  ;;  %v3747_v38 = vpop.f32.mrb[123].mxu1 }
 0x23b   :  { %v3786_v39 = vmul.f32 %v3747_v38, %v3586_v6  ;;  %v3800_v11 = vadd.f32 %v3799_v4, %v3785_v60 }
 0x23c   :  { %v5707_v41 = vpop.f32.mrb[124].mxu0 }
 0x23d   :  { %v3801_v12 = vadd.f32 %v3800_v11, %v3786_v39  ;;  %v5763_v16 = vpop.f32.mrb[124].mxu1  ;;  %v3596_v17 = vpop.f32.mrb[125].mxu0 }
 0x23e   :  { %v3789_v20 = vmul.f32 %v5763_v16, %v5707_v41  ;;  %v3757_v44 = vpop.f32.mrb[125].mxu1 }
 0x23f   :  { %v3788_v21 = vmul.f32 %v3757_v44, %v3596_v17  ;;  %v3802_v47 = vadd.f32 %v3801_v12, %v3787_v36 }
 0x240   :  { %v5710_v48 = vpop.f32.mrb[126].mxu0 }
 0x241   :  { %v3803_v53 = vadd.f32 %v3802_v47, %v3788_v21  ;;  %v5766_v10 = vpop.f32.mrb[126].mxu1  ;;  %v3606_v56 = vpop.f32.mrb[127].mxu0 }
 0x242   :  { %v3791_v46 = vmul.f32 %v5766_v10, %v5710_v48  ;;  %v3767_v59 = vpop.f32.mrb[127].mxu1 }
 0x243   :  { %v3790_v24 = vmul.f32 %v3767_v59, %v3606_v56  ;;  %v3804_v57 = vadd.f32 %v3803_v53, %v3789_v20 }
 0x245   :  { %v3805_v25 = vadd.f32 %v3804_v57, %v3790_v24 }
 0x247   :  { %v3806_v61 = vadd.f32 %v3805_v25, %v3791_v46 }
 0x249   :  { %v3807_v63 = vrot.slane %v3806_v61, 4 }
 0x24b   :  { %v3808_v62 = vadd.f32 %v3807_v63, %v3806_v61 }
 0x24d   :  { %v3809_v7 = vrot.slane %v3808_v62, 2 }
 0x24f   :  { %v3810_v27 = vadd.f32 %v3809_v7, %v3808_v62 }
 0x251   :  { %v3811_v13 = vrot.slane %v3810_v27, 1 }
 0x253   :  { %v3812_v50 = vadd.f32 %v3811_v13, %v3810_v27 }
 0x255   :  { %3813 = vst [vmem:[#allocation10 + $0x7] sm:$0x1] %v3812_v50 }
 0x256   :  { %6386 = shalt.err (!%p6383_p8)
}
 0x257   :  { %s6387_s13 = scalar_lea.hbm %s8727_s4, 128 }
 0x258   :  { %p6388_p9 = scmp.ne.s32.totalorder %s8727_s4, %s6387_s13  ;;  %p6391_p10 = scmp.lt.u32.totalorder %s6387_s13, %s8727_s4 }
 0x25a   :  { %p6393_p11 = pnand %p6391_p10, %p6388_p9 }
 0x25c   :  { %6396 = shalt.err (!%p6393_p11)
}
 0x25d   :  { %3823 = dma.vmem_to_hbm [thread:$0]  %s3821_s10, 128, %s8727_s4, [#allocation4]  }
 0x25e   :  { %6403 = dma.done.wait [#allocation4], 128  }
 0x25f   :  { %6404 = vsyncadd [#allocation4], 4294967168 }
 0x260   :  { %3827 = vsyncpa [#allocation3], 1 }
 0x261   :  { %3828 = vsyncpa [#allocation6], 1 }
 0x262   :  { %3829 = vsyncpa [#allocation9], 1 }
 0x263   :  { %3830 = vsyncpa [#allocation4], 1 }

</bundles_post_ra>
